<compile_context>
chip_gen: v6e
topology: v6e:2x2x1
jax: 0.10.0
libtpu: 0.0.40
codegen_flags: <defaults>
</compile_context>

<pallas_src>
import functools

import jax
import jax.numpy as jnp
from jax.experimental import pallas as pl
from jax.experimental.pallas import tpu as pltpu


# ----------------------------- small helpers ------------------------------ #
def _leaky_relu(x, alpha):
    return jnp.where(x >= 0, x, alpha * x)


def _softmax_axis1(x, approx):
    """Softmax over axis=1 of (i, j, batch) scores (== torch softmax(dim=2))."""
    m = jnp.max(x, axis=1, keepdims=True)
    p = jnp.exp(x - m)
    s = jnp.sum(p, axis=1, keepdims=True)
    if approx:
        # ~1e-3 relative deviation from an exact softmax; toggle via
        # gat_forward(..., approx_softmax=False) for bit-closer numerics.
        return p * pl.reciprocal(s, approx=True)
    return p / s


# ------------------------------- the kernel -------------------------------- #
def mtad_gat_kernel(T, F, H, E_f, E_t, alpha, approx,
                    x_ref,
                    w_conv_ref, b_conv_ref, w_big_ref,
                    f_blin_ref, f_a_ref, f_bias_ref,
                    t_blin_ref, t_a_ref, t_bias_ref,
                    w_gf_ref, w_gt_ref, w_h_ref, b_xg_ref, b_hg_ref,
                    fc1_w_ref, fc1_b_ref, fc2_w_ref, fc2_b_ref,
                    out_ref):
    f32 = jnp.float32
    BB = x_ref.shape[1]                    # batch block = lane axis everywhere

    # ---- ConvLayer: time-unrolled conv == one Toeplitz matmul + ReLU --------
    # xc[t*F+f, b] = relu(sum_{s,c} Wc[t*F+f, s*F+c] * x[s*F+c, b] + bc[f])
    xc = jnp.maximum(
        jnp.dot(w_conv_ref[...], x_ref[...], preferred_element_type=f32)
        + b_conv_ref[...], 0.0)                                   # (T*F, BB)
    xc3 = xc.reshape(T, F, BB)

    # ---- fused projections: feat-GAT L/R, temp-GAT L/R, GRU x-gates ---------
    P = jnp.dot(w_big_ref[...], xc, preferred_element_type=f32)   # (nPf+nPt+3HT, BB)
    nPf, nPt = 2 * E_f * F, 2 * E_t * T
    Pf = P[:nPf].reshape(2 * E_f, F, BB)            # rows ordered (e, node i)
    Pt = P[nPf:nPf + nPt].reshape(2 * E_t, T, BB)   # rows ordered (e, node t)
    xg_x = P[nPf + nPt:]                            # (T*3H, BB)

    # ---- FeatureAttentionLayer (GATv2): nodes = features, node dim = T ------
    Lf = Pf[:E_f]                                            # (E_f, F, BB), node i
    Rf = Pf[E_f:] + f_blin_ref[...].reshape(E_f, 1, 1)       # node j (+ lin bias)
    act_f = _leaky_relu(Lf[:, :, None, :] + Rf[:, None, :, :], alpha)  # (E_f,F,F,BB)
    e_f = (jnp.sum(act_f * f_a_ref[...].reshape(E_f, 1, 1, 1), axis=0)
           + f_bias_ref[...][..., None])                     # (F, F, BB)
    att_f = _softmax_axis1(e_f, approx)                      # softmax over j
    # h_feat[t, i, b] = sigmoid(sum_j att_f[i, j, b] * xc[t, j, b])
    h_feat = jax.nn.sigmoid(
        jnp.sum(att_f[None, :, :, :] * xc3[:, None, :, :], axis=2))    # (T, F, BB)

    # ---- TemporalAttentionLayer (GATv2): nodes = timesteps, node dim = F ----
    Lt = Pt[:E_t]
    Rt = Pt[E_t:] + t_blin_ref[...].reshape(E_t, 1, 1)
    act_t = _leaky_relu(Lt[:, :, None, :] + Rt[:, None, :, :], alpha)  # (E_t,T,T,BB)
    e_t = (jnp.sum(act_t * t_a_ref[...].reshape(E_t, 1, 1, 1), axis=0)
           + t_bias_ref[...][..., None])                     # (T, T, BB)
    att_t = _softmax_axis1(e_t, approx)
    # h_temp[t, f, b] = sigmoid(sum_j att_t[t, j, b] * xc[j, f, b])
    h_temp = jax.nn.sigmoid(
        jnp.sum(att_t[:, :, None, :] * xc3[None, :, :, :], axis=1))    # (T, F, BB)

    # ---- GRU input gates for all timesteps (block-diagonal matmuls) ---------
    xg_all = (xg_x
              + jnp.dot(w_gf_ref[...], h_feat.reshape(T * F, BB),
                        preferred_element_type=f32)
              + jnp.dot(w_gt_ref[...], h_temp.reshape(T * F, BB),
                        preferred_element_type=f32))
    Xg3 = xg_all.reshape(T, 3 * H, BB) + b_xg_ref[...][None]  # (T, 3H, BB)

    # ---- GRU recurrence: h kept as (H, BB); gates = sublane row blocks ------
    w_h = w_h_ref[...]                     # (3H, H), gate rows [r | z | n]
    b_hg = b_hg_ref[...]                   # (3H, 1) = [0 | 0 | b_hn]
    h = jnp.zeros((H, BB), f32)
    for t in range(T):                     # static unroll (T is small)
        hg = jnp.dot(w_h, h, preferred_element_type=f32) + b_hg       # (3H, BB)
        xg = Xg3[t]                                                    # (3H, BB)
        r = jax.nn.sigmoid(xg[:H] + hg[:H])
        z = jax.nn.sigmoid(xg[H:2 * H] + hg[H:2 * H])
        n = jnp.tanh(xg[2 * H:] + r * hg[2 * H:])
        h = (1.0 - z) * n + z * h

    # ---- Forecasting_Model: Linear -> ReLU -> Linear (dropout = identity) ---
    y1 = jnp.maximum(
        jnp.dot(fc1_w_ref[...], h, preferred_element_type=f32) + fc1_b_ref[...],
        0.0)                                                   # (HF, BB)
    out_ref[...] = (jnp.dot(fc2_w_ref[...], y1, preferred_element_type=f32)
                    + fc2_b_ref[...])                          # (O, BB) lane-dense


# ------------------------------- the wrapper -------------------------------- #
def gat_forward(x, params, *, alpha=0.2, block_b=None, approx_softmax=True):
    """x: (B, T, F) float32.  Returns (B, output_steps, 1), matching torch."""
    B, T, F = x.shape
    H = params["w_h"].shape[1]
    O = params["fc2_w"].shape[0]
    E_f = params["f_blin"].shape[0]
    E_t = params["t_blin"].shape[0]

    # Batch on the lane axis: x_flat[t*F + f, b] = x[b, t, f].
    x_flat = jnp.transpose(x, (1, 2, 0)).reshape(T * F, B).astype(jnp.float32)

    # Batch block = lane width of every tensor inside the kernel.  Multiple of
    # 128 (<= 512) with >= 2 grid steps when B allows (v7x dual TensorCore);
    # a single full-size block for small B (block == full dim is also legal).
    if block_b is None:
        block_b = B if B <= 128 else min(512, 128 * pl.cdiv(B, 256))
    nb = pl.cdiv(B, block_b)
    B_pad = nb * block_b
    if B_pad != B:
        x_flat = jnp.pad(x_flat, ((0, 0), (0, B_pad - B)))

    order = ["w_conv", "b_conv", "w_big",
             "f_blin", "f_a", "f_bias",
             "t_blin", "t_a", "t_bias",
             "w_gf", "w_gt", "w_h", "b_xg", "b_hg",
             "fc1_w", "fc1_b", "fc2_w", "fc2_b"]
    args = [params[k] for k in order]

    def const_spec(a):
        return pl.BlockSpec(a.shape, lambda b, n=a.ndim: (0,) * n)

    kernel = functools.partial(mtad_gat_kernel, T, F, H, E_f, E_t, alpha,
                               approx_softmax)

    out = pl.pallas_call(
        kernel,
        out_shape=jax.ShapeDtypeStruct((O, B_pad), jnp.float32),
        grid_spec=pltpu.PrefetchScalarGridSpec(
            num_scalar_prefetch=0,
            grid=(nb,),
            in_specs=[pl.BlockSpec((T * F, block_b), lambda b: (0, b))]
                     + [const_spec(a) for a in args],
            out_specs=pl.BlockSpec((O, block_b), lambda b: (0, b)),
        ),
        compiler_params=pltpu.CompilerParams(
            dimension_semantics=("parallel",),      # batch blocks independent
            vmem_limit_bytes=48 * 1024 * 1024),
    )(x_flat, *args)

    # (O, B) lane-dense slab -> (B, O, 1)  (== predictions.unsqueeze(dim=2))
    return jnp.transpose(out[:, :B], (1, 0)).reshape(B, O, 1)


# --------------------- parameters: torch layout + packing ------------------- #
def init_torch_params(key, T, F, O, H, HF, kernel_size):
    """Deterministic random parameters in the original torch layouts."""
    ks = jax.random.split(key, 18)
    r = lambda i, shape, s=0.1: (s * jax.random.normal(ks[i], shape)).astype(jnp.float32)
    E_f, E_t = 2 * T, 2 * F                        # GATv2 default embed dims
    return {
        "conv_w": r(0, (F, F, kernel_size)),       # Conv1d.weight (out, in, k)
        "conv_b": r(1, (F,)),
        "f_W": r(2, (E_f, 2 * T)), "f_b": r(3, (E_f,)),
        "f_a": r(4, (E_f, 1)), "f_bias": r(5, (F, F)),
        "t_W": r(6, (E_t, 2 * F)), "t_b": r(7, (E_t,)),
        "t_a": r(8, (E_t, 1)), "t_bias": r(9, (T, T)),
        "w_ih": r(10, (3 * H, 3 * F)), "w_hh": r(11, (3 * H, H)),  # gates [r|z|n]
        "b_ih": r(12, (3 * H,)), "b_hh": r(13, (3 * H,)),
        "fc1_W": r(14, (HF, H)), "fc1_b": r(15, (HF,)),
        "fc2_W": r(16, (O, HF)), "fc2_b": r(17, (O,)),
    }


def pack_params(tp, input_steps, num_features):
    """Pack torch-layout params into the kernel's (rows, batch-on-lanes) form."""
    T, F = input_steps, num_features
    conv_w = tp["conv_w"]
    ksz = conv_w.shape[2]
    pad = (ksz - 1) // 2
    H = tp["w_hh"].shape[1]
    E_f, E_t = tp["f_W"].shape[0], tp["t_W"].shape[0]
    HF, O = tp["fc1_W"].shape[0], tp["fc2_W"].shape[0]

    # Conv1d as a time-unrolled Toeplitz matrix over the UNPADDED window:
    # w_conv[t*F + f, s*F + c] = conv_w[f, c, s - t + pad]  (0 outside the taps)
    Wc = jnp.zeros((T, F, T, F), jnp.float32)
    for t in range(T):
        for j in range(ksz):
            s = t + j - pad
            if 0 <= s < T:
                Wc = Wc.at[t, :, s, :].set(conv_w[:, :, j])
    w_conv = Wc.reshape(T * F, T * F)
    b_conv = jnp.tile(tp["conv_b"], T).reshape(T * F, 1)

    eye_F = jnp.eye(F, dtype=jnp.float32)
    eye_T = jnp.eye(T, dtype=jnp.float32)

    # Feature GAT: lin split into x_i (left) / x_j (right) halves, stacked and
    # expanded so one matmul against xc (rows t*F+f) yields P[(e, node i), b].
    Wf_lr = jnp.concatenate([tp["f_W"][:, :T], tp["f_W"][:, T:]], axis=0)   # (2E_f, T)
    w_proj_f = (Wf_lr[:, None, :, None] * eye_F[None, :, None, :]
                ).reshape(2 * E_f * F, T * F)
    # Temporal GAT: same, nodes = timesteps.
    Wt_lr = jnp.concatenate([tp["t_W"][:, :F], tp["t_W"][:, F:]], axis=0)   # (2E_t, F)
    w_proj_t = (Wt_lr[:, None, None, :] * eye_T[None, :, :, None]
                ).reshape(2 * E_t * T, T * F)
    # GRU input gates, split by hcat = [xc | h_feat | h_temp] column blocks and
    # expanded block-diagonally over time (Xg row = t*3H + g).
    w_ix, w_if, w_it = tp["w_ih"][:, :F], tp["w_ih"][:, F:2 * F], tp["w_ih"][:, 2 * F:]
    bd = lambda w: (eye_T[:, None, :, None] * w[None, :, None, :]
                    ).reshape(T * 3 * H, T * F)
    w_big = jnp.concatenate([w_proj_f, w_proj_t, bd(w_ix)], axis=0)

    # GRU biases: r/z input+hidden biases merged into the input gates; the
    # hidden-side n bias stays on hg because it is scaled by r.
    b_xg = jnp.concatenate([tp["b_ih"][:2 * H] + tp["b_hh"][:2 * H],
                            tp["b_ih"][2 * H:]]).reshape(3 * H, 1)
    b_hg = jnp.concatenate([jnp.zeros((2 * H,), jnp.float32),
                            tp["b_hh"][2 * H:]]).reshape(3 * H, 1)

    return {
        "w_conv": w_conv, "b_conv": b_conv, "w_big": w_big,
        "f_blin": tp["f_b"].reshape(E_f, 1), "f_a": tp["f_a"].reshape(E_f, 1),
        "f_bias": tp["f_bias"],
        "t_blin": tp["t_b"].reshape(E_t, 1), "t_a": tp["t_a"].reshape(E_t, 1),
        "t_bias": tp["t_bias"],
        "w_gf": bd(w_if), "w_gt": bd(w_it),
        "w_h": tp["w_hh"], "b_xg": b_xg, "b_hg": b_hg,
        "fc1_w": tp["fc1_W"], "fc1_b": tp["fc1_b"].reshape(HF, 1),
        "fc2_w": tp["fc2_W"], "fc2_b": tp["fc2_b"].reshape(O, 1),
    }


# --------------------- pure-JAX reference (torch semantics) ----------------- #
def reference_forward(x, tp, *, alpha=0.2):
    HI = jax.lax.Precision.HIGHEST
    B, T, F = x.shape
    conv_w, conv_b = tp["conv_w"], tp["conv_b"]
    ksz = conv_w.shape[2]
    pad = (ksz - 1) // 2
    H = tp["w_hh"].shape[1]

    # ConvLayer
    xp = jnp.pad(x, ((0, 0), (pad, pad), (0, 0)))
    xc = jnp.zeros((B, T, F), jnp.float32)
    for j in range(ksz):
        xc = xc + jnp.einsum('btc,fc->btf', xp[:, j:j + T, :], conv_w[:, :, j],
                             precision=HI)
    xc = jax.nn.relu(xc + conv_b)

    def gatv2(v, W, b_lin, a, bias):
        D = v.shape[2]
        L = jnp.einsum('bnd,ed->bne', v, W[:, :D], precision=HI)
        R = jnp.einsum('bnd,ed->bne', v, W[:, D:], precision=HI) + b_lin
        act = _leaky_relu(L[:, :, None, :] + R[:, None, :, :], alpha)
        e = jnp.einsum('bije,e->bij', act, a[:, 0], precision=HI) + bias
        att = jax.nn.softmax(e, axis=2)
        return jax.nn.sigmoid(jnp.einsum('bij,bjd->bid', att, v, precision=HI))

    h_feat = jnp.transpose(
        gatv2(jnp.transpose(xc, (0, 2, 1)), tp["f_W"], tp["f_b"], tp["f_a"],
              tp["f_bias"]), (0, 2, 1))
    h_temp = gatv2(xc, tp["t_W"], tp["t_b"], tp["t_a"], tp["t_bias"])

    hcat = jnp.concatenate([xc, h_feat, h_temp], axis=2)
    h = jnp.zeros((B, H), jnp.float32)
    for t in range(T):
        gi = jnp.einsum('bf,gf->bg', hcat[:, t, :], tp["w_ih"], precision=HI) + tp["b_ih"]
        gh = jnp.einsum('bh,gh->bg', h, tp["w_hh"], precision=HI) + tp["b_hh"]
        r = jax.nn.sigmoid(gi[:, :H] + gh[:, :H])
        z = jax.nn.sigmoid(gi[:, H:2 * H] + gh[:, H:2 * H])
        n = jnp.tanh(gi[:, 2 * H:] + r * gh[:, 2 * H:])
        h = (1.0 - z) * n + z * h

    y1 = jax.nn.relu(jnp.einsum('bh,oh->bo', h, tp["fc1_W"], precision=HI)
                     + tp["fc1_b"])
    y = jnp.einsum('bh,oh->bo', y1, tp["fc2_W"], precision=HI) + tp["fc2_b"]
    return y[:, :, None]


if __name__ == "__main__":
    # GATModel(input_steps=8, num_features=4, output_steps=4,
    #          gru_hid_dim=32, forecast_hid_dim=32, kernel_size=7, use_gatv2=True)
    B, T, F, O = 2, 8, 4, 4
    H, HF, KSZ = 32, 32, 7

    key = jax.random.PRNGKey(0)
    kx, kp = jax.random.split(key)
    x = jax.random.normal(kx, (B, T, F), jnp.float32)

    torch_params = init_torch_params(kp, T, F, O, H, HF, KSZ)
    kparams = pack_params(torch_params, T, F)

    # TODO(synk): dropout is stochastic and train-only; implemented as identity (eval mode).
    out = jax.block_until_ready(gat_forward(x, kparams))
    assert out.shape == (B, O, 1) and out.dtype == jnp.float32
    assert bool(jnp.all(jnp.isfinite(out)))

    ref = reference_forward(x, torch_params)
    assert bool(jnp.allclose(out, ref, atol=5e-3, rtol=5e-3)), (
        "max abs err = %g" % float(jnp.max(jnp.abs(out - ref))))
    print("KERNEL_OK")
</pallas_src>

<mosaic_0001>
module attributes {stable_mosaic.version = 11 : i64} {
  func.func @mtad_gat_kernel(%arg0: i32, %arg1: memref<32x2xf32, #tpu.memory_space<vmem>>, %arg2: memref<32x32xf32, #tpu.memory_space<vmem>>, %arg3: memref<32x1xf32, #tpu.memory_space<vmem>>, %arg4: memref<1024x32xf32, #tpu.memory_space<vmem>>, %arg5: memref<16x1xf32, #tpu.memory_space<vmem>>, %arg6: memref<16x1xf32, #tpu.memory_space<vmem>>, %arg7: memref<4x4xf32, #tpu.memory_space<vmem>>, %arg8: memref<8x1xf32, #tpu.memory_space<vmem>>, %arg9: memref<8x1xf32, #tpu.memory_space<vmem>>, %arg10: memref<8x8xf32, #tpu.memory_space<vmem>>, %arg11: memref<768x32xf32, #tpu.memory_space<vmem>>, %arg12: memref<768x32xf32, #tpu.memory_space<vmem>>, %arg13: memref<96x32xf32, #tpu.memory_space<vmem>>, %arg14: memref<96x1xf32, #tpu.memory_space<vmem>>, %arg15: memref<96x1xf32, #tpu.memory_space<vmem>>, %arg16: memref<32x32xf32, #tpu.memory_space<vmem>>, %arg17: memref<32x1xf32, #tpu.memory_space<vmem>>, %arg18: memref<4x32xf32, #tpu.memory_space<vmem>>, %arg19: memref<4x1xf32, #tpu.memory_space<vmem>>, %arg20: memref<4x2xf32, #tpu.memory_space<vmem>>) attributes {dimension_semantics = [#tpu.dimension_semantics<parallel>], iteration_bounds = array<i64: 1>, scalar_prefetch = 0 : i64, scratch_operands = 0 : i64, tpu.core_type = #tpu.core_type<tc>, window_params = [{transform_indices = @transform_0, window_bounds = array<i64: 32, 2>}, {pipeline_mode = #tpu.pipeline_mode<synchronous>, transform_indices = @transform_1, window_bounds = array<i64: 32, 32>}, {pipeline_mode = #tpu.pipeline_mode<synchronous>, transform_indices = @transform_2, window_bounds = array<i64: 32, 1>}, {pipeline_mode = #tpu.pipeline_mode<synchronous>, transform_indices = @transform_3, window_bounds = array<i64: 1024, 32>}, {pipeline_mode = #tpu.pipeline_mode<synchronous>, transform_indices = @transform_4, window_bounds = array<i64: 16, 1>}, {pipeline_mode = #tpu.pipeline_mode<synchronous>, transform_indices = @transform_5, window_bounds = array<i64: 16, 1>}, {pipeline_mode = #tpu.pipeline_mode<synchronous>, transform_indices = @transform_6, window_bounds = array<i64: 4, 4>}, {pipeline_mode = #tpu.pipeline_mode<synchronous>, transform_indices = @transform_7, window_bounds = array<i64: 8, 1>}, {pipeline_mode = #tpu.pipeline_mode<synchronous>, transform_indices = @transform_8, window_bounds = array<i64: 8, 1>}, {pipeline_mode = #tpu.pipeline_mode<synchronous>, transform_indices = @transform_9, window_bounds = array<i64: 8, 8>}, {pipeline_mode = #tpu.pipeline_mode<synchronous>, transform_indices = @transform_10, window_bounds = array<i64: 768, 32>}, {pipeline_mode = #tpu.pipeline_mode<synchronous>, transform_indices = @transform_11, window_bounds = array<i64: 768, 32>}, {pipeline_mode = #tpu.pipeline_mode<synchronous>, transform_indices = @transform_12, window_bounds = array<i64: 96, 32>}, {pipeline_mode = #tpu.pipeline_mode<synchronous>, transform_indices = @transform_13, window_bounds = array<i64: 96, 1>}, {pipeline_mode = #tpu.pipeline_mode<synchronous>, transform_indices = @transform_14, window_bounds = array<i64: 96, 1>}, {pipeline_mode = #tpu.pipeline_mode<synchronous>, transform_indices = @transform_15, window_bounds = array<i64: 32, 32>}, {pipeline_mode = #tpu.pipeline_mode<synchronous>, transform_indices = @transform_16, window_bounds = array<i64: 32, 1>}, {pipeline_mode = #tpu.pipeline_mode<synchronous>, transform_indices = @transform_17, window_bounds = array<i64: 4, 32>}, {pipeline_mode = #tpu.pipeline_mode<synchronous>, transform_indices = @transform_18, window_bounds = array<i64: 4, 1>}, {transform_indices = @transform_19, window_bounds = array<i64: 4, 2>}]} {
    %c0 = arith.constant 0 : index
    %c0_0 = arith.constant 0 : index
    %0 = vector.load %arg2[%c0, %c0_0] : memref<32x32xf32, #tpu.memory_space<vmem>>, vector<32x32xf32>
    %c0_1 = arith.constant 0 : index
    %c0_2 = arith.constant 0 : index
    %1 = vector.load %arg1[%c0_1, %c0_2] : memref<32x2xf32, #tpu.memory_space<vmem>>, vector<32x2xf32>
    %cst = arith.constant dense<0.000000e+00> : vector<32x2xf32>
    %2 = tpu.matmul %0, %1, %cst {dimension_numbers = #tpu.dot_dimension_numbers<[1], [0], [0], [1], [0, 0, 1, 1], [], []>} : vector<32x32xf32>, vector<32x2xf32>, vector<32x2xf32> -> vector<32x2xf32>
    %c0_3 = arith.constant 0 : index
    %c0_4 = arith.constant 0 : index
    %3 = vector.load %arg3[%c0_3, %c0_4] : memref<32x1xf32, #tpu.memory_space<vmem>>, vector<32x1xf32>
    %4 = vector.broadcast %3 : vector<32x1xf32> to vector<32x2xf32>
    %5 = arith.addf %2, %4 : vector<32x2xf32>
    %cst_5 = arith.constant 0.000000e+00 : f32
    %6 = vector.broadcast %cst_5 : f32 to vector<32x2xf32>
    %7 = arith.maximumf %5, %6 : vector<32x2xf32>
    %8 = vector.shape_cast %7 : vector<32x2xf32> to vector<8x4x2xf32>
    %c0_6 = arith.constant 0 : index
    %c0_7 = arith.constant 0 : index
    %9 = vector.load %arg4[%c0_6, %c0_7] : memref<1024x32xf32, #tpu.memory_space<vmem>>, vector<1024x32xf32>
    %cst_8 = arith.constant dense<0.000000e+00> : vector<1024x2xf32>
    %10 = tpu.matmul %9, %7, %cst_8 {dimension_numbers = #tpu.dot_dimension_numbers<[1], [0], [0], [1], [0, 0, 1, 1], [], []>} : vector<1024x32xf32>, vector<32x2xf32>, vector<1024x2xf32> -> vector<1024x2xf32>
    %11 = vector.extract_strided_slice %10 {offsets = [0, 0], sizes = [128, 2], strides = [1, 1]} : vector<1024x2xf32> to vector<128x2xf32>
    %12 = vector.shape_cast %11 : vector<128x2xf32> to vector<32x4x2xf32>
    %13 = vector.extract_strided_slice %10 {offsets = [128, 0], sizes = [128, 2], strides = [1, 1]} : vector<1024x2xf32> to vector<128x2xf32>
    %14 = vector.shape_cast %13 : vector<128x2xf32> to vector<16x8x2xf32>
    %15 = vector.extract_strided_slice %10 {offsets = [256, 0], sizes = [768, 2], strides = [1, 1]} : vector<1024x2xf32> to vector<768x2xf32>
    %16 = vector.extract_strided_slice %12 {offsets = [0, 0, 0], sizes = [16, 4, 2], strides = [1, 1, 1]} : vector<32x4x2xf32> to vector<16x4x2xf32>
    %17 = vector.extract_strided_slice %12 {offsets = [16, 0, 0], sizes = [16, 4, 2], strides = [1, 1, 1]} : vector<32x4x2xf32> to vector<16x4x2xf32>
    %c0_9 = arith.constant 0 : index
    %c0_10 = arith.constant 0 : index
    %18 = vector.load %arg5[%c0_9, %c0_10] : memref<16x1xf32, #tpu.memory_space<vmem>>, vector<16x1xf32>
    %19 = vector.shape_cast %18 : vector<16x1xf32> to vector<16x1x1xf32>
    %20 = vector.broadcast %19 : vector<16x1x1xf32> to vector<16x4x2xf32>
    %21 = arith.addf %17, %20 : vector<16x4x2xf32>
    %22 = vector.shape_cast %16 : vector<16x4x2xf32> to vector<16x4x1x2xf32>
    %23 = vector.shape_cast %21 : vector<16x4x2xf32> to vector<16x1x4x2xf32>
    %24 = vector.broadcast %22 : vector<16x4x1x2xf32> to vector<16x4x4x2xf32>
    %25 = vector.broadcast %23 : vector<16x1x4x2xf32> to vector<16x4x4x2xf32>
    %26 = arith.addf %24, %25 : vector<16x4x4x2xf32>
    %cst_11 = arith.constant 0.000000e+00 : f32
    %27 = vector.broadcast %cst_11 : f32 to vector<16x4x4x2xf32>
    %28 = arith.cmpf oge, %26, %27 : vector<16x4x4x2xf32>
    %cst_12 = arith.constant 2.000000e-01 : f32
    %29 = vector.broadcast %cst_12 : f32 to vector<16x4x4x2xf32>
    %30 = arith.mulf %29, %26 : vector<16x4x4x2xf32>
    %31 = arith.select %28, %26, %30 : vector<16x4x4x2xi1>, vector<16x4x4x2xf32>
    %c0_13 = arith.constant 0 : index
    %c0_14 = arith.constant 0 : index
    %32 = vector.load %arg6[%c0_13, %c0_14] : memref<16x1xf32, #tpu.memory_space<vmem>>, vector<16x1xf32>
    %33 = vector.shape_cast %32 : vector<16x1xf32> to vector<16x1x1x1xf32>
    %34 = vector.broadcast %33 : vector<16x1x1x1xf32> to vector<16x4x4x2xf32>
    %35 = arith.mulf %31, %34 : vector<16x4x4x2xf32>
    %cst_15 = arith.constant dense<0.000000e+00> : vector<4x4x2xf32>
    %36 = vector.multi_reduction <add>, %35, %cst_15 [0] : vector<16x4x4x2xf32> to vector<4x4x2xf32>
    %c0_16 = arith.constant 0 : index
    %c0_17 = arith.constant 0 : index
    %37 = vector.load %arg7[%c0_16, %c0_17] : memref<4x4xf32, #tpu.memory_space<vmem>>, vector<4x4xf32>
    %38 = vector.shape_cast %37 : vector<4x4xf32> to vector<4x4x1xf32>
    %39 = vector.broadcast %38 : vector<4x4x1xf32> to vector<4x4x2xf32>
    %40 = arith.addf %36, %39 : vector<4x4x2xf32>
    %cst_18 = arith.constant dense<0xFF800000> : vector<4x2xf32>
    %41 = vector.multi_reduction <maximumf>, %40, %cst_18 [1] : vector<4x4x2xf32> to vector<4x2xf32>
    %42 = vector.shape_cast %41 : vector<4x2xf32> to vector<4x1x2xf32>
    %43 = vector.broadcast %42 : vector<4x1x2xf32> to vector<4x4x2xf32>
    %44 = arith.subf %40, %43 : vector<4x4x2xf32>
    %45 = math.exp %44 : vector<4x4x2xf32>
    %cst_19 = arith.constant dense<0.000000e+00> : vector<4x2xf32>
    %46 = vector.multi_reduction <add>, %45, %cst_19 [1] : vector<4x4x2xf32> to vector<4x2xf32>
    %47 = vector.shape_cast %46 : vector<4x2xf32> to vector<4x1x2xf32>
    %48 = tpu.reciprocal %47 {approx = true} : vector<4x1x2xf32> -> vector<4x1x2xf32>
    %49 = vector.broadcast %48 : vector<4x1x2xf32> to vector<4x4x2xf32>
    %50 = arith.mulf %45, %49 : vector<4x4x2xf32>
    %51 = vector.shape_cast %50 : vector<4x4x2xf32> to vector<1x4x4x2xf32>
    %52 = vector.shape_cast %8 : vector<8x4x2xf32> to vector<8x1x4x2xf32>
    %53 = vector.broadcast %51 : vector<1x4x4x2xf32> to vector<8x4x4x2xf32>
    %54 = vector.broadcast %52 : vector<8x1x4x2xf32> to vector<8x4x4x2xf32>
    %55 = arith.mulf %53, %54 : vector<8x4x4x2xf32>
    %cst_20 = arith.constant dense<0.000000e+00> : vector<8x4x2xf32>
    %56 = vector.multi_reduction <add>, %55, %cst_20 [2] : vector<8x4x4x2xf32> to vector<8x4x2xf32>
    %57 = arith.negf %56 : vector<8x4x2xf32>
    %58 = math.exp %57 : vector<8x4x2xf32>
    %cst_21 = arith.constant 1.000000e+00 : f32
    %59 = vector.broadcast %cst_21 : f32 to vector<8x4x2xf32>
    %60 = arith.addf %59, %58 : vector<8x4x2xf32>
    %61 = arith.divf %59, %60 : vector<8x4x2xf32>
    %62 = vector.extract_strided_slice %14 {offsets = [0, 0, 0], sizes = [8, 8, 2], strides = [1, 1, 1]} : vector<16x8x2xf32> to vector<8x8x2xf32>
    %63 = vector.extract_strided_slice %14 {offsets = [8, 0, 0], sizes = [8, 8, 2], strides = [1, 1, 1]} : vector<16x8x2xf32> to vector<8x8x2xf32>
    %c0_22 = arith.constant 0 : index
    %c0_23 = arith.constant 0 : index
    %64 = vector.load %arg8[%c0_22, %c0_23] : memref<8x1xf32, #tpu.memory_space<vmem>>, vector<8x1xf32>
    %65 = vector.shape_cast %64 : vector<8x1xf32> to vector<8x1x1xf32>
    %66 = vector.broadcast %65 : vector<8x1x1xf32> to vector<8x8x2xf32>
    %67 = arith.addf %63, %66 : vector<8x8x2xf32>
    %68 = vector.shape_cast %62 : vector<8x8x2xf32> to vector<8x8x1x2xf32>
    %69 = vector.shape_cast %67 : vector<8x8x2xf32> to vector<8x1x8x2xf32>
    %70 = vector.broadcast %68 : vector<8x8x1x2xf32> to vector<8x8x8x2xf32>
    %71 = vector.broadcast %69 : vector<8x1x8x2xf32> to vector<8x8x8x2xf32>
    %72 = arith.addf %70, %71 : vector<8x8x8x2xf32>
    %cst_24 = arith.constant 0.000000e+00 : f32
    %73 = vector.broadcast %cst_24 : f32 to vector<8x8x8x2xf32>
    %74 = arith.cmpf oge, %72, %73 : vector<8x8x8x2xf32>
    %cst_25 = arith.constant 2.000000e-01 : f32
    %75 = vector.broadcast %cst_25 : f32 to vector<8x8x8x2xf32>
    %76 = arith.mulf %75, %72 : vector<8x8x8x2xf32>
    %77 = arith.select %74, %72, %76 : vector<8x8x8x2xi1>, vector<8x8x8x2xf32>
    %c0_26 = arith.constant 0 : index
    %c0_27 = arith.constant 0 : index
    %78 = vector.load %arg9[%c0_26, %c0_27] : memref<8x1xf32, #tpu.memory_space<vmem>>, vector<8x1xf32>
    %79 = vector.shape_cast %78 : vector<8x1xf32> to vector<8x1x1x1xf32>
    %80 = vector.broadcast %79 : vector<8x1x1x1xf32> to vector<8x8x8x2xf32>
    %81 = arith.mulf %77, %80 : vector<8x8x8x2xf32>
    %cst_28 = arith.constant dense<0.000000e+00> : vector<8x8x2xf32>
    %82 = vector.multi_reduction <add>, %81, %cst_28 [0] : vector<8x8x8x2xf32> to vector<8x8x2xf32>
    %c0_29 = arith.constant 0 : index
    %c0_30 = arith.constant 0 : index
    %83 = vector.load %arg10[%c0_29, %c0_30] : memref<8x8xf32, #tpu.memory_space<vmem>>, vector<8x8xf32>
    %84 = vector.shape_cast %83 : vector<8x8xf32> to vector<8x8x1xf32>
    %85 = vector.broadcast %84 : vector<8x8x1xf32> to vector<8x8x2xf32>
    %86 = arith.addf %82, %85 : vector<8x8x2xf32>
    %cst_31 = arith.constant dense<0xFF800000> : vector<8x2xf32>
    %87 = vector.multi_reduction <maximumf>, %86, %cst_31 [1] : vector<8x8x2xf32> to vector<8x2xf32>
    %88 = vector.shape_cast %87 : vector<8x2xf32> to vector<8x1x2xf32>
    %89 = vector.broadcast %88 : vector<8x1x2xf32> to vector<8x8x2xf32>
    %90 = arith.subf %86, %89 : vector<8x8x2xf32>
    %91 = math.exp %90 : vector<8x8x2xf32>
    %cst_32 = arith.constant dense<0.000000e+00> : vector<8x2xf32>
    %92 = vector.multi_reduction <add>, %91, %cst_32 [1] : vector<8x8x2xf32> to vector<8x2xf32>
    %93 = vector.shape_cast %92 : vector<8x2xf32> to vector<8x1x2xf32>
    %94 = tpu.reciprocal %93 {approx = true} : vector<8x1x2xf32> -> vector<8x1x2xf32>
    %95 = vector.broadcast %94 : vector<8x1x2xf32> to vector<8x8x2xf32>
    %96 = arith.mulf %91, %95 : vector<8x8x2xf32>
    %97 = vector.shape_cast %96 : vector<8x8x2xf32> to vector<8x8x1x2xf32>
    %98 = vector.shape_cast %8 : vector<8x4x2xf32> to vector<1x8x4x2xf32>
    %99 = vector.broadcast %97 : vector<8x8x1x2xf32> to vector<8x8x4x2xf32>
    %100 = vector.broadcast %98 : vector<1x8x4x2xf32> to vector<8x8x4x2xf32>
    %101 = arith.mulf %99, %100 : vector<8x8x4x2xf32>
    %cst_33 = arith.constant dense<0.000000e+00> : vector<8x4x2xf32>
    %102 = vector.multi_reduction <add>, %101, %cst_33 [1] : vector<8x8x4x2xf32> to vector<8x4x2xf32>
    %103 = arith.negf %102 : vector<8x4x2xf32>
    %104 = math.exp %103 : vector<8x4x2xf32>
    %cst_34 = arith.constant 1.000000e+00 : f32
    %105 = vector.broadcast %cst_34 : f32 to vector<8x4x2xf32>
    %106 = arith.addf %105, %104 : vector<8x4x2xf32>
    %107 = arith.divf %105, %106 : vector<8x4x2xf32>
    %c0_35 = arith.constant 0 : index
    %c0_36 = arith.constant 0 : index
    %108 = vector.load %arg11[%c0_35, %c0_36] : memref<768x32xf32, #tpu.memory_space<vmem>>, vector<768x32xf32>
    %109 = vector.shape_cast %61 : vector<8x4x2xf32> to vector<32x2xf32>
    %cst_37 = arith.constant dense<0.000000e+00> : vector<768x2xf32>
    %110 = tpu.matmul %108, %109, %cst_37 {dimension_numbers = #tpu.dot_dimension_numbers<[1], [0], [0], [1], [0, 0, 1, 1], [], []>} : vector<768x32xf32>, vector<32x2xf32>, vector<768x2xf32> -> vector<768x2xf32>
    %111 = arith.addf %15, %110 : vector<768x2xf32>
    %c0_38 = arith.constant 0 : index
    %c0_39 = arith.constant 0 : index
    %112 = vector.load %arg12[%c0_38, %c0_39] : memref<768x32xf32, #tpu.memory_space<vmem>>, vector<768x32xf32>
    %113 = vector.shape_cast %107 : vector<8x4x2xf32> to vector<32x2xf32>
    %cst_40 = arith.constant dense<0.000000e+00> : vector<768x2xf32>
    %114 = tpu.matmul %112, %113, %cst_40 {dimension_numbers = #tpu.dot_dimension_numbers<[1], [0], [0], [1], [0, 0, 1, 1], [], []>} : vector<768x32xf32>, vector<32x2xf32>, vector<768x2xf32> -> vector<768x2xf32>
    %115 = arith.addf %111, %114 : vector<768x2xf32>
    %116 = vector.shape_cast %115 : vector<768x2xf32> to vector<8x96x2xf32>
    %c0_41 = arith.constant 0 : index
    %c0_42 = arith.constant 0 : index
    %117 = vector.load %arg14[%c0_41, %c0_42] : memref<96x1xf32, #tpu.memory_space<vmem>>, vector<96x1xf32>
    %118 = vector.shape_cast %117 : vector<96x1xf32> to vector<1x96x1xf32>
    %119 = vector.broadcast %118 : vector<1x96x1xf32> to vector<8x96x2xf32>
    %120 = arith.addf %116, %119 : vector<8x96x2xf32>
    %c0_43 = arith.constant 0 : index
    %c0_44 = arith.constant 0 : index
    %121 = vector.load %arg13[%c0_43, %c0_44] : memref<96x32xf32, #tpu.memory_space<vmem>>, vector<96x32xf32>
    %c0_45 = arith.constant 0 : index
    %c0_46 = arith.constant 0 : index
    %122 = vector.load %arg15[%c0_45, %c0_46] : memref<96x1xf32, #tpu.memory_space<vmem>>, vector<96x1xf32>
    %cst_47 = arith.constant 0.000000e+00 : f32
    %123 = vector.broadcast %cst_47 : f32 to vector<32x2xf32>
    %cst_48 = arith.constant dense<0.000000e+00> : vector<96x2xf32>
    %124 = tpu.matmul %121, %123, %cst_48 {dimension_numbers = #tpu.dot_dimension_numbers<[1], [0], [0], [1], [0, 0, 1, 1], [], []>} : vector<96x32xf32>, vector<32x2xf32>, vector<96x2xf32> -> vector<96x2xf32>
    %125 = vector.broadcast %122 : vector<96x1xf32> to vector<96x2xf32>
    %126 = arith.addf %124, %125 : vector<96x2xf32>
    %127 = vector.extract_strided_slice %120 {offsets = [0, 0, 0], sizes = [1, 96, 2], strides = [1, 1, 1]} : vector<8x96x2xf32> to vector<1x96x2xf32>
    %128 = vector.shape_cast %127 : vector<1x96x2xf32> to vector<96x2xf32>
    %129 = vector.extract_strided_slice %128 {offsets = [0, 0], sizes = [32, 2], strides = [1, 1]} : vector<96x2xf32> to vector<32x2xf32>
    %130 = vector.extract_strided_slice %126 {offsets = [0, 0], sizes = [32, 2], strides = [1, 1]} : vector<96x2xf32> to vector<32x2xf32>
    %131 = arith.addf %129, %130 : vector<32x2xf32>
    %132 = arith.negf %131 : vector<32x2xf32>
    %133 = math.exp %132 : vector<32x2xf32>
    %cst_49 = arith.constant 1.000000e+00 : f32
    %134 = vector.broadcast %cst_49 : f32 to vector<32x2xf32>
    %135 = arith.addf %134, %133 : vector<32x2xf32>
    %136 = arith.divf %134, %135 : vector<32x2xf32>
    %137 = vector.extract_strided_slice %128 {offsets = [32, 0], sizes = [32, 2], strides = [1, 1]} : vector<96x2xf32> to vector<32x2xf32>
    %138 = vector.extract_strided_slice %126 {offsets = [32, 0], sizes = [32, 2], strides = [1, 1]} : vector<96x2xf32> to vector<32x2xf32>
    %139 = arith.addf %137, %138 : vector<32x2xf32>
    %140 = arith.negf %139 : vector<32x2xf32>
    %141 = math.exp %140 : vector<32x2xf32>
    %cst_50 = arith.constant 1.000000e+00 : f32
    %142 = vector.broadcast %cst_50 : f32 to vector<32x2xf32>
    %143 = arith.addf %142, %141 : vector<32x2xf32>
    %144 = arith.divf %142, %143 : vector<32x2xf32>
    %145 = vector.extract_strided_slice %128 {offsets = [64, 0], sizes = [32, 2], strides = [1, 1]} : vector<96x2xf32> to vector<32x2xf32>
    %146 = vector.extract_strided_slice %126 {offsets = [64, 0], sizes = [32, 2], strides = [1, 1]} : vector<96x2xf32> to vector<32x2xf32>
    %147 = arith.mulf %136, %146 : vector<32x2xf32>
    %148 = arith.addf %145, %147 : vector<32x2xf32>
    %149 = math.tanh %148 : vector<32x2xf32>
    %cst_51 = arith.constant 1.000000e+00 : f32
    %150 = vector.broadcast %cst_51 : f32 to vector<32x2xf32>
    %151 = arith.subf %150, %144 : vector<32x2xf32>
    %152 = arith.mulf %151, %149 : vector<32x2xf32>
    %153 = arith.mulf %144, %123 : vector<32x2xf32>
    %154 = arith.addf %152, %153 : vector<32x2xf32>
    %cst_52 = arith.constant dense<0.000000e+00> : vector<96x2xf32>
    %155 = tpu.matmul %121, %154, %cst_52 {dimension_numbers = #tpu.dot_dimension_numbers<[1], [0], [0], [1], [0, 0, 1, 1], [], []>} : vector<96x32xf32>, vector<32x2xf32>, vector<96x2xf32> -> vector<96x2xf32>
    %156 = vector.broadcast %122 : vector<96x1xf32> to vector<96x2xf32>
    %157 = arith.addf %155, %156 : vector<96x2xf32>
    %158 = vector.extract_strided_slice %120 {offsets = [1, 0, 0], sizes = [1, 96, 2], strides = [1, 1, 1]} : vector<8x96x2xf32> to vector<1x96x2xf32>
    %159 = vector.shape_cast %158 : vector<1x96x2xf32> to vector<96x2xf32>
    %160 = vector.extract_strided_slice %159 {offsets = [0, 0], sizes = [32, 2], strides = [1, 1]} : vector<96x2xf32> to vector<32x2xf32>
    %161 = vector.extract_strided_slice %157 {offsets = [0, 0], sizes = [32, 2], strides = [1, 1]} : vector<96x2xf32> to vector<32x2xf32>
    %162 = arith.addf %160, %161 : vector<32x2xf32>
    %163 = arith.negf %162 : vector<32x2xf32>
    %164 = math.exp %163 : vector<32x2xf32>
    %cst_53 = arith.constant 1.000000e+00 : f32
    %165 = vector.broadcast %cst_53 : f32 to vector<32x2xf32>
    %166 = arith.addf %165, %164 : vector<32x2xf32>
    %167 = arith.divf %165, %166 : vector<32x2xf32>
    %168 = vector.extract_strided_slice %159 {offsets = [32, 0], sizes = [32, 2], strides = [1, 1]} : vector<96x2xf32> to vector<32x2xf32>
    %169 = vector.extract_strided_slice %157 {offsets = [32, 0], sizes = [32, 2], strides = [1, 1]} : vector<96x2xf32> to vector<32x2xf32>
    %170 = arith.addf %168, %169 : vector<32x2xf32>
    %171 = arith.negf %170 : vector<32x2xf32>
    %172 = math.exp %171 : vector<32x2xf32>
    %cst_54 = arith.constant 1.000000e+00 : f32
    %173 = vector.broadcast %cst_54 : f32 to vector<32x2xf32>
    %174 = arith.addf %173, %172 : vector<32x2xf32>
    %175 = arith.divf %173, %174 : vector<32x2xf32>
    %176 = vector.extract_strided_slice %159 {offsets = [64, 0], sizes = [32, 2], strides = [1, 1]} : vector<96x2xf32> to vector<32x2xf32>
    %177 = vector.extract_strided_slice %157 {offsets = [64, 0], sizes = [32, 2], strides = [1, 1]} : vector<96x2xf32> to vector<32x2xf32>
    %178 = arith.mulf %167, %177 : vector<32x2xf32>
    %179 = arith.addf %176, %178 : vector<32x2xf32>
    %180 = math.tanh %179 : vector<32x2xf32>
    %cst_55 = arith.constant 1.000000e+00 : f32
    %181 = vector.broadcast %cst_55 : f32 to vector<32x2xf32>
    %182 = arith.subf %181, %175 : vector<32x2xf32>
    %183 = arith.mulf %182, %180 : vector<32x2xf32>
    %184 = arith.mulf %175, %154 : vector<32x2xf32>
    %185 = arith.addf %183, %184 : vector<32x2xf32>
    %cst_56 = arith.constant dense<0.000000e+00> : vector<96x2xf32>
    %186 = tpu.matmul %121, %185, %cst_56 {dimension_numbers = #tpu.dot_dimension_numbers<[1], [0], [0], [1], [0, 0, 1, 1], [], []>} : vector<96x32xf32>, vector<32x2xf32>, vector<96x2xf32> -> vector<96x2xf32>
    %187 = vector.broadcast %122 : vector<96x1xf32> to vector<96x2xf32>
    %188 = arith.addf %186, %187 : vector<96x2xf32>
    %189 = vector.extract_strided_slice %120 {offsets = [2, 0, 0], sizes = [1, 96, 2], strides = [1, 1, 1]} : vector<8x96x2xf32> to vector<1x96x2xf32>
    %190 = vector.shape_cast %189 : vector<1x96x2xf32> to vector<96x2xf32>
    %191 = vector.extract_strided_slice %190 {offsets = [0, 0], sizes = [32, 2], strides = [1, 1]} : vector<96x2xf32> to vector<32x2xf32>
    %192 = vector.extract_strided_slice %188 {offsets = [0, 0], sizes = [32, 2], strides = [1, 1]} : vector<96x2xf32> to vector<32x2xf32>
    %193 = arith.addf %191, %192 : vector<32x2xf32>
    %194 = arith.negf %193 : vector<32x2xf32>
    %195 = math.exp %194 : vector<32x2xf32>
    %cst_57 = arith.constant 1.000000e+00 : f32
    %196 = vector.broadcast %cst_57 : f32 to vector<32x2xf32>
    %197 = arith.addf %196, %195 : vector<32x2xf32>
    %198 = arith.divf %196, %197 : vector<32x2xf32>
    %199 = vector.extract_strided_slice %190 {offsets = [32, 0], sizes = [32, 2], strides = [1, 1]} : vector<96x2xf32> to vector<32x2xf32>
    %200 = vector.extract_strided_slice %188 {offsets = [32, 0], sizes = [32, 2], strides = [1, 1]} : vector<96x2xf32> to vector<32x2xf32>
    %201 = arith.addf %199, %200 : vector<32x2xf32>
    %202 = arith.negf %201 : vector<32x2xf32>
    %203 = math.exp %202 : vector<32x2xf32>
    %cst_58 = arith.constant 1.000000e+00 : f32
    %204 = vector.broadcast %cst_58 : f32 to vector<32x2xf32>
    %205 = arith.addf %204, %203 : vector<32x2xf32>
    %206 = arith.divf %204, %205 : vector<32x2xf32>
    %207 = vector.extract_strided_slice %190 {offsets = [64, 0], sizes = [32, 2], strides = [1, 1]} : vector<96x2xf32> to vector<32x2xf32>
    %208 = vector.extract_strided_slice %188 {offsets = [64, 0], sizes = [32, 2], strides = [1, 1]} : vector<96x2xf32> to vector<32x2xf32>
    %209 = arith.mulf %198, %208 : vector<32x2xf32>
    %210 = arith.addf %207, %209 : vector<32x2xf32>
    %211 = math.tanh %210 : vector<32x2xf32>
    %cst_59 = arith.constant 1.000000e+00 : f32
    %212 = vector.broadcast %cst_59 : f32 to vector<32x2xf32>
    %213 = arith.subf %212, %206 : vector<32x2xf32>
    %214 = arith.mulf %213, %211 : vector<32x2xf32>
    %215 = arith.mulf %206, %185 : vector<32x2xf32>
    %216 = arith.addf %214, %215 : vector<32x2xf32>
    %cst_60 = arith.constant dense<0.000000e+00> : vector<96x2xf32>
    %217 = tpu.matmul %121, %216, %cst_60 {dimension_numbers = #tpu.dot_dimension_numbers<[1], [0], [0], [1], [0, 0, 1, 1], [], []>} : vector<96x32xf32>, vector<32x2xf32>, vector<96x2xf32> -> vector<96x2xf32>
    %218 = vector.broadcast %122 : vector<96x1xf32> to vector<96x2xf32>
    %219 = arith.addf %217, %218 : vector<96x2xf32>
    %220 = vector.extract_strided_slice %120 {offsets = [3, 0, 0], sizes = [1, 96, 2], strides = [1, 1, 1]} : vector<8x96x2xf32> to vector<1x96x2xf32>
    %221 = vector.shape_cast %220 : vector<1x96x2xf32> to vector<96x2xf32>
    %222 = vector.extract_strided_slice %221 {offsets = [0, 0], sizes = [32, 2], strides = [1, 1]} : vector<96x2xf32> to vector<32x2xf32>
    %223 = vector.extract_strided_slice %219 {offsets = [0, 0], sizes = [32, 2], strides = [1, 1]} : vector<96x2xf32> to vector<32x2xf32>
    %224 = arith.addf %222, %223 : vector<32x2xf32>
    %225 = arith.negf %224 : vector<32x2xf32>
    %226 = math.exp %225 : vector<32x2xf32>
    %cst_61 = arith.constant 1.000000e+00 : f32
    %227 = vector.broadcast %cst_61 : f32 to vector<32x2xf32>
    %228 = arith.addf %227, %226 : vector<32x2xf32>
    %229 = arith.divf %227, %228 : vector<32x2xf32>
    %230 = vector.extract_strided_slice %221 {offsets = [32, 0], sizes = [32, 2], strides = [1, 1]} : vector<96x2xf32> to vector<32x2xf32>
    %231 = vector.extract_strided_slice %219 {offsets = [32, 0], sizes = [32, 2], strides = [1, 1]} : vector<96x2xf32> to vector<32x2xf32>
    %232 = arith.addf %230, %231 : vector<32x2xf32>
    %233 = arith.negf %232 : vector<32x2xf32>
    %234 = math.exp %233 : vector<32x2xf32>
    %cst_62 = arith.constant 1.000000e+00 : f32
    %235 = vector.broadcast %cst_62 : f32 to vector<32x2xf32>
    %236 = arith.addf %235, %234 : vector<32x2xf32>
    %237 = arith.divf %235, %236 : vector<32x2xf32>
    %238 = vector.extract_strided_slice %221 {offsets = [64, 0], sizes = [32, 2], strides = [1, 1]} : vector<96x2xf32> to vector<32x2xf32>
    %239 = vector.extract_strided_slice %219 {offsets = [64, 0], sizes = [32, 2], strides = [1, 1]} : vector<96x2xf32> to vector<32x2xf32>
    %240 = arith.mulf %229, %239 : vector<32x2xf32>
    %241 = arith.addf %238, %240 : vector<32x2xf32>
    %242 = math.tanh %241 : vector<32x2xf32>
    %cst_63 = arith.constant 1.000000e+00 : f32
    %243 = vector.broadcast %cst_63 : f32 to vector<32x2xf32>
    %244 = arith.subf %243, %237 : vector<32x2xf32>
    %245 = arith.mulf %244, %242 : vector<32x2xf32>
    %246 = arith.mulf %237, %216 : vector<32x2xf32>
    %247 = arith.addf %245, %246 : vector<32x2xf32>
    %cst_64 = arith.constant dense<0.000000e+00> : vector<96x2xf32>
    %248 = tpu.matmul %121, %247, %cst_64 {dimension_numbers = #tpu.dot_dimension_numbers<[1], [0], [0], [1], [0, 0, 1, 1], [], []>} : vector<96x32xf32>, vector<32x2xf32>, vector<96x2xf32> -> vector<96x2xf32>
    %249 = vector.broadcast %122 : vector<96x1xf32> to vector<96x2xf32>
    %250 = arith.addf %248, %249 : vector<96x2xf32>
    %251 = vector.extract_strided_slice %120 {offsets = [4, 0, 0], sizes = [1, 96, 2], strides = [1, 1, 1]} : vector<8x96x2xf32> to vector<1x96x2xf32>
    %252 = vector.shape_cast %251 : vector<1x96x2xf32> to vector<96x2xf32>
    %253 = vector.extract_strided_slice %252 {offsets = [0, 0], sizes = [32, 2], strides = [1, 1]} : vector<96x2xf32> to vector<32x2xf32>
    %254 = vector.extract_strided_slice %250 {offsets = [0, 0], sizes = [32, 2], strides = [1, 1]} : vector<96x2xf32> to vector<32x2xf32>
    %255 = arith.addf %253, %254 : vector<32x2xf32>
    %256 = arith.negf %255 : vector<32x2xf32>
    %257 = math.exp %256 : vector<32x2xf32>
    %cst_65 = arith.constant 1.000000e+00 : f32
    %258 = vector.broadcast %cst_65 : f32 to vector<32x2xf32>
    %259 = arith.addf %258, %257 : vector<32x2xf32>
    %260 = arith.divf %258, %259 : vector<32x2xf32>
    %261 = vector.extract_strided_slice %252 {offsets = [32, 0], sizes = [32, 2], strides = [1, 1]} : vector<96x2xf32> to vector<32x2xf32>
    %262 = vector.extract_strided_slice %250 {offsets = [32, 0], sizes = [32, 2], strides = [1, 1]} : vector<96x2xf32> to vector<32x2xf32>
    %263 = arith.addf %261, %262 : vector<32x2xf32>
    %264 = arith.negf %263 : vector<32x2xf32>
    %265 = math.exp %264 : vector<32x2xf32>
    %cst_66 = arith.constant 1.000000e+00 : f32
    %266 = vector.broadcast %cst_66 : f32 to vector<32x2xf32>
    %267 = arith.addf %266, %265 : vector<32x2xf32>
    %268 = arith.divf %266, %267 : vector<32x2xf32>
    %269 = vector.extract_strided_slice %252 {offsets = [64, 0], sizes = [32, 2], strides = [1, 1]} : vector<96x2xf32> to vector<32x2xf32>
    %270 = vector.extract_strided_slice %250 {offsets = [64, 0], sizes = [32, 2], strides = [1, 1]} : vector<96x2xf32> to vector<32x2xf32>
    %271 = arith.mulf %260, %270 : vector<32x2xf32>
    %272 = arith.addf %269, %271 : vector<32x2xf32>
    %273 = math.tanh %272 : vector<32x2xf32>
    %cst_67 = arith.constant 1.000000e+00 : f32
    %274 = vector.broadcast %cst_67 : f32 to vector<32x2xf32>
    %275 = arith.subf %274, %268 : vector<32x2xf32>
    %276 = arith.mulf %275, %273 : vector<32x2xf32>
    %277 = arith.mulf %268, %247 : vector<32x2xf32>
    %278 = arith.addf %276, %277 : vector<32x2xf32>
    %cst_68 = arith.constant dense<0.000000e+00> : vector<96x2xf32>
    %279 = tpu.matmul %121, %278, %cst_68 {dimension_numbers = #tpu.dot_dimension_numbers<[1], [0], [0], [1], [0, 0, 1, 1], [], []>} : vector<96x32xf32>, vector<32x2xf32>, vector<96x2xf32> -> vector<96x2xf32>
    %280 = vector.broadcast %122 : vector<96x1xf32> to vector<96x2xf32>
    %281 = arith.addf %279, %280 : vector<96x2xf32>
    %282 = vector.extract_strided_slice %120 {offsets = [5, 0, 0], sizes = [1, 96, 2], strides = [1, 1, 1]} : vector<8x96x2xf32> to vector<1x96x2xf32>
    %283 = vector.shape_cast %282 : vector<1x96x2xf32> to vector<96x2xf32>
    %284 = vector.extract_strided_slice %283 {offsets = [0, 0], sizes = [32, 2], strides = [1, 1]} : vector<96x2xf32> to vector<32x2xf32>
    %285 = vector.extract_strided_slice %281 {offsets = [0, 0], sizes = [32, 2], strides = [1, 1]} : vector<96x2xf32> to vector<32x2xf32>
    %286 = arith.addf %284, %285 : vector<32x2xf32>
    %287 = arith.negf %286 : vector<32x2xf32>
    %288 = math.exp %287 : vector<32x2xf32>
    %cst_69 = arith.constant 1.000000e+00 : f32
    %289 = vector.broadcast %cst_69 : f32 to vector<32x2xf32>
    %290 = arith.addf %289, %288 : vector<32x2xf32>
    %291 = arith.divf %289, %290 : vector<32x2xf32>
    %292 = vector.extract_strided_slice %283 {offsets = [32, 0], sizes = [32, 2], strides = [1, 1]} : vector<96x2xf32> to vector<32x2xf32>
    %293 = vector.extract_strided_slice %281 {offsets = [32, 0], sizes = [32, 2], strides = [1, 1]} : vector<96x2xf32> to vector<32x2xf32>
    %294 = arith.addf %292, %293 : vector<32x2xf32>
    %295 = arith.negf %294 : vector<32x2xf32>
    %296 = math.exp %295 : vector<32x2xf32>
    %cst_70 = arith.constant 1.000000e+00 : f32
    %297 = vector.broadcast %cst_70 : f32 to vector<32x2xf32>
    %298 = arith.addf %297, %296 : vector<32x2xf32>
    %299 = arith.divf %297, %298 : vector<32x2xf32>
    %300 = vector.extract_strided_slice %283 {offsets = [64, 0], sizes = [32, 2], strides = [1, 1]} : vector<96x2xf32> to vector<32x2xf32>
    %301 = vector.extract_strided_slice %281 {offsets = [64, 0], sizes = [32, 2], strides = [1, 1]} : vector<96x2xf32> to vector<32x2xf32>
    %302 = arith.mulf %291, %301 : vector<32x2xf32>
    %303 = arith.addf %300, %302 : vector<32x2xf32>
    %304 = math.tanh %303 : vector<32x2xf32>
    %cst_71 = arith.constant 1.000000e+00 : f32
    %305 = vector.broadcast %cst_71 : f32 to vector<32x2xf32>
    %306 = arith.subf %305, %299 : vector<32x2xf32>
    %307 = arith.mulf %306, %304 : vector<32x2xf32>
    %308 = arith.mulf %299, %278 : vector<32x2xf32>
    %309 = arith.addf %307, %308 : vector<32x2xf32>
    %cst_72 = arith.constant dense<0.000000e+00> : vector<96x2xf32>
    %310 = tpu.matmul %121, %309, %cst_72 {dimension_numbers = #tpu.dot_dimension_numbers<[1], [0], [0], [1], [0, 0, 1, 1], [], []>} : vector<96x32xf32>, vector<32x2xf32>, vector<96x2xf32> -> vector<96x2xf32>
    %311 = vector.broadcast %122 : vector<96x1xf32> to vector<96x2xf32>
    %312 = arith.addf %310, %311 : vector<96x2xf32>
    %313 = vector.extract_strided_slice %120 {offsets = [6, 0, 0], sizes = [1, 96, 2], strides = [1, 1, 1]} : vector<8x96x2xf32> to vector<1x96x2xf32>
    %314 = vector.shape_cast %313 : vector<1x96x2xf32> to vector<96x2xf32>
    %315 = vector.extract_strided_slice %314 {offsets = [0, 0], sizes = [32, 2], strides = [1, 1]} : vector<96x2xf32> to vector<32x2xf32>
    %316 = vector.extract_strided_slice %312 {offsets = [0, 0], sizes = [32, 2], strides = [1, 1]} : vector<96x2xf32> to vector<32x2xf32>
    %317 = arith.addf %315, %316 : vector<32x2xf32>
    %318 = arith.negf %317 : vector<32x2xf32>
    %319 = math.exp %318 : vector<32x2xf32>
    %cst_73 = arith.constant 1.000000e+00 : f32
    %320 = vector.broadcast %cst_73 : f32 to vector<32x2xf32>
    %321 = arith.addf %320, %319 : vector<32x2xf32>
    %322 = arith.divf %320, %321 : vector<32x2xf32>
    %323 = vector.extract_strided_slice %314 {offsets = [32, 0], sizes = [32, 2], strides = [1, 1]} : vector<96x2xf32> to vector<32x2xf32>
    %324 = vector.extract_strided_slice %312 {offsets = [32, 0], sizes = [32, 2], strides = [1, 1]} : vector<96x2xf32> to vector<32x2xf32>
    %325 = arith.addf %323, %324 : vector<32x2xf32>
    %326 = arith.negf %325 : vector<32x2xf32>
    %327 = math.exp %326 : vector<32x2xf32>
    %cst_74 = arith.constant 1.000000e+00 : f32
    %328 = vector.broadcast %cst_74 : f32 to vector<32x2xf32>
    %329 = arith.addf %328, %327 : vector<32x2xf32>
    %330 = arith.divf %328, %329 : vector<32x2xf32>
    %331 = vector.extract_strided_slice %314 {offsets = [64, 0], sizes = [32, 2], strides = [1, 1]} : vector<96x2xf32> to vector<32x2xf32>
    %332 = vector.extract_strided_slice %312 {offsets = [64, 0], sizes = [32, 2], strides = [1, 1]} : vector<96x2xf32> to vector<32x2xf32>
    %333 = arith.mulf %322, %332 : vector<32x2xf32>
    %334 = arith.addf %331, %333 : vector<32x2xf32>
    %335 = math.tanh %334 : vector<32x2xf32>
    %cst_75 = arith.constant 1.000000e+00 : f32
    %336 = vector.broadcast %cst_75 : f32 to vector<32x2xf32>
    %337 = arith.subf %336, %330 : vector<32x2xf32>
    %338 = arith.mulf %337, %335 : vector<32x2xf32>
    %339 = arith.mulf %330, %309 : vector<32x2xf32>
    %340 = arith.addf %338, %339 : vector<32x2xf32>
    %cst_76 = arith.constant dense<0.000000e+00> : vector<96x2xf32>
    %341 = tpu.matmul %121, %340, %cst_76 {dimension_numbers = #tpu.dot_dimension_numbers<[1], [0], [0], [1], [0, 0, 1, 1], [], []>} : vector<96x32xf32>, vector<32x2xf32>, vector<96x2xf32> -> vector<96x2xf32>
    %342 = vector.broadcast %122 : vector<96x1xf32> to vector<96x2xf32>
    %343 = arith.addf %341, %342 : vector<96x2xf32>
    %344 = vector.extract_strided_slice %120 {offsets = [7, 0, 0], sizes = [1, 96, 2], strides = [1, 1, 1]} : vector<8x96x2xf32> to vector<1x96x2xf32>
    %345 = vector.shape_cast %344 : vector<1x96x2xf32> to vector<96x2xf32>
    %346 = vector.extract_strided_slice %345 {offsets = [0, 0], sizes = [32, 2], strides = [1, 1]} : vector<96x2xf32> to vector<32x2xf32>
    %347 = vector.extract_strided_slice %343 {offsets = [0, 0], sizes = [32, 2], strides = [1, 1]} : vector<96x2xf32> to vector<32x2xf32>
    %348 = arith.addf %346, %347 : vector<32x2xf32>
    %349 = arith.negf %348 : vector<32x2xf32>
    %350 = math.exp %349 : vector<32x2xf32>
    %cst_77 = arith.constant 1.000000e+00 : f32
    %351 = vector.broadcast %cst_77 : f32 to vector<32x2xf32>
    %352 = arith.addf %351, %350 : vector<32x2xf32>
    %353 = arith.divf %351, %352 : vector<32x2xf32>
    %354 = vector.extract_strided_slice %345 {offsets = [32, 0], sizes = [32, 2], strides = [1, 1]} : vector<96x2xf32> to vector<32x2xf32>
    %355 = vector.extract_strided_slice %343 {offsets = [32, 0], sizes = [32, 2], strides = [1, 1]} : vector<96x2xf32> to vector<32x2xf32>
    %356 = arith.addf %354, %355 : vector<32x2xf32>
    %357 = arith.negf %356 : vector<32x2xf32>
    %358 = math.exp %357 : vector<32x2xf32>
    %cst_78 = arith.constant 1.000000e+00 : f32
    %359 = vector.broadcast %cst_78 : f32 to vector<32x2xf32>
    %360 = arith.addf %359, %358 : vector<32x2xf32>
    %361 = arith.divf %359, %360 : vector<32x2xf32>
    %362 = vector.extract_strided_slice %345 {offsets = [64, 0], sizes = [32, 2], strides = [1, 1]} : vector<96x2xf32> to vector<32x2xf32>
    %363 = vector.extract_strided_slice %343 {offsets = [64, 0], sizes = [32, 2], strides = [1, 1]} : vector<96x2xf32> to vector<32x2xf32>
    %364 = arith.mulf %353, %363 : vector<32x2xf32>
    %365 = arith.addf %362, %364 : vector<32x2xf32>
    %366 = math.tanh %365 : vector<32x2xf32>
    %cst_79 = arith.constant 1.000000e+00 : f32
    %367 = vector.broadcast %cst_79 : f32 to vector<32x2xf32>
    %368 = arith.subf %367, %361 : vector<32x2xf32>
    %369 = arith.mulf %368, %366 : vector<32x2xf32>
    %370 = arith.mulf %361, %340 : vector<32x2xf32>
    %371 = arith.addf %369, %370 : vector<32x2xf32>
    %c0_80 = arith.constant 0 : index
    %c0_81 = arith.constant 0 : index
    %372 = vector.load %arg16[%c0_80, %c0_81] : memref<32x32xf32, #tpu.memory_space<vmem>>, vector<32x32xf32>
    %cst_82 = arith.constant dense<0.000000e+00> : vector<32x2xf32>
    %373 = tpu.matmul %372, %371, %cst_82 {dimension_numbers = #tpu.dot_dimension_numbers<[1], [0], [0], [1], [0, 0, 1, 1], [], []>} : vector<32x32xf32>, vector<32x2xf32>, vector<32x2xf32> -> vector<32x2xf32>
    %c0_83 = arith.constant 0 : index
    %c0_84 = arith.constant 0 : index
    %374 = vector.load %arg17[%c0_83, %c0_84] : memref<32x1xf32, #tpu.memory_space<vmem>>, vector<32x1xf32>
    %375 = vector.broadcast %374 : vector<32x1xf32> to vector<32x2xf32>
    %376 = arith.addf %373, %375 : vector<32x2xf32>
    %cst_85 = arith.constant 0.000000e+00 : f32
    %377 = vector.broadcast %cst_85 : f32 to vector<32x2xf32>
    %378 = arith.maximumf %376, %377 : vector<32x2xf32>
    %c0_86 = arith.constant 0 : index
    %c0_87 = arith.constant 0 : index
    %379 = vector.load %arg18[%c0_86, %c0_87] : memref<4x32xf32, #tpu.memory_space<vmem>>, vector<4x32xf32>
    %cst_88 = arith.constant dense<0.000000e+00> : vector<4x2xf32>
    %380 = tpu.matmul %379, %378, %cst_88 {dimension_numbers = #tpu.dot_dimension_numbers<[1], [0], [0], [1], [0, 0, 1, 1], [], []>} : vector<4x32xf32>, vector<32x2xf32>, vector<4x2xf32> -> vector<4x2xf32>
    %c0_89 = arith.constant 0 : index
    %c0_90 = arith.constant 0 : index
    %381 = vector.load %arg19[%c0_89, %c0_90] : memref<4x1xf32, #tpu.memory_space<vmem>>, vector<4x1xf32>
    %382 = vector.broadcast %381 : vector<4x1xf32> to vector<4x2xf32>
    %383 = arith.addf %380, %382 : vector<4x2xf32>
    %c0_91 = arith.constant 0 : index
    %c0_92 = arith.constant 0 : index
    %384 = vector.load %arg20[%c0_91, %c0_92] : memref<4x2xf32, #tpu.memory_space<vmem>>, vector<4x2xf32>
    tpu.vector_store %arg20[%c0_91, %c0_92], %383 {strides = array<i32>} : memref<4x2xf32, #tpu.memory_space<vmem>>, vector<4x2xf32>,
    return
  }
  func.func @transform_0(%arg0: i32) -> (i32, i32) {
    %c0_i32 = arith.constant 0 : i32
    %c0_i32_0 = arith.constant 0 : i32
    return %c0_i32, %arg0 : i32, i32
  }
  func.func @transform_1(%arg0: i32) -> (i32, i32) {
    %c0_i32 = arith.constant 0 : i32
    %c0_i32_0 = arith.constant 0 : i32
    %c0_i32_1 = arith.constant 0 : i32
    return %c0_i32, %c0_i32_0 : i32, i32
  }
  func.func @transform_2(%arg0: i32) -> (i32, i32) {
    %c0_i32 = arith.constant 0 : i32
    %c0_i32_0 = arith.constant 0 : i32
    %c0_i32_1 = arith.constant 0 : i32
    return %c0_i32, %c0_i32_0 : i32, i32
  }
  func.func @transform_3(%arg0: i32) -> (i32, i32) {
    %c0_i32 = arith.constant 0 : i32
    %c0_i32_0 = arith.constant 0 : i32
    %c0_i32_1 = arith.constant 0 : i32
    return %c0_i32, %c0_i32_0 : i32, i32
  }
  func.func @transform_4(%arg0: i32) -> (i32, i32) {
    %c0_i32 = arith.constant 0 : i32
    %c0_i32_0 = arith.constant 0 : i32
    %c0_i32_1 = arith.constant 0 : i32
    return %c0_i32, %c0_i32_0 : i32, i32
  }
  func.func @transform_5(%arg0: i32) -> (i32, i32) {
    %c0_i32 = arith.constant 0 : i32
    %c0_i32_0 = arith.constant 0 : i32
    %c0_i32_1 = arith.constant 0 : i32
    return %c0_i32, %c0_i32_0 : i32, i32
  }
  func.func @transform_6(%arg0: i32) -> (i32, i32) {
    %c0_i32 = arith.constant 0 : i32
    %c0_i32_0 = arith.constant 0 : i32
    %c0_i32_1 = arith.constant 0 : i32
    return %c0_i32, %c0_i32_0 : i32, i32
  }
  func.func @transform_7(%arg0: i32) -> (i32, i32) {
    %c0_i32 = arith.constant 0 : i32
    %c0_i32_0 = arith.constant 0 : i32
    %c0_i32_1 = arith.constant 0 : i32
    return %c0_i32, %c0_i32_0 : i32, i32
  }
  func.func @transform_8(%arg0: i32) -> (i32, i32) {
    %c0_i32 = arith.constant 0 : i32
    %c0_i32_0 = arith.constant 0 : i32
    %c0_i32_1 = arith.constant 0 : i32
    return %c0_i32, %c0_i32_0 : i32, i32
  }
  func.func @transform_9(%arg0: i32) -> (i32, i32) {
    %c0_i32 = arith.constant 0 : i32
    %c0_i32_0 = arith.constant 0 : i32
    %c0_i32_1 = arith.constant 0 : i32
    return %c0_i32, %c0_i32_0 : i32, i32
  }
  func.func @transform_10(%arg0: i32) -> (i32, i32) {
    %c0_i32 = arith.constant 0 : i32
    %c0_i32_0 = arith.constant 0 : i32
    %c0_i32_1 = arith.constant 0 : i32
    return %c0_i32, %c0_i32_0 : i32, i32
  }
  func.func @transform_11(%arg0: i32) -> (i32, i32) {
    %c0_i32 = arith.constant 0 : i32
    %c0_i32_0 = arith.constant 0 : i32
    %c0_i32_1 = arith.constant 0 : i32
    return %c0_i32, %c0_i32_0 : i32, i32
  }
  func.func @transform_12(%arg0: i32) -> (i32, i32) {
    %c0_i32 = arith.constant 0 : i32
    %c0_i32_0 = arith.constant 0 : i32
    %c0_i32_1 = arith.constant 0 : i32
    return %c0_i32, %c0_i32_0 : i32, i32
  }
  func.func @transform_13(%arg0: i32) -> (i32, i32) {
    %c0_i32 = arith.constant 0 : i32
    %c0_i32_0 = arith.constant 0 : i32
    %c0_i32_1 = arith.constant 0 : i32
    return %c0_i32, %c0_i32_0 : i32, i32
  }
  func.func @transform_14(%arg0: i32) -> (i32, i32) {
    %c0_i32 = arith.constant 0 : i32
    %c0_i32_0 = arith.constant 0 : i32
    %c0_i32_1 = arith.constant 0 : i32
    return %c0_i32, %c0_i32_0 : i32, i32
  }
  func.func @transform_15(%arg0: i32) -> (i32, i32) {
    %c0_i32 = arith.constant 0 : i32
    %c0_i32_0 = arith.constant 0 : i32
    %c0_i32_1 = arith.constant 0 : i32
    return %c0_i32, %c0_i32_0 : i32, i32
  }
  func.func @transform_16(%arg0: i32) -> (i32, i32) {
    %c0_i32 = arith.constant 0 : i32
    %c0_i32_0 = arith.constant 0 : i32
    %c0_i32_1 = arith.constant 0 : i32
    return %c0_i32, %c0_i32_0 : i32, i32
  }
  func.func @transform_17(%arg0: i32) -> (i32, i32) {
    %c0_i32 = arith.constant 0 : i32
    %c0_i32_0 = arith.constant 0 : i32
    %c0_i32_1 = arith.constant 0 : i32
    return %c0_i32, %c0_i32_0 : i32, i32
  }
  func.func @transform_18(%arg0: i32) -> (i32, i32) {
    %c0_i32 = arith.constant 0 : i32
    %c0_i32_0 = arith.constant 0 : i32
    %c0_i32_1 = arith.constant 0 : i32
    return %c0_i32, %c0_i32_0 : i32, i32
  }
  func.func @transform_19(%arg0: i32) -> (i32, i32) {
    %c0_i32 = arith.constant 0 : i32
    %c0_i32_0 = arith.constant 0 : i32
    return %c0_i32, %arg0 : i32, i32
  }
}

</mosaic_0001>

<bundles_post_ra>
// kernel: tpu_custom_call.1
= control target key start
LH: loop header
LB: loop body
LE: loop exit
PB: predicated region body
PF: predicated region fallthrough
CT: control target
= control target key end

     0   :  { %v1461_v0 = vlaneseq  ;;  %v12843_v2 = vmov 0   ;;  %vm94_vm0 = vcmask 261120   ;;  %v12844_v5 = vmov 1966171168   ;;  %s18323_s0 = inlined_call_operand.vmem [shape: f32[32,2], index: 0, kind: input, shape index: {}]   ;;  %s18324_s2 = inlined_call_operand.vmem [shape: f32[32,1], index: 2, kind: input, shape index: {}]   ;;  %s18325_s1 = inlined_call_operand.vmem [shape: f32[32,32], index: 1, kind: input, shape index: {}]   ;;  %s18326_s4 = inlined_call_operand.vmem [shape: f32[16,1], index: 4, kind: input, shape index: {}]   ;;  %s18327_s5 = inlined_call_operand.vmem [shape: f32[16,1], index: 5, kind: input, shape index: {}]   ;;  %s18328_s7 = inlined_call_operand.vmem [shape: f32[8,1], index: 7, kind: input, shape index: {}]   ;;  %s18329_s6 = inlined_call_operand.vmem [shape: f32[4,4], index: 6, kind: input, shape index: {}]   ;;  %s18330_s8 = inlined_call_operand.vmem [shape: f32[8,1], index: 8, kind: input, shape index: {}]   ;;  %s18331_s3 = inlined_call_operand.vmem [shape: f32[1024,32], index: 3, kind: input, shape index: {}]   ;;  %s18332_s9 = inlined_call_operand.vmem [shape: f32[8,8], index: 9, kind: input, shape index: {}]   ;;  %s18333_s13 = inlined_call_operand.vmem [shape: f32[96,1], index: 13, kind: input, shape index: {}]   ;;  %s18334_s14 = inlined_call_operand.vmem [shape: f32[96,1], index: 14, kind: input, shape index: {}]   ;;  %s18335_s16 = inlined_call_operand.vmem [shape: f32[32,1], index: 16, kind: input, shape index: {}]   ;;  %s18336_s18 = inlined_call_operand.vmem [shape: f32[4,1], index: 18, kind: input, shape index: {}]   ;;  %s18337_s12 = inlined_call_operand.vmem [shape: f32[96,32], index: 12, kind: input, shape index: {}]   ;;  %s18338_s10 = inlined_call_operand.vmem [shape: f32[768,32], index: 10, kind: input, shape index: {}]   ;;  %s18339_s11 = inlined_call_operand.vmem [shape: f32[768,32], index: 11, kind: input, shape index: {}]   ;;  %s18340_s15 = inlined_call_operand.vmem [shape: f32[32,32], index: 15, kind: input, shape index: {}]   ;;  %s18341_s17 = inlined_call_operand.vmem [shape: f32[4,32], index: 17, kind: input, shape index: {}]   ;;  %s18342_s19 = inlined_call_operand.vmem [shape: f32[4,2], index: 19, kind: output, shape index: {}]  }
   0x1   :  { %18414 = sst [smem:[#allocation235_spill]] %s18323_s0  ;;  %12282 = vset.pattern.permute.xlu0 %v12843_v2  ;;  %12283 = vset.pattern.permute.xlu1 %v12843_v2  ;;  %v1459_v6 = vunpack.c.l.s4 %v12844_v5  ;;  %v2659_v17 = vld [vmem:[%s18327_s5] sm:$0xff]  ;;  %vm2953_vm1 = vcmask 11264  }
   0x2   :  { %18415 = sst [smem:[#allocation236_spill]] %s18324_s2  ;;  %v12959_v8 = vshrl.u32 %v1461_v0, 7  ;;  %v2663_v45 = vcombine.high %v2659_v17, %v2659_v17 }
   0x3   :  { %18416 = sst [smem:[#allocation237_spill]] %s18325_s1  ;;  %v1460_v12 = vunpack.c.0.s8 %v1459_v6 }
   0x4   :  { %18417 = sst [smem:[#allocation238_spill]] %s18326_s4  ;;  %v12991_v21 = vsub.s32 0, %v12959_v8 }
   0x5   :  { %s18418_s20 = sld [smem:[#allocation235_spill]]  ;;  %v12981_v16 = vsub.s32 %v1460_v12, %v12959_v8 }
   0x6   :  { %s18419_s23 = sld [smem:[#allocation236_spill]] }
   0x7   :  { %s18420_s30 = sld [smem:[#allocation237_spill]]  ;;  %18422 = vst [vmem:[#allocation2_spill] sm:$0xff] %v12981_v16  ;;  %v2670_v22 = vrot.slane %v2659_v17, %v12981_v16  ;;  %v2677_v51 = vrot.slane %v2663_v45, %v12981_v16  ;;  %v3647_v45 = vld [vmem:[%s18328_s7] sm:$0xff] }
   0x8   :  { %s18421_s24 = sld [smem:[#allocation238_spill]] }
   0x9   :  { %v2686_v31 = vrot.slane %v2670_v22, %v12981_v16  ;;  %v2678_v35 = vcombine.high %v2670_v22, %v2670_v22  ;;  %v2693_v56 = vrot.slane %v2677_v51, %v12981_v16  ;;  %v2679_v57 = vcombine.high %v2677_v51, %v2677_v51 }
   0xb   :  { %v69_v1 = vld [vmem:[%s18418_s20 + $0x18] sm:$0xff]  ;;  %v68_v3 = vld [vmem:[%s18418_s20 + $0x10] sm:$0xff]  ;;  %v67_v9 = vld [vmem:[%s18418_s20 + $0x8] sm:$0xff]  ;;  %v2764_v36 = vrot.slane %v2686_v31, %v12991_v21  ;;  %v2700_v40 = vrot.slane %v2678_v35, %v12981_v16  ;;  %v2708_v44 = vcombine.high %v2686_v31, %v2686_v31  ;;  %v2780_v61 = vrot.slane %v2693_v56, %v12991_v21 }
   0xc   :  { %v73_v4 = vld [vmem:[%s18419_s23 + $0x18] sm:$0xff]  ;;  %11533 = vmatprep.subr.mxu0 %v69_v1  ;;  %v71_v7 = vld [vmem:[%s18419_s23 + $0x8] sm:$0xff]  ;;  %v72_v10 = vld [vmem:[%s18419_s23 + $0x10] sm:$0xff]  ;;  %v2707_v62 = vrot.slane %v2679_v57, %v12981_v16  ;;  %v2709_v2 = vcombine.high %v2693_v56, %v2693_v56 }
   0xd   :  { %91 = vperm.xlu0 %12282, %v73_v4   ;;  %11534 = vmatpush3.msra.mxu0 %v69_v1  ;;  %v62_v11 = vld [vmem:[%s18420_s30] sm:$0xff]  ;;  %v63_v19 = vld [vmem:[%s18420_s30 + $0x8] sm:$0xff]  ;;  %v64_v23 = vld [vmem:[%s18420_s30 + $0x10] sm:$0xff]  ;;  %v2768_v43 = vrot.slane %v2700_v40, %v12991_v21  ;;  %v2772_v49 = vrot.slane %v2708_v44, %v12991_v21  ;;  %v2710_v50 = vcombine.high %v2700_v40, %v2700_v40 }
   0xe   :  { %81 = vperm.xlu1 %12283, %v71_v7   ;;  %11535 = vmatprep.subr.mxu0 %v68_v3  ;;  %v70_v13 = vld [vmem:[%s18419_s23] sm:$0xff]  ;;  %v65_v28 = vld [vmem:[%s18420_s30 + $0x18] sm:$0xff]  ;;  %v1454_v48 = vld [vmem:[%s18421_s24 + $0x8] sm:$0xff]  ;;  %v2784_v1 = vrot.slane %v2707_v62, %v12991_v21  ;;  %v2788_v7 = vrot.slane %v2709_v2, %v12991_v21 }
   0xf   :  { %11541 = vmatprep.mubr.msk.f32.mxu0 %vm94_vm0, %v62_v11  ;;  %v1453_v14 = vld [vmem:[%s18421_s24] sm:$0xff]  ;;  %11536 = vmatpush3.msra.mxu0 %v68_v3  ;;  %v1513_v54 = vrot.slane %v1454_v48, %v12981_v16  ;;  %v2776_v55 = vrot.slane %v2710_v50, %v12991_v21  ;;  %v2660_v3 = vld [vmem:[%s18327_s5 + $0x8] sm:$0xff]  ;;  %v1506_v6 = vcombine.high %v1454_v48, %v1454_v48 }
  0x10   :  { %v66_v15 = vld [vmem:[%s18418_s20] sm:$0xff]  ;;  %v1457_v18 = vcombine.high %v1453_v14, %v1453_v14  ;;  %11537 = vmatprep.subr.mxu0 %v67_v9  ;;  %v1464_v20 = vrot.slane %v1453_v14, %v12981_v16  ;;  %v3656_v50 = vrot.slane %v3647_v45, %v12981_v16 }
  0x11   :  { %86 = vperm.xlu0 %12282, %v72_v10   ;;  %11538 = vmatpush3.msra.mxu0 %v67_v9  ;;  %v1529_v59 = vrot.slane %v1513_v54, %v12981_v16  ;;  %v1521_v60 = vcombine.high %v1513_v54, %v1513_v54  ;;  %v2711_v9 = vcombine.high %v2707_v62, %v2707_v62  ;;  %v3102_v54 = vsub.s32 3, %v12959_v8 }
  0x12   :  { %76 = vperm.xlu1 %12283, %v70_v13   ;;  %11539 = vmatprep.subr.mxu0 %v66_v15  ;;  %v1480_v24 = vrot.slane %v1464_v20, %v12981_v16  ;;  %v1472_v25 = vcombine.high %v1464_v20, %v1464_v20  ;;  %v1471_v26 = vrot.slane %v1457_v18, %v12981_v16 }
  0x13   :  { %11540 = vmatpush3.msra.mxu0 %v66_v15  ;;  %v1590_v63 = vrot.slane %v1529_v59, %v12991_v21  ;;  %v1543_v0 = vrot.slane %v1521_v60, %v12981_v16  ;;  %v1551_v5 = vcombine.high %v1529_v59, %v1529_v59  ;;  %v2719_v10 = vrot.slane %v2660_v3, %v12981_v16  ;;  %v4746_v59 = vld [vmem:[%s18330_s8] sm:$0xff] }
  0x14   :  { %11542 = vmatmul.mubr.msk.f32.vlgmr.msra.gmra.mxu0 %vm94_vm0, %v63_v19  ;;  %v1558_v27 = vrot.slane %v1480_v24, %v12991_v21  ;;  %v1494_v29 = vrot.slane %v1472_v25, %v12981_v16  ;;  %v1502_v30 = vcombine.high %v1480_v24, %v1480_v24  ;;  %v1487_v34 = vrot.slane %v1471_v26, %v12981_v16 }
  0x15   :  { %11544 = vmatprep.mubr.msk.f32.mxu0 %vm94_vm0, %v64_v23  ;;  %v1473_v38 = vcombine.high %v1471_v26, %v1471_v26  ;;  %v1594_v4 = vrot.slane %v1543_v0, %v12991_v21  ;;  %v1598_v11 = vrot.slane %v1551_v5, %v12991_v21  ;;  %v1553_v12 = vcombine.high %v1543_v0, %v1543_v0 }
  0x16   :  { %1620 = vperm.xlu0 %12282, %v1558_v27   ;;  %v1562_v32 = vrot.slane %v1494_v29, %v12991_v21  ;;  %v1566_v33 = vrot.slane %v1502_v30, %v12991_v21  ;;  %v1504_v37 = vcombine.high %v1494_v29, %v1494_v29  ;;  %v1574_v39 = vrot.slane %v1487_v34, %v12991_v21 }
  0x17   :  { %v1501_v42 = vrot.slane %v1473_v38, %v12981_v16  ;;  %v1503_v47 = vcombine.high %v1487_v34, %v1487_v34  ;;  %v1520_v13 = vrot.slane %v1506_v6, %v12981_v16  ;;  %v2792_v14 = vrot.slane %v2711_v9, %v12991_v21 }
  0x18   :  { %11545 = vmatmul.mubr.msk.f32.gmra.mxu0 %vm94_vm0, %v65_v28  ;;  %1624 = vperm.xlu1 %12283, %v1562_v32   ;;  %v1570_v41 = vrot.slane %v1504_v37, %v12991_v21  ;;  %v2735_v15 = vrot.slane %v2719_v10, %v12981_v16  ;;  %v2727_v17 = vcombine.high %v2719_v10, %v2719_v10 }
  0x19   :  { %v1578_v46 = vrot.slane %v1501_v42, %v12991_v21  ;;  %v1582_v52 = vrot.slane %v1503_v47, %v12991_v21  ;;  %v1505_v53 = vcombine.high %v1501_v42, %v1501_v42  ;;  %v1602_v18 = vrot.slane %v1553_v12, %v12991_v21  ;;  %v3078_v47 = vld [vmem:[%s18329_s6] sm:$0xf] }
  0x1a   :  { %1628 = vperm.xlu0 %12282, %v1566_v33   ;;  %v1536_v19 = vrot.slane %v1520_v13, %v12981_v16  ;;  %v1522_v20 = vcombine.high %v1520_v13, %v1520_v13  ;;  %v2796_v22 = vrot.slane %v2735_v15, %v12991_v21  ;;  %v2749_v23 = vrot.slane %v2727_v17, %v12981_v16  ;;  %v196_v13 = vld [vmem:[%s18331_s3] sm:$0xff] }
  0x1b   :  { %v1586_v58 = vrot.slane %v1505_v53, %v12991_v21  ;;  %v2712_v26 = vcombine.high %v2660_v3, %v2660_v3  ;;  %v2757_v28 = vcombine.high %v2735_v15, %v2735_v15  ;;  %v3082_v51 = vrot.slane %v3078_v47, %v12991_v21  ;;  %11555 = vmatprep.mubr.msk.f32.mxu1 %vm94_vm0, %v196_v13  ;;  %v10318_v13 = vld [vmem:[%s18335_s16 + $0x10] sm:$0xff] }
  0x1c   :  { %2826 = vperm.xlu1 %12283, %v2764_v36   ;;  %v1606_v24 = vrot.slane %v1536_v19, %v12991_v21  ;;  %v1550_v25 = vrot.slane %v1522_v20, %v12981_v16  ;;  %v2800_v27 = vrot.slane %v2749_v23, %v12991_v21  ;;  %v1552_v30 = vcombine.high %v1536_v19, %v1536_v19 }
  0x1d   :  { %v2726_v31 = vrot.slane %v2712_v26, %v12981_v16  ;;  %v2804_v32 = vrot.slane %v2757_v28, %v12991_v21  ;;  %v2759_v33 = vcombine.high %v2749_v23, %v2749_v23  ;;  %v3672_v57 = vrot.slane %v3656_v50, %v12981_v16 }
  0x1e   :  { %1636 = vperm.xlu0 %12282, %v1574_v39   ;;  %v1610_v29 = vrot.slane %v1550_v25, %v12991_v21  ;;  %v1614_v34 = vrot.slane %v1552_v30, %v12991_v21  ;;  %v1554_v35 = vcombine.high %v1550_v25, %v1550_v25  ;;  %v3103_v60 = vrot.slane %v3078_v47, %v3102_v54 }
  0x1f   :  { %v2728_v36 = vcombine.high %v2726_v31, %v2726_v31  ;;  %v2808_v37 = vrot.slane %v2759_v33, %v12991_v21  ;;  %v2742_v38 = vrot.slane %v2726_v31, %v12981_v16  ;;  %v3701_v62 = vrot.slane %v3672_v57, %v12991_v21 }
  0x20   :  { %1632 = vperm.xlu1 %12283, %v1570_v41   ;;  %v1618_v39 = vrot.slane %v1554_v35, %v12991_v21  ;;  %v4748_v17 = vcombine.high %v4746_v59, %v4746_v59 }
  0x21   :  { %v2756_v40 = vrot.slane %v2728_v36, %v12981_v16  ;;  %v2812_v41 = vrot.slane %v2742_v38, %v12991_v21  ;;  %v2758_v42 = vcombine.high %v2742_v38, %v2742_v38  ;;  %v5091_v38 = vsub.s32 6, %v12959_v8 }
  0x22   :  { %2830 = vperm.xlu0 %12282, %v2768_v43   ;;  %v4762_v23 = vrot.slane %v4748_v17, %v12981_v16  ;;  %v10442_v17 = vld [vmem:[%s18336_s18] sm:$0xf] }
  0x23   :  { %v2816_v43 = vrot.slane %v2756_v40, %v12991_v21  ;;  %v2760_v44 = vcombine.high %v2756_v40, %v2756_v40 }
  0x24   :  { %1640 = vperm.xlu1 %12283, %v1578_v46   ;;  %v2820_v46 = vrot.slane %v2758_v42, %v12991_v21  ;;  %v4764_v28 = vcombine.high %v4762_v23, %v4762_v23  ;;  %v4778_v30 = vrot.slane %v4762_v23, %v12981_v16 }
  0x25   :  { %v2824_v48 = vrot.slane %v2760_v44, %v12991_v21 }
  0x26   :  { %2834 = vperm.xlu0 %12282, %v2772_v49   ;;  %v3088_v49 = vsub.s32 1, %v12959_v8  ;;  %v4816_v33 = vrot.slane %v4778_v30, %v12991_v21 }
  0x28   :  { %1644 = vperm.xlu1 %12283, %v1582_v52   ;;  %v3095_v52 = vsub.s32 2, %v12959_v8  ;;  %v3089_v53 = vrot.slane %v3078_v47, %v3088_v49 }
  0x2a   :  { %2838 = vperm.xlu0 %12282, %v2776_v55   ;;  %v3664_v55 = vcombine.high %v3656_v50, %v3656_v50  ;;  %v3096_v56 = vrot.slane %v3078_v47, %v3095_v52 }
  0x2c   :  { %1648 = vperm.xlu1 %12283, %v1586_v58   ;;  %v3649_v58 = vcombine.high %v3647_v45, %v3647_v45  ;;  %v5084_v45 = vsub.s32 5, %v12959_v8 }
  0x2e   :  { %2842 = vperm.xlu0 %12282, %v2780_v61   ;;  %v3686_v61 = vrot.slane %v3664_v55, %v12981_v16  ;;  %v3663_v0 = vrot.slane %v3649_v58, %v12981_v16  ;;  %v8355_v55 = vld [vmem:[%s18333_s13 + $0x18] sm:$0xff]  ;;  %v8532_v58 = vld [vmem:[%s18334_s14] sm:$0xff] }
  0x30   :  { %1652 = vperm.xlu1 %12283, %v1590_v63   ;;  %v3694_v63 = vcombine.high %v3672_v57, %v3672_v57  ;;  %v3705_v2 = vrot.slane %v3686_v61, %v12991_v21  ;;  %v3696_v3 = vcombine.high %v3686_v61, %v3686_v61  ;;  %v3679_v5 = vrot.slane %v3663_v0, %v12981_v16  ;;  %v8352_v57 = vld [vmem:[%s18333_s13] sm:$0xff]  ;;  %v8358_v61 = vld [vmem:[%s18333_s13 + $0x30] sm:$0xff] }
  0x31   :  { %v3665_v10 = vcombine.high %v3663_v0, %v3663_v0  ;;  %v8537_v0 = vld [vmem:[%s18334_s14 + $0x28] sm:$0xff] }
  0x32   :  { %2846 = vperm.xlu0 %12282, %v2784_v1   ;;  %v4755_v1 = vrot.slane %v4746_v59, %v12981_v16  ;;  %v8359_v59 = vld [vmem:[%s18333_s13 + $0x38] sm:$0xff] }
  0x33   :  { %v3693_v15 = vrot.slane %v3665_v10, %v12981_v16  ;;  %v8540_v10 = vld [vmem:[%s18334_s14 + $0x40] sm:$0xff] }
  0x34   :  { %1656 = vperm.xlu1 %12283, %v1594_v4   ;;  %v3709_v4 = vrot.slane %v3694_v63, %v12991_v21  ;;  %v4763_v6 = vcombine.high %v4755_v1, %v4755_v1  ;;  %v4771_v9 = vrot.slane %v4755_v1, %v12981_v16  ;;  %v8357_v63 = vld [vmem:[%s18333_s13 + $0x28] sm:$0xff]  ;;  %v8356_v1 = vld [vmem:[%s18333_s13 + $0x20] sm:$0xff] }
  0x35   :  { %v3721_v20 = vrot.slane %v3693_v15, %v12991_v21 }
  0x36   :  { %2850 = vperm.xlu0 %12282, %v2788_v7   ;;  %v3713_v7 = vrot.slane %v3696_v3, %v12991_v21  ;;  %v4785_v12 = vrot.slane %v4763_v6, %v12981_v16  ;;  %v4793_v19 = vcombine.high %v4771_v9, %v4771_v9  ;;  %v8543_v3 = vld [vmem:[%s18334_s14 + $0x58] sm:$0xff]  ;;  %v8362_v6 = vld [vmem:[%s18333_s13 + $0x50] sm:$0xff] }
  0x38   :  { %1660 = vperm.xlu1 %12283, %v1598_v11   ;;  %v3717_v11 = vrot.slane %v3679_v5, %v12991_v21  ;;  %v4795_v25 = vcombine.high %v4785_v12, %v4785_v12 }
  0x3a   :  { %2854 = vperm.xlu0 %12282, %v2792_v14   ;;  %v4800_v14 = vrot.slane %v4771_v9, %v12991_v21  ;;  %v8361_v9 = vld [vmem:[%s18333_s13 + $0x48] sm:$0xff] }
  0x3c   :  { %1664 = vperm.xlu1 %12283, %v1602_v18   ;;  %v4804_v18 = vrot.slane %v4785_v12, %v12991_v21  ;;  %v10319_v12 = vld [vmem:[%s18335_s16 + $0x18] sm:$0xff] }
  0x3e   :  { %2858 = vperm.xlu0 %12282, %v2796_v22   ;;  %v3695_v22 = vcombine.high %v3679_v5, %v3679_v5  ;;  %v8542_v5 = vld [vmem:[%s18334_s14 + $0x50] sm:$0xff] }
  0x40   :  { %1668 = vperm.xlu1 %12283, %v1606_v24   ;;  %v4808_v24 = vrot.slane %v4793_v19, %v12991_v21  ;;  %v3725_v26 = vrot.slane %v3695_v22, %v12991_v21 }
  0x42   :  { %2862 = vperm.xlu0 %12282, %v2800_v27   ;;  %v3697_v27 = vcombine.high %v3693_v15, %v3693_v15  ;;  %v10316_v15 = vld [vmem:[%s18335_s16] sm:$0xff] }
  0x44   :  { %1672 = vperm.xlu1 %12283, %v1610_v29   ;;  %v4812_v29 = vrot.slane %v4795_v25, %v12991_v21  ;;  %v3729_v31 = vrot.slane %v3697_v27, %v12991_v21 }
  0x46   :  { %2866 = vperm.xlu0 %12282, %v2804_v32   ;;  %v4792_v32 = vrot.slane %v4764_v28, %v12981_v16 }
  0x48   :  { %1676 = vperm.xlu1 %12283, %v1614_v34   ;;  %v4794_v34 = vcombine.high %v4778_v30, %v4778_v30  ;;  %v4820_v35 = vrot.slane %v4792_v32, %v12991_v21  ;;  %v4796_v36 = vcombine.high %v4792_v32, %v4792_v32 }
  0x4a   :  { %2870 = vperm.xlu0 %12282, %v2808_v37   ;;  %v4824_v37 = vrot.slane %v4794_v34, %v12991_v21  ;;  %v4828_v40 = vrot.slane %v4796_v36, %v12991_v21  ;;  %v198_v36 = vld [vmem:[%s18331_s3 + $0x10] sm:$0xff] }
  0x4c   :  { %1680 = vperm.xlu1 %12283, %v1618_v39   ;;  %v5046_v39 = vld [vmem:[%s18332_s9] sm:$0xff] }
  0x4d   :  { %v5092_v42 = vrot.slane %v5046_v39, %v5091_v38  ;;  %v5085_v47 = vrot.slane %v5046_v39, %v5084_v45  ;;  %v5071_v50 = vrot.slane %v5046_v39, %v3102_v54  ;;  %v8354_v54 = vld [vmem:[%s18333_s13 + $0x10] sm:$0xff]  ;;  %v200_v38 = vld [vmem:[%s18331_s3 + $0x20] sm:$0xff]  ;;  %v207_v45 = vld [vmem:[%s18331_s3 + $0x58] sm:$0xff] }
  0x4e   :  { %2874 = vperm.xlu0 %12282, %v2812_v41   ;;  %v5098_v41 = vsub.s32 7, %v12959_v8 }
  0x50   :  { %2878 = vperm.xlu1 %12283, %v2816_v43   ;;  %v5077_v43 = vsub.s32 4, %v12959_v8  ;;  %v5099_v44 = vrot.slane %v5046_v39, %v5098_v41  ;;  %v8534_v8 = vld [vmem:[%s18334_s14 + $0x10] sm:$0xff]  ;;  %v203_v41 = vld [vmem:[%s18331_s3 + $0x38] sm:$0xff] }
  0x52   :  { %2882 = vperm.xlu0 %12282, %v2820_v46   ;;  %v5078_v46 = vrot.slane %v5046_v39, %v5077_v43  ;;  %v205_v43 = vld [vmem:[%s18331_s3 + $0x48] sm:$0xff] }
  0x54   :  { %2886 = vperm.xlu1 %12283, %v2824_v48   ;;  %v5064_v48 = vrot.slane %v5046_v39, %v3095_v52  ;;  %v8535_v52 = vld [vmem:[%s18334_s14 + $0x18] sm:$0xff] }
  0x56   :  { %3084 = vbcast.lane.b32.xlu0 %v3082_v51, 256  ;;  %v5050_v51 = vrot.slane %v5046_v39, %v12991_v21 }
  0x58   :  { %3091 = vbcast.lane.b32.xlu1 %v3089_v53, 256  ;;  %v5057_v53 = vrot.slane %v5046_v39, %v3088_v49  ;;  %v8353_v49 = vld [vmem:[%s18333_s13 + $0x8] sm:$0xff] }
  0x59   :  { %v201_v39 = vld [vmem:[%s18331_s3 + $0x28] sm:$0xff] }
  0x5a   :  { %3098 = vbcast.lane.b32.xlu0 %v3096_v56, 256  ;;  %v8533_v56 = vld [vmem:[%s18334_s14 + $0x8] sm:$0xff] }
  0x5c   :  { %3105 = vbcast.lane.b32.xlu1 %v3103_v60, 256  ;;  %v8539_v60 = vld [vmem:[%s18334_s14 + $0x38] sm:$0xff] }
  0x5e   :  { %3731 = vperm.xlu0 %12282, %v3701_v62   ;;  %v8538_v62 = vld [vmem:[%s18334_s14 + $0x30] sm:$0xff] }
  0x60   :  { %3735 = vperm.xlu1 %12283, %v3705_v2   ;;  %v8536_v2 = vld [vmem:[%s18334_s14 + $0x20] sm:$0xff] }
  0x62   :  { %3739 = vperm.xlu0 %12282, %v3709_v4   ;;  %v8363_v4 = vld [vmem:[%s18333_s13 + $0x58] sm:$0xff] }
  0x64   :  { %3743 = vperm.xlu1 %12283, %v3713_v7   ;;  %v8541_v7 = vld [vmem:[%s18334_s14 + $0x48] sm:$0xff] }
  0x66   :  { %3747 = vperm.xlu0 %12282, %v3717_v11   ;;  %v8360_v11 = vld [vmem:[%s18333_s13 + $0x40] sm:$0xff] }
  0x68   :  { %4830 = vperm.xlu1 %12283, %v4800_v14   ;;  %v10317_v14 = vld [vmem:[%s18335_s16 + $0x8] sm:$0xff] }
  0x6a   :  { %4834 = vperm.xlu0 %12282, %v4804_v18  }
  0x6c   :  { %3751 = vperm.xlu1 %12283, %v3721_v20  }
  0x6e   :  { %4838 = vperm.xlu0 %12282, %v4808_v24  }
  0x70   :  { %3755 = vperm.xlu1 %12283, %v3725_v26  }
  0x72   :  { %4842 = vperm.xlu0 %12282, %v4812_v29  }
  0x74   :  { %3759 = vperm.xlu1 %12283, %v3729_v31  }
  0x76   :  { %4846 = vperm.xlu0 %12282, %v4816_v33  }
  0x78   :  { %4850 = vperm.xlu1 %12283, %v4820_v35   ;;  %v197_v35 = vld [vmem:[%s18331_s3 + $0x8] sm:$0xff] }
  0x7a   :  { %4854 = vperm.xlu0 %12282, %v4824_v37   ;;  %v199_v37 = vld [vmem:[%s18331_s3 + $0x18] sm:$0xff] }
  0x7c   :  { %4858 = vperm.xlu1 %12283, %v4828_v40   ;;  %v202_v40 = vld [vmem:[%s18331_s3 + $0x30] sm:$0xff] }
  0x7e   :  { %5094 = vbcast.lane.b32.xlu0 %v5092_v42, 256  ;;  %v204_v42 = vld [vmem:[%s18331_s3 + $0x40] sm:$0xff] }
  0x80   :  { %5101 = vbcast.lane.b32.xlu1 %v5099_v44, 256  ;;  %v206_v44 = vld [vmem:[%s18331_s3 + $0x50] sm:$0xff] }
  0x82   :  { %5080 = vbcast.lane.b32.xlu0 %v5078_v46, 256  ;;  %v208_v46 = vld [vmem:[%s18331_s3 + $0x60] sm:$0xff] }
  0x84   :  { %5087 = vbcast.lane.b32.xlu1 %v5085_v47, 256  ;;  %v209_v47 = vld [vmem:[%s18331_s3 + $0x68] sm:$0xff] }
  0x86   :  { %5066 = vbcast.lane.b32.xlu0 %v5064_v48, 256  ;;  %v210_v48 = vld [vmem:[%s18331_s3 + $0x70] sm:$0xff] }
  0x88   :  { %5073 = vbcast.lane.b32.xlu1 %v5071_v50, 256  ;;  %v92_v18 = vpop.permute.xlu0 %91  ;;  %v211_v50 = vld [vmem:[%s18331_s3 + $0x78] sm:$0xff] }
  0x89   :  { %v82_v20 = vpop.permute.xlu1 %81 }
  0x8a   :  { %5052 = vbcast.lane.b32.xlu0 %v5050_v51, 256  ;;  %v212_v51 = vld [vmem:[%s18331_s3 + $0x80] sm:$0xff] }
  0x8c   :  { %5059 = vbcast.lane.b32.xlu1 %v5057_v53, 256  ;;  %v87_v25 = vpop.permute.xlu0 %86  ;;  %v213_v53 = vld [vmem:[%s18331_s3 + $0x88] sm:$0xff] }
  0x8d   :  { %v77_v30 = vpop.permute.xlu1 %76 }
  0x8e   :  { %8381 = vperm.xlu0 %12282, %v8355_v55   ;;  %v214_v55 = vld [vmem:[%s18331_s3 + $0x90] sm:$0xff] }
  0x90   :  { %8561 = vperm.xlu1 %12283, %v8535_v52   ;;  %v215_v52 = vld [vmem:[%s18331_s3 + $0x98] sm:$0xff] }
  0x92   :  { %8376 = vperm.xlu0 %12282, %v8354_v54   ;;  %v216_v54 = vld [vmem:[%s18331_s3 + $0xa0] sm:$0xff] }
  0x94   :  { %8556 = vperm.xlu1 %12283, %v8534_v8   ;;  %v217_v8 = vld [vmem:[%s18331_s3 + $0xa8] sm:$0xff] }
  0x96   :  { %8371 = vperm.xlu0 %12282, %v8353_v49   ;;  %v218_v49 = vld [vmem:[%s18331_s3 + $0xb0] sm:$0xff] }
  0x98   :  { %8551 = vperm.xlu1 %12283, %v8533_v56   ;;  %v219_v56 = vld [vmem:[%s18331_s3 + $0xb8] sm:$0xff] }
  0x9a   :  { %8366 = vperm.xlu0 %12282, %v8352_v57   ;;  %v220_v57 = vld [vmem:[%s18331_s3 + $0xc0] sm:$0xff] }
  0x9c   :  { %8546 = vperm.xlu1 %12283, %v8532_v58   ;;  %v221_v58 = vld [vmem:[%s18331_s3 + $0xc8] sm:$0xff] }
  0x9e   :  { %8401 = vperm.xlu0 %12282, %v8359_v59   ;;  %v222_v59 = vld [vmem:[%s18331_s3 + $0xd0] sm:$0xff] }
  0xa0   :  { %8581 = vperm.xlu1 %12283, %v8539_v60   ;;  %v223_v60 = vld [vmem:[%s18331_s3 + $0xd8] sm:$0xff] }
  0xa2   :  { %8396 = vperm.xlu0 %12282, %v8358_v61   ;;  %v224_v61 = vld [vmem:[%s18331_s3 + $0xe0] sm:$0xff] }
  0xa4   :  { %8576 = vperm.xlu1 %12283, %v8538_v62   ;;  %v225_v62 = vld [vmem:[%s18331_s3 + $0xe8] sm:$0xff] }
  0xa6   :  { %8391 = vperm.xlu0 %12282, %v8357_v63   ;;  %v226_v63 = vld [vmem:[%s18331_s3 + $0xf0] sm:$0xff] }
  0xa8   :  { %8571 = vperm.xlu1 %12283, %v8537_v0   ;;  %v227_v0 = vld [vmem:[%s18331_s3 + $0xf8] sm:$0xff] }
  0xaa   :  { %8386 = vperm.xlu0 %12282, %v8356_v1   ;;  %v228_v1 = vld [vmem:[%s18331_s3 + $0x100] sm:$0xff] }
  0xac   :  { %8566 = vperm.xlu1 %12283, %v8536_v2   ;;  %v229_v2 = vld [vmem:[%s18331_s3 + $0x108] sm:$0xff] }
  0xae   :  { %8601 = vperm.xlu0 %12282, %v8543_v3   ;;  %v230_v3 = vld [vmem:[%s18331_s3 + $0x110] sm:$0xff] }
  0xb0   :  { %8421 = vperm.xlu1 %12283, %v8363_v4   ;;  %v231_v4 = vld [vmem:[%s18331_s3 + $0x118] sm:$0xff] }
  0xb2   :  { %8596 = vperm.xlu0 %12282, %v8542_v5   ;;  %v232_v5 = vld [vmem:[%s18331_s3 + $0x120] sm:$0xff] }
  0xb4   :  { %8416 = vperm.xlu1 %12283, %v8362_v6   ;;  %v233_v6 = vld [vmem:[%s18331_s3 + $0x128] sm:$0xff] }
  0xb6   :  { %8591 = vperm.xlu0 %12282, %v8541_v7   ;;  %v234_v7 = vld [vmem:[%s18331_s3 + $0x130] sm:$0xff] }
  0xb8   :  { %8411 = vperm.xlu1 %12283, %v8361_v9   ;;  %v235_v9 = vld [vmem:[%s18331_s3 + $0x138] sm:$0xff] }
  0xba   :  { %8586 = vperm.xlu0 %12282, %v8540_v10   ;;  %v236_v10 = vld [vmem:[%s18331_s3 + $0x140] sm:$0xff] }
  0xbc   :  { %8406 = vperm.xlu1 %12283, %v8360_v11   ;;  %v237_v11 = vld [vmem:[%s18331_s3 + $0x148] sm:$0xff] }
  0xbe   :  { %10337 = vperm.xlu0 %12282, %v10319_v12   ;;  %v238_v12 = vld [vmem:[%s18331_s3 + $0x150] sm:$0xff] }
  0xc0   :  { %10332 = vperm.xlu1 %12283, %v10318_v13   ;;  %v239_v13 = vld [vmem:[%s18331_s3 + $0x158] sm:$0xff] }
  0xc2   :  { %10327 = vperm.xlu0 %12282, %v10317_v14   ;;  %v240_v14 = vld [vmem:[%s18331_s3 + $0x160] sm:$0xff] }
  0xc4   :  { %10322 = vperm.xlu1 %12283, %v10316_v15   ;;  %v241_v15 = vld [vmem:[%s18331_s3 + $0x168] sm:$0xff] }
  0xc6   :  { %10445 = vperm.xlu0 %12282, %v10442_v17   ;;  %v242_v17 = vld [vmem:[%s18331_s3 + $0x170] sm:$0xff] }
  0xd4   :  { %v11543_v19 = vpop.f32.mrf.mxu0 }
  0xd5   :  { %v179_v27 = vadd.f32 %v11543_v19, %v82_v20  ;;  %v244_v19 = vld [vmem:[%s18331_s3 + $0x180] sm:$0xff]  ;;  %v245_v20 = vld [vmem:[%s18331_s3 + $0x188] sm:$0xff] }
  0xd6   :  { %v173_v22 = vpop.f32.mrf.mxu0 }
  0xd7   :  { %v174_v31 = vadd.f32 %v173_v22, %v77_v30  ;;  %v13221_v33 = vmax.f32 %v179_v27, 0.0  ;;  %v246_v22 = vld [vmem:[%s18331_s3 + $0x190] sm:$0xff]  ;;  %v251_v27 = vld [vmem:[%s18331_s3 + $0x1b8] sm:$0xff]  ;;  %v253_v30 = vld [vmem:[%s18331_s3 + $0x1c8] sm:$0xff] }
  0xd8   :  { %v11546_v23 = vpop.f32.mrf.mxu0 }
  0xd9   :  { %v189_v24 = vadd.f32 %v11546_v23, %v92_v18  ;;  %18425 = vst [vmem:[#allocation5_spill] sm:$0xff] %v13221_v33  ;;  %v13225_v34 = vmax.f32 %v174_v31, 0.0  ;;  %v243_v18 = vld [vmem:[%s18331_s3 + $0x178] sm:$0xff]  ;;  %v254_v31 = vld [vmem:[%s18331_s3 + $0x1d0] sm:$0xff] }
  0xda   :  { %v183_v26 = vpop.f32.mrf.mxu0  ;;  %v247_v23 = vld [vmem:[%s18331_s3 + $0x198] sm:$0xff] }
  0xdb   :  { %v13215_v28 = vmax.f32 %v189_v24, 0.0  ;;  %v184_v29 = vadd.f32 %v183_v26, %v87_v25  ;;  %18426 = vst [vmem:[#allocation6_spill] sm:$0xff] %v13225_v34  ;;  %v248_v24 = vld [vmem:[%s18331_s3 + $0x1a0] sm:$0xff]  ;;  %v249_v25 = vld [vmem:[%s18331_s3 + $0x1a8] sm:$0xff]  ;;  %v250_v26 = vld [vmem:[%s18331_s3 + $0x1b0] sm:$0xff] }
  0xdd   :  { %18423 = vst [vmem:[#allocation3_spill] sm:$0xff] %v13215_v28  ;;  %v13217_v32 = vmax.f32 %v184_v29, 0.0  ;;  %11547 = vmatprep.subr.mxu1 %v13215_v28  ;;  %v252_v29 = vld [vmem:[%s18331_s3 + $0x1c0] sm:$0xff] }
  0xde   :  { %11548 = vmatpush3.msra.mxu1 %v13215_v28 }
  0xdf   :  { %18424 = vst [vmem:[#allocation4_spill] sm:$0xff] %v13217_v32  ;;  %11549 = vmatprep.subr.mxu1 %v13217_v32 }
  0xe0   :  { %11550 = vmatpush3.msra.mxu1 %v13217_v32 }
  0xe1   :  { %11551 = vmatprep.subr.mxu1 %v13221_v33 }
  0xe2   :  { %11552 = vmatpush3.msra.mxu1 %v13221_v33 }
  0xe3   :  { %11553 = vmatprep.subr.mxu1 %v13225_v34 }
  0xe4   :  { %11554 = vmatpush3.msra.mxu1 %v13225_v34 }
  0xe5   :  { %11556 = vmatmul.mubr.msk.f32.vlgmr.msra.gmra.mxu1 %vm94_vm0, %v197_v35  ;;  %v255_v35 = vld [vmem:[%s18331_s3 + $0x1d8] sm:$0xff] }
  0xe6   :  { %11558 = vmatprep.mubr.msk.f32.mxu1 %vm94_vm0, %v198_v36  ;;  %v256_v36 = vld [vmem:[%s18331_s3 + $0x1e0] sm:$0xff] }
  0xe9   :  { %11559 = vmatmul.mubr.msk.f32.gmra.mxu1 %vm94_vm0, %v199_v37  ;;  %v257_v37 = vld [vmem:[%s18331_s3 + $0x1e8] sm:$0xff] }
  0xea   :  { %11561 = vmatprep.mubr.msk.f32.mxu1 %vm94_vm0, %v200_v38  ;;  %v258_v38 = vld [vmem:[%s18331_s3 + $0x1f0] sm:$0xff] }
  0xed   :  { %11562 = vmatmul.mubr.msk.f32.gmra.mxu1 %vm94_vm0, %v201_v39  ;;  %v259_v39 = vld [vmem:[%s18331_s3 + $0x1f8] sm:$0xff] }
  0xee   :  { %11564 = vmatprep.mubr.msk.f32.mxu1 %vm94_vm0, %v202_v40  ;;  %v260_v40 = vld [vmem:[%s18331_s3 + $0x200] sm:$0xff] }
  0xf1   :  { %11565 = vmatmul.mubr.msk.f32.gmra.mxu1 %vm94_vm0, %v203_v41  ;;  %v261_v41 = vld [vmem:[%s18331_s3 + $0x208] sm:$0xff] }
  0xf2   :  { %11567 = vmatprep.mubr.msk.f32.mxu1 %vm94_vm0, %v204_v42  ;;  %v262_v42 = vld [vmem:[%s18331_s3 + $0x210] sm:$0xff] }
  0xf5   :  { %11568 = vmatmul.mubr.msk.f32.gmra.mxu1 %vm94_vm0, %v205_v43  ;;  %v263_v43 = vld [vmem:[%s18331_s3 + $0x218] sm:$0xff] }
  0xf6   :  { %11570 = vmatprep.mubr.msk.f32.mxu1 %vm94_vm0, %v206_v44  ;;  %v264_v44 = vld [vmem:[%s18331_s3 + $0x220] sm:$0xff] }
  0xf9   :  { %11571 = vmatmul.mubr.msk.f32.gmra.mxu1 %vm94_vm0, %v207_v45  ;;  %v265_v45 = vld [vmem:[%s18331_s3 + $0x228] sm:$0xff] }
  0xfa   :  { %11573 = vmatprep.mubr.msk.f32.mxu1 %vm94_vm0, %v208_v46  ;;  %v266_v46 = vld [vmem:[%s18331_s3 + $0x230] sm:$0xff] }
  0xfd   :  { %11574 = vmatmul.mubr.msk.f32.gmra.mxu1 %vm94_vm0, %v209_v47  ;;  %v267_v47 = vld [vmem:[%s18331_s3 + $0x238] sm:$0xff] }
  0xfe   :  { %11576 = vmatprep.mubr.msk.f32.mxu1 %vm94_vm0, %v210_v48  ;;  %v268_v48 = vld [vmem:[%s18331_s3 + $0x240] sm:$0xff] }
 0x101   :  { %11577 = vmatmul.mubr.msk.f32.gmra.mxu1 %vm94_vm0, %v211_v50  ;;  %v269_v50 = vld [vmem:[%s18331_s3 + $0x248] sm:$0xff] }
 0x102   :  { %11579 = vmatprep.mubr.msk.f32.mxu1 %vm94_vm0, %v212_v51  ;;  %v270_v51 = vld [vmem:[%s18331_s3 + $0x250] sm:$0xff] }
 0x105   :  { %11580 = vmatmul.mubr.msk.f32.gmra.mxu1 %vm94_vm0, %v213_v53  ;;  %v271_v53 = vld [vmem:[%s18331_s3 + $0x258] sm:$0xff] }
 0x106   :  { %11582 = vmatprep.mubr.msk.f32.mxu1 %vm94_vm0, %v214_v55  ;;  %v272_v55 = vld [vmem:[%s18331_s3 + $0x260] sm:$0xff] }
 0x109   :  { %11583 = vmatmul.mubr.msk.f32.gmra.mxu1 %vm94_vm0, %v215_v52  ;;  %v273_v52 = vld [vmem:[%s18331_s3 + $0x268] sm:$0xff] }
 0x10a   :  { %11585 = vmatprep.mubr.msk.f32.mxu1 %vm94_vm0, %v216_v54  ;;  %v274_v54 = vld [vmem:[%s18331_s3 + $0x270] sm:$0xff] }
 0x10d   :  { %11586 = vmatmul.mubr.msk.f32.gmra.mxu1 %vm94_vm0, %v217_v8  ;;  %v275_v8 = vld [vmem:[%s18331_s3 + $0x278] sm:$0xff] }
 0x10e   :  { %11588 = vmatprep.mubr.msk.f32.mxu1 %vm94_vm0, %v218_v49  ;;  %v276_v49 = vld [vmem:[%s18331_s3 + $0x280] sm:$0xff] }
 0x111   :  { %11589 = vmatmul.mubr.msk.f32.gmra.mxu1 %vm94_vm0, %v219_v56  ;;  %v277_v56 = vld [vmem:[%s18331_s3 + $0x288] sm:$0xff] }
 0x112   :  { %11591 = vmatprep.mubr.msk.f32.mxu1 %vm94_vm0, %v220_v57  ;;  %v278_v57 = vld [vmem:[%s18331_s3 + $0x290] sm:$0xff] }
 0x115   :  { %11592 = vmatmul.mubr.msk.f32.gmra.mxu1 %vm94_vm0, %v221_v58  ;;  %v279_v58 = vld [vmem:[%s18331_s3 + $0x298] sm:$0xff] }
 0x116   :  { %11594 = vmatprep.mubr.msk.f32.mxu1 %vm94_vm0, %v222_v59  ;;  %v280_v59 = vld [vmem:[%s18331_s3 + $0x2a0] sm:$0xff] }
 0x119   :  { %11595 = vmatmul.mubr.msk.f32.gmra.mxu1 %vm94_vm0, %v223_v60  ;;  %v281_v60 = vld [vmem:[%s18331_s3 + $0x2a8] sm:$0xff] }
 0x11a   :  { %11597 = vmatprep.mubr.msk.f32.mxu1 %vm94_vm0, %v224_v61  ;;  %v282_v61 = vld [vmem:[%s18331_s3 + $0x2b0] sm:$0xff] }
 0x11d   :  { %11598 = vmatmul.mubr.msk.f32.gmra.mxu1 %vm94_vm0, %v225_v62  ;;  %v283_v62 = vld [vmem:[%s18331_s3 + $0x2b8] sm:$0xff] }
 0x11e   :  { %11600 = vmatprep.mubr.msk.f32.mxu1 %vm94_vm0, %v226_v63  ;;  %v284_v63 = vld [vmem:[%s18331_s3 + $0x2c0] sm:$0xff] }
 0x121   :  { %11601 = vmatmul.mubr.msk.f32.gmra.mxu1 %vm94_vm0, %v227_v0  ;;  %v285_v0 = vld [vmem:[%s18331_s3 + $0x2c8] sm:$0xff] }
 0x122   :  { %11603 = vmatprep.mubr.msk.f32.mxu1 %vm94_vm0, %v228_v1  ;;  %v286_v1 = vld [vmem:[%s18331_s3 + $0x2d0] sm:$0xff] }
 0x125   :  { %11604 = vmatmul.mubr.msk.f32.gmra.mxu1 %vm94_vm0, %v229_v2  ;;  %v287_v2 = vld [vmem:[%s18331_s3 + $0x2d8] sm:$0xff] }
 0x126   :  { %11606 = vmatprep.mubr.msk.f32.mxu1 %vm94_vm0, %v230_v3  ;;  %v288_v3 = vld [vmem:[%s18331_s3 + $0x2e0] sm:$0xff] }
 0x129   :  { %11607 = vmatmul.mubr.msk.f32.gmra.mxu1 %vm94_vm0, %v231_v4  ;;  %v289_v4 = vld [vmem:[%s18331_s3 + $0x2e8] sm:$0xff] }
 0x12a   :  { %11609 = vmatprep.mubr.msk.f32.mxu1 %vm94_vm0, %v232_v5  ;;  %v290_v5 = vld [vmem:[%s18331_s3 + $0x2f0] sm:$0xff] }
 0x12d   :  { %11610 = vmatmul.mubr.msk.f32.gmra.mxu1 %vm94_vm0, %v233_v6  ;;  %v291_v6 = vld [vmem:[%s18331_s3 + $0x2f8] sm:$0xff] }
 0x12e   :  { %11612 = vmatprep.mubr.msk.f32.mxu1 %vm94_vm0, %v234_v7  ;;  %v292_v7 = vld [vmem:[%s18331_s3 + $0x300] sm:$0xff] }
 0x131   :  { %11613 = vmatmul.mubr.msk.f32.gmra.mxu1 %vm94_vm0, %v235_v9  ;;  %v293_v9 = vld [vmem:[%s18331_s3 + $0x308] sm:$0xff] }
 0x132   :  { %11615 = vmatprep.mubr.msk.f32.mxu1 %vm94_vm0, %v236_v10  ;;  %v294_v10 = vld [vmem:[%s18331_s3 + $0x310] sm:$0xff] }
 0x135   :  { %11616 = vmatmul.mubr.msk.f32.gmra.mxu1 %vm94_vm0, %v237_v11 }
 0x136   :  { %11618 = vmatprep.mubr.msk.f32.mxu1 %vm94_vm0, %v238_v12 }
 0x139   :  { %11619 = vmatmul.mubr.msk.f32.gmra.mxu1 %vm94_vm0, %v239_v13 }
 0x13a   :  { %11621 = vmatprep.mubr.msk.f32.mxu1 %vm94_vm0, %v240_v14  ;;  %v295_v14 = vld [vmem:[%s18331_s3 + $0x318] sm:$0xff] }
 0x13d   :  { %11622 = vmatmul.mubr.msk.f32.gmra.mxu1 %vm94_vm0, %v241_v15 }
 0x13e   :  { %11624 = vmatprep.mubr.msk.f32.mxu1 %vm94_vm0, %v242_v17  ;;  %v296_v17 = vld [vmem:[%s18331_s3 + $0x320] sm:$0xff] }
 0x141   :  { %11625 = vmatmul.mubr.msk.f32.gmra.mxu1 %vm94_vm0, %v243_v18 }
 0x142   :  { %11627 = vmatprep.mubr.msk.f32.mxu1 %vm94_vm0, %v244_v19 }
 0x145   :  { %11628 = vmatmul.mubr.msk.f32.gmra.mxu1 %vm94_vm0, %v245_v20 }
 0x146   :  { %11630 = vmatprep.mubr.msk.f32.mxu1 %vm94_vm0, %v246_v22 }
 0x149   :  { %11631 = vmatmul.mubr.msk.f32.gmra.mxu1 %vm94_vm0, %v247_v23 }
 0x14a   :  { %11633 = vmatprep.mubr.msk.f32.mxu1 %vm94_vm0, %v248_v24 }
 0x14d   :  { %11634 = vmatmul.mubr.msk.f32.gmra.mxu1 %vm94_vm0, %v249_v25 }
 0x14e   :  { %11636 = vmatprep.mubr.msk.f32.mxu1 %vm94_vm0, %v250_v26 }
 0x151   :  { %11637 = vmatmul.mubr.msk.f32.gmra.mxu1 %vm94_vm0, %v251_v27 }
 0x152   :  { %11639 = vmatprep.mubr.msk.f32.mxu1 %vm94_vm0, %v252_v29 }
 0x155   :  { %11640 = vmatmul.mubr.msk.f32.gmra.mxu1 %vm94_vm0, %v253_v30  ;;  %v297_v30 = vld [vmem:[%s18331_s3 + $0x328] sm:$0xff] }
 0x156   :  { %11642 = vmatprep.mubr.msk.f32.mxu1 %vm94_vm0, %v254_v31  ;;  %v13650_v31 = vcombine.high %v13215_v28, %v13215_v28 }
 0x158   :  { %18427 = vst [vmem:[#allocation7_spill] sm:$0xff] %v13650_v31 }
 0x159   :  { %11643 = vmatmul.mubr.msk.f32.gmra.mxu1 %vm94_vm0, %v255_v35 }
 0x15a   :  { %11645 = vmatprep.mubr.msk.f32.mxu1 %vm94_vm0, %v256_v36 }
 0x15d   :  { %11646 = vmatmul.mubr.msk.f32.gmra.mxu1 %vm94_vm0, %v257_v37 }
 0x15e   :  { %11648 = vmatprep.mubr.msk.f32.mxu1 %vm94_vm0, %v258_v38  ;;  %v298_v38 = vld [vmem:[%s18331_s3 + $0x330] sm:$0xff] }
 0x161   :  { %11649 = vmatmul.mubr.msk.f32.gmra.mxu1 %vm94_vm0, %v259_v39 }
 0x162   :  { %11651 = vmatprep.mubr.msk.f32.mxu1 %vm94_vm0, %v260_v40 }
 0x165   :  { %11652 = vmatmul.mubr.msk.f32.gmra.mxu1 %vm94_vm0, %v261_v41 }
 0x166   :  { %11654 = vmatprep.mubr.msk.f32.mxu1 %vm94_vm0, %v262_v42 }
 0x169   :  { %11655 = vmatmul.mubr.msk.f32.gmra.mxu1 %vm94_vm0, %v263_v43 }
 0x16a   :  { %11657 = vmatprep.mubr.msk.f32.mxu1 %vm94_vm0, %v264_v44 }
 0x16d   :  { %11658 = vmatmul.mubr.msk.f32.gmra.mxu1 %vm94_vm0, %v265_v45 }
 0x16e   :  { %11660 = vmatprep.mubr.msk.f32.mxu1 %vm94_vm0, %v266_v46 }
 0x171   :  { %11661 = vmatmul.mubr.msk.f32.gmra.mxu1 %vm94_vm0, %v267_v47 }
 0x172   :  { %11663 = vmatprep.mubr.msk.f32.mxu1 %vm94_vm0, %v268_v48 }
 0x175   :  { %11664 = vmatmul.mubr.msk.f32.gmra.mxu1 %vm94_vm0, %v269_v50  ;;  %v13903_v50 = vpop.permute.xlu1 %1624 }
 0x176   :  { %11666 = vmatprep.mubr.msk.f32.mxu1 %vm94_vm0, %v270_v51 }
 0x179   :  { %11667 = vmatmul.mubr.msk.f32.gmra.mxu1 %vm94_vm0, %v271_v53 }
 0x17a   :  { %11669 = vmatprep.mubr.msk.f32.mxu1 %vm94_vm0, %v272_v55  ;;  %v299_v55 = vld [vmem:[%s18331_s3 + $0x338] sm:$0xff] }
 0x17d   :  { %11670 = vmatmul.mubr.msk.f32.gmra.mxu1 %vm94_vm0, %v273_v52 }
 0x17e   :  { %11672 = vmatprep.mubr.msk.f32.mxu1 %vm94_vm0, %v274_v54 }
 0x181   :  { %11673 = vmatmul.mubr.msk.f32.gmra.mxu1 %vm94_vm0, %v275_v8 }
 0x182   :  { %11675 = vmatprep.mubr.msk.f32.mxu1 %vm94_vm0, %v276_v49 }
 0x185   :  { %11676 = vmatmul.mubr.msk.f32.gmra.mxu1 %vm94_vm0, %v277_v56  ;;  %v300_v56 = vld [vmem:[%s18331_s3 + $0x340] sm:$0xff] }
 0x186   :  { %11678 = vmatprep.mubr.msk.f32.mxu1 %vm94_vm0, %v278_v57 }
 0x189   :  { %11679 = vmatmul.mubr.msk.f32.gmra.mxu1 %vm94_vm0, %v279_v58 }
 0x18a   :  { %11681 = vmatprep.mubr.msk.f32.mxu1 %vm94_vm0, %v280_v59 }
 0x18d   :  { %11682 = vmatmul.mubr.msk.f32.gmra.mxu1 %vm94_vm0, %v281_v60 }
 0x18e   :  { %11684 = vmatprep.mubr.msk.f32.mxu1 %vm94_vm0, %v282_v61 }
 0x191   :  { %11685 = vmatmul.mubr.msk.f32.gmra.mxu1 %vm94_vm0, %v283_v62 }
 0x192   :  { %11687 = vmatprep.mubr.msk.f32.mxu1 %vm94_vm0, %v284_v63 }
 0x195   :  { %11688 = vmatmul.mubr.msk.f32.gmra.mxu1 %vm94_vm0, %v285_v0 }
 0x196   :  { %11690 = vmatprep.mubr.msk.f32.mxu1 %vm94_vm0, %v286_v1 }
 0x199   :  { %11691 = vmatmul.mubr.msk.f32.gmra.mxu1 %vm94_vm0, %v287_v2 }
 0x19a   :  { %11693 = vmatprep.mubr.msk.f32.mxu1 %vm94_vm0, %v288_v3 }
 0x19d   :  { %11694 = vmatmul.mubr.msk.f32.gmra.mxu1 %vm94_vm0, %v289_v4 }
 0x19e   :  { %11696 = vmatprep.mubr.msk.f32.mxu1 %vm94_vm0, %v290_v5 }
 0x1a1   :  { %11697 = vmatmul.mubr.msk.f32.gmra.mxu1 %vm94_vm0, %v291_v6  ;;  %v301_v6 = vld [vmem:[%s18331_s3 + $0x348] sm:$0xff] }
 0x1a2   :  { %11699 = vmatprep.mubr.msk.f32.mxu1 %vm94_vm0, %v292_v7 }
 0x1a5   :  { %v11557_v11 = vpop.f32.mrf.mxu1  ;;  %11700 = vmatmul.mubr.msk.f32.gmra.mxu1 %vm94_vm0, %v293_v9 }
 0x1a6   :  { %v1430_v12 = vcombine.high %v11557_v11, %v11557_v11  ;;  %v1753_v13 = vrot.slane %v11557_v11, %v12981_v16  ;;  %11702 = vmatprep.mubr.msk.f32.mxu1 %vm94_vm0, %v294_v10 }
 0x1a7   :  { %v774_v15 = vpop.f32.mrf.mxu1 }
 0x1a8   :  { %v1754_v18 = vcombine.high %v1753_v13, %v1753_v13  ;;  %v13631_v19 = vrot.slane %v1753_v13, %v12981_v16  ;;  %v1777_v20 = vrot.slane %v1430_v12, %v12981_v16  ;;  %v1429_v22 = vcombine.high %v774_v15, %v774_v15  ;;  %v302_v12 = vld [vmem:[%s18331_s3 + $0x350] sm:$0xff] }
 0x1a9   :  { %v1705_v23 = vrot.slane %v774_v15, %v12981_v16  ;;  %11703 = vmatmul.mubr.msk.f32.gmra.mxu1 %vm94_vm0, %v295_v14  ;;  %v11560_v29 = vpop.f32.mrf.mxu1 }
 0x1aa   :  { %v13637_v24 = vrot.slane %v1754_v18, %v12981_v16  ;;  %v1769_v25 = vcombine.high %v13631_v19, %v13631_v19  ;;  %v1778_v26 = vcombine.high %v1777_v20, %v1777_v20  ;;  %v13642_v27 = vrot.slane %v1777_v20, %v12981_v16  ;;  %11705 = vmatprep.mubr.msk.f32.mxu1 %vm94_vm0, %v296_v17 }
 0x1ab   :  { %v1706_v35 = vcombine.high %v1705_v23, %v1705_v23  ;;  %v13653_v36 = vrot.slane %v1705_v23, %v12981_v16  ;;  %v1729_v37 = vrot.slane %v1429_v22, %v12981_v16  ;;  %v784_v53 = vpop.f32.mrf.mxu1  ;;  %v1432_v60 = vcombine.high %v11560_v29, %v11560_v29 }
 0x1ac   :  { %v1770_v39 = vcombine.high %v13637_v24, %v13637_v24  ;;  %v13662_v40 = vrot.slane %v1778_v26, %v12981_v16  ;;  %v1793_v41 = vcombine.high %v13642_v27, %v13642_v27  ;;  %v13671_v44 = vrot.slane %v1769_v25, %v12991_v21 }
 0x1ad   :  { %v13674_v45 = vrot.slane %v1706_v35, %v12981_v16  ;;  %v1721_v46 = vcombine.high %v13653_v36, %v13653_v36  ;;  %11706 = vmatmul.mubr.msk.f32.gmra.mxu1 %vm94_vm0, %v297_v30  ;;  %v1730_v8 = vcombine.high %v1729_v37, %v1729_v37  ;;  %v13698_v49 = vrot.slane %v1729_v37, %v12981_v16  ;;  %v11563_v5 = vpop.f32.mrf.mxu1  ;;  %v303_v35 = vld [vmem:[%s18331_s3 + $0x358] sm:$0xff] }
 0x1ae   :  { %v1794_v47 = vcombine.high %v13662_v40, %v13662_v40  ;;  %v13682_v48 = vrot.slane %v1770_v39, %v12991_v21  ;;  %11708 = vmatprep.mubr.msk.f32.mxu1 %vm94_vm0, %v298_v38  ;;  %v13693_v52 = vrot.slane %v1793_v41, %v12991_v21  ;;  %v1849_v1 = vrot.slane %v11560_v29, %v12981_v16 }
 0x1af   :  { %v1722_v54 = vcombine.high %v13674_v45, %v13674_v45  ;;  %v13711_v61 = vrot.slane %v1730_v8, %v12981_v16  ;;  %v1745_v62 = vcombine.high %v13698_v49, %v13698_v49  ;;  %v13716_v63 = vrot.slane %v1721_v46, %v12991_v21  ;;  %v304_v46 = vld [vmem:[%s18331_s3 + $0x360] sm:$0xff] }
 0x1b0   :  { %v13704_v57 = vrot.slane %v1794_v47, %v12991_v21  ;;  %v1873_v2 = vrot.slane %v1432_v60, %v12981_v16  ;;  %v1431_v3 = vcombine.high %v784_v53, %v784_v53  ;;  %v1801_v4 = vrot.slane %v784_v53, %v12981_v16 }
 0x1b1   :  { %v13719_v0 = vrot.slane %v1722_v54, %v12991_v21  ;;  %11709 = vmatmul.mubr.msk.f32.gmra.mxu1 %vm94_vm0, %v299_v55  ;;  %v1746_v7 = vcombine.high %v13711_v61, %v13711_v61  ;;  %v13736_v11 = vrot.slane %v1745_v62, %v12991_v21  ;;  %v1850_v13 = vcombine.high %v1849_v1, %v1849_v1 }
 0x1b2   :  { %11711 = vmatprep.mubr.msk.f32.mxu1 %vm94_vm0, %v300_v56  ;;  %v13742_v14 = vrot.slane %v1849_v1, %v12981_v16  ;;  %v1874_v15 = vcombine.high %v1873_v2, %v1873_v2  ;;  %v13745_v17 = vrot.slane %v1873_v2, %v12981_v16  ;;  %v1802_v18 = vcombine.high %v1801_v4, %v1801_v4 }
 0x1b3   :  { %v13748_v20 = vrot.slane %v1801_v4, %v12981_v16  ;;  %v1825_v22 = vrot.slane %v1431_v3, %v12981_v16  ;;  %v1434_v23 = vcombine.high %v11563_v5, %v11563_v5  ;;  %v13753_v25 = vrot.slane %v1850_v13, %v12981_v16 }
 0x1b4   :  { %v1865_v26 = vcombine.high %v13742_v14, %v13742_v14  ;;  %v13758_v29 = vrot.slane %v1874_v15, %v12981_v16  ;;  %v1889_v30 = vcombine.high %v13745_v17, %v13745_v17  ;;  %v13767_v37 = vrot.slane %v1746_v7, %v12991_v21  ;;  %v305_v7 = vld [vmem:[%s18331_s3 + $0x368] sm:$0xff] }
 0x1b5   :  { %11712 = vmatmul.mubr.msk.f32.gmra.mxu1 %vm94_vm0, %v301_v6  ;;  %v13772_v39 = vrot.slane %v1802_v18, %v12981_v16  ;;  %v1817_v41 = vcombine.high %v13748_v20, %v13748_v20  ;;  %v1866_v47 = vcombine.high %v13753_v25, %v13753_v25  ;;  %v1826_v62 = vcombine.high %v1825_v22, %v1825_v22  ;;  %v794_v6 = vpop.f32.mrf.mxu1 }
 0x1b6   :  { %11714 = vmatprep.mubr.msk.f32.mxu1 %vm94_vm0, %v302_v12  ;;  %v1890_v53 = vcombine.high %v13758_v29, %v13758_v29  ;;  %v13788_v8 = vrot.slane %v1865_v26, %v12991_v21  ;;  %v13799_v2 = vrot.slane %v1889_v30, %v12991_v21  ;;  %v13805_v4 = vrot.slane %v1825_v22, %v12981_v16  ;;  %v306_v22 = vld [vmem:[%s18331_s3 + $0x370] sm:$0xff] }
 0x1b7   :  { %v1818_v60 = vcombine.high %v13772_v39, %v13772_v39  ;;  %v13796_v1 = vrot.slane %v1866_v47, %v12991_v21  ;;  %v13812_v12 = vrot.slane %v1826_v62, %v12981_v16  ;;  %v13819_v18 = vrot.slane %v1817_v41, %v12991_v21  ;;  %v13831_v47 = vpop.permute.xlu0 %1620  ;;  %v11566_v56 = vpop.f32.mrf.mxu1 }
 0x1b8   :  { %v13802_v3 = vrot.slane %v1890_v53, %v12991_v21  ;;  %v1841_v26 = vcombine.high %v13805_v4, %v13805_v4  ;;  %v1897_v15 = vrot.slane %v794_v6, %v12981_v16  ;;  %v1433_v13 = vcombine.high %v794_v6, %v794_v6  ;;  %v307_v53 = vld [vmem:[%s18331_s3 + $0x378] sm:$0xff]  ;;  %v308_v6 = vld [vmem:[%s18331_s3 + $0x380] sm:$0xff] }
 0x1b9   :  { %11715 = vmatmul.mubr.msk.f32.gmra.mxu1 %vm94_vm0, %v303_v35  ;;  %v13827_v30 = vrot.slane %v1818_v60, %v12991_v21  ;;  %v1945_v35 = vrot.slane %v11563_v5, %v12981_v16  ;;  %v1842_v41 = vcombine.high %v13812_v12, %v13812_v12  ;;  %v804_v59 = vpop.f32.mrf.mxu1 }
 0x1ba   :  { %11717 = vmatprep.mubr.msk.f32.mxu1 %vm94_vm0, %v304_v46  ;;  %v1969_v46 = vrot.slane %v1434_v23, %v12981_v16  ;;  %v13849_v54 = vrot.slane %v1841_v26, %v12991_v21  ;;  %v13855_v55 = vrot.slane %v1897_v15, %v12981_v16  ;;  %v1921_v38 = vrot.slane %v1433_v13, %v12981_v16 }
 0x1bb   :  { %v1946_v60 = vcombine.high %v1945_v35, %v1945_v35  ;;  %v13842_v5 = vrot.slane %v1945_v35, %v12981_v16  ;;  %v11569_v33 = vpop.f32.mrf.mxu1  ;;  %v1435_v31 = vcombine.high %v804_v59, %v804_v59 }
 0x1bc   :  { %v1970_v23 = vcombine.high %v1969_v46, %v1969_v46  ;;  %v13852_v62 = vrot.slane %v1969_v46, %v12981_v16  ;;  %18428 = vst [vmem:[#allocation8_spill] sm:$0xff] %v13855_v55  ;;  %v1922_v51 = vcombine.high %v1921_v38, %v1921_v38  ;;  %v13917_v32 = vrot.slane %v1921_v38, %v12981_v16 }
 0x1bd   :  { %11718 = vmatmul.mubr.msk.f32.gmra.mxu1 %vm94_vm0, %v305_v7  ;;  %v1898_v7 = vcombine.high %v1897_v15, %v1897_v15  ;;  %v13864_v35 = vrot.slane %v1946_v60, %v12981_v16  ;;  %v1961_v26 = vcombine.high %v13842_v5, %v13842_v5 }
 0x1be   :  { %11720 = vmatprep.mubr.msk.f32.mxu1 %vm94_vm0, %v306_v22  ;;  %v13861_v22 = vrot.slane %v1842_v41, %v12991_v21  ;;  %v13869_v46 = vrot.slane %v1970_v23, %v12981_v16  ;;  %v1985_v15 = vcombine.high %v13852_v62, %v13852_v62  ;;  %v1913_v41 = vcombine.high %v13855_v55, %v13855_v55 }
 0x1bf   :  { %v13876_v10 = vrot.slane %v1898_v7, %v12981_v16  ;;  %v1962_v60 = vcombine.high %v13864_v35, %v13864_v35  ;;  %v309_v7 = vld [vmem:[%s18331_s3 + $0x388] sm:$0xff]  ;;  %v13896_v58 = vrot.slane %v1961_v26, %v12991_v21  ;;  %18433 = vst [vmem:[#allocation13_spill] sm:$0xff] %v13917_v32  ;;  %v1993_v26 = vrot.slane %v804_v59, %v12981_v16 }
 0x1c0   :  { %18429 = vst [vmem:[#allocation9_spill] sm:$0xff] %v13869_v46  ;;  %v1986_v23 = vcombine.high %v13869_v46, %v13869_v46  ;;  %v13909_v43 = vrot.slane %v1985_v15, %v12991_v21  ;;  %v13922_v34 = vrot.slane %v1913_v41, %v12991_v21  ;;  %v13931_v38 = vrot.slane %v1922_v51, %v12981_v16 }
 0x1c1   :  { %18430 = vst [vmem:[#allocation10_spill] sm:$0xff] %v13876_v10  ;;  %11721 = vmatmul.mubr.msk.f32.gmra.mxu1 %vm94_vm0, %v307_v53  ;;  %v13893_v53 = vpop.permute.xlu0 %1628  ;;  %v1914_v9 = vcombine.high %v13876_v10, %v13876_v10  ;;  %v1937_v13 = vcombine.high %v13917_v32, %v13917_v32  ;;  %v13951_v59 = vrot.slane %v1993_v26, %v12981_v16 }
 0x1c2   :  { %11723 = vmatprep.mubr.msk.f32.mxu1 %vm94_vm0, %v308_v6  ;;  %v13906_v6 = vrot.slane %v1962_v60, %v12991_v21  ;;  %18431 = vst [vmem:[#allocation11_spill] sm:$0xff] %v13909_v43  ;;  %v13912_v42 = vrot.slane %v1986_v23, %v12991_v21  ;;  %18434 = vst [vmem:[#allocation14_spill] sm:$0xff] %v13922_v34  ;;  %v1436_v60 = vcombine.high %v11566_v56, %v11566_v56 }
 0x1c3   :  { %v13926_v15 = vrot.slane %v1914_v9, %v12991_v21  ;;  %v2041_v23 = vrot.slane %v11566_v56, %v12981_v16  ;;  %18436 = vst [vmem:[#allocation16_spill] sm:$0xff] %v13931_v38  ;;  %v1994_v56 = vcombine.high %v1993_v26, %v1993_v26  ;;  %v1938_v34 = vcombine.high %v13931_v38, %v13931_v38 }
 0x1c4   :  { %18432 = vst [vmem:[#allocation12_spill] sm:$0xff] %v13912_v42  ;;  %v2065_v28 = vrot.slane %v1436_v60, %v12981_v16  ;;  %18438 = vst [vmem:[#allocation18_spill] sm:$0xff] %v13951_v59  ;;  %v13954_v60 = vpop.permute.xlu1 %2826  ;;  %v13965_v41 = vrot.slane %v1937_v13, %v12991_v21  ;;  %v2009_v13 = vcombine.high %v13951_v59, %v13951_v59 }
 0x1c5   :  { %11724 = vmatmul.mubr.msk.f32.gmra.mxu1 %vm94_vm0, %v309_v7  ;;  %18435 = vst [vmem:[#allocation15_spill] sm:$0xff] %v13926_v15  ;;  %v2042_v7 = vcombine.high %v2041_v23, %v2041_v23  ;;  %v13938_v9 = vrot.slane %v2041_v23, %v12981_v16  ;;  %v310_v15 = vld [vmem:[%s18331_s3 + $0x390] sm:$0xff]  ;;  %v13944_v51 = vpop.permute.xlu0 %1636  ;;  %v1438_v23 = vcombine.high %v11569_v33, %v11569_v33 }
 0x1c6   :  { %11726 = vmatprep.mubr.msk.f32.mxu1 %vm94_vm0, %v310_v15  ;;  %v2066_v55 = vcombine.high %v2065_v28, %v2065_v28  ;;  %v13962_v42 = vrot.slane %v2065_v28, %v12981_v16  ;;  %18441 = vst [vmem:[#allocation21_spill] sm:$0xff] %v13965_v41  ;;  %v13968_v26 = vrot.slane %v1938_v34, %v12991_v21 }
 0x1c7   :  { %18437 = vst [vmem:[#allocation17_spill] sm:$0xff] %v13938_v9  ;;  %v13957_v32 = vrot.slane %v2042_v7, %v12981_v16  ;;  %v2057_v10 = vcombine.high %v13938_v9, %v13938_v9  ;;  %v13973_v38 = vrot.slane %v1994_v56, %v12981_v16  ;;  %v2017_v9 = vrot.slane %v1435_v31, %v12981_v16 }
 0x1c8   :  { %18440 = vst [vmem:[#allocation20_spill] sm:$0xff] %v13962_v42  ;;  %18442 = vst [vmem:[#allocation22_spill] sm:$0xff] %v13968_v26  ;;  %v13978_v43 = vrot.slane %v2066_v55, %v12981_v16  ;;  %v2081_v28 = vcombine.high %v13962_v42, %v13962_v42  ;;  %v14017_v34 = vrot.slane %v2009_v13, %v12991_v21 }
 0x1c9   :  { %18439 = vst [vmem:[#allocation19_spill] sm:$0xff] %v13957_v32  ;;  %18443 = vst [vmem:[#allocation23_spill] sm:$0xff] %v13973_v38  ;;  %v2058_v7 = vcombine.high %v13957_v32, %v13957_v32  ;;  %v13987_v15 = vrot.slane %v2057_v10, %v12991_v21  ;;  %v2010_v56 = vcombine.high %v13973_v38, %v13973_v38  ;;  %v14001_v32 = vpop.permute.xlu0 %2830 }
 0x1ca   :  { %18444 = vst [vmem:[#allocation24_spill] sm:$0xff] %v13978_v43  ;;  %v2082_v55 = vcombine.high %v13978_v43, %v13978_v43  ;;  %v14004_v10 = vrot.slane %v2081_v28, %v12991_v21  ;;  %v14007_v31 = vrot.slane %v2017_v9, %v12981_v16  ;;  %18450 = vst [vmem:[#allocation30_spill] sm:$0xff] %v14017_v34  ;;  %v312_v34 = vld [vmem:[%s18331_s3 + $0x3a0] sm:$0xff] }
 0x1cb   :  { %18445 = vst [vmem:[#allocation25_spill] sm:$0xff] %v13987_v15  ;;  %v13995_v26 = vrot.slane %v2058_v7, %v12991_v21  ;;  %v2018_v15 = vcombine.high %v2017_v9, %v2017_v9  ;;  %v1633_v7 = vpop.permute.xlu1 %1632  ;;  %v1685_v28 = vadd.f32 %v11569_v33, %v13893_v53  ;;  %v14026_v46 = vrot.slane %v2010_v56, %v12991_v21 }
 0x1cc   :  { %18447 = vst [vmem:[#allocation27_spill] sm:$0xff] %v14004_v10  ;;  %18448 = vst [vmem:[#allocation28_spill] sm:$0xff] %v14007_v31  ;;  %v2033_v9 = vcombine.high %v14007_v31, %v14007_v31  ;;  %v1686_v59 = vadd.f32 %v1633_v7, %v1438_v23  ;;  %v18453_v13 = vrot.slane %v13631_v19, %v12991_v21 }
 0x1cd   :  { %18446 = vst [vmem:[#allocation26_spill] sm:$0xff] %v13995_v26  ;;  %v14012_v26 = vrot.slane %v2082_v55, %v12991_v21  ;;  %v14021_v10 = vrot.slane %v2018_v15, %v12981_v16  ;;  %18452 = vst [vmem:[#allocation32_spill] sm:$0xff] %v14026_v46  ;;  %v311_v55 = vld [vmem:[%s18331_s3 + $0x398] sm:$0xff]  ;;  %v18454_v33 = vrot.slane %v13637_v24, %v12991_v21  ;;  %v2835_v56 = vpop.permute.xlu0 %2834 }
 0x1ce   :  { %v2411_v41 = vadd.f32 %v18453_v13, %v1685_v28  ;;  %v2413_v15 = vadd.f32 %v13671_v44, %v1685_v28  ;;  %v2414_v16 = vadd.f32 %v13682_v48, %v1685_v28  ;;  %11727 = vmatmul.mubr.msk.f32.gmra.mxu1 %vm94_vm0, %v311_v55  ;;  %v18455_v24 = vrot.slane %v13642_v27, %v12991_v21 }
 0x1cf   :  { %18449 = vst [vmem:[#allocation29_spill] sm:$0xff] %v14012_v26  ;;  %18451 = vst [vmem:[#allocation31_spill] sm:$0xff] %v14021_v10  ;;  %v2412_v53 = vadd.f32 %v18454_v33, %v1685_v28  ;;  %v2034_v23 = vcombine.high %v14021_v10, %v14021_v10  ;;  %v14050_v44 = vrot.slane %v2033_v9, %v12991_v21  ;;  %v814_v33 = vpop.f32.mrf.mxu1  ;;  %11729 = vmatprep.mubr.msk.f32.mxu1 %vm94_vm0, %v312_v34 }
 0x1d0   :  { %v2415_v7 = vadd.f32 %v18455_v24, %v1686_v59  ;;  %v18457_v48 = vrot.slane %v13662_v40, %v12991_v21  ;;  %v2417_v55 = vadd.f32 %v13693_v52, %v1686_v59  ;;  %v2418_v13 = vadd.f32 %v13704_v57, %v1686_v59  ;;  %v14057_v40 = vpop.permute.xlu1 %1640 }
 0x1d1   :  { %18456 = vst [vmem:[#allocation33_spill] sm:$0xff] %v14050_v44  ;;  %vm2475_vm2 = vcmp.ge.f32.partialorder %v2411_v41, 0.0  ;;  %vm2476_vm3 = vcmp.ge.f32.partialorder %v2412_v53, 0.0  ;;  %vm2477_vm4 = vcmp.ge.f32.partialorder %v2413_v15, 0.0  ;;  %vm2478_vm5 = vcmp.ge.f32.partialorder %v2414_v16, 0.0 }
 0x1d2   :  { %v2416_v28 = vadd.f32 %v18457_v48, %v1686_v59  ;;  %vm2479_vm6 = vcmp.ge.f32.partialorder %v2415_v7, 0.0  ;;  %vm2481_vm8 = vcmp.ge.f32.partialorder %v2417_v55, 0.0  ;;  %vm2482_vm9 = vcmp.ge.f32.partialorder %v2418_v13, 0.0 }
 0x1d3   :  { %v2539_v27 = vmul.f32 0.2, %v2411_v41  ;;  %v2540_v9 = vmul.f32 0.2, %v2412_v53  ;;  %v2541_v24 = vmul.f32 0.2, %v2413_v15  ;;  %v1437_v19 = vcombine.high %v814_v33, %v814_v33 }
 0x1d4   :  { %vm2480_vm7 = vcmp.ge.f32.partialorder %v2416_v28, 0.0  ;;  %v2542_v48 = vmul.f32 0.2, %v2414_v16  ;;  %v2543_v52 = vmul.f32 0.2, %v2415_v7  ;;  %v1683_v57 = vadd.f32 %v13831_v47, %v814_v33  ;;  %v2839_v47 = vpop.permute.xlu0 %2838 }
 0x1d5   :  { %v2544_v44 = vmul.f32 0.2, %v2416_v28  ;;  %v2545_v59 = vmul.f32 0.2, %v2417_v55  ;;  %v2546_v10 = vmul.f32 0.2, %v2418_v13  ;;  %v2603_v31 = vsel %vm2475_vm2, %v2411_v41, %v2539_v27 }
 0x1d6   :  { %v2604_v46 = vsel %vm2476_vm3, %v2412_v53, %v2540_v9  ;;  %v2605_v38 = vsel %vm2477_vm4, %v2413_v15, %v2541_v24  ;;  %v2606_v26 = vsel %vm2478_vm5, %v2414_v16, %v2542_v48  ;;  %v2607_v43 = vsel %vm2479_vm6, %v2415_v7, %v2543_v52  ;;  %v313_v9 = vld [vmem:[%s18331_s3 + $0x3a8] sm:$0xff] }
 0x1d7   :  { %v2608_v42 = vsel %vm2480_vm7, %v2416_v28, %v2544_v44  ;;  %v2609_v33 = vsel %vm2481_vm8, %v2417_v55, %v2545_v59  ;;  %v2610_v41 = vsel %vm2482_vm9, %v2418_v13, %v2546_v10  ;;  %v2897_v53 = vmul.f32 %v2835_v56, %v2603_v31  ;;  %11730 = vmatmul.mubr.msk.f32.gmra.mxu1 %vm94_vm0, %v313_v9  ;;  %v1645_v31 = vpop.permute.xlu1 %1644 }
 0x1d8   :  { %v2898_v27 = vmul.f32 %v2835_v56, %v2604_v46  ;;  %v2899_v15 = vmul.f32 %v2835_v56, %v2605_v38  ;;  %v2900_v24 = vmul.f32 %v2835_v56, %v2606_v26  ;;  %v2901_v16 = vmul.f32 %v2839_v47, %v2607_v43  ;;  %v11572_v46 = vpop.f32.mrf.mxu1 }
 0x1d9   :  { %v2902_v48 = vmul.f32 %v2839_v47, %v2608_v42  ;;  %v14077_v7 = vrot.slane %v2034_v23, %v12991_v21  ;;  %v2903_v34 = vmul.f32 %v2839_v47, %v2609_v33  ;;  %v14079_v44 = vmul.f32 %v2839_v47, %v2610_v41 }
 0x1da   :  { %v14082_v10 = vsel %vm2953_vm1, %v2897_v53, 0.0  ;;  %v14085_v28 = vsel %vm2953_vm1, %v2901_v16, 0.0  ;;  %v14088_v38 = vsel %vm2953_vm1, %v2898_v27, 0.0  ;;  %v14094_v43 = vsel %vm2953_vm1, %v2899_v15, 0.0 }
 0x1db   :  { %v14091_v42 = vsel %vm2953_vm1, %v2902_v48, 0.0  ;;  %v14097_v26 = vsel %vm2953_vm1, %v2903_v34, 0.0  ;;  %v14100_v23 = vsel %vm2953_vm1, %v2900_v24, 0.0  ;;  %v1684_v56 = vadd.f32 %v13903_v50, %v1437_v19 }
 0x1dc   :  { %v18458_v55 = vrot.slane %v13653_v36, %v12991_v21  ;;  %v18459_v52 = vrot.slane %v13674_v45, %v12991_v21  ;;  %v2405_v47 = vadd.f32 %v13716_v63, %v1683_v57  ;;  %v2406_v33 = vadd.f32 %v13719_v0, %v1683_v57  ;;  %v1649_v45 = vpop.permute.xlu1 %1648  ;;  %v14119_v63 = vpop.permute.xlu0 %2842 }
 0x1dd   :  { %v1440_v41 = vcombine.high %v11572_v46, %v11572_v46  ;;  %v18460_v53 = vrot.slane %v13698_v49, %v12991_v21  ;;  %v18461_v50 = vrot.slane %v13711_v61, %v12991_v21  ;;  %v2409_v36 = vadd.f32 %v13736_v11, %v1684_v56 }
 0x1de   :  { %v2403_v13 = vadd.f32 %v18458_v55, %v1683_v57  ;;  %v2404_v59 = vadd.f32 %v18459_v52, %v1683_v57  ;;  %v2410_v9 = vadd.f32 %v13767_v37, %v1684_v56  ;;  %vm2469_vm12 = vcmp.ge.f32.partialorder %v2405_v47, 0.0 }
 0x1df   :  { %v2407_v27 = vadd.f32 %v18460_v53, %v1684_v56  ;;  %v2408_v19 = vadd.f32 %v18461_v50, %v1684_v56  ;;  %vm2470_vm13 = vcmp.ge.f32.partialorder %v2406_v33, 0.0  ;;  %vm2473_vm2 = vcmp.ge.f32.partialorder %v2409_v36, 0.0 }
 0x1e0   :  { %vm2467_vm10 = vcmp.ge.f32.partialorder %v2403_v13, 0.0  ;;  %vm2468_vm11 = vcmp.ge.f32.partialorder %v2404_v59, 0.0  ;;  %vm2474_vm3 = vcmp.ge.f32.partialorder %v2410_v9, 0.0  ;;  %v2531_v49 = vmul.f32 0.2, %v2403_v13 }
 0x1e1   :  { %vm2471_vm14 = vcmp.ge.f32.partialorder %v2407_v27, 0.0  ;;  %vm2472_vm15 = vcmp.ge.f32.partialorder %v2408_v19, 0.0  ;;  %v2532_v0 = vmul.f32 0.2, %v2404_v59  ;;  %v2533_v57 = vmul.f32 0.2, %v2405_v47 }
 0x1e2   :  { %v1689_v61 = vadd.f32 %v11572_v46, %v1645_v31  ;;  %v2534_v15 = vmul.f32 0.2, %v2406_v33  ;;  %v2535_v24 = vmul.f32 0.2, %v2407_v27  ;;  %v2536_v11 = vmul.f32 0.2, %v2408_v19 }
 0x1e3   :  { %v1690_v16 = vadd.f32 %v1649_v45, %v1440_v41  ;;  %v2537_v37 = vmul.f32 0.2, %v2409_v36  ;;  %v2538_v48 = vmul.f32 0.2, %v2410_v9  ;;  %v2595_v34 = vsel %vm2467_vm10, %v2403_v13, %v2531_v49  ;;  %v314_v46 = vld [vmem:[%s18331_s3 + $0x3b0] sm:$0xff]  ;;  %v14139_v45 = vpop.permute.xlu0 %2846 }
 0x1e4   :  { %v2596_v56 = vsel %vm2468_vm11, %v2404_v59, %v2532_v0  ;;  %v2597_v55 = vsel %vm2469_vm12, %v2405_v47, %v2533_v57  ;;  %v2598_v52 = vsel %vm2470_vm13, %v2406_v33, %v2534_v15  ;;  %v2599_v53 = vsel %vm2471_vm14, %v2407_v27, %v2535_v24  ;;  %11732 = vmatprep.mubr.msk.f32.mxu1 %vm94_vm0, %v314_v46 }
 0x1e5   :  { %v2600_v50 = vsel %vm2472_vm15, %v2408_v19, %v2536_v11  ;;  %v2601_v31 = vsel %vm2473_vm2, %v2409_v36, %v2537_v37  ;;  %v2602_v41 = vsel %vm2474_vm3, %v2410_v9, %v2538_v48  ;;  %v2889_v13 = vmul.f32 %v13954_v60, %v2595_v34 }
 0x1e6   :  { %v2890_v59 = vmul.f32 %v13954_v60, %v2596_v56  ;;  %v2891_v47 = vmul.f32 %v13954_v60, %v2597_v55  ;;  %v2892_v33 = vmul.f32 %v13954_v60, %v2598_v52  ;;  %v2893_v27 = vmul.f32 %v14001_v32, %v2599_v53 }
 0x1e7   :  { %v2894_v19 = vmul.f32 %v14001_v32, %v2600_v50  ;;  %v2895_v36 = vmul.f32 %v14001_v32, %v2601_v31  ;;  %v2896_v9 = vmul.f32 %v14001_v32, %v2602_v41  ;;  %v2954_v49 = vsel %vm2953_vm1, %v2889_v13, 0.0 }
 0x1e8   :  { %v2985_v0 = vsel %vm2953_vm1, %v2890_v59, 0.0  ;;  %v2955_v57 = vsel %vm2953_vm1, %v2893_v27, 0.0  ;;  %v3016_v60 = vsel %vm2953_vm1, %v2891_v47, 0.0  ;;  %v3047_v24 = vsel %vm2953_vm1, %v2892_v33, 0.0 }
 0x1e9   :  { %v2986_v15 = vsel %vm2953_vm1, %v2894_v19, 0.0  ;;  %v2956_v11 = vadd.f32 %v2955_v57, %v2954_v49  ;;  %v3017_v48 = vsel %vm2953_vm1, %v2895_v36, 0.0  ;;  %v3048_v34 = vsel %vm2953_vm1, %v2896_v9, 0.0 }
 0x1ea   :  { %v2987_v37 = vadd.f32 %v2986_v15, %v2985_v0  ;;  %v3018_v56 = vadd.f32 %v3017_v48, %v3016_v60  ;;  %v3049_v32 = vadd.f32 %v3048_v34, %v3047_v24  ;;  %v18462_v55 = vrot.slane %v13742_v14, %v12991_v21  ;;  %v316_v60 = vld [vmem:[%s18331_s3 + $0x3c0] sm:$0xff] }
 0x1eb   :  { %v18463_v53 = vrot.slane %v13753_v25, %v12991_v21  ;;  %v2958_v46 = vadd.f32 %v14082_v10, %v2956_v11  ;;  %v2429_v41 = vadd.f32 %v13788_v8, %v1689_v61  ;;  %v2430_v13 = vadd.f32 %v13796_v1, %v1689_v61  ;;  %v315_v10 = vld [vmem:[%s18331_s3 + $0x3b8] sm:$0xff]  ;;  %v2851_v8 = vpop.permute.xlu0 %2850 }
 0x1ec   :  { %v2427_v52 = vadd.f32 %v18462_v55, %v1689_v61  ;;  %v2989_v31 = vadd.f32 %v14088_v38, %v2987_v37  ;;  %v3020_v59 = vadd.f32 %v14094_v43, %v3018_v56  ;;  %v14163_v47 = vadd.f32 %v14100_v23, %v3049_v32  ;;  %v824_v43 = vpop.f32.mrf.mxu1  ;;  %11733 = vmatmul.mubr.msk.f32.gmra.mxu1 %vm94_vm0, %v315_v10  ;;  %v14189_v56 = vpop.permute.xlu1 %1652 }
 0x1ed   :  { %v2428_v50 = vadd.f32 %v18463_v53, %v1689_v61  ;;  %v18464_v14 = vrot.slane %v13745_v17, %v12991_v21  ;;  %v18465_v25 = vrot.slane %v13758_v29, %v12991_v21  ;;  %v2433_v1 = vadd.f32 %v13799_v2, %v1690_v16  ;;  %11735 = vmatprep.mubr.msk.f32.mxu1 %vm94_vm0, %v316_v60 }
 0x1ee   :  { %v2434_v38 = vadd.f32 %v13802_v3, %v1690_v16  ;;  %vm2491_vm4 = vcmp.ge.f32.partialorder %v2427_v52, 0.0  ;;  %vm2493_vm6 = vcmp.ge.f32.partialorder %v2429_v41, 0.0  ;;  %vm2494_vm7 = vcmp.ge.f32.partialorder %v2430_v13, 0.0 }
 0x1ef   :  { %v2431_v33 = vadd.f32 %v18464_v14, %v1690_v16  ;;  %v2432_v27 = vadd.f32 %v18465_v25, %v1690_v16  ;;  %vm2492_vm5 = vcmp.ge.f32.partialorder %v2428_v50, 0.0  ;;  %vm2497_vm10 = vcmp.ge.f32.partialorder %v2433_v1, 0.0  ;;  %v2855_v24 = vpop.permute.xlu0 %2854 }
 0x1f0   :  { %vm2498_vm11 = vcmp.ge.f32.partialorder %v2434_v38, 0.0  ;;  %v2555_v17 = vmul.f32 0.2, %v2427_v52  ;;  %v2556_v29 = vmul.f32 0.2, %v2428_v50  ;;  %v1439_v36 = vcombine.high %v824_v43, %v824_v43 }
 0x1f1   :  { %vm2495_vm8 = vcmp.ge.f32.partialorder %v2431_v33, 0.0  ;;  %vm2496_vm9 = vcmp.ge.f32.partialorder %v2432_v27, 0.0  ;;  %v2557_v23 = vmul.f32 0.2, %v2429_v41  ;;  %v2558_v61 = vmul.f32 0.2, %v2430_v13 }
 0x1f2   :  { %v2559_v19 = vmul.f32 0.2, %v2431_v33  ;;  %v2560_v2 = vmul.f32 0.2, %v2432_v27  ;;  %v2561_v9 = vmul.f32 0.2, %v2433_v1  ;;  %v2619_v16 = vsel %vm2491_vm4, %v2427_v52, %v2555_v17 }
 0x1f3   :  { %v2562_v3 = vmul.f32 0.2, %v2434_v38  ;;  %v2620_v49 = vsel %vm2492_vm5, %v2428_v50, %v2556_v29  ;;  %v2621_v0 = vsel %vm2493_vm6, %v2429_v41, %v2557_v23  ;;  %v2622_v57 = vsel %vm2494_vm7, %v2430_v13, %v2558_v61 }
 0x1f4   :  { %v2623_v15 = vsel %vm2495_vm8, %v2431_v33, %v2559_v19  ;;  %v2624_v11 = vsel %vm2496_vm9, %v2432_v27, %v2560_v2  ;;  %v2625_v37 = vsel %vm2497_vm10, %v2433_v1, %v2561_v9  ;;  %v2913_v34 = vmul.f32 %v2851_v8, %v2619_v16 }
 0x1f5   :  { %v2626_v48 = vsel %vm2498_vm11, %v2434_v38, %v2562_v3  ;;  %v2914_v32 = vmul.f32 %v2851_v8, %v2620_v49  ;;  %v2915_v55 = vmul.f32 %v2851_v8, %v2621_v0  ;;  %v2916_v52 = vmul.f32 %v2851_v8, %v2622_v57  ;;  %v14240_v49 = vpop.permute.xlu0 %2858 }
 0x1f6   :  { %v2917_v53 = vmul.f32 %v2855_v24, %v2623_v15  ;;  %v3052_v50 = vsel %vm2953_vm1, %v14079_v44, 0.0  ;;  %v2918_v41 = vmul.f32 %v2855_v24, %v2624_v11  ;;  %v2919_v13 = vmul.f32 %v2855_v24, %v2625_v37 }
 0x1f7   :  { %v2920_v14 = vmul.f32 %v2855_v24, %v2626_v48  ;;  %v14194_v33 = vsel %vm2953_vm1, %v2913_v34, 0.0  ;;  %v14200_v27 = vsel %vm2953_vm1, %v2914_v32, 0.0  ;;  %v14203_v10 = vsel %vm2953_vm1, %v2915_v55, 0.0 }
 0x1f8   :  { %v14197_v25 = vsel %vm2953_vm1, %v2917_v53, 0.0  ;;  %v14206_v8 = vsel %vm2953_vm1, %v2918_v41, 0.0  ;;  %v14209_v44 = vsel %vm2953_vm1, %v2919_v13, 0.0  ;;  %v14212_v1 = vsel %vm2953_vm1, %v2916_v52, 0.0 }
 0x1f9   :  { %v1687_v38 = vadd.f32 %v13944_v51, %v824_v43  ;;  %v1688_v17 = vadd.f32 %v14057_v40, %v1439_v36  ;;  %v2960_v29 = vadd.f32 %v14085_v28, %v2958_v46  ;;  %v2991_v23 = vadd.f32 %v14091_v42, %v2989_v31  ;;  %v14229_v40 = vpop.permute.xlu1 %1656 }
 0x1fa   :  { %v14219_v61 = vadd.f32 %v14097_v26, %v3020_v59  ;;  %v18466_v19 = vrot.slane %v13748_v20, %v12991_v21  ;;  %v18467_v9 = vrot.slane %v13772_v39, %v12991_v21  ;;  %v18468_v28 = vrot.slane %v13805_v4, %v12991_v21  ;;  %v11575_v39 = vpop.f32.mrf.mxu1 }
 0x1fb   :  { %v2421_v16 = vadd.f32 %v13819_v18, %v1687_v38  ;;  %v2422_v51 = vadd.f32 %v13827_v30, %v1687_v38  ;;  %v18469_v26 = vrot.slane %v13812_v12, %v12991_v21  ;;  %v2425_v20 = vadd.f32 %v13849_v54, %v1688_v17 }
 0x1fc   :  { %v2419_v2 = vadd.f32 %v18466_v19, %v1687_v38  ;;  %v2420_v3 = vadd.f32 %v18467_v9, %v1687_v38  ;;  %v2423_v42 = vadd.f32 %v18468_v28, %v1688_v17  ;;  %v2426_v31 = vadd.f32 %v13861_v22, %v1688_v17  ;;  %v14268_v28 = vpop.permute.xlu0 %2862 }
 0x1fd   :  { %v2424_v46 = vadd.f32 %v18469_v26, %v1688_v17  ;;  %vm2485_vm14 = vcmp.ge.f32.partialorder %v2421_v16, 0.0  ;;  %vm2486_vm15 = vcmp.ge.f32.partialorder %v2422_v51, 0.0  ;;  %vm2489_vm4 = vcmp.ge.f32.partialorder %v2425_v20, 0.0  ;;  %v1661_v60 = vpop.permute.xlu1 %1660 }
 0x1fe   :  { %vm2483_vm12 = vcmp.ge.f32.partialorder %v2419_v2, 0.0  ;;  %vm2484_vm13 = vcmp.ge.f32.partialorder %v2420_v3, 0.0  ;;  %vm2487_vm2 = vcmp.ge.f32.partialorder %v2423_v42, 0.0  ;;  %vm2490_vm5 = vcmp.ge.f32.partialorder %v2426_v31, 0.0 }
 0x1ff   :  { %vm2488_vm3 = vcmp.ge.f32.partialorder %v2424_v46, 0.0  ;;  %v2547_v18 = vmul.f32 0.2, %v2419_v2  ;;  %v2548_v4 = vmul.f32 0.2, %v2420_v3  ;;  %v3053_v59 = vadd.f32 %v3052_v50, %v14163_v47 }
 0x200   :  { %v2549_v30 = vmul.f32 0.2, %v2421_v16  ;;  %v2550_v12 = vmul.f32 0.2, %v2422_v51  ;;  %v2551_v43 = vmul.f32 0.2, %v2423_v42  ;;  %v1442_v54 = vcombine.high %v11575_v39, %v11575_v39 }
 0x201   :  { %v2552_v36 = vmul.f32 0.2, %v2424_v46  ;;  %v2553_v22 = vmul.f32 0.2, %v2425_v20  ;;  %v2554_v0 = vmul.f32 0.2, %v2426_v31  ;;  %v2611_v57 = vsel %vm2483_vm12, %v2419_v2, %v2547_v18 }
 0x202   :  { %v2612_v15 = vsel %vm2484_vm13, %v2420_v3, %v2548_v4  ;;  %v2613_v24 = vsel %vm2485_vm14, %v2421_v16, %v2549_v30  ;;  %v2614_v11 = vsel %vm2486_vm15, %v2422_v51, %v2550_v12  ;;  %v2615_v37 = vsel %vm2487_vm2, %v2423_v42, %v2551_v43  ;;  %v317_v2 = vld [vmem:[%s18331_s3 + $0x3c8] sm:$0xff]  ;;  %v834_v51 = vpop.f32.mrf.mxu1 }
 0x203   :  { %v2616_v47 = vsel %vm2488_vm3, %v2424_v46, %v2552_v36  ;;  %v2617_v48 = vsel %vm2489_vm4, %v2425_v20, %v2553_v22  ;;  %v2618_v34 = vsel %vm2490_vm5, %v2426_v31, %v2554_v0  ;;  %v2905_v32 = vmul.f32 %v14119_v63, %v2611_v57  ;;  %11736 = vmatmul.mubr.msk.f32.gmra.mxu1 %vm94_vm0, %v317_v2  ;;  %v1665_v20 = vpop.permute.xlu1 %1664 }
 0x204   :  { %v2906_v55 = vmul.f32 %v14119_v63, %v2612_v15  ;;  %v2907_v52 = vmul.f32 %v14119_v63, %v2613_v24  ;;  %v2908_v53 = vmul.f32 %v14119_v63, %v2614_v11  ;;  %v2909_v50 = vmul.f32 %v14139_v45, %v2615_v37  ;;  %v18473_v24 = vld [vmem:[#allocation9_spill] sm:$0xff]  ;;  %v18475_v37 = vld [vmem:[#allocation11_spill] sm:$0xff] }
 0x205   :  { %v2910_v41 = vmul.f32 %v14139_v45, %v2616_v47  ;;  %v2911_v13 = vmul.f32 %v14139_v45, %v2617_v48  ;;  %v2912_v38 = vmul.f32 %v14139_v45, %v2618_v34  ;;  %v2961_v17 = vsel %vm2953_vm1, %v2905_v32, 0.0  ;;  %v2867_v34 = vpop.permute.xlu0 %2866 }
 0x206   :  { %v2992_v19 = vsel %vm2953_vm1, %v2906_v55, 0.0  ;;  %v14264_v9 = vsel %vm2953_vm1, %v2920_v14, 0.0  ;;  %v2962_v63 = vadd.f32 %v2961_v17, %v2960_v29  ;;  %v2963_v3 = vsel %vm2953_vm1, %v2909_v50, 0.0 }
 0x207   :  { %v2993_v16 = vadd.f32 %v2992_v19, %v2991_v23  ;;  %v2994_v45 = vsel %vm2953_vm1, %v2910_v41, 0.0  ;;  %v3023_v42 = vsel %vm2953_vm1, %v2907_v52, 0.0  ;;  %v3025_v26 = vsel %vm2953_vm1, %v2911_v13, 0.0  ;;  %v14306_v17 = vpop.permute.xlu1 %1668 }
 0x208   :  { %v3054_v46 = vsel %vm2953_vm1, %v2908_v53, 0.0  ;;  %v2964_v14 = vadd.f32 %v2963_v3, %v2962_v63  ;;  %v3024_v29 = vadd.f32 %v3023_v42, %v14219_v61  ;;  %v3056_v23 = vsel %vm2953_vm1, %v2912_v38, 0.0 }
 0x209   :  { %v2995_v31 = vadd.f32 %v2994_v45, %v2993_v16  ;;  %v3055_v18 = vadd.f32 %v3054_v46, %v3053_v59  ;;  %v1693_v4 = vadd.f32 %v11575_v39, %v1661_v60  ;;  %v1694_v30 = vadd.f32 %v1665_v20, %v1442_v54  ;;  %v2871_v3 = vpop.permute.xlu0 %2870 }
 0x20a   :  { %v1441_v12 = vcombine.high %v834_v51, %v834_v51  ;;  %v14276_v43 = vadd.f32 %v3025_v26, %v3024_v29  ;;  %v14281_v22 = vadd.f32 %v14194_v33, %v2964_v14  ;;  %v18470_v57 = vrot.slane %v13842_v5, %v12991_v21  ;;  %v18476_v5 = vld [vmem:[#allocation12_spill] sm:$0xff] }
 0x20b   :  { %v14278_v36 = vadd.f32 %v3056_v23, %v3055_v18  ;;  %v14284_v0 = vadd.f32 %v14200_v27, %v2995_v31  ;;  %v18471_v59 = vrot.slane %v13864_v35, %v12991_v21  ;;  %v2445_v54 = vadd.f32 %v13896_v58, %v1693_v4  ;;  %v18477_v18 = vld [vmem:[#allocation8_spill] sm:$0xff] }
 0x20c   :  { %v2443_v61 = vadd.f32 %v18470_v57, %v1693_v4  ;;  %v2446_v15 = vadd.f32 %v13906_v6, %v1693_v4  ;;  %v18472_v60 = vrot.slane %v13852_v62, %v12991_v21  ;;  %v18474_v27 = vrot.slane %v18473_v24, %v12991_v21  ;;  %v18481_v24 = vld [vmem:[#allocation14_spill] sm:$0xff] }
 0x20d   :  { %v2444_v39 = vadd.f32 %v18471_v59, %v1693_v4  ;;  %v2449_v47 = vadd.f32 %v18475_v37, %v1694_v30  ;;  %v2450_v48 = vadd.f32 %v18476_v5, %v1694_v30  ;;  %vm2509_vm8 = vcmp.ge.f32.partialorder %v2445_v54, 0.0  ;;  %v18482_v37 = vld [vmem:[#allocation15_spill] sm:$0xff]  ;;  %v18483_v5 = vld [vmem:[#allocation13_spill] sm:$0xff] }
 0x20e   :  { %v2447_v33 = vadd.f32 %v18472_v60, %v1694_v30  ;;  %v2448_v11 = vadd.f32 %v18474_v27, %v1694_v30  ;;  %vm2507_vm6 = vcmp.ge.f32.partialorder %v2443_v61, 0.0  ;;  %vm2510_vm9 = vcmp.ge.f32.partialorder %v2446_v15, 0.0  ;;  %v318_v30 = vld [vmem:[%s18331_s3 + $0x3d0] sm:$0xff] }
 0x20f   :  { %vm2508_vm7 = vcmp.ge.f32.partialorder %v2444_v39, 0.0  ;;  %vm2513_vm12 = vcmp.ge.f32.partialorder %v2449_v47, 0.0  ;;  %vm2514_vm13 = vcmp.ge.f32.partialorder %v2450_v48, 0.0  ;;  %v2571_v58 = vmul.f32 0.2, %v2443_v61  ;;  %11738 = vmatprep.mubr.msk.f32.mxu1 %vm94_vm0, %v318_v30 }
 0x210   :  { %vm2511_vm10 = vcmp.ge.f32.partialorder %v2447_v33, 0.0  ;;  %vm2512_vm11 = vcmp.ge.f32.partialorder %v2448_v11, 0.0  ;;  %v2572_v62 = vmul.f32 0.2, %v2444_v39  ;;  %v2573_v35 = vmul.f32 0.2, %v2445_v54 }
 0x211   :  { %v1691_v6 = vadd.f32 %v14189_v56, %v834_v51  ;;  %v2574_v32 = vmul.f32 0.2, %v2446_v15  ;;  %v2575_v55 = vmul.f32 0.2, %v2447_v33  ;;  %v2576_v52 = vmul.f32 0.2, %v2448_v11 }
 0x212   :  { %v1692_v53 = vadd.f32 %v14229_v40, %v1441_v12  ;;  %v2577_v50 = vmul.f32 0.2, %v2449_v47  ;;  %v2578_v41 = vmul.f32 0.2, %v2450_v48  ;;  %v2635_v13 = vsel %vm2507_vm6, %v2443_v61, %v2571_v58  ;;  %v18485_v58 = vld [vmem:[#allocation16_spill] sm:$0xff] }
 0x213   :  { %v2636_v38 = vsel %vm2508_vm7, %v2444_v39, %v2572_v62  ;;  %v2637_v19 = vsel %vm2509_vm8, %v2445_v54, %v2573_v35  ;;  %v2638_v2 = vsel %vm2510_vm9, %v2446_v15, %v2574_v32  ;;  %v2639_v63 = vsel %vm2511_vm10, %v2447_v33, %v2575_v55  ;;  %v18479_v15 = vld [vmem:[#allocation10_spill] sm:$0xff]  ;;  %v18487_v32 = vld [vmem:[#allocation21_spill] sm:$0xff] }
 0x214   :  { %v2640_v56 = vsel %vm2512_vm11, %v2448_v11, %v2576_v52  ;;  %v2641_v16 = vsel %vm2513_vm12, %v2449_v47, %v2577_v50  ;;  %v2642_v40 = vsel %vm2514_vm13, %v2450_v48, %v2578_v41  ;;  %v2929_v51 = vmul.f32 %v2867_v34, %v2635_v13  ;;  %v14346_v11 = vpop.permute.xlu1 %1672  ;;  %v18488_v52 = vld [vmem:[#allocation22_spill] sm:$0xff] }
 0x215   :  { %v2930_v45 = vmul.f32 %v2867_v34, %v2636_v38  ;;  %v2931_v42 = vmul.f32 %v2867_v34, %v2637_v19  ;;  %v2932_v26 = vmul.f32 %v2867_v34, %v2638_v2  ;;  %v2933_v46 = vmul.f32 %v2871_v3, %v2639_v63 }
 0x216   :  { %v2934_v20 = vmul.f32 %v2871_v3, %v2640_v56  ;;  %v2935_v14 = vmul.f32 %v2871_v3, %v2641_v16  ;;  %v2936_v31 = vmul.f32 %v2871_v3, %v2642_v40  ;;  %v14315_v29 = vsel %vm2953_vm1, %v2929_v51, 0.0 }
 0x217   :  { %v18478_v23 = vrot.slane %v18477_v18, %v12991_v21  ;;  %v14324_v12 = vsel %vm2953_vm1, %v2933_v46, 0.0  ;;  %v14327_v57 = vsel %vm2953_vm1, %v2930_v45, 0.0  ;;  %v14333_v59 = vsel %vm2953_vm1, %v2931_v42, 0.0  ;;  %v11578_v46 = vpop.f32.mrf.mxu1 }
 0x218   :  { %v14330_v61 = vsel %vm2953_vm1, %v2934_v20, 0.0  ;;  %v14337_v39 = vsel %vm2953_vm1, %v2935_v14, 0.0  ;;  %v14340_v54 = vsel %vm2953_vm1, %v2932_v26, 0.0  ;;  %v18480_v60 = vrot.slane %v18479_v15, %v12991_v21  ;;  %v1677_v40 = vpop.permute.xlu1 %1676 }
 0x219   :  { %v2435_v4 = vadd.f32 %v18478_v23, %v1691_v6  ;;  %v2437_v27 = vadd.f32 %v18481_v24, %v1691_v6  ;;  %v2438_v47 = vadd.f32 %v18482_v37, %v1691_v6  ;;  %v18484_v48 = vrot.slane %v18483_v5, %v12991_v21 }
 0x21a   :  { %v2436_v33 = vadd.f32 %v18480_v60, %v1691_v6  ;;  %v18486_v62 = vrot.slane %v18485_v58, %v12991_v21  ;;  %v2441_v55 = vadd.f32 %v18487_v32, %v1692_v53  ;;  %v2442_v50 = vadd.f32 %v18488_v52, %v1692_v53 }
 0x21b   :  { %v2439_v34 = vadd.f32 %v18484_v48, %v1692_v53  ;;  %vm2499_vm14 = vcmp.ge.f32.partialorder %v2435_v4, 0.0  ;;  %vm2501_vm2 = vcmp.ge.f32.partialorder %v2437_v27, 0.0  ;;  %vm2502_vm3 = vcmp.ge.f32.partialorder %v2438_v47, 0.0 }
 0x21c   :  { %v2440_v35 = vadd.f32 %v18486_v62, %v1692_v53  ;;  %vm2500_vm15 = vcmp.ge.f32.partialorder %v2436_v33, 0.0  ;;  %vm2505_vm6 = vcmp.ge.f32.partialorder %v2441_v55, 0.0  ;;  %vm2506_vm7 = vcmp.ge.f32.partialorder %v2442_v50, 0.0  ;;  %v1681_v58 = vpop.permute.xlu1 %1680 }
 0x21d   :  { %vm2503_vm4 = vcmp.ge.f32.partialorder %v2439_v34, 0.0  ;;  %v2563_v6 = vmul.f32 0.2, %v2435_v4  ;;  %v2564_v41 = vmul.f32 0.2, %v2436_v33  ;;  %v2968_v13 = vadd.f32 %v14197_v25, %v14281_v22 }
 0x21e   :  { %vm2504_vm5 = vcmp.ge.f32.partialorder %v2440_v35, 0.0  ;;  %v2565_v38 = vmul.f32 0.2, %v2437_v27  ;;  %v2566_v19 = vmul.f32 0.2, %v2438_v47  ;;  %v2999_v63 = vadd.f32 %v14206_v8, %v14284_v0 }
 0x21f   :  { %v2567_v2 = vmul.f32 0.2, %v2439_v34  ;;  %v2568_v53 = vmul.f32 0.2, %v2440_v35  ;;  %v2569_v56 = vmul.f32 0.2, %v2441_v55  ;;  %v2627_v16 = vsel %vm2499_vm14, %v2435_v4, %v2563_v6 }
 0x220   :  { %v2570_v3 = vmul.f32 0.2, %v2442_v50  ;;  %v2628_v51 = vsel %vm2500_vm15, %v2436_v33, %v2564_v41  ;;  %v2629_v45 = vsel %vm2501_vm2, %v2437_v27, %v2565_v38  ;;  %v2630_v42 = vsel %vm2502_vm3, %v2438_v47, %v2566_v19  ;;  %v319_v33 = vld [vmem:[%s18331_s3 + $0x3d8] sm:$0xff] }
 0x221   :  { %v2631_v25 = vsel %vm2503_vm4, %v2439_v34, %v2567_v2  ;;  %v2632_v22 = vsel %vm2504_vm5, %v2440_v35, %v2568_v53  ;;  %v2633_v26 = vsel %vm2505_vm6, %v2441_v55, %v2569_v56  ;;  %v2921_v0 = vmul.f32 %v14240_v49, %v2627_v16  ;;  %11739 = vmatmul.mubr.msk.f32.gmra.mxu1 %vm94_vm0, %v319_v33  ;;  %v844_v34 = vpop.f32.mrf.mxu1  ;;  %v18489_v19 = vld [vmem:[#allocation17_spill] sm:$0xff] }
 0x222   :  { %v2634_v8 = vsel %vm2506_vm7, %v2442_v50, %v2570_v3  ;;  %v14371_v20 = vsel %vm2953_vm1, %v2936_v31, 0.0  ;;  %v2922_v14 = vmul.f32 %v14240_v49, %v2628_v51  ;;  %v2923_v18 = vmul.f32 %v14240_v49, %v2629_v45  ;;  %v18493_v53 = vld [vmem:[#allocation25_spill] sm:$0xff]  ;;  %v14413_v45 = vpop.permute.xlu0 %2874 }
 0x223   :  { %v2925_v23 = vmul.f32 %v14268_v28, %v2631_v25  ;;  %v2924_v4 = vmul.f32 %v14240_v49, %v2630_v42  ;;  %v2926_v30 = vmul.f32 %v14268_v28, %v2632_v22  ;;  %v2927_v15 = vmul.f32 %v14268_v28, %v2633_v26  ;;  %v18495_v42 = vld [vmem:[#allocation20_spill] sm:$0xff] }
 0x224   :  { %v2969_v60 = vsel %vm2953_vm1, %v2921_v0, 0.0  ;;  %v2928_v31 = vmul.f32 %v14268_v28, %v2634_v8  ;;  %v3000_v27 = vsel %vm2953_vm1, %v2922_v14, 0.0  ;;  %v3028_v37 = vadd.f32 %v14203_v10, %v14276_v43  ;;  %v18497_v26 = vld [vmem:[#allocation24_spill] sm:$0xff] }
 0x225   :  { %v2970_v24 = vadd.f32 %v2969_v60, %v2968_v13  ;;  %v2971_v49 = vsel %vm2953_vm1, %v2925_v23, 0.0  ;;  %v3001_v47 = vadd.f32 %v3000_v27, %v2999_v63  ;;  %v3002_v5 = vsel %vm2953_vm1, %v2926_v30, 0.0  ;;  %v18491_v63 = vld [vmem:[#allocation19_spill] sm:$0xff]  ;;  %v18501_v27 = vld [vmem:[#allocation18_spill] sm:$0xff] }
 0x226   :  { %v3031_v48 = vsel %vm2953_vm1, %v2923_v18, 0.0  ;;  %v3030_v28 = vadd.f32 %v14209_v44, %v3028_v37  ;;  %v3033_v35 = vsel %vm2953_vm1, %v2927_v15, 0.0  ;;  %v3059_v10 = vadd.f32 %v14212_v1, %v14278_v36  ;;  %v18500_v18 = vld [vmem:[#allocation29_spill] sm:$0xff] }
 0x227   :  { %v14391_v62 = vadd.f32 %v2971_v49, %v2970_v24  ;;  %v14397_v43 = vadd.f32 %v3002_v5, %v3001_v47  ;;  %v3062_v32 = vsel %vm2953_vm1, %v2924_v4, 0.0  ;;  %v1444_v55 = vcombine.high %v11578_v46, %v11578_v46  ;;  %v14423_v4 = vpop.permute.xlu1 %2878 }
 0x228   :  { %v1697_v52 = vadd.f32 %v11578_v46, %v1677_v40  ;;  %v3032_v50 = vadd.f32 %v3031_v48, %v3030_v28  ;;  %v3061_v6 = vadd.f32 %v14264_v9, %v3059_v10  ;;  %v3064_v41 = vsel %vm2953_vm1, %v2928_v31, 0.0  ;;  %v18494_v40 = vld [vmem:[#allocation26_spill] sm:$0xff]  ;;  %v18499_v46 = vld [vmem:[#allocation27_spill] sm:$0xff] }
 0x229   :  { %v1443_v13 = vcombine.high %v844_v34, %v844_v34  ;;  %v1698_v38 = vadd.f32 %v1681_v58, %v1444_v55  ;;  %v18490_v44 = vrot.slane %v18489_v19, %v12991_v21  ;;  %v18492_v1 = vrot.slane %v18491_v63, %v12991_v21 }
 0x22a   :  { %v2461_v56 = vadd.f32 %v18493_v53, %v1697_v52  ;;  %v14409_v3 = vadd.f32 %v3033_v35, %v3032_v50  ;;  %v3063_v16 = vadd.f32 %v3062_v32, %v3061_v6  ;;  %v2462_v51 = vadd.f32 %v18494_v40, %v1697_v52  ;;  %v320_v32 = vld [vmem:[%s18331_s3 + $0x3e0] sm:$0xff] }
 0x22b   :  { %v2459_v2 = vadd.f32 %v18490_v44, %v1697_v52  ;;  %v2460_v36 = vadd.f32 %v18492_v1, %v1697_v52  ;;  %v1695_v9 = vadd.f32 %v14306_v17, %v844_v34  ;;  %v18496_v25 = vrot.slane %v18495_v42, %v12991_v21  ;;  %v2883_v34 = vpop.permute.xlu0 %2882  ;;  %v2887_v55 = vpop.permute.xlu1 %2886  ;;  %11741 = vmatprep.mubr.msk.f32.mxu1 %vm94_vm0, %v320_v32 }
 0x22c   :  { %v18498_v8 = vrot.slane %v18497_v26, %v12991_v21  ;;  %v2465_v14 = vadd.f32 %v18499_v46, %v1698_v38  ;;  %v2466_v23 = vadd.f32 %v18500_v18, %v1698_v38  ;;  %v14425_v30 = vadd.f32 %v3064_v41, %v3063_v16  ;;  %v18506_v46 = vld [vmem:[#allocation32_spill] sm:$0xff] }
 0x22d   :  { %v2463_v22 = vadd.f32 %v18496_v25, %v1698_v38  ;;  %vm2523_vm8 = vcmp.ge.f32.partialorder %v2459_v2, 0.0  ;;  %vm2524_vm9 = vcmp.ge.f32.partialorder %v2460_v36, 0.0  ;;  %v1696_v17 = vadd.f32 %v14346_v11, %v1443_v13  ;;  %v18507_v18 = vld [vmem:[#allocation28_spill] sm:$0xff] }
 0x22e   :  { %v2464_v0 = vadd.f32 %v18498_v8, %v1698_v38  ;;  %vm2525_vm10 = vcmp.ge.f32.partialorder %v2461_v56, 0.0  ;;  %vm2526_vm11 = vcmp.ge.f32.partialorder %v2462_v51, 0.0  ;;  %vm2529_vm14 = vcmp.ge.f32.partialorder %v2465_v14, 0.0  ;;  %v18505_v8 = vld [vmem:[#allocation30_spill] sm:$0xff] }
 0x22f   :  { %vm2527_vm12 = vcmp.ge.f32.partialorder %v2463_v22, 0.0  ;;  %vm2530_vm15 = vcmp.ge.f32.partialorder %v2466_v23, 0.0  ;;  %v2587_v15 = vmul.f32 0.2, %v2459_v2  ;;  %v2588_v60 = vmul.f32 0.2, %v2460_v36 }
 0x230   :  { %vm2528_vm13 = vcmp.ge.f32.partialorder %v2464_v0, 0.0  ;;  %v2589_v33 = vmul.f32 0.2, %v2461_v56  ;;  %v2590_v31 = vmul.f32 0.2, %v2462_v51  ;;  %v18502_v37 = vrot.slane %v18501_v27, %v12991_v21 }
 0x231   :  { %v2591_v24 = vmul.f32 0.2, %v2463_v22  ;;  %v2592_v47 = vmul.f32 0.2, %v2464_v0  ;;  %v2593_v5 = vmul.f32 0.2, %v2465_v14  ;;  %v2651_v11 = vsel %vm2523_vm8, %v2459_v2, %v2587_v15 }
 0x232   :  { %v2451_v49 = vadd.f32 %v18502_v37, %v1695_v9  ;;  %v2594_v48 = vmul.f32 0.2, %v2466_v23  ;;  %v2652_v58 = vsel %vm2524_vm9, %v2460_v36, %v2588_v60  ;;  %v2653_v28 = vsel %vm2525_vm10, %v2461_v56, %v2589_v33  ;;  %v18503_v36 = vld [vmem:[#allocation23_spill] sm:$0xff] }
 0x233   :  { %v2654_v35 = vsel %vm2526_vm11, %v2462_v51, %v2590_v31  ;;  %v2655_v10 = vsel %vm2527_vm12, %v2463_v22, %v2591_v24  ;;  %v2656_v52 = vsel %vm2528_vm13, %v2464_v0, %v2592_v47  ;;  %v2657_v50 = vsel %vm2529_vm14, %v2465_v14, %v2593_v5  ;;  %v18509_v60 = vld [vmem:[#allocation31_spill] sm:$0xff]  ;;  %v18511_v24 = vld [vmem:[#allocation33_spill] sm:$0xff] }
 0x234   :  { %v2658_v6 = vsel %vm2530_vm15, %v2466_v23, %v2594_v48  ;;  %v2945_v41 = vmul.f32 %v2883_v34, %v2651_v11  ;;  %v2946_v13 = vmul.f32 %v2883_v34, %v2652_v58  ;;  %v2947_v38 = vmul.f32 %v2883_v34, %v2653_v28 }
 0x235   :  { %v2948_v19 = vmul.f32 %v2883_v34, %v2654_v35  ;;  %v2949_v44 = vmul.f32 %v2887_v55, %v2655_v10  ;;  %v2950_v2 = vmul.f32 %v2887_v55, %v2656_v52  ;;  %v2951_v63 = vmul.f32 %v2887_v55, %v2657_v50 }
 0x236   :  { %v2952_v1 = vmul.f32 %v2887_v55, %v2658_v6  ;;  %v18504_v53 = vrot.slane %v18503_v36, %v12991_v21  ;;  %v14447_v16 = vsel %vm2953_vm1, %v2945_v41, 0.0  ;;  %v14453_v51 = vsel %vm2953_vm1, %v2946_v13, 0.0 }
 0x237   :  { %v14450_v40 = vsel %vm2953_vm1, %v2949_v44, 0.0  ;;  %v14456_v42 = vsel %vm2953_vm1, %v2947_v38, 0.0  ;;  %v14459_v25 = vsel %vm2953_vm1, %v2950_v2, 0.0  ;;  %v14462_v22 = vsel %vm2953_vm1, %v2951_v63, 0.0 }
 0x238   :  { %v2452_v56 = vadd.f32 %v18504_v53, %v1695_v9  ;;  %v14465_v26 = vsel %vm2953_vm1, %v2948_v19, 0.0  ;;  %v2453_v0 = vadd.f32 %v18505_v8, %v1695_v9  ;;  %v2454_v14 = vadd.f32 %v18506_v46, %v1695_v9 }
 0x239   :  { %v18508_v23 = vrot.slane %v18507_v18, %v12991_v21  ;;  %v18510_v33 = vrot.slane %v18509_v60, %v12991_v21  ;;  %v2457_v27 = vadd.f32 %v18511_v24, %v1696_v17  ;;  %v2458_v37 = vadd.f32 %v14077_v7, %v1696_v17 }
 0x23a   :  { %vm2515_vm2 = vcmp.ge.f32.partialorder %v2451_v49, 0.0  ;;  %vm2516_vm3 = vcmp.ge.f32.partialorder %v2452_v56, 0.0  ;;  %vm2517_vm4 = vcmp.ge.f32.partialorder %v2453_v0, 0.0  ;;  %vm2518_vm5 = vcmp.ge.f32.partialorder %v2454_v14, 0.0 }
 0x23b   :  { %v2455_v15 = vadd.f32 %v18508_v23, %v1696_v17  ;;  %v2456_v31 = vadd.f32 %v18510_v33, %v1696_v17  ;;  %vm2521_vm8 = vcmp.ge.f32.partialorder %v2457_v27, 0.0  ;;  %vm2522_vm9 = vcmp.ge.f32.partialorder %v2458_v37, 0.0 }
 0x23c   :  { %v2579_v9 = vmul.f32 0.2, %v2451_v49  ;;  %v2580_v47 = vmul.f32 0.2, %v2452_v56  ;;  %v2974_v5 = vadd.f32 %v14315_v29, %v14391_v62  ;;  %v2581_v48 = vmul.f32 0.2, %v2453_v0 }
 0x23d   :  { %vm2519_vm6 = vcmp.ge.f32.partialorder %v2455_v15, 0.0  ;;  %vm2520_vm7 = vcmp.ge.f32.partialorder %v2456_v31, 0.0  ;;  %v2582_v11 = vmul.f32 0.2, %v2454_v14  ;;  %v2583_v34 = vmul.f32 0.2, %v2455_v15 }
 0x23e   :  { %v3005_v58 = vadd.f32 %v14327_v57, %v14397_v43  ;;  %v2584_v7 = vmul.f32 0.2, %v2456_v31  ;;  %v2585_v17 = vmul.f32 0.2, %v2457_v27  ;;  %v2586_v28 = vmul.f32 0.2, %v2458_v37 }
 0x23f   :  { %v2643_v35 = vsel %vm2515_vm2, %v2451_v49, %v2579_v9  ;;  %v2644_v10 = vsel %vm2516_vm3, %v2452_v56, %v2580_v47  ;;  %v2645_v32 = vsel %vm2517_vm4, %v2453_v0, %v2581_v48  ;;  %v2646_v55 = vsel %vm2518_vm5, %v2454_v14, %v2582_v11  ;;  %v321_v29 = vld [vmem:[%s18331_s3 + $0x3e8] sm:$0xff]  ;;  %v11581_v56 = vpop.f32.mrf.mxu1 }
 0x240   :  { %v2647_v52 = vsel %vm2519_vm6, %v2455_v15, %v2583_v34  ;;  %v2648_v62 = vsel %vm2520_vm7, %v2456_v31, %v2584_v7  ;;  %v2649_v57 = vsel %vm2521_vm8, %v2457_v27, %v2585_v17  ;;  %v2650_v43 = vsel %vm2522_vm9, %v2458_v37, %v2586_v28  ;;  %11742 = vmatmul.mubr.msk.f32.gmra.mxu1 %vm94_vm0, %v321_v29 }
 0x241   :  { %v2937_v49 = vmul.f32 %v14413_v45, %v2643_v35  ;;  %v3076_v50 = vsel %vm2953_vm1, %v2952_v1, 0.0  ;;  %v2938_v6 = vmul.f32 %v14413_v45, %v2644_v10  ;;  %v2939_v41 = vmul.f32 %v14413_v45, %v2645_v32  ;;  %v854_v27 = vpop.f32.mrf.mxu1 }
 0x242   :  { %v2941_v13 = vmul.f32 %v14423_v4, %v2647_v52  ;;  %v2940_v38 = vmul.f32 %v14413_v45, %v2646_v55  ;;  %v2942_v19 = vmul.f32 %v14423_v4, %v2648_v62  ;;  %v2943_v44 = vmul.f32 %v14423_v4, %v2649_v57 }
 0x243   :  { %v2976_v2 = vadd.f32 %v14324_v12, %v2974_v5  ;;  %v2944_v63 = vmul.f32 %v14423_v4, %v2650_v43  ;;  %v2977_v36 = vsel %vm2953_vm1, %v2937_v49, 0.0  ;;  %v3007_v53 = vadd.f32 %v14330_v61, %v3005_v58 }
 0x244   :  { %v2979_v1 = vsel %vm2953_vm1, %v2941_v13, 0.0  ;;  %v3008_v0 = vsel %vm2953_vm1, %v2938_v6, 0.0  ;;  %v3010_v45 = vsel %vm2953_vm1, %v2942_v19, 0.0  ;;  %v3036_v46 = vadd.f32 %v14333_v59, %v14409_v3  ;;  %v18512_v59 = vld [vmem:[#allocation2_spill] sm:$0xff] }
 0x245   :  { %v2978_v8 = vadd.f32 %v2977_v36, %v2976_v2  ;;  %v3009_v14 = vadd.f32 %v3008_v0, %v3007_v53  ;;  %v3039_v12 = vsel %vm2953_vm1, %v2939_v41, 0.0  ;;  %v3041_v4 = vsel %vm2953_vm1, %v2943_v44, 0.0 }
 0x246   :  { %v3067_v18 = vadd.f32 %v14340_v54, %v14425_v30  ;;  %v3038_v61 = vadd.f32 %v14337_v39, %v3036_v46  ;;  %v3070_v15 = vsel %vm2953_vm1, %v2940_v38, 0.0  ;;  %v3827_v60 = vcombine.high %v11581_v56, %v11581_v56  ;;  %v3085_v30 = vpop.permute.xlu0 %3084 }
 0x247   :  { %v2980_v23 = vadd.f32 %v2979_v1, %v2978_v8  ;;  %v3011_v33 = vadd.f32 %v3010_v45, %v3009_v14  ;;  %v3072_v24 = vsel %vm2953_vm1, %v2944_v63, 0.0  ;;  %v3834_v3 = vrot.slane %v11581_v56, %v18512_v59 }
 0x248   :  { %v3069_v31 = vadd.f32 %v14371_v20, %v3067_v18  ;;  %v3040_v9 = vadd.f32 %v3039_v12, %v3038_v61  ;;  %v3841_v47 = vrot.slane %v3827_v60, %v18512_v59  ;;  %v3778_v54 = vcombine.high %v854_v27, %v854_v27  ;;  %v3092_v20 = vpop.permute.xlu1 %3091 }
 0x249   :  { %v2982_v37 = vadd.f32 %v14447_v16, %v2980_v23  ;;  %v3013_v39 = vadd.f32 %v14453_v51, %v3011_v33  ;;  %v3842_v48 = vcombine.high %v3834_v3, %v3834_v3  ;;  %v14523_v11 = vrot.slane %v3834_v3, %v18512_v59 }
 0x24a   :  { %v3071_v5 = vadd.f32 %v3070_v15, %v3069_v31  ;;  %v3042_v58 = vadd.f32 %v3041_v4, %v3040_v9  ;;  %v3843_v7 = vcombine.high %v3841_v47, %v3841_v47  ;;  %v14527_v17 = vrot.slane %v3841_v47, %v18512_v59 }
 0x24b   :  { %v2984_v34 = vadd.f32 %v14450_v40, %v2982_v37  ;;  %v3015_v16 = vadd.f32 %v14459_v25, %v3013_v39  ;;  %v14531_v35 = vrot.slane %v3842_v48, %v18512_v59  ;;  %v3785_v51 = vrot.slane %v854_v27, %v18512_v59 }
 0x24c   :  { %v3073_v28 = vadd.f32 %v3072_v24, %v3071_v5  ;;  %v3044_v10 = vadd.f32 %v14456_v42, %v3042_v58  ;;  %v14538_v55 = vrot.slane %v3843_v7, %v18512_v59  ;;  %v3872_v40 = vcombine.high %v14523_v11, %v14523_v11  ;;  %v3106_v19 = vpop.permute.xlu1 %3105 }
 0x24d   :  { %v14535_v32 = vadd.f32 %v3085_v30, %v2984_v34  ;;  %v14543_v29 = vadd.f32 %v3092_v20, %v3015_v16  ;;  %v3873_v25 = vcombine.high %v14527_v17, %v14527_v17  ;;  %v3874_v62 = vcombine.high %v14531_v35, %v14531_v35 }
 0x24e   :  { %v3075_v52 = vadd.f32 %v14465_v26, %v3073_v28  ;;  %v3046_v42 = vadd.f32 %v14462_v22, %v3044_v10  ;;  %v3875_v43 = vcombine.high %v14538_v55, %v14538_v55  ;;  %v3099_v26 = vpop.permute.xlu0 %3098  ;;  %v322_v22 = vld [vmem:[%s18331_s3 + $0x3f0] sm:$0xff]  ;;  %v14566_v63 = vrot.slane %v3872_v40, %v12991_v21  ;;  %v11584_v10 = vpop.f32.mrf.mxu1 }
 0x24f   :  { %v3111_v57 = vsel %vm2953_vm1, %v14535_v32, -inf  ;;  %v3118_v13 = vsel %vm2953_vm1, %v14543_v29, -inf  ;;  %11744 = vmatprep.mubr.msk.f32.mxu1 %vm94_vm0, %v322_v22  ;;  %v14581_v45 = vrot.slane %v3873_v25, %v12991_v21  ;;  %v3792_v46 = vrot.slane %v3778_v54, %v18512_v59 }
 0x250   :  { %v3077_v6 = vadd.f32 %v3076_v50, %v3075_v52  ;;  %v3112_v41 = vrot.slane %v3111_v57, 4  ;;  %v14563_v44 = vadd.f32 %v3099_v26, %v3046_v42  ;;  %v3119_v2 = vrot.slane %v3118_v13, 4 }
 0x251   :  { %v14569_v50 = vrot.slane %v3874_v62, %v12991_v21  ;;  %v3793_v18 = vcombine.high %v3785_v51, %v3785_v51  ;;  %v3794_v15 = vcombine.high %v3792_v46, %v3792_v46  ;;  %v14587_v60 = vrot.slane %v3785_v51, %v18512_v59 }
 0x252   :  { %v14572_v36 = vadd.f32 %v3106_v19, %v3077_v6  ;;  %v3113_v1 = vmax.f32 %v3111_v57, %v3112_v41  ;;  %v3120_v8 = vmax.f32 %v3118_v13, %v3119_v2  ;;  %v3125_v0 = vsel %vm2953_vm1, %v14563_v44, -inf  ;;  %v323_v19 = vld [vmem:[%s18331_s3 + $0x3f8] sm:$0xff] }
 0x253   :  { %v3126_v12 = vrot.slane %v3125_v0, 4  ;;  %v14590_v24 = vrot.slane %v3792_v46, %v18512_v59  ;;  %v14593_v3 = vrot.slane %v3793_v18, %v18512_v59  ;;  %v14596_v9 = vrot.slane %v3794_v15, %v18512_v59  ;;  %11745 = vmatmul.mubr.msk.f32.gmra.mxu1 %vm94_vm0, %v323_v19 }
 0x254   :  { %v3114_v14 = vrot.slane %v3113_v1, 2  ;;  %v3132_v4 = vsel %vm2953_vm1, %v14572_v36, -inf  ;;  %v3121_v23 = vrot.slane %v3120_v8, 2  ;;  %v3823_v47 = vcombine.high %v14587_v60, %v14587_v60 }
 0x255   :  { %v3133_v61 = vrot.slane %v3132_v4, 4  ;;  %v3127_v31 = vmax.f32 %v3125_v0, %v3126_v12  ;;  %v14601_v39 = vrot.slane %v3875_v43, %v12991_v21  ;;  %v3825_v5 = vcombine.high %v14593_v3, %v14593_v3  ;;  %v864_v0 = vpop.f32.mrf.mxu1 }
 0x256   :  { %v3115_v33 = vmax.f32 %v3113_v1, %v3114_v14  ;;  %v3122_v27 = vmax.f32 %v3120_v8, %v3121_v23  ;;  %v3824_v34 = vcombine.high %v14590_v24, %v14590_v24  ;;  %v3826_v58 = vcombine.high %v14596_v9, %v14596_v9 }
 0x257   :  { %v3134_v37 = vmax.f32 %v3132_v4, %v3133_v61  ;;  %v3128_v30 = vrot.slane %v3127_v31, 2  ;;  %v14614_v25 = vrot.slane %v3823_v47, %v12991_v21  ;;  %v14617_v62 = vrot.slane %v3825_v5, %v12991_v21 }
 0x258   :  { %v3116_v54 = vrot.slane %v3115_v33, 1  ;;  %v3123_v48 = vrot.slane %v3122_v27, 1  ;;  %v14626_v13 = vrot.slane %v3824_v34, %v12991_v21  ;;  %v3925_v22 = vcombine.high %v11584_v10, %v11584_v10  ;;  %v11587_v34 = vpop.f32.mrf.mxu1 }
 0x259   :  { %v3135_v20 = vrot.slane %v3134_v37, 2  ;;  %v3129_v16 = vmax.f32 %v3127_v31, %v3128_v30  ;;  %v3932_v8 = vrot.slane %v11584_v10, %v18512_v59  ;;  %v3876_v12 = vcombine.high %v864_v0, %v864_v0 }
 0x25a   :  { %v3117_v7 = vmax.f32 %v3115_v33, %v3116_v54  ;;  %v3124_v40 = vmax.f32 %v3122_v27, %v3123_v48  ;;  %v3939_v14 = vrot.slane %v3925_v22, %v18512_v59  ;;  %v4030_v22 = vrot.slane %v11587_v34, %v18512_v59 }
 0x25b   :  { %v3136_v52 = vmax.f32 %v3134_v37, %v3135_v20  ;;  %v3130_v42 = vrot.slane %v3129_v16, 1  ;;  %v3940_v18 = vcombine.high %v3932_v8, %v3932_v8  ;;  %v14639_v23 = vrot.slane %v3932_v8, %v18512_v59 }
 0x25c   :  { %v3139_v57 = vsub.f32 %v14535_v32, %v3117_v7  ;;  %v3140_v41 = vsub.f32 %v14543_v29, %v3124_v40  ;;  %v14632_v32 = vrot.slane %v3826_v58, %v12991_v21  ;;  %v3941_v15 = vcombine.high %v3939_v14, %v3939_v14 }
 0x25d   :  { %v3137_v6 = vrot.slane %v3136_v52, 1  ;;  %v3131_v2 = vmax.f32 %v3129_v16, %v3130_v42  ;;  %v14643_v33 = vrot.slane %v3939_v14, %v18512_v59  ;;  %v14646_v27 = vrot.slane %v3940_v18, %v18512_v59 }
 0x25e   :  { %v3143_v1 = vmul.f32 1.442695, %v3139_v57  ;;  %v3145_v29 = vmul.f32 1.442695, %v3140_v41  ;;  %v3970_v37 = vcombine.high %v14639_v23, %v14639_v23  ;;  %v14652_v54 = vrot.slane %v3941_v15, %v18512_v59 }
 0x25f   :  { %v3138_v46 = vmax.f32 %v3136_v52, %v3137_v6  ;;  %v3141_v4 = vsub.f32 %v14563_v44, %v3131_v2  ;;  %v3883_v44 = vrot.slane %v864_v0, %v18512_v59  ;;  %v3972_v5 = vcombine.high %v14646_v27, %v14646_v27  ;;  %v874_v0 = vpop.f32.mrf.mxu1 }
 0x260   :  { %12290 = vpow2.f32 %v3143_v1  ;;  %v3973_v58 = vcombine.high %v14652_v54, %v14652_v54  ;;  %v14667_v7 = vrot.slane %v3970_v37, %v12991_v21  ;;  %v3890_v40 = vrot.slane %v3876_v12, %v18512_v59 }
 0x261   :  { %v3142_v61 = vsub.f32 %v14572_v36, %v3138_v46  ;;  %12292 = vpow2.f32 %v3145_v29  ;;  %v3147_v31 = vmul.f32 1.442695, %v3141_v4  ;;  %v3971_v36 = vcombine.high %v14643_v33, %v14643_v33 }
 0x262   :  { %v3891_v52 = vcombine.high %v3883_v44, %v3883_v44  ;;  %v14676_v42 = vrot.slane %v3883_v44, %v18512_v59  ;;  %v14679_v57 = vrot.slane %v3972_v5, %v12991_v21  ;;  %v14682_v6 = vrot.slane %v3973_v58, %v12991_v21 }
 0x263   :  { %v3149_v47 = vmul.f32 1.442695, %v3142_v61  ;;  %12294 = vpow2.f32 %v3147_v31  ;;  %v14672_v10 = vrot.slane %v3971_v36, %v12991_v21  ;;  %v4023_v41 = vcombine.high %v11587_v34, %v11587_v34 }
 0x264   :  { %v3892_v19 = vcombine.high %v3890_v40, %v3890_v40  ;;  %v14686_v2 = vrot.slane %v3890_v40, %v18512_v59  ;;  %v14689_v1 = vrot.slane %v3891_v52, %v18512_v59  ;;  %v3921_v8 = vcombine.high %v14676_v42, %v14676_v42 }
 0x265   :  { %12296 = vpow2.f32 %v3149_v47  ;;  %v4037_v46 = vrot.slane %v4023_v41, %v18512_v59  ;;  %v4038_v29 = vcombine.high %v4030_v22, %v4030_v22  ;;  %v14695_v14 = vrot.slane %v4030_v22, %v18512_v59 }
 0x266   :  { %v3974_v12 = vcombine.high %v874_v0, %v874_v0  ;;  %v14698_v4 = vrot.slane %v3892_v19, %v18512_v59  ;;  %v3922_v18 = vcombine.high %v14686_v2, %v14686_v2  ;;  %v3923_v61 = vcombine.high %v14689_v1, %v14689_v1 }
 0x267   :  { %18513 = vst [vmem:[#allocation9_spill] sm:$0xff] %v14695_v14  ;;  %v14709_v37 = vrot.slane %v3921_v8, %v12991_v21  ;;  %v4039_v44 = vcombine.high %v4037_v46, %v4037_v46  ;;  %v14712_v47 = vrot.slane %v4037_v46, %v18512_v59  ;;  %v14726_v52 = vrot.slane %v4038_v29, %v18512_v59 }
 0x268   :  { %v3924_v36 = vcombine.high %v14698_v4, %v14698_v4  ;;  %v14717_v5 = vrot.slane %v3923_v61, %v12991_v21  ;;  %v4068_v22 = vcombine.high %v14695_v14, %v14695_v14  ;;  %v14740_v61 = vrot.slane %v3922_v18, %v12991_v21 }
 0x269   :  { %18514 = vst [vmem:[#allocation11_spill] sm:$0xff] %v14712_v47  ;;  %18515 = vst [vmem:[#allocation12_spill] sm:$0xff] %v14726_v52  ;;  %v14729_v41 = vrot.slane %v4039_v44, %v18512_v59  ;;  %v4069_v19 = vcombine.high %v14712_v47, %v14712_v47  ;;  %v4070_v31 = vcombine.high %v14726_v52, %v14726_v52  ;;  %vm4925_vm10 = vcmask 15360  }
 0x26a   :  { %18517 = vst [vmem:[#allocation10_spill] sm:$0xff] %v14740_v61  ;;  %v14743_v29 = vrot.slane %v3924_v36, %v12991_v21  ;;  %v14756_v36 = vrot.slane %v4068_v22, %v12991_v21  ;;  %v3981_v44 = vrot.slane %v874_v0, %v18512_v59  ;;  %v3988_v28 = vrot.slane %v3974_v12, %v18512_v59 }
 0x26b   :  { %18516 = vst [vmem:[#allocation8_spill] sm:$0xff] %v14729_v41  ;;  %v4071_v15 = vcombine.high %v14729_v41, %v14729_v41  ;;  %v14763_v30 = vrot.slane %v4070_v31, %v12991_v21  ;;  %v14768_v43 = vrot.slane %v4069_v19, %v12991_v21  ;;  %v11590_v19 = vpop.f32.mrf.mxu1 }
 0x26c   :  { %18518 = vst [vmem:[#allocation14_spill] sm:$0xff] %v14743_v29  ;;  %18519 = vst [vmem:[#allocation15_spill] sm:$0xff] %v14756_v36  ;;  %v3989_v38 = vcombine.high %v3981_v44, %v3981_v44  ;;  %v14785_v0 = vrot.slane %v3988_v28, %v18512_v59 }
 0x26d   :  { %v14723_v40 = vpop.eup %12290  ;;  %18520 = vst [vmem:[#allocation13_spill] sm:$0xff] %v14763_v30  ;;  %18521 = vst [vmem:[#allocation16_spill] sm:$0xff] %v14768_v43  ;;  %v14779_v26 = vrot.slane %v4071_v15, %v12991_v21  ;;  %v14782_v43 = vrot.slane %v3981_v44, %v18512_v59 }
 0x26e   :  { %v14735_v8 = vpop.eup %12292  ;;  %v3151_v46 = vsel %vm2953_vm1, %v14723_v40, 0.0  ;;  %18523 = vst [vmem:[#allocation22_spill] sm:$0xff] %v14785_v0  ;;  %v14788_v47 = vrot.slane %v3989_v38, %v18512_v59 }
 0x26f   :  { %v3152_v58 = vrot.slane %v3151_v46, 4  ;;  %v3158_v34 = vsel %vm2953_vm1, %v14735_v8, 0.0  ;;  %18522 = vst [vmem:[#allocation21_spill] sm:$0xff] %v14779_v26 }
 0x270   :  { %v3159_v16 = vrot.slane %v3158_v34, 4  ;;  %v14760_v20 = vpop.eup %12294 }
 0x271   :  { %v3153_v48 = vadd.f32 %v3152_v58, %v3151_v46  ;;  %v3165_v22 = vsel %vm2953_vm1, %v14760_v20, 0.0 }
 0x272   :  { %v14770_v51 = vpop.eup %12296  ;;  %v3160_v18 = vadd.f32 %v3159_v16, %v3158_v34  ;;  %v3166_v46 = vrot.slane %v3165_v22, 4  ;;  %v3990_v16 = vcombine.high %v3988_v28, %v3988_v28  ;;  %v4020_v28 = vcombine.high %v14785_v0, %v14785_v0 }
 0x273   :  { %v3154_v58 = vrot.slane %v3153_v48, 2  ;;  %v3172_v31 = vsel %vm2953_vm1, %v14770_v51, 0.0 }
 0x274   :  { %v3161_v56 = vrot.slane %v3160_v18, 2  ;;  %v3173_v53 = vrot.slane %v3172_v31, 4  ;;  %v3167_v49 = vadd.f32 %v3166_v46, %v3165_v22  ;;  %v14791_v15 = vrot.slane %v3990_v16, %v18512_v59 }
 0x275   :  { %v3155_v34 = vadd.f32 %v3154_v58, %v3153_v48  ;;  %v4019_v48 = vcombine.high %v14782_v43, %v14782_v43  ;;  %v4121_v22 = vcombine.high %v11590_v19, %v11590_v19  ;;  %v884_v58 = vpop.f32.mrf.mxu1 }
 0x276   :  { %v3162_v12 = vadd.f32 %v3161_v56, %v3160_v18  ;;  %v3174_v41 = vadd.f32 %v3173_v53, %v3172_v31  ;;  %18524 = vst [vmem:[#allocation17_spill] sm:$0xff] %v14791_v15  ;;  %v3168_v30 = vrot.slane %v3167_v49, 2  ;;  %v4021_v53 = vcombine.high %v14788_v47, %v14788_v47 }
 0x277   :  { %v3156_v26 = vrot.slane %v3155_v34, 1  ;;  %v4022_v18 = vcombine.high %v14791_v15, %v14791_v15  ;;  %v14806_v14 = vrot.slane %v4019_v48, %v12991_v21 }
 0x278   :  { %v3163_v44 = vrot.slane %v3162_v12, 1  ;;  %v3175_v46 = vrot.slane %v3174_v41, 2  ;;  %v3169_v56 = vadd.f32 %v3168_v30, %v3167_v49  ;;  %v14809_v61 = vrot.slane %v4021_v53, %v12991_v21 }
 0x279   :  { %v3157_v38 = vadd.f32 %v3156_v26, %v3155_v34  ;;  %18525 = vst [vmem:[#allocation19_spill] sm:$0xff] %v14806_v14  ;;  %v11593_v26 = vpop.f32.mrf.mxu1  ;;  %v14816_v34 = vrot.slane %v4020_v28, %v12991_v21  ;;  %v4072_v53 = vcombine.high %v884_v58, %v884_v58  ;;  %v14823_v49 = vrot.slane %v4022_v18, %v12991_v21 }
 0x27a   :  { %v3164_v16 = vadd.f32 %v3163_v44, %v3162_v12  ;;  %v3176_v36 = vadd.f32 %v3175_v46, %v3174_v41  ;;  %v3170_v29 = vrot.slane %v3169_v56, 1  ;;  %18526 = vst [vmem:[#allocation25_spill] sm:$0xff] %v14809_v61  ;;  %v3736_v12 = vpop.permute.xlu1 %3735  ;;  %v4128_v44 = vrot.slane %v11590_v19, %v18512_v59 }
 0x27b   :  { %12298 = vrcp.f32 %v3157_v38  ;;  %18527 = vst [vmem:[#allocation26_spill] sm:$0xff] %v14816_v34  ;;  %v4135_v46 = vrot.slane %v4121_v22, %v18512_v59  ;;  %v14820_v38 = vpop.permute.xlu0 %3731  ;;  %18528 = vst [vmem:[#allocation20_spill] sm:$0xff] %v14823_v49  ;;  %v3763_v31 = vadd.f32 %v11593_v26, %v3736_v12  ;;  %v4086_v19 = vrot.slane %v4072_v53, %v18512_v59  ;;  %v14859_v53 = vpop.f32.mrf.mxu1 }
 0x27c   :  { %v3177_v30 = vrot.slane %v3176_v36, 1  ;;  %12300 = vrcp.f32 %v3164_v16  ;;  %v3171_v48 = vadd.f32 %v3170_v29, %v3169_v56  ;;  %v4079_v16 = vrot.slane %v884_v58, %v18512_v59 }
 0x27d   :  { %v4136_v41 = vcombine.high %v4128_v44, %v4128_v44  ;;  %v4137_v28 = vcombine.high %v4135_v46, %v4135_v46  ;;  %v14827_v34 = vrot.slane %v4128_v44, %v18512_v59  ;;  %v14830_v29 = vrot.slane %v4135_v46, %v18512_v59 }
 0x27e   :  { %v3178_v52 = vadd.f32 %v3177_v30, %v3176_v36  ;;  %12302 = vrcp.f32 %v3171_v48  ;;  %v4087_v22 = vcombine.high %v4079_v16, %v4079_v16  ;;  %v4088_v30 = vcombine.high %v4086_v19, %v4086_v19 }
 0x27f   :  { %18529 = vst [vmem:[#allocation24_spill] sm:$0xff] %v14827_v34  ;;  %18530 = vst [vmem:[#allocation27_spill] sm:$0xff] %v14830_v29  ;;  %v14834_v36 = vrot.slane %v4136_v41, %v18512_v59  ;;  %v14837_v56 = vrot.slane %v4137_v28, %v18512_v59  ;;  %v4166_v58 = vcombine.high %v14827_v34, %v14827_v34  ;;  %v14861_v28 = vpop.permute.xlu0 %3739 }
 0x280   :  { %12304 = vrcp.f32 %v3178_v52  ;;  %v4167_v52 = vcombine.high %v14830_v29, %v14830_v29  ;;  %v14848_v12 = vrot.slane %v4079_v16, %v18512_v59  ;;  %v14869_v18 = vrot.slane %v4086_v19, %v18512_v59 }
 0x281   :  { %18531 = vst [vmem:[#allocation29_spill] sm:$0xff] %v14834_v36  ;;  %18532 = vst [vmem:[#allocation18_spill] sm:$0xff] %v14837_v56  ;;  %v4168_v41 = vcombine.high %v14834_v36, %v14834_v36  ;;  %v4169_v48 = vcombine.high %v14837_v56, %v14837_v56  ;;  %v14857_v46 = vrot.slane %v4166_v58, %v12991_v21 }
 0x282   :  { %18533 = vst [vmem:[#allocation23_spill] sm:$0xff] %v14848_v12  ;;  %v14866_v26 = vrot.slane %v4167_v52, %v12991_v21  ;;  %18536 = vst [vmem:[#allocation28_spill] sm:$0xff] %v14869_v18  ;;  %v14872_v29 = vrot.slane %v4087_v22, %v18512_v59  ;;  %v4117_v16 = vcombine.high %v14848_v12, %v14848_v12 }
 0x283   :  { %18534 = vst [vmem:[#allocation30_spill] sm:$0xff] %v14857_v46  ;;  %v14875_v44 = vrot.slane %v4168_v41, %v12991_v21  ;;  %v14878_v58 = vrot.slane %v4169_v48, %v12991_v21  ;;  %v14881_v46 = vrot.slane %v4088_v30, %v18512_v59  ;;  %v4118_v52 = vcombine.high %v14869_v18, %v14869_v18 }
 0x284   :  { %18535 = vst [vmem:[#allocation32_spill] sm:$0xff] %v14866_v26  ;;  %18537 = vst [vmem:[#allocation31_spill] sm:$0xff] %v14872_v29  ;;  %v4119_v19 = vcombine.high %v14872_v29, %v14872_v29  ;;  %v14896_v30 = vrot.slane %v4117_v16, %v12991_v21  ;;  %v14902_v26 = vpop.f32.mrf.mxu1  ;;  %v18544_v29 = vrot.slane %v14523_v11, %v12991_v21  ;;  %v14926_v11 = vpop.permute.xlu0 %3747 }
 0x285   :  { %18538 = vst [vmem:[#allocation33_spill] sm:$0xff] %v14875_v44  ;;  %18539 = vst [vmem:[#allocation34_spill] sm:$0xff] %v14878_v58  ;;  %v4120_v48 = vcombine.high %v14881_v46, %v14881_v46  ;;  %v14908_v41 = vrot.slane %v4118_v52, %v12991_v21  ;;  %v14916_v58 = vpop.permute.xlu1 %3743  ;;  %v4500_v52 = vadd.f32 %v14566_v63, %v3763_v31 }
 0x286   :  { %18540 = vst [vmem:[#allocation35_spill] sm:$0xff] %v14881_v46  ;;  %18541 = vst [vmem:[#allocation36_spill] sm:$0xff] %v14896_v30  ;;  %v14905_v22 = vrot.slane %v4119_v19, %v12991_v21  ;;  %v4498_v16 = vadd.f32 %v18544_v29, %v3763_v31  ;;  %v18545_v30 = vrot.slane %v14531_v35, %v12991_v21  ;;  %v904_v63 = vpop.f32.mrf.mxu1 }
 0x287   :  { %18543 = vst [vmem:[#allocation38_spill] sm:$0xff] %v14908_v41  ;;  %v14922_v19 = vrot.slane %v4120_v48, %v12991_v21  ;;  %v4501_v41 = vadd.f32 %v14569_v50, %v3763_v31  ;;  %v18549_v35 = vrot.slane %v14527_v17, %v12991_v21  ;;  %v4504_v48 = vadd.f32 %v14581_v45, %v3763_v31  ;;  %v8520_v17 = vld [vmem:[%s18337_s12] sm:$0xff] }
 0x288   :  { %v12299_v56 = vpop.eup %12298  ;;  %18542 = vst [vmem:[#allocation37_spill] sm:$0xff] %v14905_v22  ;;  %v4499_v59 = vadd.f32 %v18545_v30, %v3763_v31  ;;  %vm4562_vm11 = vcmp.ge.f32.partialorder %v4498_v16, 0.0  ;;  %vm4564_vm13 = vcmp.ge.f32.partialorder %v4500_v52, 0.0  ;;  %v4626_v45 = vmul.f32 0.2, %v4498_v16  ;;  %12053 = vmatprep.mubr.msk.f32.mxu1 %vm94_vm0, %v8520_v17 }
 0x289   :  { %v12301_v18 = vpop.eup %12300  ;;  %v14919_v46 = vmul.f32 %v12299_v56, %v14723_v40  ;;  %18547 = vst [vmem:[#allocation40_spill] sm:$0xff] %v14922_v19  ;;  %v4502_v30 = vadd.f32 %v18549_v35, %v3763_v31  ;;  %v18550_v40 = vrot.slane %v14538_v55, %v12991_v21  ;;  %vm4565_vm14 = vcmp.ge.f32.partialorder %v4501_v41, 0.0 }
 0x28a   :  { %v14929_v29 = vmul.f32 %v12301_v18, %v14735_v8  ;;  %vm4563_vm12 = vcmp.ge.f32.partialorder %v4499_v59, 0.0  ;;  %vm4568_vm3 = vcmp.ge.f32.partialorder %v4504_v48, 0.0  ;;  %v4628_v18 = vmul.f32 0.2, %v4500_v52 }
 0x28b   :  { %18546 = vst [vmem:[#allocation39_spill] sm:$0xff] %v14919_v46  ;;  %v4503_v56 = vadd.f32 %v18550_v40, %v3763_v31  ;;  %v4505_v46 = vadd.f32 %v14601_v39, %v3763_v31  ;;  %v12303_v50 = vpop.eup %12302  ;;  %vm4566_vm15 = vcmp.ge.f32.partialorder %v4502_v30, 0.0  ;;  %v4627_v39 = vmul.f32 0.2, %v4499_v59 }
 0x28c   :  { %18548 = vst [vmem:[#allocation41_spill] sm:$0xff] %v14929_v29  ;;  %v14943_v55 = vmul.f32 %v12303_v50, %v14760_v20  ;;  %v4629_v35 = vmul.f32 0.2, %v4501_v41  ;;  %v4630_v40 = vmul.f32 0.2, %v4502_v30  ;;  %v14949_v29 = vpop.permute.xlu1 %4830  ;;  %v4690_v44 = vsel %vm4562_vm11, %v4498_v16, %v4626_v45  ;;  %v11599_v20 = vpop.f32.mrf.mxu1 }
 0x28d   :  { %vm4567_vm2 = vcmp.ge.f32.partialorder %v4503_v56, 0.0  ;;  %v12305_v8 = vpop.eup %12304  ;;  %vm4569_vm4 = vcmp.ge.f32.partialorder %v4505_v46, 0.0  ;;  %v4631_v19 = vmul.f32 0.2, %v4503_v56  ;;  %v4632_v22 = vmul.f32 0.2, %v4504_v48  ;;  %v4835_v50 = vpop.permute.xlu0 %4834 }
 0x28e   :  { %18551 = vst [vmem:[#allocation42_spill] sm:$0xff] %v14943_v55  ;;  %v14947_v31 = vmul.f32 %v12305_v8, %v14770_v51  ;;  %v4633_v12 = vmul.f32 0.2, %v4505_v46  ;;  %v4691_v55 = vsel %vm4563_vm12, %v4499_v59, %v4627_v39  ;;  %v4692_v36 = vsel %vm4564_vm13, %v4500_v52, %v4628_v18  ;;  %v914_v39 = vpop.f32.mrf.mxu1 }
 0x28f   :  { %v4693_v17 = vsel %vm4565_vm14, %v4501_v41, %v4629_v35  ;;  %v4694_v51 = vsel %vm4566_vm15, %v4502_v30, %v4630_v40  ;;  %v4695_v8 = vsel %vm4567_vm2, %v4503_v56, %v4631_v19  ;;  %v4869_v49 = vmul.f32 %v4835_v50, %v4690_v44 }
 0x290   :  { %18552 = vst [vmem:[#allocation43_spill] sm:$0xff] %v14947_v31  ;;  %v4696_v31 = vsel %vm4568_vm3, %v4504_v48, %v4632_v22  ;;  %v4697_v34 = vsel %vm4569_vm4, %v4505_v46, %v4633_v12  ;;  %v4870_v15 = vmul.f32 %v4835_v50, %v4691_v55  ;;  %v4871_v0 = vmul.f32 %v4835_v50, %v4692_v36  ;;  %v3752_v12 = vpop.permute.xlu1 %3751 }
 0x291   :  { %v4872_v16 = vmul.f32 %v4835_v50, %v4693_v17  ;;  %v4873_v45 = vmul.f32 %v4835_v50, %v4694_v51  ;;  %v4874_v61 = vmul.f32 %v4835_v50, %v4695_v8  ;;  %v4875_v14 = vmul.f32 %v4835_v50, %v4696_v31 }
 0x292   :  { %v4876_v59 = vmul.f32 %v4835_v50, %v4697_v34  ;;  %v4927_v52 = vsel %vm4925_vm10, %v4869_v49, 0.0  ;;  %v4942_v41 = vsel %vm4925_vm10, %v4870_v15, 0.0  ;;  %v4957_v30 = vsel %vm4925_vm10, %v4871_v0, 0.0 }
 0x293   :  { %v4972_v19 = vsel %vm4925_vm10, %v4872_v16, 0.0  ;;  %v4987_v22 = vsel %vm4925_vm10, %v4873_v45, 0.0  ;;  %v5002_v44 = vsel %vm4925_vm10, %v4874_v61, 0.0  ;;  %v14966_v36 = vsel %vm4925_vm10, %v4875_v14, 0.0 }
 0x294   :  { %v14969_v46 = vsel %vm4925_vm10, %v4876_v59, 0.0  ;;  %v3762_v49 = vadd.f32 %v14820_v38, %v14859_v53  ;;  %v14975_v15 = vadd.f32 %v14902_v26, %v14916_v58  ;;  %v14978_v0 = vadd.f32 %v14861_v28, %v904_v63 }
 0x295   :  { %v14980_v34 = vadd.f32 %v11599_v20, %v3752_v12  ;;  %v14983_v61 = vadd.f32 %v14926_v11, %v914_v39  ;;  %v18553_v14 = vrot.slane %v14587_v60, %v12991_v21  ;;  %v18554_v48 = vrot.slane %v14593_v3, %v12991_v21 }
 0x296   :  { %v4492_v53 = vadd.f32 %v14614_v25, %v3762_v49  ;;  %v4493_v26 = vadd.f32 %v14617_v62, %v3762_v49  ;;  %v18555_v28 = vrot.slane %v14590_v24, %v12991_v21  ;;  %v18556_v11 = vrot.slane %v14596_v9, %v12991_v21 }
 0x297   :  { %v4490_v56 = vadd.f32 %v18553_v14, %v3762_v49  ;;  %v4491_v38 = vadd.f32 %v18554_v48, %v3762_v49  ;;  %v4496_v55 = vadd.f32 %v14626_v13, %v3762_v49  ;;  %v4497_v60 = vadd.f32 %v14632_v32, %v3762_v49 }
 0x298   :  { %v4494_v58 = vadd.f32 %v18555_v28, %v3762_v49  ;;  %v4495_v63 = vadd.f32 %v18556_v11, %v3762_v49  ;;  %vm4556_vm7 = vcmp.ge.f32.partialorder %v4492_v53, 0.0  ;;  %vm4557_vm8 = vcmp.ge.f32.partialorder %v4493_v26, 0.0 }
 0x299   :  { %vm4554_vm5 = vcmp.ge.f32.partialorder %v4490_v56, 0.0  ;;  %vm4555_vm6 = vcmp.ge.f32.partialorder %v4491_v38, 0.0  ;;  %vm4560_vm12 = vcmp.ge.f32.partialorder %v4496_v55, 0.0  ;;  %vm4561_vm13 = vcmp.ge.f32.partialorder %v4497_v60, 0.0 }
 0x29a   :  { %vm4558_vm9 = vcmp.ge.f32.partialorder %v4494_v58, 0.0  ;;  %vm4559_vm11 = vcmp.ge.f32.partialorder %v4495_v63, 0.0  ;;  %v4618_v3 = vmul.f32 0.2, %v4490_v56  ;;  %v4619_v25 = vmul.f32 0.2, %v4491_v38 }
 0x29b   :  { %v4620_v24 = vmul.f32 0.2, %v4492_v53  ;;  %v18557_v9 = vrot.slane %v14639_v23, %v12991_v21  ;;  %v4621_v13 = vmul.f32 0.2, %v4493_v26  ;;  %v4622_v31 = vmul.f32 0.2, %v4494_v58 }
 0x29c   :  { %v4623_v32 = vmul.f32 0.2, %v4495_v63  ;;  %v18558_v18 = vrot.slane %v14646_v27, %v12991_v21  ;;  %v4624_v40 = vmul.f32 0.2, %v4496_v55  ;;  %v4625_v20 = vmul.f32 0.2, %v4497_v60 }
 0x29d   :  { %v15005_v62 = vadd.f32 %v18557_v9, %v14975_v15  ;;  %v4682_v50 = vsel %vm4554_vm5, %v4490_v56, %v4618_v3  ;;  %v4683_v17 = vsel %vm4555_vm6, %v4491_v38, %v4619_v25  ;;  %v4684_v51 = vsel %vm4556_vm7, %v4492_v53, %v4620_v24 }
 0x29e   :  { %v4515_v35 = vadd.f32 %v18558_v18, %v14975_v15  ;;  %v4685_v23 = vsel %vm4557_vm8, %v4493_v26, %v4621_v13  ;;  %v4686_v8 = vsel %vm4558_vm9, %v4494_v58, %v4622_v31  ;;  %v4687_v16 = vsel %vm4559_vm11, %v4495_v63, %v4623_v32 }
 0x29f   :  { %v4688_v45 = vsel %vm4560_vm12, %v4496_v55, %v4624_v40  ;;  %v4689_v59 = vsel %vm4561_vm13, %v4497_v60, %v4625_v20  ;;  %v4861_v27 = vmul.f32 %v14949_v29, %v4682_v50  ;;  %v4862_v39 = vmul.f32 %v14949_v29, %v4683_v17 }
 0x2a0   :  { %v4863_v12 = vmul.f32 %v14949_v29, %v4684_v51  ;;  %v4864_v49 = vmul.f32 %v14949_v29, %v4685_v23  ;;  %v4865_v14 = vmul.f32 %v14949_v29, %v4686_v8  ;;  %v4866_v56 = vmul.f32 %v14949_v29, %v4687_v16 }
 0x2a1   :  { %v4867_v48 = vmul.f32 %v14949_v29, %v4688_v45  ;;  %v4868_v38 = vmul.f32 %v14949_v29, %v4689_v59  ;;  %v4926_v53 = vsel %vm4925_vm10, %v4861_v27, 0.0  ;;  %v4941_v26 = vsel %vm4925_vm10, %v4862_v39, 0.0 }
 0x2a2   :  { %v15029_v28 = vadd.f32 %v4927_v52, %v4926_v53  ;;  %v15031_v58 = vadd.f32 %v4942_v41, %v4941_v26  ;;  %v4956_v11 = vsel %vm4925_vm10, %v4863_v12, 0.0  ;;  %v4971_v63 = vsel %vm4925_vm10, %v4864_v49, 0.0 }
 0x2a3   :  { %v15035_v55 = vadd.f32 %v4957_v30, %v4956_v11  ;;  %v15037_v60 = vadd.f32 %v4972_v19, %v4971_v63  ;;  %v4986_v3 = vsel %vm4925_vm10, %v4865_v14, 0.0  ;;  %v5001_v29 = vsel %vm4925_vm10, %v4866_v56, 0.0 }
 0x2a4   :  { %v15041_v25 = vadd.f32 %v4987_v22, %v4986_v3  ;;  %v15043_v24 = vadd.f32 %v5002_v44, %v5001_v29  ;;  %v5016_v52 = vsel %vm4925_vm10, %v4867_v48, 0.0  ;;  %v5031_v41 = vsel %vm4925_vm10, %v4868_v38, 0.0  ;;  %v15057_v22 = vpop.permute.xlu0 %4838 }
 0x2a5   :  { %v15048_v9 = vadd.f32 %v14966_v36, %v5016_v52  ;;  %v15051_v30 = vadd.f32 %v14969_v46, %v5031_v41  ;;  %v4516_v19 = vadd.f32 %v14667_v7, %v14975_v15  ;;  %v4517_v13 = vadd.f32 %v14679_v57, %v14975_v15 }
 0x2a6   :  { %v18559_v44 = vrot.slane %v14643_v33, %v12991_v21  ;;  %v18560_v36 = vrot.slane %v14652_v54, %v12991_v21  ;;  %v4520_v46 = vadd.f32 %v14672_v10, %v14975_v15  ;;  %v4521_v7 = vadd.f32 %v14682_v6, %v14975_v15 }
 0x2a7   :  { %vm4578_vm14 = vcmp.ge.f32.partialorder %v15005_v62, 0.0  ;;  %vm4579_vm15 = vcmp.ge.f32.partialorder %v4515_v35, 0.0  ;;  %vm4580_vm2 = vcmp.ge.f32.partialorder %v4516_v19, 0.0  ;;  %vm4581_vm3 = vcmp.ge.f32.partialorder %v4517_v13, 0.0 }
 0x2a8   :  { %v4518_v31 = vadd.f32 %v18559_v44, %v14975_v15  ;;  %v4519_v32 = vadd.f32 %v18560_v36, %v14975_v15  ;;  %vm4584_vm6 = vcmp.ge.f32.partialorder %v4520_v46, 0.0  ;;  %vm4585_vm7 = vcmp.ge.f32.partialorder %v4521_v7, 0.0  ;;  %v4843_v16 = vpop.permute.xlu0 %4842 }
 0x2a9   :  { %v4642_v33 = vmul.f32 0.2, %v15005_v62  ;;  %v4643_v57 = vmul.f32 0.2, %v4515_v35  ;;  %v4644_v54 = vmul.f32 0.2, %v4516_v19  ;;  %v18561_v10 = vrot.slane %v14676_v42, %v12991_v21 }
 0x2aa   :  { %vm4582_vm4 = vcmp.ge.f32.partialorder %v4518_v31, 0.0  ;;  %vm4583_vm5 = vcmp.ge.f32.partialorder %v4519_v32, 0.0  ;;  %v4645_v40 = vmul.f32 0.2, %v4517_v13  ;;  %v4646_v6 = vmul.f32 0.2, %v4518_v31 }
 0x2ab   :  { %v4506_v18 = vadd.f32 %v18561_v10, %v14978_v0  ;;  %v4647_v15 = vmul.f32 0.2, %v4519_v32  ;;  %v18562_v20 = vrot.slane %v14689_v1, %v12991_v21  ;;  %v4648_v17 = vmul.f32 0.2, %v4520_v46 }
 0x2ac   :  { %v4649_v51 = vmul.f32 0.2, %v4521_v7  ;;  %v4706_v23 = vsel %vm4578_vm14, %v15005_v62, %v4642_v33  ;;  %v4707_v8 = vsel %vm4579_vm15, %v4515_v35, %v4643_v57  ;;  %v4708_v42 = vsel %vm4580_vm2, %v4516_v19, %v4644_v54  ;;  %v18566_v33 = vld [vmem:[#allocation14_spill] sm:$0xff] }
 0x2ad   :  { %v4507_v50 = vadd.f32 %v18562_v20, %v14978_v0  ;;  %v4709_v45 = vsel %vm4581_vm3, %v4517_v13, %v4645_v40  ;;  %v4710_v59 = vsel %vm4582_vm4, %v4518_v31, %v4646_v6  ;;  %v4711_v27 = vsel %vm4583_vm5, %v4519_v32, %v4647_v15  ;;  %v18569_v15 = vld [vmem:[#allocation12_spill] sm:$0xff] }
 0x2ae   :  { %v4712_v1 = vsel %vm4584_vm6, %v4520_v46, %v4648_v17  ;;  %v4713_v39 = vsel %vm4585_vm7, %v4521_v7, %v4649_v51  ;;  %v4885_v12 = vmul.f32 %v4843_v16, %v4706_v23  ;;  %v4886_v49 = vmul.f32 %v4843_v16, %v4707_v8  ;;  %v18565_v46 = vld [vmem:[#allocation10_spill] sm:$0xff] }
 0x2af   :  { %v4887_v14 = vmul.f32 %v4843_v16, %v4708_v42  ;;  %v4888_v56 = vmul.f32 %v4843_v16, %v4709_v45  ;;  %v4889_v62 = vmul.f32 %v4843_v16, %v4710_v59  ;;  %v4890_v48 = vmul.f32 %v4843_v16, %v4711_v27 }
 0x2b0   :  { %v4891_v35 = vmul.f32 %v4843_v16, %v4712_v1  ;;  %v4892_v38 = vmul.f32 %v4843_v16, %v4713_v39  ;;  %v15092_v53 = vsel %vm4925_vm10, %v4885_v12, 0.0  ;;  %v15095_v26 = vsel %vm4925_vm10, %v4886_v49, 0.0 }
 0x2b1   :  { %v15098_v11 = vsel %vm4925_vm10, %v4887_v14, 0.0  ;;  %v15101_v63 = vsel %vm4925_vm10, %v4888_v56, 0.0  ;;  %v15104_v3 = vsel %vm4925_vm10, %v4889_v62, 0.0  ;;  %v15107_v29 = vsel %vm4925_vm10, %v4890_v48, 0.0  ;;  %v15153_v14 = vpop.permute.xlu1 %3755 }
 0x2b2   :  { %v15110_v52 = vsel %vm4925_vm10, %v4891_v35, 0.0  ;;  %v15113_v41 = vsel %vm4925_vm10, %v4892_v38, 0.0  ;;  %v4508_v19 = vadd.f32 %v14709_v37, %v14978_v0  ;;  %v4509_v13 = vadd.f32 %v14717_v5, %v14978_v0 }
 0x2b3   :  { %v18563_v44 = vrot.slane %v14686_v2, %v12991_v21  ;;  %v18564_v36 = vrot.slane %v14698_v4, %v12991_v21  ;;  %v4512_v7 = vadd.f32 %v18565_v46, %v14978_v0  ;;  %v4513_v57 = vadd.f32 %v18566_v33, %v14978_v0  ;;  %v18567_v4 = vld [vmem:[#allocation9_spill] sm:$0xff] }
 0x2b4   :  { %vm4570_vm8 = vcmp.ge.f32.partialorder %v4506_v18, 0.0  ;;  %vm4571_vm9 = vcmp.ge.f32.partialorder %v4507_v50, 0.0  ;;  %vm4572_vm11 = vcmp.ge.f32.partialorder %v4508_v19, 0.0  ;;  %vm4573_vm12 = vcmp.ge.f32.partialorder %v4509_v13, 0.0 }
 0x2b5   :  { %v4510_v31 = vadd.f32 %v18563_v44, %v14978_v0  ;;  %v4511_v32 = vadd.f32 %v18564_v36, %v14978_v0  ;;  %vm4576_vm15 = vcmp.ge.f32.partialorder %v4512_v7, 0.0  ;;  %vm4577_vm2 = vcmp.ge.f32.partialorder %v4513_v57, 0.0 }
 0x2b6   :  { %v4634_v2 = vmul.f32 0.2, %v4506_v18  ;;  %v4635_v37 = vmul.f32 0.2, %v4507_v50  ;;  %v4636_v5 = vmul.f32 0.2, %v4508_v19  ;;  %v18568_v54 = vrot.slane %v18567_v4, %v12991_v21  ;;  %v15197_v4 = vpop.permute.xlu1 %3759 }
 0x2b7   :  { %vm4574_vm13 = vcmp.ge.f32.partialorder %v4510_v31, 0.0  ;;  %vm4575_vm14 = vcmp.ge.f32.partialorder %v4511_v32, 0.0  ;;  %v4637_v40 = vmul.f32 0.2, %v4509_v13  ;;  %v4638_v6 = vmul.f32 0.2, %v4510_v31 }
 0x2b8   :  { %v15135_v10 = vadd.f32 %v18568_v54, %v14980_v34  ;;  %v4639_v0 = vmul.f32 0.2, %v4511_v32  ;;  %v18570_v20 = vrot.slane %v18569_v15, %v12991_v21  ;;  %v4640_v51 = vmul.f32 0.2, %v4512_v7 }
 0x2b9   :  { %v4641_v23 = vmul.f32 0.2, %v4513_v57  ;;  %v4698_v8 = vsel %vm4570_vm8, %v4506_v18, %v4634_v2  ;;  %v4699_v16 = vsel %vm4571_vm9, %v4507_v50, %v4635_v37  ;;  %v4700_v42 = vsel %vm4572_vm11, %v4508_v19, %v4636_v5  ;;  %v18571_v2 = vld [vmem:[#allocation15_spill] sm:$0xff]  ;;  %v18572_v5 = vld [vmem:[#allocation13_spill] sm:$0xff] }
 0x2ba   :  { %v15141_v17 = vadd.f32 %v18570_v20, %v14980_v34  ;;  %v4701_v45 = vsel %vm4573_vm12, %v4509_v13, %v4637_v40  ;;  %v4702_v59 = vsel %vm4574_vm13, %v4510_v31, %v4638_v6  ;;  %v4703_v27 = vsel %vm4575_vm14, %v4511_v32, %v4639_v0  ;;  %v18575_v6 = vld [vmem:[#allocation8_spill] sm:$0xff]  ;;  %v18578_v20 = vld [vmem:[#allocation21_spill] sm:$0xff] }
 0x2bb   :  { %v4704_v1 = vsel %vm4576_vm15, %v4512_v7, %v4640_v51  ;;  %v4705_v39 = vsel %vm4577_vm2, %v4513_v57, %v4641_v23  ;;  %v4877_v12 = vmul.f32 %v15057_v22, %v4698_v8  ;;  %v4878_v49 = vmul.f32 %v15057_v22, %v4699_v16 }
 0x2bc   :  { %v4879_v18 = vmul.f32 %v15057_v22, %v4700_v42  ;;  %v4880_v50 = vmul.f32 %v15057_v22, %v4701_v45  ;;  %v4881_v56 = vmul.f32 %v15057_v22, %v4702_v59  ;;  %v4882_v62 = vmul.f32 %v15057_v22, %v4703_v27 }
 0x2bd   :  { %v4883_v48 = vmul.f32 %v15057_v22, %v4704_v1  ;;  %v4884_v35 = vmul.f32 %v15057_v22, %v4705_v39  ;;  %v4929_v38 = vsel %vm4925_vm10, %v4877_v12, 0.0  ;;  %v4944_v19 = vsel %vm4925_vm10, %v4878_v49, 0.0 }
 0x2be   :  { %v15164_v13 = vadd.f32 %v4929_v38, %v15029_v28  ;;  %v15167_v44 = vadd.f32 %v4944_v19, %v15031_v58  ;;  %v4959_v31 = vsel %vm4925_vm10, %v4879_v18, 0.0  ;;  %v4974_v36 = vsel %vm4925_vm10, %v4880_v50, 0.0 }
 0x2bf   :  { %v15172_v32 = vadd.f32 %v4959_v31, %v15035_v55  ;;  %v15175_v46 = vadd.f32 %v4974_v36, %v15037_v60  ;;  %v4989_v22 = vsel %vm4925_vm10, %v4881_v56, 0.0  ;;  %v5004_v7 = vsel %vm4925_vm10, %v4882_v62, 0.0 }
 0x2c0   :  { %v15180_v28 = vadd.f32 %v4989_v22, %v15041_v25  ;;  %v15183_v58 = vadd.f32 %v5004_v7, %v15043_v24  ;;  %v5019_v33 = vsel %vm4925_vm10, %v4883_v48, 0.0  ;;  %v5034_v57 = vsel %vm4925_vm10, %v4884_v35, 0.0  ;;  %v18573_v24 = vld [vmem:[#allocation11_spill] sm:$0xff] }
 0x2c1   :  { %v15188_v55 = vadd.f32 %v5019_v33, %v15048_v9  ;;  %v15191_v60 = vadd.f32 %v5034_v57, %v15051_v30  ;;  %v4532_v37 = vadd.f32 %v18571_v2, %v14980_v34  ;;  %v4533_v25 = vadd.f32 %v18572_v5, %v14980_v34  ;;  %v18577_v30 = vld [vmem:[#allocation16_spill] sm:$0xff] }
 0x2c2   :  { %v18574_v54 = vrot.slane %v18573_v24, %v12991_v21  ;;  %v18576_v9 = vrot.slane %v18575_v6, %v12991_v21  ;;  %v4536_v15 = vadd.f32 %v18577_v30, %v14980_v34  ;;  %v4537_v51 = vadd.f32 %v18578_v20, %v14980_v34  ;;  %v18581_v6 = vld [vmem:[#allocation19_spill] sm:$0xff] }
 0x2c3   :  { %vm4594_vm3 = vcmp.ge.f32.partialorder %v15135_v10, 0.0  ;;  %vm4595_vm4 = vcmp.ge.f32.partialorder %v15141_v17, 0.0  ;;  %vm4596_vm5 = vcmp.ge.f32.partialorder %v4532_v37, 0.0  ;;  %vm4597_vm6 = vcmp.ge.f32.partialorder %v4533_v25, 0.0 }
 0x2c4   :  { %v4534_v40 = vadd.f32 %v18574_v54, %v14980_v34  ;;  %v4535_v0 = vadd.f32 %v18576_v9, %v14980_v34  ;;  %vm4600_vm9 = vcmp.ge.f32.partialorder %v4536_v15, 0.0  ;;  %vm4601_vm11 = vcmp.ge.f32.partialorder %v4537_v51, 0.0 }
 0x2c5   :  { %v4658_v23 = vmul.f32 0.2, %v15135_v10  ;;  %v4659_v8 = vmul.f32 0.2, %v15141_v17  ;;  %v4660_v16 = vmul.f32 0.2, %v4532_v37  ;;  %v18579_v42 = vrot.slane %v14782_v43, %v12991_v21  ;;  %v4851_v43 = vpop.permute.xlu1 %4850 }
 0x2c6   :  { %vm4598_vm7 = vcmp.ge.f32.partialorder %v4534_v40, 0.0  ;;  %vm4599_vm8 = vcmp.ge.f32.partialorder %v4535_v0, 0.0  ;;  %v4661_v45 = vmul.f32 0.2, %v4533_v25  ;;  %v4662_v59 = vmul.f32 0.2, %v4534_v40 }
 0x2c7   :  { %v4522_v34 = vadd.f32 %v18579_v42, %v14983_v61  ;;  %v4663_v27 = vmul.f32 0.2, %v4535_v0  ;;  %v18580_v1 = vrot.slane %v14788_v47, %v12991_v21  ;;  %v4664_v12 = vmul.f32 0.2, %v4536_v15  ;;  %v18587_v42 = vld [vmem:[#allocation26_spill] sm:$0xff] }
 0x2c8   :  { %v4665_v49 = vmul.f32 0.2, %v4537_v51  ;;  %v4722_v18 = vsel %vm4594_vm3, %v15135_v10, %v4658_v23  ;;  %v4723_v50 = vsel %vm4595_vm4, %v15141_v17, %v4659_v8  ;;  %v4724_v56 = vsel %vm4596_vm5, %v4532_v37, %v4660_v16  ;;  %v18585_v23 = vld [vmem:[#allocation17_spill] sm:$0xff] }
 0x2c9   :  { %v4523_v39 = vadd.f32 %v18580_v1, %v14983_v61  ;;  %v4725_v62 = vsel %vm4597_vm6, %v4533_v25, %v4661_v45  ;;  %v4726_v48 = vsel %vm4598_vm7, %v4534_v40, %v4662_v59  ;;  %v4727_v47 = vsel %vm4599_vm8, %v4535_v0, %v4663_v27  ;;  %v18582_v0 = vld [vmem:[#allocation25_spill] sm:$0xff]  ;;  %v18588_v59 = vld [vmem:[#allocation20_spill] sm:$0xff] }
 0x2ca   :  { %v4728_v35 = vsel %vm4600_vm9, %v4536_v15, %v4664_v12  ;;  %v4729_v38 = vsel %vm4601_vm11, %v4537_v51, %v4665_v49  ;;  %v4901_v19 = vmul.f32 %v4851_v43, %v4722_v18  ;;  %v4902_v31 = vmul.f32 %v4851_v43, %v4723_v50  ;;  %v18583_v15 = vld [vmem:[#allocation22_spill] sm:$0xff] }
 0x2cb   :  { %v4903_v10 = vmul.f32 %v4851_v43, %v4724_v56  ;;  %v4904_v36 = vmul.f32 %v4851_v43, %v4725_v62  ;;  %v4905_v22 = vmul.f32 %v4851_v43, %v4726_v48  ;;  %v4906_v7 = vmul.f32 %v4851_v43, %v4727_v47 }
 0x2cc   :  { %v4907_v17 = vmul.f32 %v4851_v43, %v4728_v35  ;;  %v4908_v33 = vmul.f32 %v4851_v43, %v4729_v38  ;;  %v15236_v57 = vsel %vm4925_vm10, %v4901_v19, 0.0  ;;  %v15239_v2 = vsel %vm4925_vm10, %v4902_v31, 0.0  ;;  %v4847_v38 = vpop.permute.xlu0 %4846 }
 0x2cd   :  { %v15242_v37 = vsel %vm4925_vm10, %v4903_v10, 0.0  ;;  %v15245_v5 = vsel %vm4925_vm10, %v4904_v36, 0.0  ;;  %v15248_v25 = vsel %vm4925_vm10, %v4905_v22, 0.0  ;;  %v15251_v24 = vsel %vm4925_vm10, %v4906_v7, 0.0 }
 0x2ce   :  { %v15254_v54 = vsel %vm4925_vm10, %v4907_v17, 0.0  ;;  %v15257_v40 = vsel %vm4925_vm10, %v4908_v33, 0.0  ;;  %v4524_v9 = vadd.f32 %v18581_v6, %v14983_v61  ;;  %v4525_v30 = vadd.f32 %v18582_v0, %v14983_v61 }
 0x2cf   :  { %v18584_v20 = vrot.slane %v18583_v15, %v12991_v21  ;;  %v18586_v8 = vrot.slane %v18585_v23, %v12991_v21  ;;  %v4528_v45 = vadd.f32 %v18587_v42, %v14983_v61  ;;  %v4529_v27 = vadd.f32 %v18588_v59, %v14983_v61 }
 0x2d0   :  { %vm4586_vm12 = vcmp.ge.f32.partialorder %v4522_v34, 0.0  ;;  %vm4587_vm13 = vcmp.ge.f32.partialorder %v4523_v39, 0.0  ;;  %vm4588_vm14 = vcmp.ge.f32.partialorder %v4524_v9, 0.0  ;;  %vm4589_vm15 = vcmp.ge.f32.partialorder %v4525_v30, 0.0 }
 0x2d1   :  { %v4526_v51 = vadd.f32 %v18584_v20, %v14983_v61  ;;  %v4527_v16 = vadd.f32 %v18586_v8, %v14983_v61  ;;  %vm4592_vm4 = vcmp.ge.f32.partialorder %v4528_v45, 0.0  ;;  %vm4593_vm5 = vcmp.ge.f32.partialorder %v4529_v27, 0.0 }
 0x2d2   :  { %v4650_v1 = vmul.f32 0.2, %v4522_v34  ;;  %v4651_v12 = vmul.f32 0.2, %v4523_v39  ;;  %v4652_v49 = vmul.f32 0.2, %v4524_v9  ;;  %v4932_v18 = vadd.f32 %v15092_v53, %v15164_v13 }
 0x2d3   :  { %vm4590_vm2 = vcmp.ge.f32.partialorder %v4526_v51, 0.0  ;;  %vm4591_vm3 = vcmp.ge.f32.partialorder %v4527_v16, 0.0  ;;  %v4653_v50 = vmul.f32 0.2, %v4525_v30  ;;  %v4654_v43 = vmul.f32 0.2, %v4526_v51 }
 0x2d4   :  { %v4655_v56 = vmul.f32 0.2, %v4527_v16  ;;  %v4947_v61 = vadd.f32 %v15095_v26, %v15167_v44  ;;  %v4656_v62 = vmul.f32 0.2, %v4528_v45  ;;  %v4657_v48 = vmul.f32 0.2, %v4529_v27 }
 0x2d5   :  { %v4714_v47 = vsel %vm4586_vm12, %v4522_v34, %v4650_v1  ;;  %v4715_v35 = vsel %vm4587_vm13, %v4523_v39, %v4651_v12  ;;  %v4716_v19 = vsel %vm4588_vm14, %v4524_v9, %v4652_v49  ;;  %v4717_v31 = vsel %vm4589_vm15, %v4525_v30, %v4653_v50  ;;  %v11602_v39 = vpop.f32.mrf.mxu1  ;;  %v18589_v50 = vld [vmem:[#allocation24_spill] sm:$0xff] }
 0x2d6   :  { %v4718_v10 = vsel %vm4590_vm2, %v4526_v51, %v4654_v43  ;;  %v4719_v53 = vsel %vm4591_vm3, %v4527_v16, %v4655_v56  ;;  %v4720_v13 = vsel %vm4592_vm4, %v4528_v45, %v4656_v62  ;;  %v4721_v36 = vsel %vm4593_vm5, %v4529_v27, %v4657_v48  ;;  %v18591_v43 = vld [vmem:[#allocation29_spill] sm:$0xff]  ;;  %v18593_v62 = vld [vmem:[#allocation30_spill] sm:$0xff] }
 0x2d7   :  { %v4893_v26 = vmul.f32 %v4847_v38, %v4714_v47  ;;  %v4894_v44 = vmul.f32 %v4847_v38, %v4715_v35  ;;  %v4895_v22 = vmul.f32 %v4847_v38, %v4716_v19  ;;  %v4896_v7 = vmul.f32 %v4847_v38, %v4717_v31  ;;  %v18594_v48 = vld [vmem:[#allocation33_spill] sm:$0xff]  ;;  %v18595_v35 = vld [vmem:[#allocation27_spill] sm:$0xff]  ;;  %v18599_v31 = vld [vmem:[#allocation32_spill] sm:$0xff] }
 0x2d8   :  { %v4897_v34 = vmul.f32 %v4847_v38, %v4718_v10  ;;  %v4898_v17 = vmul.f32 %v4847_v38, %v4719_v53  ;;  %v4899_v33 = vmul.f32 %v4847_v38, %v4720_v13  ;;  %v4900_v6 = vmul.f32 %v4847_v38, %v4721_v36  ;;  %v18597_v38 = vld [vmem:[#allocation18_spill] sm:$0xff]  ;;  %v15343_v36 = vpop.permute.xlu0 %4854 }
 0x2d9   :  { %v4933_v9 = vsel %vm4925_vm10, %v4893_v26, 0.0  ;;  %v4948_v0 = vsel %vm4925_vm10, %v4894_v44, 0.0  ;;  %v4962_v20 = vadd.f32 %v15098_v11, %v15172_v32  ;;  %v4963_v51 = vsel %vm4925_vm10, %v4895_v22, 0.0  ;;  %v924_v32 = vpop.f32.mrf.mxu1  ;;  %v18600_v53 = vld [vmem:[#allocation34_spill] sm:$0xff]  ;;  %v4859_v26 = vpop.permute.xlu1 %4858 }
 0x2da   :  { %v4934_v30 = vadd.f32 %v4933_v9, %v4932_v18  ;;  %v4949_v15 = vadd.f32 %v4948_v0, %v4947_v61  ;;  %v4977_v23 = vadd.f32 %v15101_v63, %v15175_v46  ;;  %v4978_v8 = vsel %vm4925_vm10, %v4896_v7, 0.0  ;;  %v18603_v0 = vld [vmem:[#allocation31_spill] sm:$0xff] }
 0x2db   :  { %v4992_v16 = vadd.f32 %v15104_v3, %v15180_v28  ;;  %v4993_v42 = vsel %vm4925_vm10, %v4897_v34, 0.0  ;;  %v15298_v45 = vadd.f32 %v4963_v51, %v4962_v20  ;;  %v5007_v59 = vadd.f32 %v15107_v29, %v15183_v58  ;;  %v18601_v34 = vld [vmem:[#allocation23_spill] sm:$0xff] }
 0x2dc   :  { %v5008_v27 = vsel %vm4925_vm10, %v4898_v17, 0.0  ;;  %v5022_v11 = vadd.f32 %v15110_v52, %v15188_v55  ;;  %v15305_v1 = vadd.f32 %v4978_v8, %v4977_v23  ;;  %v5023_v46 = vsel %vm4925_vm10, %v4899_v33, 0.0 }
 0x2dd   :  { %v15307_v63 = vadd.f32 %v4993_v42, %v4992_v16  ;;  %v5037_v3 = vadd.f32 %v15113_v41, %v15191_v60  ;;  %v15312_v28 = vadd.f32 %v5008_v27, %v5007_v59  ;;  %v5038_v29 = vsel %vm4925_vm10, %v4900_v6, 0.0 }
 0x2de   :  { %v15314_v12 = vadd.f32 %v5023_v46, %v5022_v11  ;;  %v3769_v58 = vadd.f32 %v11602_v39, %v15197_v4  ;;  %v3768_v52 = vadd.f32 %v15153_v14, %v924_v32  ;;  %v15322_v55 = vadd.f32 %v15236_v57, %v4934_v30 }
 0x2df   :  { %v15318_v49 = vadd.f32 %v5038_v29, %v5037_v3  ;;  %v15325_v18 = vadd.f32 %v15239_v2, %v4949_v15  ;;  %v18590_v41 = vrot.slane %v18589_v50, %v12991_v21  ;;  %v18592_v56 = vrot.slane %v18591_v43, %v12991_v21  ;;  %v15359_v29 = vpop.permute.xlu0 %5094 }
 0x2e0   :  { %v4548_v4 = vadd.f32 %v18593_v62, %v3769_v58  ;;  %v4549_v47 = vadd.f32 %v18594_v48, %v3769_v58  ;;  %v18596_v14 = vrot.slane %v18595_v35, %v12991_v21  ;;  %v18598_v2 = vrot.slane %v18597_v38, %v12991_v21 }
 0x2e1   :  { %v4546_v60 = vadd.f32 %v18590_v41, %v3769_v58  ;;  %v4547_v61 = vadd.f32 %v18592_v56, %v3769_v58  ;;  %v4552_v10 = vadd.f32 %v18599_v31, %v3769_v58  ;;  %v4553_v13 = vadd.f32 %v18600_v53, %v3769_v58  ;;  %v18606_v31 = vld [vmem:[#allocation37_spill] sm:$0xff]  ;;  %v18607_v53 = vld [vmem:[#allocation28_spill] sm:$0xff] }
 0x2e2   :  { %v4550_v57 = vadd.f32 %v18596_v14, %v3769_v58  ;;  %v4551_v19 = vadd.f32 %v18598_v2, %v3769_v58  ;;  %vm4612_vm8 = vcmp.ge.f32.partialorder %v4548_v4, 0.0  ;;  %vm4613_vm9 = vcmp.ge.f32.partialorder %v4549_v47, 0.0  ;;  %v15361_v58 = vpop.permute.xlu1 %5101  ;;  %v18605_v2 = vld [vmem:[#allocation36_spill] sm:$0xff] }
 0x2e3   :  { %vm4610_vm6 = vcmp.ge.f32.partialorder %v4546_v60, 0.0  ;;  %vm4611_vm7 = vcmp.ge.f32.partialorder %v4547_v61, 0.0  ;;  %vm4616_vm13 = vcmp.ge.f32.partialorder %v4552_v10, 0.0  ;;  %vm4617_vm14 = vcmp.ge.f32.partialorder %v4553_v13, 0.0 }
 0x2e4   :  { %vm4614_vm11 = vcmp.ge.f32.partialorder %v4550_v57, 0.0  ;;  %vm4615_vm12 = vcmp.ge.f32.partialorder %v4551_v19, 0.0  ;;  %v4674_v44 = vmul.f32 0.2, %v4546_v60  ;;  %v4675_v22 = vmul.f32 0.2, %v4547_v61 }
 0x2e5   :  { %v4676_v7 = vmul.f32 0.2, %v4548_v4  ;;  %v18602_v17 = vrot.slane %v18601_v34, %v12991_v21  ;;  %v4677_v33 = vmul.f32 0.2, %v4549_v47  ;;  %v4678_v6 = vmul.f32 0.2, %v4550_v57 }
 0x2e6   :  { %v4679_v9 = vmul.f32 0.2, %v4551_v19  ;;  %v18604_v30 = vrot.slane %v18603_v0, %v12991_v21  ;;  %v4680_v20 = vmul.f32 0.2, %v4552_v10  ;;  %v4681_v51 = vmul.f32 0.2, %v4553_v13  ;;  %v15395_v0 = vpop.permute.xlu1 %5087 }
 0x2e7   :  { %v4538_v39 = vadd.f32 %v18602_v17, %v3768_v52  ;;  %v4738_v23 = vsel %vm4610_vm6, %v4546_v60, %v4674_v44  ;;  %v4739_v8 = vsel %vm4611_vm7, %v4547_v61, %v4675_v22  ;;  %v4740_v16 = vsel %vm4612_vm8, %v4548_v4, %v4676_v7  ;;  %v18609_v44 = vld [vmem:[#allocation35_spill] sm:$0xff]  ;;  %v18611_v34 = vld [vmem:[#allocation38_spill] sm:$0xff] }
 0x2e8   :  { %v4539_v15 = vadd.f32 %v18604_v30, %v3768_v52  ;;  %v4741_v42 = vsel %vm4613_vm9, %v4549_v47, %v4677_v33  ;;  %v4742_v59 = vsel %vm4614_vm11, %v4550_v57, %v4678_v6  ;;  %v4743_v27 = vsel %vm4615_vm12, %v4551_v19, %v4679_v9  ;;  %v18612_v33 = vld [vmem:[#allocation40_spill] sm:$0xff]  ;;  %v15393_v9 = vpop.permute.xlu0 %5080 }
 0x2e9   :  { %v4744_v11 = vsel %vm4616_vm13, %v4552_v10, %v4680_v20  ;;  %v4745_v32 = vsel %vm4617_vm14, %v4553_v13, %v4681_v51  ;;  %v4917_v46 = vmul.f32 %v4859_v26, %v4738_v23  ;;  %v4918_v3 = vmul.f32 %v4859_v26, %v4739_v8 }
 0x2ea   :  { %v4919_v50 = vmul.f32 %v4859_v26, %v4740_v16  ;;  %v4920_v41 = vmul.f32 %v4859_v26, %v4741_v42  ;;  %v4921_v60 = vmul.f32 %v4859_v26, %v4742_v59  ;;  %v4922_v43 = vmul.f32 %v4859_v26, %v4743_v27 }
 0x2eb   :  { %v4923_v56 = vmul.f32 %v4859_v26, %v4744_v11  ;;  %v4924_v61 = vmul.f32 %v4859_v26, %v4745_v32  ;;  %v4939_v62 = vsel %vm4925_vm10, %v4917_v46, 0.0  ;;  %v4954_v4 = vsel %vm4925_vm10, %v4918_v3, 0.0 }
 0x2ec   :  { %v15366_v48 = vsel %vm4925_vm10, %v4919_v50, 0.0  ;;  %v15369_v47 = vsel %vm4925_vm10, %v4920_v41, 0.0  ;;  %v15372_v35 = vsel %vm4925_vm10, %v4921_v60, 0.0  ;;  %v15375_v14 = vsel %vm4925_vm10, %v4922_v43, 0.0  ;;  %v5067_v60 = vpop.permute.xlu0 %5066 }
 0x2ed   :  { %v15378_v57 = vsel %vm4925_vm10, %v4923_v56, 0.0  ;;  %v15381_v38 = vsel %vm4925_vm10, %v4924_v61, 0.0  ;;  %v4540_v19 = vadd.f32 %v18605_v2, %v3768_v52  ;;  %v4541_v10 = vadd.f32 %v18606_v31, %v3768_v52 }
 0x2ee   :  { %v18608_v13 = vrot.slane %v18607_v53, %v12991_v21  ;;  %v18610_v22 = vrot.slane %v18609_v44, %v12991_v21  ;;  %v4544_v17 = vadd.f32 %v18611_v34, %v3768_v52  ;;  %v4545_v6 = vadd.f32 %v18612_v33, %v3768_v52 }
 0x2ef   :  { %vm4602_vm15 = vcmp.ge.f32.partialorder %v4538_v39, 0.0  ;;  %vm4603_vm2 = vcmp.ge.f32.partialorder %v4539_v15, 0.0  ;;  %vm4604_vm3 = vcmp.ge.f32.partialorder %v4540_v19, 0.0  ;;  %vm4605_vm4 = vcmp.ge.f32.partialorder %v4541_v10, 0.0 }
 0x2f0   :  { %v4542_v26 = vadd.f32 %v18608_v13, %v3768_v52  ;;  %v4543_v7 = vadd.f32 %v18610_v22, %v3768_v52  ;;  %vm4608_vm7 = vcmp.ge.f32.partialorder %v4544_v17, 0.0  ;;  %vm4609_vm8 = vcmp.ge.f32.partialorder %v4545_v6, 0.0 }
 0x2f1   :  { %v4666_v30 = vmul.f32 0.2, %v4538_v39  ;;  %v4667_v20 = vmul.f32 0.2, %v4539_v15  ;;  %v4668_v51 = vmul.f32 0.2, %v4540_v19  ;;  %v4966_v23 = vadd.f32 %v15242_v37, %v15298_v45 }
 0x2f2   :  { %vm4606_vm5 = vcmp.ge.f32.partialorder %v4542_v26, 0.0  ;;  %vm4607_vm6 = vcmp.ge.f32.partialorder %v4543_v7, 0.0  ;;  %v4669_v8 = vmul.f32 0.2, %v4541_v10  ;;  %v4670_v52 = vmul.f32 0.2, %v4542_v26 }
 0x2f3   :  { %v4671_v16 = vmul.f32 0.2, %v4543_v7  ;;  %v4981_v42 = vadd.f32 %v15245_v5, %v15305_v1  ;;  %v4672_v59 = vmul.f32 0.2, %v4544_v17  ;;  %v4673_v27 = vmul.f32 0.2, %v4545_v6 }
 0x2f4   :  { %v4730_v11 = vsel %vm4602_vm15, %v4538_v39, %v4666_v30  ;;  %v4731_v32 = vsel %vm4603_vm2, %v4539_v15, %v4667_v20  ;;  %v4732_v46 = vsel %vm4604_vm3, %v4540_v19, %v4668_v51  ;;  %v4733_v3 = vsel %vm4605_vm4, %v4541_v10, %v4669_v8  ;;  %v5074_v39 = vpop.permute.xlu1 %5073 }
 0x2f5   :  { %v4734_v50 = vsel %vm4606_vm5, %v4542_v26, %v4670_v52  ;;  %v4735_v37 = vsel %vm4607_vm6, %v4543_v7, %v4671_v16  ;;  %v4736_v45 = vsel %vm4608_vm7, %v4544_v17, %v4672_v59  ;;  %v4737_v41 = vsel %vm4609_vm8, %v4545_v6, %v4673_v27 }
 0x2f6   :  { %v4909_v5 = vmul.f32 %v15343_v36, %v4730_v11  ;;  %v4910_v1 = vmul.f32 %v15343_v36, %v4731_v32  ;;  %v4911_v15 = vmul.f32 %v15343_v36, %v4732_v46  ;;  %v4912_v43 = vmul.f32 %v15343_v36, %v4733_v3 }
 0x2f7   :  { %v4913_v56 = vmul.f32 %v15343_v36, %v4734_v50  ;;  %v4914_v61 = vmul.f32 %v15343_v36, %v4735_v37  ;;  %v4915_v2 = vmul.f32 %v15343_v36, %v4736_v45  ;;  %v4916_v19 = vmul.f32 %v15343_v36, %v4737_v41 }
 0x2f8   :  { %v4937_v31 = vsel %vm4925_vm10, %v4909_v5, 0.0  ;;  %v4952_v10 = vsel %vm4925_vm10, %v4910_v1, 0.0  ;;  %v4967_v26 = vsel %vm4925_vm10, %v4911_v15, 0.0  ;;  %v4982_v44 = vsel %vm4925_vm10, %v4912_v43, 0.0  ;;  %v5060_v8 = vpop.permute.xlu1 %5059 }
 0x2f9   :  { %v4938_v53 = vadd.f32 %v4937_v31, %v15322_v55  ;;  %v4953_v13 = vadd.f32 %v4952_v10, %v15325_v18  ;;  %v4968_v22 = vadd.f32 %v4967_v26, %v4966_v23  ;;  %v4983_v7 = vadd.f32 %v4982_v44, %v4981_v42  ;;  %v5053_v23 = vpop.permute.xlu0 %5052 }
 0x2fa   :  { %v4996_v34 = vadd.f32 %v15248_v25, %v15307_v63  ;;  %v4997_v17 = vsel %vm4925_vm10, %v4913_v56, 0.0  ;;  %v5011_v6 = vadd.f32 %v15251_v24, %v15312_v28  ;;  %v5012_v55 = vsel %vm4925_vm10, %v4914_v61, 0.0 }
 0x2fb   :  { %v4940_v36 = vadd.f32 %v4939_v62, %v4938_v53  ;;  %v4955_v33 = vadd.f32 %v4954_v4, %v4953_v13  ;;  %v4970_v18 = vadd.f32 %v15366_v48, %v4968_v22  ;;  %v4985_v30 = vadd.f32 %v15369_v47, %v4983_v7 }
 0x2fc   :  { %v4998_v20 = vadd.f32 %v4997_v17, %v4996_v34  ;;  %v5026_v51 = vadd.f32 %v15254_v54, %v15314_v12  ;;  %v5013_v25 = vadd.f32 %v5012_v55, %v5011_v6  ;;  %v5027_v63 = vsel %vm4925_vm10, %v4915_v2, 0.0 }
 0x2fd   :  { %v5041_v62 = vadd.f32 %v15257_v40, %v15318_v49  ;;  %v5042_v24 = vsel %vm4925_vm10, %v4916_v19, 0.0  ;;  %v15438_v48 = vadd.f32 %v5053_v23, %v4940_v36  ;;  %v15440_v47 = vadd.f32 %v5060_v8, %v4955_v33 }
 0x2fe   :  { %v5000_v28 = vadd.f32 %v15372_v35, %v4998_v20  ;;  %v5028_v4 = vadd.f32 %v5027_v63, %v5026_v51  ;;  %v5015_v52 = vadd.f32 %v15375_v14, %v5013_v25  ;;  %v15443_v12 = vadd.f32 %v5067_v60, %v4970_v18 }
 0x2ff   :  { %v5043_v54 = vadd.f32 %v5042_v24, %v5041_v62  ;;  %v15445_v16 = vadd.f32 %v5074_v39, %v4985_v30  ;;  %v5111_v49 = vsel %vm4925_vm10, %v15438_v48, -inf  ;;  %v5118_v35 = vsel %vm4925_vm10, %v15440_v47, -inf }
 0x300   :  { %v5030_v42 = vadd.f32 %v15378_v57, %v5028_v4  ;;  %v15449_v40 = vadd.f32 %v15393_v9, %v5000_v28  ;;  %v15457_v14 = vadd.f32 %v15395_v0, %v5015_v52  ;;  %v5112_v27 = vrot.slane %v5111_v49, 4 }
 0x301   :  { %v5045_v59 = vadd.f32 %v15381_v38, %v5043_v54  ;;  %v5119_v11 = vrot.slane %v5118_v35, 4  ;;  %v5125_v57 = vsel %vm4925_vm10, %v15443_v12, -inf  ;;  %v5132_v9 = vsel %vm4925_vm10, %v15445_v16, -inf }
 0x302   :  { %v15460_v32 = vadd.f32 %v15359_v29, %v5030_v42  ;;  %v5139_v46 = vsel %vm4925_vm10, %v15449_v40, -inf  ;;  %v5113_v38 = vmax.f32 %v5111_v49, %v5112_v27  ;;  %v5126_v50 = vrot.slane %v5125_v57, 4 }
 0x303   :  { %v15469_v3 = vadd.f32 %v15361_v58, %v5045_v59  ;;  %v5120_v0 = vmax.f32 %v5118_v35, %v5119_v11  ;;  %v5133_v37 = vrot.slane %v5132_v9, 4  ;;  %v5140_v45 = vrot.slane %v5139_v46, 4 }
 0x304   :  { %v5146_v29 = vsel %vm4925_vm10, %v15457_v14, -inf  ;;  %v5153_v41 = vsel %vm4925_vm10, %v15460_v32, -inf  ;;  %v5114_v5 = vrot.slane %v5113_v38, 2  ;;  %v5127_v60 = vmax.f32 %v5125_v57, %v5126_v50 }
 0x305   :  { %v5121_v1 = vrot.slane %v5120_v0, 2  ;;  %v5147_v39 = vrot.slane %v5146_v29, 4  ;;  %v5134_v15 = vmax.f32 %v5132_v9, %v5133_v37  ;;  %v5141_v43 = vmax.f32 %v5139_v46, %v5140_v45  ;;  %v18613_v45 = vld [vmem:[#allocation3_spill] sm:$0xff] }
 0x306   :  { %v5154_v56 = vrot.slane %v5153_v41, 4  ;;  %v5160_v58 = vsel %vm4925_vm10, %v15469_v3, -inf  ;;  %v5115_v61 = vmax.f32 %v5113_v38, %v5114_v5  ;;  %v5128_v19 = vrot.slane %v5127_v60, 2 }
 0x307   :  { %v5122_v2 = vmax.f32 %v5120_v0, %v5121_v1  ;;  %v5148_v31 = vmax.f32 %v5146_v29, %v5147_v39  ;;  %v5135_v10 = vrot.slane %v5134_v15, 2  ;;  %v5142_v53 = vrot.slane %v5141_v43, 2  ;;  %v18614_v29 = vld [vmem:[#allocation39_spill] sm:$0xff]  ;;  %v18615_v1 = vld [vmem:[#allocation41_spill] sm:$0xff] }
 0x308   :  { %v5155_v13 = vmax.f32 %v5153_v41, %v5154_v56  ;;  %v5161_v26 = vrot.slane %v5160_v58, 4  ;;  %v5116_v44 = vrot.slane %v5115_v61, 1  ;;  %v5129_v7 = vmax.f32 %v5127_v60, %v5128_v19  ;;  %v8523_v39 = vld [vmem:[%s18337_s12 + $0x18] sm:$0xff]  ;;  %v18617_v56 = vld [vmem:[#allocation43_spill] sm:$0xff]  ;;  %v8524_v19 = vld [vmem:[%s18337_s12 + $0x20] sm:$0xff] }
 0x309   :  { %v5123_v22 = vrot.slane %v5122_v2, 1  ;;  %v5149_v34 = vrot.slane %v5148_v31, 2  ;;  %v5136_v17 = vmax.f32 %v5134_v15, %v5135_v10  ;;  %v5143_v36 = vmax.f32 %v5141_v43, %v5142_v53  ;;  %v18616_v15 = vld [vmem:[#allocation42_spill] sm:$0xff] }
 0x30a   :  { %v5156_v33 = vrot.slane %v5155_v13, 2  ;;  %v5162_v6 = vmax.f32 %v5160_v58, %v5161_v26  ;;  %v5117_v55 = vmax.f32 %v5115_v61, %v5116_v44  ;;  %v5130_v30 = vrot.slane %v5129_v7, 1  ;;  %v18618_v58 = vld [vmem:[#allocation7_spill] sm:$0xff] }
 0x30b   :  { %v5124_v18 = vmax.f32 %v5122_v2, %v5123_v22  ;;  %v5150_v20 = vmax.f32 %v5148_v31, %v5149_v34  ;;  %v5137_v51 = vrot.slane %v5136_v17, 1  ;;  %v5144_v23 = vrot.slane %v5143_v36, 1  ;;  %v8525_v34 = vld [vmem:[%s18337_s12 + $0x28] sm:$0xff] }
 0x30c   :  { %v5157_v8 = vmax.f32 %v5155_v13, %v5156_v33  ;;  %v5163_v25 = vrot.slane %v5162_v6, 2  ;;  %v5131_v63 = vmax.f32 %v5129_v7, %v5130_v30  ;;  %v5167_v24 = vsub.f32 %v15438_v48, %v5117_v55  ;;  %v8526_v55 = vld [vmem:[%s18337_s12 + $0x30] sm:$0xff] }
 0x30d   :  { %v5151_v62 = vrot.slane %v5150_v20, 1  ;;  %v5168_v28 = vsub.f32 %v15440_v47, %v5124_v18  ;;  %v5138_v4 = vmax.f32 %v5136_v17, %v5137_v51  ;;  %v5145_v52 = vmax.f32 %v5143_v36, %v5144_v23  ;;  %v8521_v47 = vld [vmem:[%s18337_s12 + $0x8] sm:$0xff] }
 0x30e   :  { %v5158_v54 = vrot.slane %v5157_v8, 1  ;;  %v5164_v42 = vmax.f32 %v5162_v6, %v5163_v25  ;;  %v5169_v35 = vsub.f32 %v15443_v12, %v5131_v63  ;;  %v5175_v59 = vmul.f32 1.442695, %v5167_v24 }
 0x30f   :  { %v5152_v49 = vmax.f32 %v5150_v20, %v5151_v62  ;;  %v5177_v27 = vmul.f32 1.442695, %v5168_v28  ;;  %v5170_v9 = vsub.f32 %v15445_v16, %v5138_v4  ;;  %v5171_v46 = vsub.f32 %v15449_v40, %v5145_v52  ;;  %v8522_v16 = vld [vmem:[%s18337_s12 + $0x10] sm:$0xff]  ;;  %v8527_v52 = vld [vmem:[%s18337_s12 + $0x38] sm:$0xff] }
 0x310   :  { %v5159_v11 = vmax.f32 %v5157_v8, %v5158_v54  ;;  %v5165_v57 = vrot.slane %v5164_v42, 1  ;;  %12306 = vpow2.f32 %v5175_v59  ;;  %v5179_v48 = vmul.f32 1.442695, %v5169_v35  ;;  %v6215_v59 = vld [vmem:[%s18338_s10] sm:$0xff] }
 0x311   :  { %v5172_v38 = vsub.f32 %v15457_v14, %v5152_v49  ;;  %12308 = vpow2.f32 %v5177_v27  ;;  %v5181_v12 = vmul.f32 1.442695, %v5170_v9  ;;  %v18390_v37 = vmov 0.0   ;;  %11755 = vmatprep.mubr.msk.f32.mxu0 %vm94_vm0, %v6215_v59 }
 0x312   :  { %v5166_v0 = vmax.f32 %v5164_v42, %v5165_v57  ;;  %v5173_v50 = vsub.f32 %v15460_v32, %v5159_v11  ;;  %12051 = vmatprep.subr.mxu1 %v18390_v37  ;;  %12310 = vpow2.f32 %v5179_v48  ;;  %v5183_v40 = vmul.f32 1.442695, %v5171_v46  ;;  %v8528_v11 = vld [vmem:[%s18337_s12 + $0x40] sm:$0xff] }
 0x313   :  { %v5185_v14 = vmul.f32 1.442695, %v5172_v38  ;;  %12052 = vmatpush3.msra.mxu1 %v18390_v37  ;;  %v3223_v41 = vmul.f32 %v18614_v29, %v18613_v45  ;;  %12312 = vpow2.f32 %v5181_v12  ;;  %v3224_v60 = vmul.f32 %v18615_v1, %v18613_v45 }
 0x314   :  { %v5174_v5 = vsub.f32 %v15469_v3, %v5166_v0  ;;  %v5187_v32 = vmul.f32 1.442695, %v5173_v50  ;;  %12054 = vmatmul.mubr.msk.f32.vlgmr.msra.gmra.mxu1 %vm94_vm0, %v8521_v47  ;;  %12314 = vpow2.f32 %v5183_v40  ;;  %v3225_v43 = vmul.f32 %v18616_v15, %v18613_v45 }
 0x315   :  { %12056 = vmatprep.mubr.msk.f32.mxu1 %vm94_vm0, %v8522_v16  ;;  %v3226_v3 = vmul.f32 %v18617_v56, %v18613_v45  ;;  %v3227_v61 = vmul.f32 %v18618_v58, %v18614_v29  ;;  %12316 = vpow2.f32 %v5185_v14  ;;  %v3228_v31 = vmul.f32 %v18618_v58, %v18615_v1 }
 0x316   :  { %v5189_v2 = vmul.f32 1.442695, %v5174_v5  ;;  %v3229_v10 = vmul.f32 %v18618_v58, %v18616_v15  ;;  %12318 = vpow2.f32 %v5187_v32  ;;  %v3230_v53 = vmul.f32 %v18618_v58, %v18617_v56 }
 0x317   :  { %v3399_v13 = vsel %vm2953_vm1, %v3223_v41, 0.0  ;;  %v3406_v26 = vsel %vm2953_vm1, %v3224_v60, 0.0  ;;  %v3413_v7 = vsel %vm2953_vm1, %v3225_v43, 0.0  ;;  %v3420_v36 = vsel %vm2953_vm1, %v3226_v3, 0.0  ;;  %v8529_v60 = vld [vmem:[%s18337_s12 + $0x48] sm:$0xff] }
 0x318   :  { %12320 = vpow2.f32 %v5189_v2  ;;  %12057 = vmatmul.mubr.msk.f32.gmra.mxu1 %vm94_vm0, %v8523_v39  ;;  %v3400_v44 = vrot.slane %v3399_v13, 4  ;;  %v3407_v22 = vrot.slane %v3406_v26, 4  ;;  %v3414_v17 = vrot.slane %v3413_v7, 4 }
 0x319   :  { %12059 = vmatprep.mubr.msk.f32.mxu1 %vm94_vm0, %v8524_v19  ;;  %v3427_v33 = vsel %vm2953_vm1, %v3227_v61, 0.0  ;;  %v3434_v6 = vsel %vm2953_vm1, %v3228_v31, 0.0  ;;  %v3421_v20 = vrot.slane %v3420_v36, 4  ;;  %v3441_v25 = vsel %vm2953_vm1, %v3229_v10, 0.0  ;;  %v8530_v19 = vld [vmem:[%s18337_s12 + $0x50] sm:$0xff] }
 0x31a   :  { %v3401_v18 = vadd.f32 %v3400_v44, %v3399_v13  ;;  %v3408_v30 = vadd.f32 %v3407_v22, %v3406_v26  ;;  %v3428_v51 = vrot.slane %v3427_v33, 4  ;;  %v3415_v23 = vadd.f32 %v3414_v17, %v3413_v7 }
 0x31b   :  { %v3435_v8 = vrot.slane %v3434_v6, 4  ;;  %v3448_v63 = vsel %vm2953_vm1, %v3230_v53, 0.0  ;;  %v3422_v28 = vadd.f32 %v3421_v20, %v3420_v36  ;;  %v3442_v49 = vrot.slane %v3441_v25, 4 }
 0x31c   :  { %12060 = vmatmul.mubr.msk.f32.gmra.mxu1 %vm94_vm0, %v8525_v34  ;;  %v3402_v62 = vrot.slane %v3401_v18, 2  ;;  %v3409_v24 = vrot.slane %v3408_v30, 2  ;;  %v3429_v4 = vadd.f32 %v3428_v51, %v3427_v33  ;;  %v3416_v54 = vrot.slane %v3415_v23, 2 }
 0x31d   :  { %12062 = vmatprep.mubr.msk.f32.mxu1 %vm94_vm0, %v8526_v55  ;;  %v3436_v42 = vadd.f32 %v3435_v8, %v3434_v6  ;;  %v3449_v35 = vrot.slane %v3448_v63, 4  ;;  %v15541_v27 = vpop.eup %12306  ;;  %v3423_v46 = vrot.slane %v3422_v28, 2  ;;  %v3443_v50 = vadd.f32 %v3442_v49, %v3441_v25  ;;  %v12818_v49 = vld [vmem:[%s18337_s12] sm:$0xff] }
 0x31e   :  { %v3403_v57 = vadd.f32 %v3402_v62, %v3401_v18  ;;  %v3410_v9 = vadd.f32 %v3409_v24, %v3408_v30  ;;  %v3430_v38 = vrot.slane %v3429_v4, 2  ;;  %v15547_v48 = vpop.eup %12308  ;;  %v3417_v47 = vadd.f32 %v3416_v54, %v3415_v23  ;;  %v8531_v30 = vld [vmem:[%s18337_s12 + $0x58] sm:$0xff] }
 0x31f   :  { %v3437_v0 = vrot.slane %v3436_v42, 2  ;;  %v3450_v12 = vadd.f32 %v3449_v35, %v3448_v63  ;;  %v15549_v16 = vpop.eup %12310  ;;  %v3424_v41 = vadd.f32 %v3423_v46, %v3422_v28  ;;  %v3444_v3 = vrot.slane %v3443_v50, 2  ;;  %v18620_v35 = vld [vmem:[#allocation6_spill] sm:$0xff] }
 0x320   :  { %12063 = vmatmul.mubr.msk.f32.gmra.mxu1 %vm94_vm0, %v8527_v52  ;;  %v3404_v40 = vrot.slane %v3403_v57, 1  ;;  %v3411_v14 = vrot.slane %v3410_v9, 1  ;;  %v3431_v5 = vadd.f32 %v3430_v38, %v3429_v4  ;;  %v15552_v32 = vpop.eup %12312  ;;  %v3418_v39 = vrot.slane %v3417_v47, 1  ;;  %v18619_v4 = vld [vmem:[#allocation5_spill] sm:$0xff] }
 0x321   :  { %12065 = vmatprep.mubr.msk.f32.mxu1 %vm94_vm0, %v8528_v11  ;;  %v3438_v43 = vadd.f32 %v3437_v0, %v3436_v42  ;;  %v3451_v61 = vrot.slane %v3450_v12, 2  ;;  %v15558_v2 = vpop.eup %12314  ;;  %v3425_v53 = vrot.slane %v3424_v41, 1  ;;  %v3445_v7 = vadd.f32 %v3444_v3, %v3443_v50  ;;  %v18621_v11 = vld [vmem:[#allocation4_spill] sm:$0xff] }
 0x322   :  { %v3405_v31 = vadd.f32 %v3404_v40, %v3403_v57  ;;  %v3412_v10 = vadd.f32 %v3411_v14, %v3410_v9  ;;  %v3432_v13 = vrot.slane %v3431_v5, 1  ;;  %v15563_v26 = vpop.eup %12316  ;;  %v3419_v44 = vadd.f32 %v3418_v39, %v3417_v47 }
 0x323   :  { %v3439_v22 = vrot.slane %v3438_v43, 1  ;;  %v3452_v34 = vadd.f32 %v3451_v61, %v3450_v12  ;;  %v15565_v17 = vpop.eup %12318  ;;  %v3426_v36 = vadd.f32 %v3425_v53, %v3424_v41  ;;  %v3446_v51 = vrot.slane %v3445_v7, 1 }
 0x324   :  { %12066 = vmatmul.mubr.msk.f32.gmra.mxu1 %vm94_vm0, %v8529_v60  ;;  %v3433_v33 = vadd.f32 %v3432_v13, %v3431_v5  ;;  %v10682_v6 = vmul.f32 -1.442695, %v3405_v31  ;;  %v10683_v55 = vmul.f32 -1.442695, %v3412_v10  ;;  %v10684_v8 = vmul.f32 -1.442695, %v3419_v44 }
 0x325   :  { %v15568_v18 = vpop.eup %12320  ;;  %12068 = vmatprep.mubr.msk.f32.mxu1 %vm94_vm0, %v8530_v19  ;;  %v3440_v20 = vadd.f32 %v3439_v22, %v3438_v43  ;;  %v3453_v23 = vrot.slane %v3452_v34, 1  ;;  %v10685_v25 = vmul.f32 -1.442695, %v3426_v36  ;;  %v3447_v62 = vadd.f32 %v3446_v51, %v3445_v7 }
 0x326   :  { %12322 = vpow2.f32 %v10682_v6  ;;  %v10686_v63 = vmul.f32 -1.442695, %v3433_v33  ;;  %v15577_v52 = vcombine.high %v18619_v4, %v18619_v4  ;;  %v15585_v59 = vcombine.high %v18620_v35, %v18620_v35 }
 0x327   :  { %v3454_v24 = vadd.f32 %v3453_v23, %v3452_v34  ;;  %12324 = vpow2.f32 %v10683_v55  ;;  %v10687_v28 = vmul.f32 -1.442695, %v3440_v20  ;;  %v10688_v54 = vmul.f32 -1.442695, %v3447_v62 }
 0x328   :  { %12069 = vmatmul.mubr.msk.f32.gmra.mxu1 %vm94_vm0, %v8531_v30  ;;  %12326 = vpow2.f32 %v10684_v8  ;;  %v15589_v57 = vcombine.high %v18621_v11, %v18621_v11  ;;  %v3215_v9 = vmul.f32 %v18614_v29, %v18621_v11  ;;  %v3216_v46 = vmul.f32 %v18615_v1, %v18621_v11 }
 0x329   :  { %12328 = vpow2.f32 %v10685_v25  ;;  %v10689_v42 = vmul.f32 -1.442695, %v3454_v24  ;;  %12079 = vmatprep.mubr.msk.f32.mxu1 %vm94_vm0, %v12818_v49  ;;  %v3217_v38 = vmul.f32 %v18616_v15, %v18621_v11  ;;  %v3218_v47 = vmul.f32 %v18617_v56, %v18621_v11 }
 0x32a   :  { %12330 = vpow2.f32 %v10686_v63  ;;  %v3219_v0 = vmul.f32 %v15589_v57, %v18614_v29  ;;  %v3220_v50 = vmul.f32 %v15589_v57, %v18615_v1  ;;  %v3221_v12 = vmul.f32 %v15589_v57, %v18616_v15 }
 0x32b   :  { %12332 = vpow2.f32 %v10687_v28  ;;  %v3222_v40 = vmul.f32 %v15589_v57, %v18617_v56  ;;  %v3343_v14 = vsel %vm2953_vm1, %v3215_v9, 0.0  ;;  %v3350_v41 = vsel %vm2953_vm1, %v3216_v46, 0.0 }
 0x32c   :  { %12334 = vpow2.f32 %v10688_v54  ;;  %v3344_v5 = vrot.slane %v3343_v14, 4  ;;  %v3351_v60 = vrot.slane %v3350_v41, 4  ;;  %v3357_v39 = vsel %vm2953_vm1, %v3217_v38, 0.0 }
 0x32d   :  { %12336 = vpow2.f32 %v10689_v42  ;;  %v3364_v43 = vsel %vm2953_vm1, %v3218_v47, 0.0  ;;  %v3358_v3 = vrot.slane %v3357_v39, 4  ;;  %v3371_v19 = vsel %vm2953_vm1, %v3219_v0, 0.0 }
 0x32e   :  { %v3365_v61 = vrot.slane %v3364_v43, 4  ;;  %v3378_v31 = vsel %vm2953_vm1, %v3220_v50, 0.0  ;;  %v3345_v10 = vadd.f32 %v3344_v5, %v3343_v14  ;;  %v3352_v53 = vadd.f32 %v3351_v60, %v3350_v41 }
 0x32f   :  { %v3372_v13 = vrot.slane %v3371_v19, 4  ;;  %v3379_v44 = vrot.slane %v3378_v31, 4  ;;  %v3359_v22 = vadd.f32 %v3358_v3, %v3357_v39  ;;  %v3385_v34 = vsel %vm2953_vm1, %v3221_v12, 0.0 }
 0x330   :  { %v3366_v7 = vadd.f32 %v3365_v61, %v3364_v43  ;;  %v3392_v36 = vsel %vm2953_vm1, %v3222_v40, 0.0  ;;  %v3346_v33 = vrot.slane %v3345_v10, 2  ;;  %v3353_v6 = vrot.slane %v3352_v53, 2 }
 0x331   :  { %v3373_v55 = vadd.f32 %v3372_v13, %v3371_v19  ;;  %v3380_v30 = vadd.f32 %v3379_v44, %v3378_v31  ;;  %v3360_v51 = vrot.slane %v3359_v22, 2  ;;  %v3386_v8 = vrot.slane %v3385_v34, 4 }
 0x332   :  { %v3367_v23 = vrot.slane %v3366_v7, 2  ;;  %v3393_v25 = vrot.slane %v3392_v36, 4  ;;  %v3347_v24 = vadd.f32 %v3346_v33, %v3345_v10  ;;  %v3354_v28 = vadd.f32 %v3353_v6, %v3352_v53 }
 0x333   :  { %v12323_v20 = vpop.eup %12322  ;;  %v3374_v54 = vrot.slane %v3373_v55, 2  ;;  %v3361_v9 = vadd.f32 %v3360_v51, %v3359_v22  ;;  %v3381_v38 = vrot.slane %v3380_v30, 2  ;;  %vm6343_vm9 = vcmask 1041409  }
 0x334   :  { %v12325_v63 = vpop.eup %12324  ;;  %v3575_v62 = vadd.f32 1.0, %v12323_v20  ;;  %v3368_v46 = vadd.f32 %v3367_v23, %v3366_v7  ;;  %v3348_v50 = vrot.slane %v3347_v24, 1  ;;  %v3355_v12 = vrot.slane %v3354_v28, 1 }
 0x335   :  { %v12327_v42 = vpop.eup %12326  ;;  %v3576_v49 = vadd.f32 1.0, %v12325_v63  ;;  %v3362_v41 = vrot.slane %v3361_v9, 1  ;;  %v3375_v44 = vadd.f32 %v3374_v54, %v3373_v55  ;;  %v3382_v22 = vadd.f32 %v3381_v38, %v3380_v30 }
 0x336   :  { %v12329_v47 = vpop.eup %12328  ;;  %v3577_v0 = vadd.f32 1.0, %v12327_v42  ;;  %12338 = vrcp.f32 %v3575_v62  ;;  %v3369_v5 = vrot.slane %v3368_v46, 1  ;;  %v3349_v43 = vadd.f32 %v3348_v50, %v3347_v24 }
 0x337   :  { %v12331_v40 = vpop.eup %12330  ;;  %v3578_v14 = vadd.f32 1.0, %v12329_v47  ;;  %12340 = vrcp.f32 %v3576_v49  ;;  %v3356_v3 = vadd.f32 %v3355_v12, %v3354_v28  ;;  %v3363_v31 = vadd.f32 %v3362_v41, %v3361_v9 }
 0x338   :  { %v12333_v60 = vpop.eup %12332  ;;  %v3579_v39 = vadd.f32 1.0, %v12331_v40  ;;  %12342 = vrcp.f32 %v3577_v0  ;;  %v3370_v10 = vadd.f32 %v3369_v5, %v3368_v46  ;;  %vm6345_vm11 = vcmask 1042434  }
 0x339   :  { %v12335_v61 = vpop.eup %12334  ;;  %v3580_v19 = vadd.f32 1.0, %v12333_v60  ;;  %12344 = vrcp.f32 %v3578_v14  ;;  %v3387_v33 = vadd.f32 %v3386_v8, %v3385_v34  ;;  %v3394_v6 = vadd.f32 %v3393_v25, %v3392_v36 }
 0x33a   :  { %v12337_v53 = vpop.eup %12336  ;;  %v3581_v13 = vadd.f32 1.0, %v12335_v61  ;;  %12346 = vrcp.f32 %v3579_v39  ;;  %vm6347_vm12 = vcmask 1043459   ;;  %v3376_v20 = vrot.slane %v3375_v44, 1 }
 0x33b   :  { %v3582_v7 = vadd.f32 1.0, %v12337_v53  ;;  %12348 = vrcp.f32 %v3580_v19  ;;  %v3383_v51 = vrot.slane %v3382_v22, 1  ;;  %v10674_v23 = vmul.f32 -1.442695, %v3349_v43 }
 0x33c   :  { %12350 = vrcp.f32 %v3581_v13  ;;  %vm6349_vm13 = vcmask 1044484   ;;  %v3388_v63 = vrot.slane %v3387_v33, 2  ;;  %v3395_v62 = vrot.slane %v3394_v6, 2 }
 0x33d   :  { %12352 = vrcp.f32 %v3582_v7  ;;  %v10675_v24 = vmul.f32 -1.442695, %v3356_v3  ;;  %vm6351_vm14 = vcmask 1045509   ;;  %v3377_v28 = vadd.f32 %v3376_v20, %v3375_v44 }
 0x33e   :  { %v3384_v42 = vadd.f32 %v3383_v51, %v3382_v22  ;;  %12354 = vpow2.f32 %v10674_v23  ;;  %v10676_v55 = vmul.f32 -1.442695, %v3363_v31  ;;  %vm6353_vm15 = vcmask 1046534  }
 0x33f   :  { %v3389_v30 = vadd.f32 %v3388_v63, %v3387_v33  ;;  %v3396_v54 = vadd.f32 %v3395_v62, %v3394_v6  ;;  %12356 = vpow2.f32 %v10675_v24  ;;  %v10677_v34 = vmul.f32 -1.442695, %v3370_v10 }
 0x340   :  { %vm6355_vm2 = vcmask 1047559   ;;  %12358 = vpow2.f32 %v10676_v55  ;;  %v10678_v36 = vmul.f32 -1.442695, %v3377_v28  ;;  %v10679_v8 = vmul.f32 -1.442695, %v3384_v42 }
 0x341   :  { %v3207_v25 = vmul.f32 %v18614_v29, %v18619_v4  ;;  %v3390_v49 = vrot.slane %v3389_v30, 1  ;;  %v3397_v9 = vrot.slane %v3396_v54, 1  ;;  %12360 = vpow2.f32 %v10677_v34 }
 0x342   :  { %v3208_v46 = vmul.f32 %v18615_v1, %v18619_v4  ;;  %12362 = vpow2.f32 %v10678_v36  ;;  %v3209_v38 = vmul.f32 %v18616_v15, %v18619_v4  ;;  %v3210_v47 = vmul.f32 %v18617_v56, %v18619_v4 }
 0x343   :  { %v3211_v0 = vmul.f32 %v15577_v52, %v18614_v29  ;;  %v12339_v50 = vpop.eup %12338  ;;  %v3391_v12 = vadd.f32 %v3390_v49, %v3389_v30  ;;  %v3398_v40 = vadd.f32 %v3397_v9, %v3396_v54  ;;  %12364 = vpow2.f32 %v10679_v8 }
 0x344   :  { %v3212_v14 = vmul.f32 %v15577_v52, %v18615_v1  ;;  %v12341_v41 = vpop.eup %12340  ;;  %v15629_v5 = vmul.f32 %v15577_v52, %v18616_v15  ;;  %v15633_v60 = vmul.f32 %v15577_v52, %v18617_v56  ;;  %v3287_v39 = vsel %vm2953_vm1, %v3207_v25, 0.0 }
 0x345   :  { %v3294_v43 = vsel %vm2953_vm1, %v3208_v46, 0.0  ;;  %v12343_v3 = vpop.eup %12342  ;;  %v6371_v61 = vsel %vm6343_vm9, %v12341_v41, %v12339_v50  ;;  %v10680_v19 = vmul.f32 -1.442695, %v3391_v12  ;;  %v10681_v31 = vmul.f32 -1.442695, %v3398_v40 }
 0x346   :  { %v3288_v10 = vrot.slane %v3287_v39, 4  ;;  %v12345_v53 = vpop.eup %12344  ;;  %v6372_v13 = vsel %vm6345_vm11, %v12343_v3, %v6371_v61  ;;  %v3295_v44 = vrot.slane %v3294_v43, 4  ;;  %v3301_v22 = vsel %vm2953_vm1, %v3209_v38, 0.0 }
 0x347   :  { %v3308_v7 = vsel %vm2953_vm1, %v3210_v47, 0.0  ;;  %v12347_v33 = vpop.eup %12346  ;;  %v6373_v6 = vsel %vm6347_vm12, %v12345_v53, %v6372_v13  ;;  %12366 = vpow2.f32 %v10680_v19  ;;  %v3302_v51 = vrot.slane %v3301_v22, 4 }
 0x348   :  { %v3289_v20 = vadd.f32 %v3288_v10, %v3287_v39  ;;  %v12349_v23 = vpop.eup %12348  ;;  %v6374_v63 = vsel %vm6349_vm13, %v12347_v33, %v6373_v6  ;;  %12368 = vpow2.f32 %v10681_v31  ;;  %v3296_v62 = vadd.f32 %v3295_v44, %v3294_v43 }
 0x349   :  { %v3309_v24 = vrot.slane %v3308_v7, 4  ;;  %v12351_v28 = vpop.eup %12350  ;;  %v6375_v42 = vsel %vm6351_vm14, %v12349_v23, %v6374_v63  ;;  %v3303_v30 = vadd.f32 %v3302_v51, %v3301_v22  ;;  %v3315_v54 = vsel %vm2953_vm1, %v3211_v0, 0.0 }
 0x34a   :  { %v3290_v55 = vrot.slane %v3289_v20, 2  ;;  %v12353_v34 = vpop.eup %12352  ;;  %v6376_v36 = vsel %vm6353_vm15, %v12351_v28, %v6375_v42  ;;  %v3297_v8 = vrot.slane %v3296_v62, 2  ;;  %v3316_v49 = vrot.slane %v3315_v54, 4 }
 0x34b   :  { %v3310_v25 = vadd.f32 %v3309_v24, %v3308_v7  ;;  %v12355_v9 = vpop.eup %12354  ;;  %v6377_v46 = vsel %vm6355_vm2, %v12353_v34, %v6376_v36  ;;  %v3304_v47 = vrot.slane %v3303_v30, 2  ;;  %v3322_v50 = vsel %vm2953_vm1, %v3212_v14, 0.0 }
 0x34c   :  { %v3291_v38 = vadd.f32 %v3290_v55, %v3289_v20  ;;  %v12357_v12 = vpop.eup %12356  ;;  %11747 = vmatprep.subr.mxu0 %v6377_v46  ;;  %v3567_v40 = vadd.f32 1.0, %v12355_v9  ;;  %v3298_v41 = vadd.f32 %v3297_v8, %v3296_v62  ;;  %v3317_v43 = vadd.f32 %v3316_v49, %v3315_v54 }
 0x34d   :  { %v3311_v39 = vrot.slane %v3310_v25, 2  ;;  %v12359_v0 = vpop.eup %12358  ;;  %11748 = vmatpush3.msra.mxu0 %v6377_v46  ;;  %v3568_v3 = vadd.f32 1.0, %v12357_v12  ;;  %v3305_v19 = vadd.f32 %v3304_v47, %v3303_v30  ;;  %v3323_v31 = vrot.slane %v3322_v50, 4 }
 0x34e   :  { %v3292_v61 = vrot.slane %v3291_v38, 1  ;;  %v12361_v10 = vpop.eup %12360  ;;  %v3569_v53 = vadd.f32 1.0, %v12359_v0  ;;  %12370 = vrcp.f32 %v3567_v40  ;;  %v3299_v13 = vrot.slane %v3298_v41, 1 }
 0x34f   :  { %v3312_v44 = vadd.f32 %v3311_v39, %v3310_v25  ;;  %v12363_v22 = vpop.eup %12362  ;;  %v3570_v7 = vadd.f32 1.0, %v12361_v10  ;;  %12372 = vrcp.f32 %v3568_v3  ;;  %v3306_v33 = vrot.slane %v3305_v19, 1 }
 0x350   :  { %v3293_v14 = vadd.f32 %v3292_v61, %v3291_v38  ;;  %v12365_v6 = vpop.eup %12364  ;;  %v3571_v20 = vadd.f32 1.0, %v12363_v22  ;;  %12374 = vrcp.f32 %v3569_v53  ;;  %v3300_v51 = vadd.f32 %v3299_v13, %v3298_v41 }
 0x351   :  { %v3313_v23 = vrot.slane %v3312_v44, 1  ;;  %v3572_v63 = vadd.f32 1.0, %v12365_v6  ;;  %12376 = vrcp.f32 %v3570_v7  ;;  %v3307_v62 = vadd.f32 %v3306_v33, %v3305_v19 }
 0x352   :  { %v3318_v24 = vrot.slane %v3317_v43, 2  ;;  %12378 = vrcp.f32 %v3571_v20  ;;  %v3324_v42 = vadd.f32 %v3323_v31, %v3322_v50  ;;  %v3329_v55 = vsel %vm2953_vm1, %v15629_v5, 0.0 }
 0x353   :  { %v3314_v28 = vadd.f32 %v3313_v23, %v3312_v44  ;;  %12380 = vrcp.f32 %v3572_v63  ;;  %v3330_v54 = vrot.slane %v3329_v55, 4  ;;  %v3336_v34 = vsel %vm2953_vm1, %v15633_v60, 0.0 }
 0x354   :  { %v3319_v30 = vadd.f32 %v3318_v24, %v3317_v43  ;;  %v12367_v36 = vpop.eup %12366  ;;  %v3325_v8 = vrot.slane %v3324_v42, 2  ;;  %v3337_v25 = vrot.slane %v3336_v34, 4  ;;  %v10666_v49 = vmul.f32 -1.442695, %v3293_v14 }
 0x355   :  { %v10667_v9 = vmul.f32 -1.442695, %v3300_v51  ;;  %v12369_v46 = vpop.eup %12368  ;;  %v3573_v38 = vadd.f32 1.0, %v12367_v36  ;;  %v3331_v12 = vadd.f32 %v3330_v54, %v3329_v55  ;;  %v10668_v40 = vmul.f32 -1.442695, %v3307_v62 }
 0x356   :  { %v3320_v47 = vrot.slane %v3319_v30, 1  ;;  %v3574_v50 = vadd.f32 1.0, %v12369_v46  ;;  %v3326_v41 = vadd.f32 %v3325_v8, %v3324_v42  ;;  %v3338_v39 = vadd.f32 %v3337_v25, %v3336_v34 }
 0x357   :  { %12382 = vpow2.f32 %v10666_v49  ;;  %v3332_v43 = vrot.slane %v3331_v12, 2  ;;  %v10669_v0 = vmul.f32 -1.442695, %v3314_v28  ;;  %v3199_v61 = vmul.f32 %v18614_v29, %v18620_v35 }
 0x358   :  { %12384 = vrcp.f32 %v3573_v38  ;;  %v3321_v5 = vadd.f32 %v3320_v47, %v3319_v30  ;;  %v3327_v60 = vrot.slane %v3326_v41, 1  ;;  %v3339_v3 = vrot.slane %v3338_v39, 2 }
 0x359   :  { %12386 = vrcp.f32 %v3574_v50  ;;  %v3333_v19 = vadd.f32 %v3332_v43, %v3331_v12  ;;  %v3200_v10 = vmul.f32 %v18615_v1, %v18620_v35  ;;  %v3201_v44 = vmul.f32 %v18616_v15, %v18620_v35 }
 0x35a   :  { %12388 = vpow2.f32 %v10667_v9  ;;  %v10670_v31 = vmul.f32 -1.442695, %v3321_v5  ;;  %v3328_v53 = vadd.f32 %v3327_v60, %v3326_v41  ;;  %v3340_v13 = vadd.f32 %v3339_v3, %v3338_v39 }
 0x35b   :  { %12390 = vpow2.f32 %v10668_v40  ;;  %v12371_v22 = vpop.eup %12370  ;;  %v3334_v7 = vrot.slane %v3333_v19, 1  ;;  %v3202_v14 = vmul.f32 %v18617_v56, %v18620_v35  ;;  %v3203_v33 = vmul.f32 %v15585_v59, %v18614_v29 }
 0x35c   :  { %12392 = vpow2.f32 %v10669_v0  ;;  %v12373_v6 = vpop.eup %12372  ;;  %v3341_v20 = vrot.slane %v3340_v13, 1  ;;  %v10671_v51 = vmul.f32 -1.442695, %v3328_v53  ;;  %v3204_v23 = vmul.f32 %v15585_v59, %v18615_v1 }
 0x35d   :  { %12394 = vpow2.f32 %v10670_v31  ;;  %v12375_v63 = vpop.eup %12374  ;;  %v6364_v62 = vsel %vm6343_vm9, %v12373_v6, %v12371_v22  ;;  %v3335_v24 = vadd.f32 %v3334_v7, %v3333_v19  ;;  %v3205_v28 = vmul.f32 %v15585_v59, %v18616_v15 }
 0x35e   :  { %v15669_v42 = vmul.f32 %v15585_v59, %v18617_v56  ;;  %v12377_v55 = vpop.eup %12376  ;;  %v6365_v29 = vsel %vm6345_vm11, %v12375_v63, %v6364_v62  ;;  %v3342_v30 = vadd.f32 %v3341_v20, %v3340_v13  ;;  %12396 = vpow2.f32 %v10671_v51 }
 0x35f   :  { %v3231_v54 = vsel %vm2953_vm1, %v3199_v61, 0.0  ;;  %v12379_v34 = vpop.eup %12378  ;;  %v6366_v1 = vsel %vm6347_vm12, %v12377_v55, %v6365_v29  ;;  %v10672_v36 = vmul.f32 -1.442695, %v3335_v24  ;;  %v3238_v25 = vsel %vm2953_vm1, %v3200_v10, 0.0 }
 0x360   :  { %v3232_v8 = vrot.slane %v3231_v54, 4  ;;  %v12381_v49 = vpop.eup %12380  ;;  %v6367_v15 = vsel %vm6349_vm13, %v12379_v34, %v6366_v1  ;;  %v10673_v9 = vmul.f32 -1.442695, %v3342_v30  ;;  %v3239_v56 = vrot.slane %v3238_v25, 4 }
 0x361   :  { %v3245_v46 = vsel %vm2953_vm1, %v3201_v44, 0.0  ;;  %v6368_v38 = vsel %vm6351_vm14, %v12381_v49, %v6367_v15  ;;  %12398 = vpow2.f32 %v10672_v36  ;;  %v3252_v50 = vsel %vm2953_vm1, %v3202_v14, 0.0 }
 0x362   :  { %v3233_v47 = vadd.f32 %v3232_v8, %v3231_v54  ;;  %v3246_v12 = vrot.slane %v3245_v46, 4  ;;  %12400 = vpow2.f32 %v10673_v9  ;;  %v3240_v40 = vadd.f32 %v3239_v56, %v3238_v25 }
 0x363   :  { %v3259_v41 = vsel %vm2953_vm1, %v3203_v33, 0.0  ;;  %v3253_v0 = vrot.slane %v3252_v50, 4  ;;  %v3266_v31 = vsel %vm2953_vm1, %v3204_v23, 0.0  ;;  %v3273_v10 = vsel %vm2953_vm1, %v3205_v28, 0.0 }
 0x364   :  { %v12383_v39 = vpop.eup %12382  ;;  %v3234_v5 = vrot.slane %v3233_v47, 2  ;;  %v3247_v43 = vadd.f32 %v3246_v12, %v3245_v46  ;;  %v3260_v60 = vrot.slane %v3259_v41, 4  ;;  %v3241_v19 = vrot.slane %v3240_v40, 2 }
 0x365   :  { %v12385_v3 = vpop.eup %12384  ;;  %v3559_v61 = vadd.f32 1.0, %v12383_v39  ;;  %v3254_v7 = vadd.f32 %v3253_v0, %v3252_v50  ;;  %v3267_v54 = vrot.slane %v3266_v31, 4  ;;  %v3280_v39 = vsel %vm2953_vm1, %v15669_v42, 0.0 }
 0x366   :  { %v12387_v53 = vpop.eup %12386  ;;  %v6369_v13 = vsel %vm6353_vm15, %v12385_v3, %v6368_v38  ;;  %v3235_v44 = vadd.f32 %v3234_v5, %v3233_v47  ;;  %v3248_v22 = vrot.slane %v3247_v43, 2  ;;  %v3242_v6 = vadd.f32 %v3241_v19, %v3240_v40 }
 0x367   :  { %v12389_v14 = vpop.eup %12388  ;;  %v6370_v33 = vsel %vm6355_vm2, %v12387_v53, %v6369_v13  ;;  %12402 = vrcp.f32 %v3559_v61  ;;  %v3261_v20 = vadd.f32 %v3260_v60, %v3259_v41  ;;  %v3255_v23 = vrot.slane %v3254_v7, 2 }
 0x368   :  { %v12391_v51 = vpop.eup %12390  ;;  %11749 = vmatprep.subr.mxu0 %v6370_v33  ;;  %v3560_v63 = vadd.f32 1.0, %v12389_v14  ;;  %v3236_v62 = vrot.slane %v3235_v44, 1  ;;  %v3249_v24 = vadd.f32 %v3248_v22, %v3247_v43  ;;  %v3243_v29 = vrot.slane %v3242_v6, 1 }
 0x369   :  { %v12393_v55 = vpop.eup %12392  ;;  %11750 = vmatpush3.msra.mxu0 %v6370_v33  ;;  %v3561_v28 = vadd.f32 1.0, %v12391_v51  ;;  %v3262_v30 = vrot.slane %v3261_v20, 2  ;;  %v3256_v15 = vadd.f32 %v3255_v23, %v3254_v7  ;;  %v3268_v38 = vadd.f32 %v3267_v54, %v3266_v31 }
 0x36a   :  { %v12395_v34 = vpop.eup %12394  ;;  %v3562_v1 = vadd.f32 1.0, %v12393_v55  ;;  %12404 = vrcp.f32 %v3560_v63  ;;  %v3237_v36 = vadd.f32 %v3236_v62, %v3235_v44  ;;  %v3250_v8 = vrot.slane %v3249_v24, 1 }
 0x36b   :  { %v3563_v25 = vadd.f32 1.0, %v12395_v34  ;;  %12406 = vrcp.f32 %v3561_v28  ;;  %v3244_v49 = vadd.f32 %v3243_v29, %v3242_v6  ;;  %v12397_v9 = vpop.eup %12396  ;;  %v3263_v46 = vadd.f32 %v3262_v30, %v3261_v20 }
 0x36c   :  { %12408 = vrcp.f32 %v3562_v1  ;;  %v3251_v56 = vadd.f32 %v3250_v8, %v3249_v24  ;;  %v3564_v47 = vadd.f32 1.0, %v12397_v9  ;;  %v3257_v12 = vrot.slane %v3256_v15, 1 }
 0x36d   :  { %12410 = vrcp.f32 %v3563_v25  ;;  %v3274_v40 = vrot.slane %v3273_v10, 4  ;;  %v3264_v50 = vrot.slane %v3263_v46, 1  ;;  %v3269_v41 = vrot.slane %v3268_v38, 2 }
 0x36e   :  { %v10658_v5 = vmul.f32 -1.442695, %v3237_v36  ;;  %v12399_v43 = vpop.eup %12398  ;;  %12412 = vrcp.f32 %v3564_v47  ;;  %v3258_v0 = vadd.f32 %v3257_v12, %v3256_v15  ;;  %v3281_v3 = vrot.slane %v3280_v39, 4 }
 0x36f   :  { %v3275_v60 = vadd.f32 %v3274_v40, %v3273_v10  ;;  %v12401_v61 = vpop.eup %12400  ;;  %v3565_v19 = vadd.f32 1.0, %v12399_v43  ;;  %v3265_v53 = vadd.f32 %v3264_v50, %v3263_v46  ;;  %v3270_v13 = vadd.f32 %v3269_v41, %v3268_v38 }
 0x370   :  { %12414 = vpow2.f32 %v10658_v5  ;;  %v3566_v31 = vadd.f32 1.0, %v12401_v61  ;;  %v3282_v22 = vadd.f32 %v3281_v3, %v3280_v39  ;;  %v10659_v7 = vmul.f32 -1.442695, %v3244_v49 }
 0x371   :  { %v3276_v44 = vrot.slane %v3275_v60, 2  ;;  %12416 = vrcp.f32 %v3565_v19  ;;  %v3271_v14 = vrot.slane %v3270_v13, 1  ;;  %v10660_v33 = vmul.f32 -1.442695, %v3251_v56 }
 0x372   :  { %v10661_v6 = vmul.f32 -1.442695, %v3258_v0  ;;  %12418 = vrcp.f32 %v3566_v31  ;;  %v3283_v20 = vrot.slane %v3282_v22, 2  ;;  %v10662_v51 = vmul.f32 -1.442695, %v3265_v53 }
 0x373   :  { %v3277_v42 = vadd.f32 %v3276_v44, %v3275_v60  ;;  %v3272_v10 = vadd.f32 %v3271_v14, %v3270_v13  ;;  %12420 = vpow2.f32 %v10659_v7  ;;  %v5233_v62 = vsel %vm4925_vm10, %v15565_v17, 0.0 }
 0x374   :  { %v12403_v63 = vpop.eup %12402  ;;  %v5240_v24 = vsel %vm4925_vm10, %v15568_v18, 0.0  ;;  %v3284_v55 = vadd.f32 %v3283_v20, %v3282_v22  ;;  %12422 = vpow2.f32 %v10660_v33  ;;  %v5234_v28 = vrot.slane %v5233_v62, 4 }
 0x375   :  { %v3278_v23 = vrot.slane %v3277_v42, 1  ;;  %12424 = vpow2.f32 %v10661_v6  ;;  %v10663_v29 = vmul.f32 -1.442695, %v3272_v10  ;;  %v5241_v30 = vrot.slane %v5240_v24, 4 }
 0x376   :  { %v5219_v54 = vsel %vm4925_vm10, %v15558_v2, 0.0  ;;  %v3285_v36 = vrot.slane %v3284_v55, 1  ;;  %12426 = vpow2.f32 %v10662_v51  ;;  %v5235_v8 = vadd.f32 %v5234_v28, %v5233_v62 }
 0x377   :  { %v12405_v34 = vpop.eup %12404  ;;  %v3279_v1 = vadd.f32 %v3278_v23, %v3277_v42  ;;  %12428 = vpow2.f32 %v10663_v29  ;;  %v5242_v15 = vadd.f32 %v5241_v30, %v5240_v24  ;;  %v5220_v41 = vrot.slane %v5219_v54, 4 }
 0x378   :  { %v12407_v25 = vpop.eup %12406  ;;  %v6357_v49 = vsel %vm6343_vm9, %v12405_v34, %v12403_v63  ;;  %v3286_v46 = vadd.f32 %v3285_v36, %v3284_v55  ;;  %v5236_v47 = vrot.slane %v5235_v8, 2  ;;  %v5226_v39 = vsel %vm4925_vm10, %v15563_v26, 0.0 }
 0x379   :  { %v12409_v9 = vpop.eup %12408  ;;  %v6358_v56 = vsel %vm6345_vm11, %v12407_v25, %v6357_v49  ;;  %v10664_v38 = vmul.f32 -1.442695, %v3279_v1  ;;  %v5243_v50 = vrot.slane %v5242_v15, 2  ;;  %v5227_v61 = vrot.slane %v5226_v39, 4 }
 0x37a   :  { %v12411_v12 = vpop.eup %12410  ;;  %v6359_v40 = vsel %vm6347_vm12, %v12409_v9, %v6358_v56  ;;  %v10665_v43 = vmul.f32 -1.442695, %v3286_v46  ;;  %v5237_v0 = vadd.f32 %v5236_v47, %v5235_v8  ;;  %v5205_v19 = vsel %vm4925_vm10, %v15549_v16, 0.0 }
 0x37b   :  { %v6360_v5 = vsel %vm6349_vm13, %v12411_v12, %v6359_v40  ;;  %12430 = vpow2.f32 %v10664_v38  ;;  %v12413_v60 = vpop.eup %12412  ;;  %v5244_v3 = vadd.f32 %v5243_v50, %v5242_v15  ;;  %v5206_v44 = vrot.slane %v5205_v19, 4 }
 0x37c   :  { %v6361_v13 = vsel %vm6351_vm14, %v12413_v60, %v6360_v5  ;;  %12432 = vpow2.f32 %v10665_v43  ;;  %v5238_v31 = vrot.slane %v5237_v0, 1  ;;  %v5221_v6 = vadd.f32 %v5220_v41, %v5219_v54 }
 0x37d   :  { %v12415_v53 = vpop.eup %12414  ;;  %v5245_v7 = vrot.slane %v5244_v3, 1  ;;  %v5228_v42 = vadd.f32 %v5227_v61, %v5226_v39  ;;  %v5212_v20 = vsel %vm4925_vm10, %v15552_v32, 0.0  ;;  %v5191_v62 = vsel %vm4925_vm10, %v15541_v27, 0.0 }
 0x37e   :  { %v3551_v22 = vadd.f32 1.0, %v12415_v53  ;;  %v12417_v14 = vpop.eup %12416  ;;  %v5239_v33 = vadd.f32 %v5238_v31, %v5237_v0  ;;  %v5207_v55 = vadd.f32 %v5206_v44, %v5205_v19  ;;  %v5213_v30 = vrot.slane %v5212_v20, 4 }
 0x37f   :  { %v12419_v51 = vpop.eup %12418  ;;  %v6362_v63 = vsel %vm6353_vm15, %v12417_v14, %v6361_v13  ;;  %v5246_v10 = vadd.f32 %v5245_v7, %v5244_v3  ;;  %v5222_v1 = vrot.slane %v5221_v6, 2  ;;  %v5192_v36 = vrot.slane %v5191_v62, 4 }
 0x380   :  { %12434 = vrcp.f32 %v3551_v22  ;;  %v12421_v24 = vpop.eup %12420  ;;  %v6363_v23 = vsel %vm6355_vm2, %v12419_v51, %v6362_v63  ;;  %v5229_v49 = vrot.slane %v5228_v42, 2  ;;  %v5198_v15 = vsel %vm4925_vm10, %v15547_v48, 0.0 }
 0x381   :  { %12436 = vrcp.f32 %v5239_v33  ;;  %v12423_v28 = vpop.eup %12422  ;;  %11751 = vmatprep.subr.mxu0 %v6363_v23  ;;  %v3552_v29 = vadd.f32 1.0, %v12421_v24  ;;  %v5208_v46 = vrot.slane %v5207_v55, 2  ;;  %v5214_v38 = vadd.f32 %v5213_v30, %v5212_v20  ;;  %v18622_v24 = vld [vmem:[#allocation2_spill] sm:$0xff] }
 0x382   :  { %12438 = vrcp.f32 %v5246_v10  ;;  %v12425_v54 = vpop.eup %12424  ;;  %11752 = vmatpush3.msra.mxu0 %v6363_v23  ;;  %v3553_v34 = vadd.f32 1.0, %v12423_v28  ;;  %v5193_v12 = vadd.f32 %v5192_v36, %v5191_v62  ;;  %v5199_v40 = vrot.slane %v5198_v15, 4 }
 0x383   :  { %v12427_v8 = vpop.eup %12426  ;;  %v3554_v25 = vadd.f32 1.0, %v12425_v54  ;;  %12440 = vrcp.f32 %v3552_v29  ;;  %v5223_v41 = vadd.f32 %v5222_v1, %v5221_v6  ;;  %v5230_v39 = vadd.f32 %v5229_v49, %v5228_v42 }
 0x384   :  { %v12429_v9 = vpop.eup %12428  ;;  %v3555_v56 = vadd.f32 1.0, %v12427_v8  ;;  %12442 = vrcp.f32 %v3553_v34  ;;  %v5209_v43 = vadd.f32 %v5208_v46, %v5207_v55  ;;  %v5215_v0 = vrot.slane %v5214_v38, 2 }
 0x385   :  { %v3556_v47 = vadd.f32 1.0, %v12429_v9  ;;  %12444 = vrcp.f32 %v3554_v25  ;;  %v5194_v3 = vrot.slane %v5193_v12, 2  ;;  %v5200_v19 = vadd.f32 %v5199_v40, %v5198_v15 }
 0x386   :  { %12446 = vrcp.f32 %v3555_v56  ;;  %v5224_v53 = vrot.slane %v5223_v41, 1  ;;  %v5231_v13 = vrot.slane %v5230_v39, 1  ;;  %v5210_v44 = vrot.slane %v5209_v43, 1 }
 0x387   :  { %12448 = vrcp.f32 %v3556_v47  ;;  %v5216_v22 = vadd.f32 %v5215_v0, %v5214_v38  ;;  %v5195_v14 = vadd.f32 %v5194_v3, %v5193_v12  ;;  %v5201_v42 = vrot.slane %v5200_v19, 2 }
 0x388   :  { %v12431_v50 = vpop.eup %12430  ;;  %v5225_v51 = vadd.f32 %v5224_v53, %v5223_v41  ;;  %v5232_v63 = vadd.f32 %v5231_v13, %v5230_v39  ;;  %v5211_v55 = vadd.f32 %v5210_v44, %v5209_v43  ;;  %vm12846_vm10 = vmmov 0  }
 0x389   :  { %v3557_v5 = vadd.f32 1.0, %v12431_v50  ;;  %v12433_v60 = vpop.eup %12432  ;;  %v5217_v28 = vrot.slane %v5216_v22, 1  ;;  %v5196_v1 = vrot.slane %v5195_v14, 1  ;;  %v5202_v49 = vadd.f32 %v5201_v42, %v5200_v19 }
 0x38a   :  { %v3558_v61 = vadd.f32 1.0, %v12433_v60 }
 0x38b   :  { %12450 = vrcp.f32 %v3557_v5  ;;  %v5218_v43 = vadd.f32 %v5217_v28, %v5216_v22  ;;  %v5197_v13 = vadd.f32 %v5196_v1, %v5195_v14  ;;  %v6217_v28 = vld [vmem:[%s18338_s10 + $0x10] sm:$0xff] }
 0x38c   :  { %12452 = vrcp.f32 %v3558_v61 }
 0x38d   :  { %v12435_v31 = vpop.eup %12434  ;;  %12454 = vrcp.f32 %v5225_v51 }
 0x38e   :  { %v12437_v7 = vpop.eup %12436  ;;  %12456 = vrcp.f32 %v5232_v63 }
 0x38f   :  { %v12439_v33 = vpop.eup %12438  ;;  %v5261_v6 = vmul.f32 %v12437_v7, %v15565_v17  ;;  %v15714_v17 = vpop.f32.mrf.mxu1  ;;  %12458 = vrcp.f32 %v5211_v55 }
 0x390   :  { %v5262_v20 = vmul.f32 %v12439_v33, %v15568_v18  ;;  %v12441_v10 = vpop.eup %12440  ;;  %12460 = vrcp.f32 %v5218_v43 }
 0x391   :  { %v5565_v62 = vcombine.high %v5261_v6, %v5261_v6  ;;  %v5572_v23 = vrot.slane %v5261_v6, %v18622_v24  ;;  %v12443_v29 = vpop.eup %12442  ;;  %v6344_v30 = vsel %vm6343_vm9, %v12441_v10, %v12435_v31  ;;  %v15725_v0 = vpop.f32.mrf.mxu1  ;;  %v5203_v31 = vrot.slane %v5202_v49, 1  ;;  %v6216_v10 = vld [vmem:[%s18338_s10 + $0x8] sm:$0xff] }
 0x392   :  { %v5614_v54 = vcombine.high %v5262_v20, %v5262_v20  ;;  %v5621_v34 = vrot.slane %v5262_v20, %v18622_v24  ;;  %v12445_v36 = vpop.eup %12444  ;;  %v6346_v18 = vsel %vm6345_vm11, %v12443_v29, %v6344_v30  ;;  %12462 = vrcp.f32 %v5197_v13 }
 0x393   :  { %v5579_v8 = vrot.slane %v5565_v62, %v18622_v24  ;;  %v5580_v25 = vcombine.high %v5572_v23, %v5572_v23  ;;  %v12447_v15 = vpop.eup %12446  ;;  %v6348_v9 = vsel %vm6347_vm12, %v12445_v36, %v6346_v18  ;;  %v5588_v56 = vrot.slane %v5572_v23, %v18622_v24  ;;  %v15741_v63 = vpop.f32.mrf.mxu1 }
 0x394   :  { %v5628_v46 = vrot.slane %v5614_v54, %v18622_v24  ;;  %v5629_v38 = vcombine.high %v5621_v34, %v5621_v34  ;;  %v12449_v47 = vpop.eup %12448  ;;  %v6350_v12 = vsel %vm6349_vm13, %v12447_v15, %v6348_v9  ;;  %v5637_v5 = vrot.slane %v5621_v34, %v18622_v24 }
 0x395   :  { %v5581_v40 = vcombine.high %v5579_v8, %v5579_v8  ;;  %v5602_v50 = vrot.slane %v5580_v25, %v18622_v24  ;;  %v6352_v41 = vsel %vm6351_vm14, %v12449_v47, %v6350_v12  ;;  %v5595_v60 = vrot.slane %v5579_v8, %v18622_v24 }
 0x396   :  { %v5630_v39 = vcombine.high %v5628_v46, %v5628_v46  ;;  %v5651_v61 = vrot.slane %v5629_v38, %v18622_v24  ;;  %v5610_v53 = vcombine.high %v5588_v56, %v5588_v56  ;;  %v15734_v22 = vrot.slane %v5628_v46, %v18622_v24  ;;  %v6218_v46 = vld [vmem:[%s18338_s10 + $0x18] sm:$0xff] }
 0x397   :  { %v15729_v3 = vrot.slane %v5581_v40, %v18622_v24  ;;  %v5612_v7 = vcombine.high %v5602_v50, %v5602_v50  ;;  %v5659_v42 = vcombine.high %v5637_v5, %v5637_v5  ;;  %v5858_v20 = vrot.slane %v5588_v56, %v12991_v21  ;;  %v15767_v56 = vpop.f32.mrf.mxu1  ;;  %v6219_v40 = vld [vmem:[%s18338_s10 + $0x20] sm:$0xff] }
 0x398   :  { %v12451_v19 = vpop.eup %12450  ;;  %v15737_v33 = vrot.slane %v5630_v39, %v18622_v24  ;;  %v5862_v51 = vrot.slane %v5602_v50, %v12991_v21  ;;  %v5611_v62 = vcombine.high %v5595_v60, %v5595_v60  ;;  %v5661_v55 = vcombine.high %v5651_v61, %v5651_v61 }
 0x399   :  { %v6354_v44 = vsel %vm6353_vm15, %v12451_v19, %v6352_v41  ;;  %v12453_v6 = vpop.eup %12452  ;;  %v5613_v23 = vcombine.high %v15729_v3, %v15729_v3  ;;  %v5866_v29 = vrot.slane %v5610_v53, %v12991_v21  ;;  %v5890_v30 = vrot.slane %v5637_v5, %v12991_v21 }
 0x39a   :  { %v6356_v14 = vsel %vm6355_vm2, %v12453_v6, %v6354_v44  ;;  %v5894_v54 = vrot.slane %v5651_v61, %v12991_v21  ;;  %v5660_v34 = vcombine.high %v15734_v22, %v15734_v22  ;;  %v5662_v1 = vcombine.high %v15737_v33, %v15737_v33  ;;  %v12455_v19 = vpop.eup %12454 }
 0x39b   :  { %11753 = vmatprep.subr.mxu0 %v6356_v14  ;;  %v5870_v36 = vrot.slane %v5612_v7, %v12991_v21  ;;  %v15760_v18 = vadd.f32 %v5203_v31, %v5202_v49  ;;  %v5874_v8 = vrot.slane %v5595_v60, %v12991_v21  ;;  %v5898_v25 = vrot.slane %v5659_v42, %v12991_v21  ;;  %v15796_v7 = vpop.f32.mrf.mxu1 }
 0x39c   :  { %11754 = vmatpush3.msra.mxu0 %v6356_v14  ;;  %v6031_v15 = vmul.f32 %v5858_v20, %v18620_v35  ;;  %v6032_v9 = vmul.f32 %v5862_v51, %v15585_v59  ;;  %v5878_v49 = vrot.slane %v15729_v3, %v12991_v21  ;;  %v5882_v38 = vrot.slane %v5611_v62, %v12991_v21  ;;  %v12457_v51 = vpop.eup %12456  ;;  %v6221_v14 = vld [vmem:[%s18338_s10 + $0x30] sm:$0xff] }
 0x39d   :  { %11756 = vmatmul.mubr.msk.f32.vlgmr.msra.gmra.mxu0 %vm94_vm0, %v6216_v10  ;;  %v5886_v47 = vrot.slane %v5613_v23, %v12991_v21  ;;  %v5902_v12 = vrot.slane %v5661_v55, %v12991_v21  ;;  %v5906_v50 = vrot.slane %v15734_v22, %v12991_v21  ;;  %v6033_v41 = vmul.f32 %v5866_v29, %v18619_v4  ;;  %v6220_v22 = vld [vmem:[%s18338_s10 + $0x28] sm:$0xff] }
 0x39e   :  { %11758 = vmatprep.mubr.msk.f32.mxu0 %vm94_vm0, %v6217_v28  ;;  %v6039_v39 = vmul.f32 %v5890_v30, %v18620_v35  ;;  %v6040_v5 = vmul.f32 %v5894_v54, %v15585_v59  ;;  %v5910_v43 = vrot.slane %v15737_v33, %v12991_v21  ;;  %v5914_v60 = vrot.slane %v5660_v34, %v12991_v21  ;;  %v12459_v28 = vpop.eup %12458 }
 0x39f   :  { %v5918_v3 = vrot.slane %v5662_v1, %v12991_v21  ;;  %v6034_v61 = vmul.f32 %v5870_v36, %v15577_v52  ;;  %v6035_v53 = vmul.f32 %v5874_v8, %v18621_v11  ;;  %v6041_v13 = vmul.f32 %v5898_v25, %v18619_v4 }
 0x3a0   :  { %v6137_v31 = vsel %vm2953_vm1, %v6031_v15, 0.0  ;;  %v6138_v44 = vsel %vm2953_vm1, %v6032_v9, 0.0  ;;  %v6036_v33 = vmul.f32 %v5878_v49, %v15589_v57  ;;  %v6037_v6 = vmul.f32 %v5882_v38, %v18613_v45  ;;  %v12461_v15 = vpop.eup %12460  ;;  %v15819_v9 = vpop.f32.mrf.mxu1 }
 0x3a1   :  { %11759 = vmatmul.mubr.msk.f32.gmra.mxu0 %vm94_vm0, %v6218_v46  ;;  %v6038_v42 = vmul.f32 %v5886_v47, %v18618_v58  ;;  %v6139_v20 = vadd.f32 %v6138_v44, %v6137_v31  ;;  %v6042_v10 = vmul.f32 %v5902_v12, %v15577_v52  ;;  %v6140_v62 = vsel %vm2953_vm1, %v6033_v41, 0.0  ;;  %v6222_v46 = vld [vmem:[%s18338_s10 + $0x38] sm:$0xff] }
 0x3a2   :  { %11761 = vmatprep.mubr.msk.f32.mxu0 %vm94_vm0, %v6219_v40  ;;  %v6152_v23 = vsel %vm2953_vm1, %v6039_v39, 0.0  ;;  %v6153_v55 = vsel %vm2953_vm1, %v6040_v5, 0.0  ;;  %v6043_v29 = vmul.f32 %v5906_v50, %v18621_v11  ;;  %v6044_v30 = vmul.f32 %v5910_v43, %v15589_v57  ;;  %v15833_v5 = vpop.eup %12462  ;;  %v15840_v31 = vpop.f32.mrf.mxu1 }
 0x3a3   :  { %v6141_v54 = vadd.f32 %v6140_v62, %v6139_v20  ;;  %v6154_v34 = vadd.f32 %v6153_v55, %v6152_v23  ;;  %v6045_v1 = vmul.f32 %v5914_v60, %v18613_v45  ;;  %v6142_v36 = vsel %vm2953_vm1, %v6034_v61, 0.0  ;;  %v6225_v55 = vld [vmem:[%s18338_s10 + $0x50] sm:$0xff] }
 0x3a4   :  { %v6155_v8 = vsel %vm2953_vm1, %v6041_v13, 0.0  ;;  %v5259_v25 = vmul.f32 %v12455_v19, %v15558_v2  ;;  %v6046_v49 = vmul.f32 %v5918_v3, %v18618_v58  ;;  %v5260_v12 = vmul.f32 %v12457_v51, %v15563_v26  ;;  %v6223_v2 = vld [vmem:[%s18338_s10 + $0x40] sm:$0xff] }
 0x3a5   :  { %11762 = vmatmul.mubr.msk.f32.gmra.mxu0 %vm94_vm0, %v6220_v22  ;;  %v6143_v38 = vadd.f32 %v6142_v36, %v6141_v54  ;;  %v6156_v47 = vadd.f32 %v6155_v8, %v6154_v34  ;;  %v6144_v40 = vsel %vm2953_vm1, %v6035_v53, 0.0  ;;  %v6157_v50 = vsel %vm2953_vm1, %v6042_v10, 0.0 }
 0x3a6   :  { %11764 = vmatprep.mubr.msk.f32.mxu0 %vm94_vm0, %v6221_v14  ;;  %v5467_v41 = vcombine.high %v5259_v25, %v5259_v25  ;;  %v5474_v39 = vrot.slane %v5259_v25, %v18622_v24  ;;  %v5516_v3 = vcombine.high %v5260_v12, %v5260_v12  ;;  %v5523_v61 = vrot.slane %v5260_v12, %v18622_v24  ;;  %v6224_v14 = vld [vmem:[%s18338_s10 + $0x48] sm:$0xff] }
 0x3a7   :  { %v6145_v43 = vadd.f32 %v6144_v40, %v6143_v38  ;;  %v6158_v60 = vadd.f32 %v6157_v50, %v6156_v47  ;;  %v6146_v26 = vsel %vm2953_vm1, %v6036_v33, 0.0  ;;  %v6159_v19 = vsel %vm2953_vm1, %v6043_v29, 0.0  ;;  %v6227_v50 = vld [vmem:[%s18338_s10 + $0x60] sm:$0xff] }
 0x3a8   :  { %v5481_v53 = vrot.slane %v5467_v41, %v18622_v24  ;;  %v5482_v13 = vcombine.high %v5474_v39, %v5474_v39  ;;  %v6148_v22 = vsel %vm2953_vm1, %v6037_v6, 0.0  ;;  %v5530_v51 = vrot.slane %v5516_v3, %v18622_v24 }
 0x3a9   :  { %11765 = vmatmul.mubr.msk.f32.gmra.mxu0 %vm94_vm0, %v6222_v46  ;;  %v6147_v44 = vadd.f32 %v6146_v26, %v6145_v43  ;;  %v6160_v20 = vadd.f32 %v6159_v19, %v6158_v60  ;;  %v6161_v33 = vsel %vm2953_vm1, %v6044_v30, 0.0  ;;  %v5490_v62 = vrot.slane %v5474_v39, %v18622_v24  ;;  %v15861_v46 = vpop.f32.mrf.mxu1 }
 0x3aa   :  { %11767 = vmatprep.mubr.msk.f32.mxu0 %vm94_vm0, %v6223_v2  ;;  %v5483_v10 = vcombine.high %v5481_v53, %v5481_v53  ;;  %v5531_v23 = vcombine.high %v5523_v61, %v5523_v61  ;;  %v6150_v29 = vsel %vm2953_vm1, %v6038_v42, 0.0  ;;  %v6163_v34 = vsel %vm2953_vm1, %v6045_v1, 0.0  ;;  %v6226_v1 = vld [vmem:[%s18338_s10 + $0x58] sm:$0xff] }
 0x3ab   :  { %v6149_v6 = vadd.f32 %v6148_v22, %v6147_v44  ;;  %v6162_v54 = vadd.f32 %v6161_v33, %v6160_v20  ;;  %v6165_v36 = vsel %vm2953_vm1, %v6046_v49, 0.0  ;;  %v5504_v8 = vrot.slane %v5482_v13, %v18622_v24  ;;  %v6229_v20 = vld [vmem:[%s18338_s10 + $0x70] sm:$0xff] }
 0x3ac   :  { %v5532_v25 = vcombine.high %v5530_v51, %v5530_v51  ;;  %v15859_v30 = vmul.f32 %v12459_v28, %v15549_v16  ;;  %v5497_v12 = vrot.slane %v5481_v53, %v18622_v24  ;;  %v5539_v42 = vrot.slane %v5523_v61, %v18622_v24 }
 0x3ad   :  { %11768 = vmatmul.mubr.msk.f32.gmra.mxu0 %vm94_vm0, %v6224_v14  ;;  %v6151_v38 = vadd.f32 %v6150_v29, %v6149_v6  ;;  %v6164_v47 = vadd.f32 %v6163_v34, %v6162_v54  ;;  %v5511_v49 = vrot.slane %v5483_v10, %v18622_v24  ;;  %v5512_v40 = vcombine.high %v5490_v62, %v5490_v62 }
 0x3ae   :  { %11770 = vmatprep.mubr.msk.f32.mxu0 %vm94_vm0, %v6225_v55  ;;  %v5553_v16 = vrot.slane %v5531_v23, %v18622_v24  ;;  %v15872_v28 = vmul.f32 %v12461_v15, %v15552_v32  ;;  %v5546_v39 = vrot.slane %v5530_v51, %v18622_v24  ;;  %12464 = vrcp.f32 %v15760_v18  ;;  %v15885_v32 = vpop.f32.mrf.mxu1  ;;  %v6228_v18 = vld [vmem:[%s18338_s10 + $0x68] sm:$0xff] }
 0x3af   :  { %v6166_v2 = vadd.f32 %v6165_v36, %v6164_v47  ;;  %v10696_v41 = vmul.f32 -1.442695, %v6151_v38  ;;  %v5514_v43 = vcombine.high %v5504_v8, %v5504_v8  ;;  %v15880_v60 = vrot.slane %v5532_v25, %v18622_v24 }
 0x3b0   :  { %v5794_v3 = vrot.slane %v5490_v62, %v12991_v21  ;;  %v5798_v61 = vrot.slane %v5504_v8, %v12991_v21  ;;  %v5513_v26 = vcombine.high %v5497_v12, %v5497_v12  ;;  %v5561_v19 = vcombine.high %v5539_v42, %v5539_v42  ;;  %v15905_v6 = vpop.f32.mrf.mxu1  ;;  %v6230_v8 = vld [vmem:[%s18338_s10 + $0x78] sm:$0xff] }
 0x3b1   :  { %11771 = vmatmul.mubr.msk.f32.gmra.mxu0 %vm94_vm0, %v6226_v1  ;;  %12466 = vpow2.f32 %v10696_v41  ;;  %v10697_v15 = vmul.f32 -1.442695, %v6166_v2  ;;  %v5515_v53 = vcombine.high %v5511_v49, %v5511_v49  ;;  %v5563_v13 = vcombine.high %v5553_v16, %v5553_v16 }
 0x3b2   :  { %11773 = vmatprep.mubr.msk.f32.mxu0 %vm94_vm0, %v6227_v50  ;;  %v5802_v44 = vrot.slane %v5512_v40, %v12991_v21  ;;  %v5369_v22 = vcombine.high %v15859_v30, %v15859_v30  ;;  %v5562_v51 = vcombine.high %v5546_v39, %v5546_v39  ;;  %v5826_v14 = vrot.slane %v5539_v42, %v12991_v21  ;;  %v6231_v42 = vld [vmem:[%s18338_s10 + $0x80] sm:$0xff] }
 0x3b3   :  { %12468 = vpow2.f32 %v10697_v15  ;;  %v5830_v33 = vrot.slane %v5553_v16, %v12991_v21  ;;  %v5564_v10 = vcombine.high %v15880_v60, %v15880_v60  ;;  %v5806_v62 = vrot.slane %v5514_v43, %v12991_v21  ;;  %v15932_v43 = vpop.f32.mrf.mxu1 }
 0x3b4   :  { %v6015_v23 = vmul.f32 %v5794_v3, %v18620_v35  ;;  %v6016_v55 = vmul.f32 %v5798_v61, %v15585_v59  ;;  %v5810_v29 = vrot.slane %v5497_v12, %v12991_v21  ;;  %v5814_v54 = vrot.slane %v5511_v49, %v12991_v21 }
 0x3b5   :  { %11774 = vmatmul.mubr.msk.f32.gmra.mxu0 %vm94_vm0, %v6228_v18  ;;  %v5818_v34 = vrot.slane %v5513_v26, %v12991_v21  ;;  %v5834_v36 = vrot.slane %v5561_v19, %v12991_v21  ;;  %v5822_v25 = vrot.slane %v5515_v53, %v12991_v21  ;;  %v5838_v38 = vrot.slane %v5563_v13, %v12991_v21  ;;  %v6232_v26 = vld [vmem:[%s18338_s10 + $0x88] sm:$0xff] }
 0x3b6   :  { %11776 = vmatprep.mubr.msk.f32.mxu0 %vm94_vm0, %v6229_v20  ;;  %v5842_v47 = vrot.slane %v5546_v39, %v12991_v21  ;;  %v6017_v12 = vmul.f32 %v5802_v44, %v18619_v4  ;;  %v5846_v1 = vrot.slane %v15880_v60, %v12991_v21  ;;  %v5850_v49 = vrot.slane %v5562_v51, %v12991_v21  ;;  %v6233_v44 = vld [vmem:[%s18338_s10 + $0x90] sm:$0xff] }
 0x3b7   :  { %v6023_v40 = vmul.f32 %v5826_v14, %v18620_v35  ;;  %v6024_v16 = vmul.f32 %v5830_v33, %v15585_v59  ;;  %v5854_v50 = vrot.slane %v5564_v10, %v12991_v21  ;;  %v6018_v2 = vmul.f32 %v5806_v62, %v15577_v52 }
 0x3b8   :  { %v6107_v41 = vsel %vm2953_vm1, %v6015_v23, 0.0  ;;  %v6108_v39 = vsel %vm2953_vm1, %v6016_v55, 0.0  ;;  %v6019_v60 = vmul.f32 %v5810_v29, %v18621_v11  ;;  %v6020_v3 = vmul.f32 %v5814_v54, %v15589_v57  ;;  %v15957_v54 = vpop.f32.mrf.mxu1 }
 0x3b9   :  { %11777 = vmatmul.mubr.msk.f32.gmra.mxu0 %vm94_vm0, %v6230_v8  ;;  %v6025_v61 = vmul.f32 %v5834_v36, %v18619_v4  ;;  %v6109_v15 = vadd.f32 %v6108_v39, %v6107_v41  ;;  %v6021_v19 = vmul.f32 %v5818_v34, %v18613_v45  ;;  %v6022_v18 = vmul.f32 %v5822_v25, %v18618_v58 }
 0x3ba   :  { %11779 = vmatprep.mubr.msk.f32.mxu0 %vm94_vm0, %v6231_v42  ;;  %v6026_v53 = vmul.f32 %v5838_v38, %v15577_v52  ;;  %v6110_v13 = vsel %vm2953_vm1, %v6017_v12, 0.0  ;;  %v6027_v20 = vmul.f32 %v5842_v47, %v18621_v11  ;;  %v6122_v14 = vsel %vm2953_vm1, %v6023_v40, 0.0  ;;  %v6234_v38 = vld [vmem:[%s18338_s10 + $0x98] sm:$0xff]  ;;  %v6235_v40 = vld [vmem:[%s18338_s10 + $0xa0] sm:$0xff] }
 0x3bb   :  { %v6111_v51 = vadd.f32 %v6110_v13, %v6109_v15  ;;  %v6123_v33 = vsel %vm2953_vm1, %v6024_v16, 0.0  ;;  %v15951_v10 = vpop.eup %12464  ;;  %v6028_v62 = vmul.f32 %v5846_v1, %v15589_v57  ;;  %v6029_v23 = vmul.f32 %v5850_v49, %v18613_v45  ;;  %v15983_v15 = vpop.f32.mrf.mxu1 }
 0x3bc   :  { %v6112_v55 = vsel %vm2953_vm1, %v6018_v2, 0.0  ;;  %v6124_v29 = vadd.f32 %v6123_v33, %v6122_v14  ;;  %v6030_v34 = vmul.f32 %v5854_v50, %v18618_v58  ;;  %v6125_v8 = vsel %vm2953_vm1, %v6025_v61, 0.0  ;;  %18623 = vst [vmem:[#allocation10_spill] sm:$0xff] %v15983_v15  ;;  %v6237_v33 = vld [vmem:[%s18338_s10 + $0xb0] sm:$0xff] }
 0x3bd   :  { %11780 = vmatmul.mubr.msk.f32.gmra.mxu0 %vm94_vm0, %v6232_v26  ;;  %v6113_v36 = vadd.f32 %v6112_v55, %v6111_v51  ;;  %v5376_v25 = vrot.slane %v15859_v30, %v18622_v24  ;;  %v6114_v12 = vsel %vm2953_vm1, %v6019_v60, 0.0  ;;  %v5383_v1 = vrot.slane %v5369_v22, %v18622_v24 }
 0x3be   :  { %11782 = vmatprep.mubr.msk.f32.mxu0 %vm94_vm0, %v6233_v44  ;;  %v12467_v47 = vpop.eup %12466  ;;  %v6126_v42 = vadd.f32 %v6125_v8, %v6124_v29  ;;  %v5418_v49 = vcombine.high %v15872_v28, %v15872_v28  ;;  %v6127_v2 = vsel %vm2953_vm1, %v6026_v53, 0.0  ;;  %v5425_v41 = vrot.slane %v15872_v28, %v18622_v24  ;;  %v6236_v28 = vld [vmem:[%s18338_s10 + $0xa8] sm:$0xff] }
 0x3bf   :  { %v6197_v16 = vadd.f32 1.0, %v12467_v47  ;;  %v6115_v50 = vadd.f32 %v6114_v12, %v6113_v36  ;;  %v6116_v60 = vsel %vm2953_vm1, %v6020_v3, 0.0  ;;  %v5384_v30 = vcombine.high %v5376_v25, %v5376_v25 }
 0x3c0   :  { %v12469_v39 = vpop.eup %12468  ;;  %v6128_v61 = vadd.f32 %v6127_v2, %v6126_v42  ;;  %v5432_v22 = vrot.slane %v5418_v49, %v18622_v24  ;;  %v6129_v44 = vsel %vm2953_vm1, %v6027_v20, 0.0  ;;  %v6118_v3 = vsel %vm2953_vm1, %v6021_v19, 0.0  ;;  %v15999_v19 = vpop.f32.mrf.mxu1 }
 0x3c1   :  { %11783 = vmatmul.mubr.msk.f32.gmra.mxu0 %vm94_vm0, %v6234_v38  ;;  %v6198_v26 = vadd.f32 1.0, %v12469_v39  ;;  %12470 = vrcp.f32 %v6197_v16  ;;  %v6117_v13 = vadd.f32 %v6116_v60, %v6115_v50  ;;  %v5385_v51 = vcombine.high %v5383_v1, %v5383_v1  ;;  %18624 = vst [vmem:[#allocation14_spill] sm:$0xff] %v15999_v19 }
 0x3c2   :  { %11785 = vmatprep.mubr.msk.f32.mxu0 %vm94_vm0, %v6235_v40  ;;  %v6130_v53 = vadd.f32 %v6129_v44, %v6128_v61  ;;  %v5392_v14 = vrot.slane %v5376_v25, %v18622_v24  ;;  %v6131_v20 = vsel %vm2953_vm1, %v6028_v62, 0.0  ;;  %v5433_v29 = vcombine.high %v5425_v41, %v5425_v41 }
 0x3c3   :  { %12472 = vrcp.f32 %v6198_v26  ;;  %v6119_v55 = vadd.f32 %v6118_v3, %v6117_v13  ;;  %v6120_v36 = vsel %vm2953_vm1, %v6022_v18, 0.0  ;;  %v5406_v38 = vrot.slane %v5384_v30, %v18622_v24  ;;  %v6238_v18 = vld [vmem:[%s18338_s10 + $0xb8] sm:$0xff]  ;;  %v16027_v13 = vpop.f32.mrf.mxu1 }
 0x3c4   :  { %v6132_v8 = vadd.f32 %v6131_v20, %v6130_v53  ;;  %v5434_v47 = vcombine.high %v5432_v22, %v5432_v22  ;;  %v6133_v12 = vsel %vm2953_vm1, %v6029_v23, 0.0  ;;  %v16003_v42 = vrot.slane %v5383_v1, %v18622_v24  ;;  %v6239_v23 = vld [vmem:[%s18338_s10 + $0xc0] sm:$0xff]  ;;  %18625 = vst [vmem:[#allocation9_spill] sm:$0xff] %v16027_v13 }
 0x3c5   :  { %11786 = vmatmul.mubr.msk.f32.gmra.mxu0 %vm94_vm0, %v6236_v28  ;;  %v6121_v25 = vadd.f32 %v6120_v36, %v6119_v55  ;;  %v5441_v49 = vrot.slane %v5425_v41, %v18622_v24  ;;  %v16011_v40 = vrot.slane %v5385_v51, %v18622_v24  ;;  %v5414_v16 = vcombine.high %v5392_v14, %v5392_v14  ;;  %v6240_v28 = vld [vmem:[%s18338_s10 + $0xc8] sm:$0xff] }
 0x3c6   :  { %11788 = vmatprep.mubr.msk.f32.mxu0 %vm94_vm0, %v6237_v33  ;;  %v6134_v62 = vadd.f32 %v6133_v12, %v6132_v8  ;;  %v5455_v50 = vrot.slane %v5433_v29, %v18622_v24  ;;  %v6135_v1 = vsel %vm2953_vm1, %v6030_v34, 0.0  ;;  %v16019_v41 = vrot.slane %v5432_v22, %v18622_v24  ;;  %v6241_v33 = vld [vmem:[%s18338_s10 + $0xd0] sm:$0xff] }
 0x3c7   :  { %v10694_v2 = vmul.f32 -1.442695, %v6121_v25  ;;  %v16022_v39 = vrot.slane %v5434_v47, %v18622_v24  ;;  %v5416_v61 = vcombine.high %v5406_v38, %v5406_v38  ;;  %v5730_v30 = vrot.slane %v5392_v14, %v12991_v21 }
 0x3c8   :  { %v6136_v60 = vadd.f32 %v6135_v1, %v6134_v62  ;;  %v5734_v26 = vrot.slane %v5406_v38, %v12991_v21  ;;  %v5415_v34 = vcombine.high %v16003_v42, %v16003_v42  ;;  %v5463_v44 = vcombine.high %v5441_v49, %v5441_v49  ;;  %v16055_v38 = vpop.f32.mrf.mxu1 }
 0x3c9   :  { %11789 = vmatmul.mubr.msk.f32.gmra.mxu0 %vm94_vm0, %v6238_v18  ;;  %12474 = vpow2.f32 %v10694_v2  ;;  %v16033_v22 = vmul.f32 %v15833_v5, %v15541_v27  ;;  %v5417_v53 = vcombine.high %v16011_v40, %v16011_v40  ;;  %v5465_v51 = vcombine.high %v5455_v50, %v5455_v50  ;;  %18626 = vst [vmem:[#allocation12_spill] sm:$0xff] %v16055_v38  ;;  %v6242_v18 = vld [vmem:[%s18338_s10 + $0xd8] sm:$0xff] }
 0x3ca   :  { %11791 = vmatprep.mubr.msk.f32.mxu0 %vm94_vm0, %v6239_v23  ;;  %v10695_v3 = vmul.f32 -1.442695, %v6136_v60  ;;  %v5738_v14 = vrot.slane %v5414_v16, %v12991_v21  ;;  %v5464_v27 = vcombine.high %v16019_v41, %v16019_v41  ;;  %v5466_v5 = vcombine.high %v16022_v39, %v16022_v39  ;;  %v6243_v23 = vld [vmem:[%s18338_s10 + $0xe0] sm:$0xff] }
 0x3cb   :  { %v5762_v55 = vrot.slane %v5441_v49, %v12991_v21  ;;  %v5766_v20 = vrot.slane %v5455_v50, %v12991_v21  ;;  %v5742_v29 = vrot.slane %v5416_v61, %v12991_v21  ;;  %v5999_v36 = vmul.f32 %v5730_v30, %v18620_v35 }
 0x3cc   :  { %12476 = vpow2.f32 %v10695_v3  ;;  %v6000_v8 = vmul.f32 %v5734_v26, %v15585_v59  ;;  %v5746_v47 = vrot.slane %v16003_v42, %v12991_v21  ;;  %v5750_v25 = vrot.slane %v16011_v40, %v12991_v21 }
 0x3cd   :  { %11792 = vmatmul.mubr.msk.f32.gmra.mxu0 %vm94_vm0, %v6240_v28  ;;  %v5754_v12 = vrot.slane %v5415_v34, %v12991_v21  ;;  %v5770_v49 = vrot.slane %v5463_v44, %v12991_v21  ;;  %v5758_v16 = vrot.slane %v5417_v53, %v12991_v21  ;;  %v5774_v50 = vrot.slane %v5465_v51, %v12991_v21  ;;  %v16085_v28 = vpop.f32.mrf.mxu1 }
 0x3ce   :  { %11794 = vmatprep.mubr.msk.f32.mxu0 %vm94_vm0, %v6241_v33  ;;  %v12471_v62 = vpop.eup %12470  ;;  %v5778_v42 = vrot.slane %v16019_v41, %v12991_v21  ;;  %v6001_v40 = vmul.f32 %v5738_v14, %v18619_v4  ;;  %v5782_v1 = vrot.slane %v16022_v39, %v12991_v21  ;;  %v5786_v2 = vrot.slane %v5464_v27, %v12991_v21 }
 0x3cf   :  { %v6007_v60 = vmul.f32 %v5762_v55, %v18620_v35  ;;  %v6008_v61 = vmul.f32 %v5766_v20, %v15585_v59  ;;  %v5790_v26 = vrot.slane %v5466_v5, %v12991_v21  ;;  %v6002_v41 = vmul.f32 %v5742_v29, %v15577_v52  ;;  %18627 = vst [vmem:[#allocation15_spill] sm:$0xff] %v16085_v28  ;;  %v6244_v55 = vld [vmem:[%s18338_s10 + $0xe8] sm:$0xff] }
 0x3d0   :  { %v12473_v30 = vpop.eup %12472  ;;  %v6077_v34 = vsel %vm2953_vm1, %v5999_v36, 0.0  ;;  %v6078_v44 = vsel %vm2953_vm1, %v6000_v8, 0.0  ;;  %v6003_v3 = vmul.f32 %v5746_v47, %v18621_v11  ;;  %v6009_v53 = vmul.f32 %v5770_v49, %v18619_v4  ;;  %v6245_v47 = vld [vmem:[%s18338_s10 + $0xf0] sm:$0xff] }
 0x3d1   :  { %11795 = vmatmul.mubr.msk.f32.gmra.mxu0 %vm94_vm0, %v6242_v18  ;;  %v7418_v39 = vcombine.low %v12471_v62, %v12473_v30  ;;  %v6079_v51 = vadd.f32 %v6078_v44, %v6077_v34  ;;  %v6004_v14 = vmul.f32 %v5750_v25, %v15589_v57  ;;  %v6005_v33 = vmul.f32 %v5754_v12, %v18613_v45  ;;  %v16106_v62 = vpop.f32.mrf.mxu1  ;;  %v6247_v44 = vld [vmem:[%s18338_s10 + $0x100] sm:$0xff] }
 0x3d2   :  { %11797 = vmatprep.mubr.msk.f32.mxu0 %vm94_vm0, %v6243_v23  ;;  %v6006_v27 = vmul.f32 %v5758_v16, %v18618_v58  ;;  %v6080_v5 = vsel %vm2953_vm1, %v6001_v40, 0.0  ;;  %v6010_v20 = vmul.f32 %v5774_v50, %v15577_v52  ;;  %v6092_v36 = vsel %vm2953_vm1, %v6007_v60, 0.0  ;;  %18628 = vst [vmem:[#allocation13_spill] sm:$0xff] %v16106_v62 }
 0x3d3   :  { %11899 = vmatprep.subr.mxu0 %v7418_v39  ;;  %v6081_v29 = vadd.f32 %v6080_v5, %v6079_v51  ;;  %v6093_v8 = vsel %vm2953_vm1, %v6008_v61, 0.0  ;;  %v6011_v25 = vmul.f32 %v5778_v42, %v18621_v11  ;;  %v6012_v12 = vmul.f32 %v5782_v1, %v15589_v57  ;;  %v16129_v5 = vpop.f32.mrf.mxu1 }
 0x3d4   :  { %11900 = vmatpush3.msra.mxu0 %v7418_v39  ;;  %v6082_v49 = vsel %vm2953_vm1, %v6002_v41, 0.0  ;;  %v6094_v18 = vadd.f32 %v6093_v8, %v6092_v36  ;;  %v6013_v16 = vmul.f32 %v5786_v2, %v18613_v45  ;;  %v6095_v40 = vsel %vm2953_vm1, %v6009_v53, 0.0  ;;  %v6246_v2 = vld [vmem:[%s18338_s10 + $0xf8] sm:$0xff]  ;;  %18629 = vst [vmem:[#allocation11_spill] sm:$0xff] %v16129_v5 }
 0x3d5   :  { %v6083_v50 = vadd.f32 %v6082_v49, %v6081_v29  ;;  %v5256_v23 = vmul.f32 %v15951_v10, %v15547_v48  ;;  %11798 = vmatmul.mubr.msk.f32.gmra.mxu0 %vm94_vm0, %v6244_v55  ;;  %v6084_v42 = vsel %vm2953_vm1, %v6003_v3, 0.0  ;;  %v5271_v1 = vcombine.high %v16033_v22, %v16033_v22 }
 0x3d6   :  { %v12475_v60 = vpop.eup %12474  ;;  %v6096_v61 = vadd.f32 %v6095_v40, %v6094_v18  ;;  %v5278_v30 = vrot.slane %v16033_v22, %v18622_v24  ;;  %11800 = vmatprep.mubr.msk.f32.mxu0 %vm94_vm0, %v6245_v47  ;;  %v6097_v10 = vsel %vm2953_vm1, %v6010_v20, 0.0  ;;  %v6014_v39 = vmul.f32 %v5790_v26, %v18618_v58 }
 0x3d7   :  { %v6195_v41 = vadd.f32 1.0, %v12475_v60  ;;  %v6085_v48 = vadd.f32 %v6084_v42, %v6083_v50  ;;  %v5320_v34 = vcombine.high %v5256_v23, %v5256_v23  ;;  %v6086_v3 = vsel %vm2953_vm1, %v6004_v14, 0.0  ;;  %v6248_v14 = vld [vmem:[%s18338_s10 + $0x108] sm:$0xff]  ;;  %v6249_v50 = vld [vmem:[%s18338_s10 + $0x110] sm:$0xff]  ;;  %v16146_v42 = vpop.f32.mrf.mxu1 }
 0x3d8   :  { %v6098_v22 = vadd.f32 %v6097_v10, %v6096_v61  ;;  %v5327_v53 = vrot.slane %v5256_v23, %v18622_v24  ;;  %v6088_v29 = vsel %vm2953_vm1, %v6005_v33, 0.0  ;;  %v6099_v20 = vsel %vm2953_vm1, %v6011_v25, 0.0  ;;  %18630 = vst [vmem:[#allocation8_spill] sm:$0xff] %v16146_v42 }
 0x3d9   :  { %v12477_v51 = vpop.eup %12476  ;;  %v6087_v55 = vadd.f32 %v6086_v3, %v6085_v48  ;;  %v5286_v36 = vcombine.high %v5278_v30, %v5278_v30  ;;  %11801 = vmatmul.mubr.msk.f32.gmra.mxu0 %vm94_vm0, %v6246_v2  ;;  %12478 = vrcp.f32 %v6195_v41  ;;  %v5285_v26 = vrot.slane %v5271_v1, %v18622_v24 }
 0x3da   :  { %v6196_v8 = vadd.f32 1.0, %v12477_v51  ;;  %v6100_v47 = vadd.f32 %v6099_v20, %v6098_v22  ;;  %11803 = vmatprep.mubr.msk.f32.mxu0 %vm94_vm0, %v6247_v44  ;;  %v6101_v18 = vsel %vm2953_vm1, %v6012_v12, 0.0  ;;  %v5294_v33 = vrot.slane %v5278_v30, %v18622_v24  ;;  %v16162_v51 = vpop.f32.mrf.mxu1 }
 0x3db   :  { %v6089_v49 = vadd.f32 %v6088_v29, %v6087_v55  ;;  %v5334_v25 = vrot.slane %v5320_v34, %v18622_v24  ;;  %v6090_v40 = vsel %vm2953_vm1, %v6006_v27, 0.0  ;;  %v5335_v60 = vcombine.high %v5327_v53, %v5327_v53  ;;  %v6250_v27 = vld [vmem:[%s18338_s10 + $0x118] sm:$0xff]  ;;  %18631 = vst [vmem:[#allocation16_spill] sm:$0xff] %v16162_v51  ;;  %v7401_v51 = vld [vmem:[%s18339_s11 + $0x2d0] sm:$0xff] }
 0x3dc   :  { %12480 = vrcp.f32 %v6196_v8  ;;  %v6102_v23 = vadd.f32 %v6101_v18, %v6100_v47  ;;  %v6103_v1 = vsel %vm2953_vm1, %v6013_v16, 0.0  ;;  %v5308_v12 = vrot.slane %v5286_v36, %v18622_v24  ;;  %v6251_v16 = vld [vmem:[%s18338_s10 + $0x120] sm:$0xff]  ;;  %v6252_v47 = vld [vmem:[%s18338_s10 + $0x128] sm:$0xff]  ;;  %v6253_v18 = vld [vmem:[%s18338_s10 + $0x130] sm:$0xff] }
 0x3dd   :  { %v6091_v61 = vadd.f32 %v6090_v40, %v6089_v49  ;;  %11804 = vmatmul.mubr.msk.f32.gmra.mxu0 %vm94_vm0, %v6248_v14  ;;  %v5287_v2 = vcombine.high %v5285_v26, %v5285_v26  ;;  %v5343_v41 = vrot.slane %v5327_v53, %v18622_v24  ;;  %v6105_v48 = vsel %vm2953_vm1, %v6014_v39, 0.0 }
 0x3de   :  { %v6104_v30 = vadd.f32 %v6103_v1, %v6102_v23  ;;  %11806 = vmatprep.mubr.msk.f32.mxu0 %vm94_vm0, %v6249_v50  ;;  %v5316_v34 = vcombine.high %v5294_v33, %v5294_v33  ;;  %v5336_v44 = vcombine.high %v5334_v25, %v5334_v25  ;;  %v5301_v22 = vrot.slane %v5285_v26, %v18622_v24  ;;  %v16182_v23 = vpop.f32.mrf.mxu1 }
 0x3df   :  { %v10692_v10 = vmul.f32 -1.442695, %v6091_v61  ;;  %v5357_v53 = vrot.slane %v5335_v60, %v18622_v24  ;;  %v5318_v55 = vcombine.high %v5308_v12, %v5308_v12  ;;  %v5666_v29 = vrot.slane %v5294_v33, %v12991_v21  ;;  %18632 = vst [vmem:[#allocation21_spill] sm:$0xff] %v16182_v23 }
 0x3e0   :  { %v6106_v3 = vadd.f32 %v6105_v48, %v6104_v30  ;;  %v5670_v39 = vrot.slane %v5308_v12, %v12991_v21  ;;  %v5315_v36 = vrot.slane %v5287_v2, %v18622_v24  ;;  %v5365_v8 = vcombine.high %v5343_v41, %v5343_v41  ;;  %v6254_v30 = vld [vmem:[%s18338_s10 + $0x138] sm:$0xff] }
 0x3e1   :  { %12482 = vpow2.f32 %v10692_v10  ;;  %11807 = vmatmul.mubr.msk.f32.gmra.mxu0 %vm94_vm0, %v6250_v27  ;;  %v5350_v26 = vrot.slane %v5334_v25, %v18622_v24  ;;  %v16174_v14 = vrot.slane %v5336_v44, %v18622_v24  ;;  %v5674_v49 = vrot.slane %v5316_v34, %v12991_v21  ;;  %v6255_v34 = vld [vmem:[%s18338_s10 + $0x140] sm:$0xff] }
 0x3e2   :  { %v10693_v20 = vmul.f32 -1.442695, %v6106_v3  ;;  %11809 = vmatprep.mubr.msk.f32.mxu0 %vm94_vm0, %v6251_v16  ;;  %v5367_v33 = vcombine.high %v5357_v53, %v5357_v53  ;;  %v5698_v50 = vrot.slane %v5343_v41, %v12991_v21  ;;  %v5702_v40 = vrot.slane %v5357_v53, %v12991_v21 }
 0x3e3   :  { %v5317_v60 = vcombine.high %v5301_v22, %v5301_v22  ;;  %v5678_v25 = vrot.slane %v5318_v55, %v12991_v21  ;;  %v5983_v24 = vmul.f32 %v5666_v29, %v18620_v35  ;;  %v5984_v61 = vmul.f32 %v5670_v39, %v15585_v59  ;;  %v16204_v29 = vpop.f32.mrf.mxu1 }
 0x3e4   :  { %12484 = vpow2.f32 %v10693_v20  ;;  %v5319_v1 = vcombine.high %v5315_v36, %v5315_v36  ;;  %v5706_v12 = vrot.slane %v5365_v8, %v12991_v21  ;;  %v5366_v41 = vcombine.high %v5350_v26, %v5350_v26  ;;  %18633 = vst [vmem:[#allocation19_spill] sm:$0xff] %v16204_v29 }
 0x3e5   :  { %11810 = vmatmul.mubr.msk.f32.gmra.mxu0 %vm94_vm0, %v6252_v47  ;;  %v5368_v27 = vcombine.high %v16174_v14, %v16174_v14  ;;  %v5682_v48 = vrot.slane %v5301_v22, %v12991_v21  ;;  %v5985_v10 = vmul.f32 %v5674_v49, %v18619_v4  ;;  %v5686_v44 = vrot.slane %v5315_v36, %v12991_v21 }
 0x3e6   :  { %11812 = vmatprep.mubr.msk.f32.mxu0 %vm94_vm0, %v6253_v18  ;;  %v12479_v2 = vpop.eup %12478  ;;  %v5710_v16 = vrot.slane %v5367_v33, %v12991_v21  ;;  %v5991_v3 = vmul.f32 %v5698_v50, %v18620_v35  ;;  %v5992_v53 = vmul.f32 %v5702_v40, %v15585_v59  ;;  %v5690_v39 = vrot.slane %v5317_v60, %v12991_v21  ;;  %v6256_v40 = vld [vmem:[%s18338_s10 + $0x148] sm:$0xff] }
 0x3e7   :  { %v5986_v22 = vmul.f32 %v5678_v25, %v15577_v52  ;;  %v6047_v20 = vsel %vm2953_vm1, %v5983_v24, 0.0  ;;  %v6048_v8 = vsel %vm2953_vm1, %v5984_v61, 0.0  ;;  %v5714_v47 = vrot.slane %v5350_v26, %v12991_v21  ;;  %v16228_v24 = vpop.f32.mrf.mxu1 }
 0x3e8   :  { %v5993_v35 = vmul.f32 %v5706_v12, %v18619_v4  ;;  %v6049_v49 = vadd.f32 %v6048_v8, %v6047_v20  ;;  %v5694_v59 = vrot.slane %v5319_v1, %v12991_v21  ;;  %v5718_v18 = vrot.slane %v16174_v14, %v12991_v21  ;;  %v6257_v14 = vld [vmem:[%s18338_s10 + $0x150] sm:$0xff]  ;;  %18634 = vst [vmem:[#allocation25_spill] sm:$0xff] %v16228_v24 }
 0x3e9   :  { %v12481_v55 = vpop.eup %12480  ;;  %11813 = vmatmul.mubr.msk.f32.gmra.mxu0 %vm94_vm0, %v6254_v30  ;;  %v5987_v33 = vmul.f32 %v5682_v48, %v18621_v11  ;;  %v6050_v50 = vsel %vm2953_vm1, %v5985_v10, 0.0  ;;  %v5994_v26 = vmul.f32 %v5710_v16, %v15577_v52  ;;  %v6062_v60 = vsel %vm2953_vm1, %v5991_v3, 0.0  ;;  %v16248_v8 = vpop.f32.mrf.mxu1 }
 0x3ea   :  { %v7417_v36 = vcombine.low %v12479_v2, %v12481_v55  ;;  %11815 = vmatprep.mubr.msk.f32.mxu0 %vm94_vm0, %v6255_v34  ;;  %v6051_v4 = vadd.f32 %v6050_v50, %v6049_v49  ;;  %v6063_v25 = vsel %vm2953_vm1, %v5992_v53, 0.0  ;;  %v5722_v61 = vrot.slane %v5366_v41, %v12991_v21  ;;  %v6258_v41 = vld [vmem:[%s18338_s10 + $0x158] sm:$0xff]  ;;  %18635 = vst [vmem:[#allocation22_spill] sm:$0xff] %v16248_v8 }
 0x3eb   :  { %v5988_v1 = vmul.f32 %v5686_v44, %v15589_v57  ;;  %v6052_v12 = vsel %vm2953_vm1, %v5986_v22, 0.0  ;;  %v6064_v30 = vadd.f32 %v6063_v25, %v6062_v60  ;;  %v5995_v2 = vmul.f32 %v5714_v47, %v18621_v11 }
 0x3ec   :  { %11901 = vmatprep.subr.mxu0 %v7417_v36  ;;  %v6053_v48 = vadd.f32 %v6052_v12, %v6051_v4  ;;  %v6065_v10 = vsel %vm2953_vm1, %v5993_v35, 0.0  ;;  %v5989_v16 = vmul.f32 %v5690_v39, %v18613_v45  ;;  %v6054_v3 = vsel %vm2953_vm1, %v5987_v33, 0.0  ;;  %v6259_v39 = vld [vmem:[%s18338_s10 + $0x160] sm:$0xff]  ;;  %v16265_v4 = vpop.f32.mrf.mxu1 }
 0x3ed   :  { %11902 = vmatpush3.msra.mxu0 %v7417_v36  ;;  %v6066_v53 = vadd.f32 %v6065_v10, %v6064_v30  ;;  %v5726_v44 = vrot.slane %v5368_v27, %v12991_v21  ;;  %v5996_v11 = vmul.f32 %v5718_v18, %v15589_v57  ;;  %v6067_v22 = vsel %vm2953_vm1, %v5994_v26, 0.0  ;;  %v6261_v26 = vld [vmem:[%s18338_s10 + $0x170] sm:$0xff]  ;;  %18636 = vst [vmem:[#allocation17_spill] sm:$0xff] %v16265_v4 }
 0x3ee   :  { %v12483_v52 = vpop.eup %12482  ;;  %11816 = vmatmul.mubr.msk.f32.gmra.mxu0 %vm94_vm0, %v6256_v40  ;;  %v6055_v55 = vadd.f32 %v6054_v3, %v6053_v48  ;;  %v5990_v36 = vmul.f32 %v5694_v59, %v18618_v58  ;;  %v5997_v47 = vmul.f32 %v5722_v61, %v18613_v45  ;;  %v6056_v35 = vsel %vm2953_vm1, %v5988_v1, 0.0  ;;  %v6260_v59 = vld [vmem:[%s18338_s10 + $0x168] sm:$0xff] }
 0x3ef   :  { %v6193_v34 = vadd.f32 1.0, %v12483_v52  ;;  %11818 = vmatprep.mubr.msk.f32.mxu0 %vm94_vm0, %v6257_v14  ;;  %v6068_v49 = vadd.f32 %v6067_v22, %v6066_v53  ;;  %v6069_v27 = vsel %vm2953_vm1, %v5995_v2, 0.0  ;;  %v6058_v18 = vsel %vm2953_vm1, %v5989_v16, 0.0  ;;  %v6263_v52 = vld [vmem:[%s18338_s10 + $0x180] sm:$0xff]  ;;  %v16278_v2 = vpop.f32.mrf.mxu1  ;;  %v6265_v16 = vld [vmem:[%s18338_s10 + $0x190] sm:$0xff] }
 0x3f0   :  { %v6057_v57 = vadd.f32 %v6056_v35, %v6055_v55  ;;  %v5998_v45 = vmul.f32 %v5726_v44, %v18618_v58  ;;  %v6071_v40 = vsel %vm2953_vm1, %v5996_v11, 0.0  ;;  %v6060_v60 = vsel %vm2953_vm1, %v5990_v36, 0.0  ;;  %v6262_v58 = vld [vmem:[%s18338_s10 + $0x178] sm:$0xff]  ;;  %18637 = vst [vmem:[#allocation26_spill] sm:$0xff] %v16278_v2  ;;  %v6267_v44 = vld [vmem:[%s18338_s10 + $0x1a0] sm:$0xff] }
 0x3f1   :  { %v12485_v20 = vpop.eup %12484  ;;  %12486 = vrcp.f32 %v6193_v34  ;;  %v6070_v33 = vadd.f32 %v6069_v27, %v6068_v49  ;;  %v6073_v61 = vsel %vm2953_vm1, %v5997_v47, 0.0  ;;  %v6264_v34 = vld [vmem:[%s18338_s10 + $0x188] sm:$0xff]  ;;  %v16288_v3 = vpop.f32.mrf.mxu1  ;;  %v6270_v35 = vld [vmem:[%s18338_s10 + $0x1b8] sm:$0xff] }
 0x3f2   :  { %v6194_v21 = vadd.f32 1.0, %v12485_v20  ;;  %11819 = vmatmul.mubr.msk.f32.gmra.mxu0 %vm94_vm0, %v6258_v41  ;;  %v6059_v50 = vadd.f32 %v6058_v18, %v6057_v57  ;;  %v6075_v12 = vsel %vm2953_vm1, %v5998_v45, 0.0  ;;  %18638 = vst [vmem:[#allocation20_spill] sm:$0xff] %v16288_v3  ;;  %v6266_v41 = vld [vmem:[%s18338_s10 + $0x198] sm:$0xff]  ;;  %v6269_v20 = vld [vmem:[%s18338_s10 + $0x1b0] sm:$0xff] }
 0x3f3   :  { %11821 = vmatprep.mubr.msk.f32.mxu0 %vm94_vm0, %v6259_v39  ;;  %v6072_v25 = vadd.f32 %v6071_v40, %v6070_v33  ;;  %v16298_v55 = vpop.f32.mrf.mxu1  ;;  %v6268_v39 = vld [vmem:[%s18338_s10 + $0x1a8] sm:$0xff]  ;;  %v6275_v40 = vld [vmem:[%s18338_s10 + $0x1e0] sm:$0xff] }
 0x3f4   :  { %12488 = vrcp.f32 %v6194_v21  ;;  %v6061_v14 = vadd.f32 %v6060_v60, %v6059_v50  ;;  %18639 = vst [vmem:[#allocation24_spill] sm:$0xff] %v16298_v55  ;;  %v6271_v21 = vld [vmem:[%s18338_s10 + $0x1c0] sm:$0xff]  ;;  %v6272_v33 = vld [vmem:[%s18338_s10 + $0x1c8] sm:$0xff]  ;;  %v6274_v50 = vld [vmem:[%s18338_s10 + $0x1d8] sm:$0xff] }
 0x3f5   :  { %v6074_v1 = vadd.f32 %v6073_v61, %v6072_v25  ;;  %v16308_v36 = vpop.f32.mrf.mxu1  ;;  %v6276_v60 = vld [vmem:[%s18338_s10 + $0x1e8] sm:$0xff]  ;;  %v6277_v25 = vld [vmem:[%s18338_s10 + $0x1f0] sm:$0xff]  ;;  %v6278_v61 = vld [vmem:[%s18338_s10 + $0x1f8] sm:$0xff] }
 0x3f6   :  { %11822 = vmatmul.mubr.msk.f32.gmra.mxu0 %vm94_vm0, %v6260_v59  ;;  %v10690_v30 = vmul.f32 -1.442695, %v6061_v14  ;;  %18640 = vst [vmem:[#allocation29_spill] sm:$0xff] %v16308_v36  ;;  %v6273_v59 = vld [vmem:[%s18338_s10 + $0x1d0] sm:$0xff] }
 0x3f7   :  { %11824 = vmatprep.mubr.msk.f32.mxu0 %vm94_vm0, %v6261_v26  ;;  %v6076_v48 = vadd.f32 %v6075_v12, %v6074_v1  ;;  %v16318_v57 = vpop.f32.mrf.mxu1 }
 0x3f8   :  { %12490 = vpow2.f32 %v10690_v30  ;;  %18641 = vst [vmem:[#allocation30_spill] sm:$0xff] %v16318_v57 }
 0x3f9   :  { %v10691_v10 = vmul.f32 -1.442695, %v6076_v48  ;;  %v16328_v45 = vpop.f32.mrf.mxu1  ;;  %v6280_v48 = vld [vmem:[%s18338_s10 + $0x208] sm:$0xff] }
 0x3fa   :  { %11825 = vmatmul.mubr.msk.f32.gmra.mxu0 %vm94_vm0, %v6262_v58  ;;  %18642 = vst [vmem:[#allocation33_spill] sm:$0xff] %v16328_v45  ;;  %v6279_v58 = vld [vmem:[%s18338_s10 + $0x200] sm:$0xff] }
 0x3fb   :  { %11827 = vmatprep.mubr.msk.f32.mxu0 %vm94_vm0, %v6263_v52  ;;  %12492 = vpow2.f32 %v10691_v10  ;;  %v16338_v26 = vpop.f32.mrf.mxu1 }
 0x3fc   :  { %18643 = vst [vmem:[#allocation27_spill] sm:$0xff] %v16338_v26 }
 0x3fd   :  { %v16348_v14 = vpop.f32.mrf.mxu1 }
 0x3fe   :  { %11828 = vmatmul.mubr.msk.f32.gmra.mxu0 %vm94_vm0, %v6264_v34  ;;  %v12487_v53 = vpop.eup %12486  ;;  %18644 = vst [vmem:[#allocation18_spill] sm:$0xff] %v16348_v14  ;;  %v6281_v34 = vld [vmem:[%s18338_s10 + $0x210] sm:$0xff] }
 0x3ff   :  { %11830 = vmatprep.mubr.msk.f32.mxu0 %vm94_vm0, %v6265_v16  ;;  %v16358_v12 = vpop.f32.mrf.mxu1  ;;  %v6282_v16 = vld [vmem:[%s18338_s10 + $0x218] sm:$0xff] }
 0x400   :  { %18645 = vst [vmem:[#allocation32_spill] sm:$0xff] %v16358_v12 }
 0x401   :  { %v12489_v11 = vpop.eup %12488  ;;  %v16365_v10 = vpop.f32.mrf.mxu1 }
 0x402   :  { %v7416_v22 = vcombine.low %v12487_v53, %v12489_v11  ;;  %11831 = vmatmul.mubr.msk.f32.gmra.mxu0 %vm94_vm0, %v6266_v41  ;;  %18646 = vst [vmem:[#allocation34_spill] sm:$0xff] %v16365_v10  ;;  %v6283_v41 = vld [vmem:[%s18338_s10 + $0x220] sm:$0xff] }
 0x403   :  { %11833 = vmatprep.mubr.msk.f32.mxu0 %vm94_vm0, %v6267_v44  ;;  %v16375_v53 = vpop.f32.mrf.mxu1  ;;  %v6284_v44 = vld [vmem:[%s18338_s10 + $0x228] sm:$0xff] }
 0x404   :  { %11903 = vmatprep.subr.mxu0 %v7416_v22  ;;  %18647 = vst [vmem:[#allocation23_spill] sm:$0xff] %v16375_v53 }
 0x405   :  { %11904 = vmatpush3.msra.mxu0 %v7416_v22  ;;  %v12491_v47 = vpop.eup %12490  ;;  %v16385_v11 = vpop.f32.mrf.mxu1  ;;  %v6285_v22 = vld [vmem:[%s18338_s10 + $0x230] sm:$0xff] }
 0x406   :  { %11834 = vmatmul.mubr.msk.f32.gmra.mxu0 %vm94_vm0, %v6268_v39  ;;  %v6191_v49 = vadd.f32 1.0, %v12491_v47  ;;  %18648 = vst [vmem:[#allocation31_spill] sm:$0xff] %v16385_v11  ;;  %v6286_v39 = vld [vmem:[%s18338_s10 + $0x238] sm:$0xff]  ;;  %v6287_v47 = vld [vmem:[%s18338_s10 + $0x240] sm:$0xff] }
 0x407   :  { %11836 = vmatprep.mubr.msk.f32.mxu0 %vm94_vm0, %v6269_v20  ;;  %v16395_v20 = vpop.f32.mrf.mxu1 }
 0x408   :  { %v12493_v27 = vpop.eup %12492  ;;  %12494 = vrcp.f32 %v6191_v49  ;;  %18649 = vst [vmem:[#allocation36_spill] sm:$0xff] %v16395_v20 }
 0x409   :  { %v6192_v18 = vadd.f32 1.0, %v12493_v27  ;;  %v16405_v49 = vpop.f32.mrf.mxu1  ;;  %v6290_v27 = vld [vmem:[%s18338_s10 + $0x258] sm:$0xff] }
 0x40a   :  { %11837 = vmatmul.mubr.msk.f32.gmra.mxu0 %vm94_vm0, %v6270_v35  ;;  %v6288_v35 = vld [vmem:[%s18338_s10 + $0x248] sm:$0xff]  ;;  %18650 = vst [vmem:[#allocation37_spill] sm:$0xff] %v16405_v49 }
 0x40b   :  { %11839 = vmatprep.mubr.msk.f32.mxu0 %vm94_vm0, %v6271_v21  ;;  %12496 = vrcp.f32 %v6192_v18  ;;  %v6289_v21 = vld [vmem:[%s18338_s10 + $0x250] sm:$0xff]  ;;  %v16415_v18 = vpop.f32.mrf.mxu1 }
 0x40c   :  { %18651 = vst [vmem:[#allocation28_spill] sm:$0xff] %v16415_v18 }
 0x40e   :  { %11840 = vmatmul.mubr.msk.f32.gmra.mxu0 %vm94_vm0, %v6272_v33  ;;  %v6291_v33 = vld [vmem:[%s18338_s10 + $0x260] sm:$0xff] }
 0x40f   :  { %11842 = vmatprep.mubr.msk.f32.mxu0 %vm94_vm0, %v6273_v59  ;;  %v6292_v59 = vld [vmem:[%s18338_s10 + $0x268] sm:$0xff] }
 0x412   :  { %11843 = vmatmul.mubr.msk.f32.gmra.mxu0 %vm94_vm0, %v6274_v50  ;;  %v16425_v50 = vpop.f32.mrf.mxu1 }
 0x413   :  { %11845 = vmatprep.mubr.msk.f32.mxu0 %vm94_vm0, %v6275_v40  ;;  %18652 = vst [vmem:[#allocation35_spill] sm:$0xff] %v16425_v50  ;;  %v6293_v40 = vld [vmem:[%s18338_s10 + $0x270] sm:$0xff] }
 0x415   :  { %v12495_v1 = vpop.eup %12494 }
 0x416   :  { %11846 = vmatmul.mubr.msk.f32.gmra.mxu0 %vm94_vm0, %v6276_v60  ;;  %v6294_v60 = vld [vmem:[%s18338_s10 + $0x278] sm:$0xff] }
 0x417   :  { %11848 = vmatprep.mubr.msk.f32.mxu0 %vm94_vm0, %v6277_v25  ;;  %v16435_v25 = vpop.f32.mrf.mxu1 }
 0x418   :  { %v12497_v30 = vpop.eup %12496  ;;  %18653 = vst [vmem:[#allocation38_spill] sm:$0xff] %v16435_v25 }
 0x419   :  { %v7415_v52 = vcombine.low %v12495_v1, %v12497_v30  ;;  %v6296_v1 = vld [vmem:[%s18338_s10 + $0x288] sm:$0xff]  ;;  %v6297_v30 = vld [vmem:[%s18338_s10 + $0x290] sm:$0xff] }
 0x41a   :  { %11849 = vmatmul.mubr.msk.f32.gmra.mxu0 %vm94_vm0, %v6278_v61  ;;  %v6295_v61 = vld [vmem:[%s18338_s10 + $0x280] sm:$0xff] }
 0x41b   :  { %11851 = vmatprep.mubr.msk.f32.mxu0 %vm94_vm0, %v6279_v58  ;;  %11905 = vmatprep.subr.mxu0 %v7415_v52  ;;  %v16445_v58 = vpop.f32.mrf.mxu1 }
 0x41c   :  { %11906 = vmatpush3.msra.mxu0 %v7415_v52  ;;  %18654 = vst [vmem:[#allocation40_spill] sm:$0xff] %v16445_v58  ;;  %v6298_v52 = vld [vmem:[%s18338_s10 + $0x298] sm:$0xff] }
 0x41e   :  { %11852 = vmatmul.mubr.msk.f32.gmra.mxu0 %vm94_vm0, %v6280_v48  ;;  %v16455_v48 = vpop.f32.mrf.mxu1 }
 0x41f   :  { %11854 = vmatprep.mubr.msk.f32.mxu0 %vm94_vm0, %v6281_v34  ;;  %18655 = vst [vmem:[#allocation3_spill] sm:$0xff] %v16455_v48  ;;  %v6299_v34 = vld [vmem:[%s18338_s10 + $0x2a0] sm:$0xff] }
 0x422   :  { %11855 = vmatmul.mubr.msk.f32.gmra.mxu0 %vm94_vm0, %v6282_v16  ;;  %v6300_v16 = vld [vmem:[%s18338_s10 + $0x2a8] sm:$0xff] }
 0x423   :  { %11857 = vmatprep.mubr.msk.f32.mxu0 %vm94_vm0, %v6283_v41  ;;  %v16465_v41 = vpop.f32.mrf.mxu1 }
 0x424   :  { %18656 = vst [vmem:[#allocation39_spill] sm:$0xff] %v16465_v41 }
 0x426   :  { %11858 = vmatmul.mubr.msk.f32.gmra.mxu0 %vm94_vm0, %v6284_v44  ;;  %v6301_v44 = vld [vmem:[%s18338_s10 + $0x2b0] sm:$0xff] }
 0x427   :  { %11860 = vmatprep.mubr.msk.f32.mxu0 %vm94_vm0, %v6285_v22  ;;  %v6302_v22 = vld [vmem:[%s18338_s10 + $0x2b8] sm:$0xff] }
 0x42a   :  { %11861 = vmatmul.mubr.msk.f32.gmra.mxu0 %vm94_vm0, %v6286_v39  ;;  %v16475_v39 = vpop.f32.mrf.mxu1 }
 0x42b   :  { %11863 = vmatprep.mubr.msk.f32.mxu0 %vm94_vm0, %v6287_v47  ;;  %18657 = vst [vmem:[#allocation41_spill] sm:$0xff] %v16475_v39  ;;  %v6303_v47 = vld [vmem:[%s18338_s10 + $0x2c0] sm:$0xff] }
 0x42e   :  { %11864 = vmatmul.mubr.msk.f32.gmra.mxu0 %vm94_vm0, %v6288_v35  ;;  %v6304_v35 = vld [vmem:[%s18338_s10 + $0x2c8] sm:$0xff] }
 0x42f   :  { %11866 = vmatprep.mubr.msk.f32.mxu0 %vm94_vm0, %v6289_v21  ;;  %v16485_v21 = vpop.f32.mrf.mxu1 }
 0x430   :  { %18658 = vst [vmem:[#allocation42_spill] sm:$0xff] %v16485_v21 }
 0x432   :  { %11867 = vmatmul.mubr.msk.f32.gmra.mxu0 %vm94_vm0, %v6290_v27  ;;  %v6305_v27 = vld [vmem:[%s18338_s10 + $0x2d0] sm:$0xff] }
 0x433   :  { %11869 = vmatprep.mubr.msk.f32.mxu0 %vm94_vm0, %v6291_v33  ;;  %v6306_v33 = vld [vmem:[%s18338_s10 + $0x2d8] sm:$0xff] }
 0x436   :  { %11870 = vmatmul.mubr.msk.f32.gmra.mxu0 %vm94_vm0, %v6292_v59  ;;  %v16495_v59 = vpop.f32.mrf.mxu1 }
 0x437   :  { %11872 = vmatprep.mubr.msk.f32.mxu0 %vm94_vm0, %v6293_v40  ;;  %18659 = vst [vmem:[#allocation43_spill] sm:$0xff] %v16495_v59  ;;  %v6307_v40 = vld [vmem:[%s18338_s10 + $0x2e0] sm:$0xff] }
 0x43a   :  { %11873 = vmatmul.mubr.msk.f32.gmra.mxu0 %vm94_vm0, %v6294_v60  ;;  %v6308_v60 = vld [vmem:[%s18338_s10 + $0x2e8] sm:$0xff] }
 0x43b   :  { %11875 = vmatprep.mubr.msk.f32.mxu0 %vm94_vm0, %v6295_v61  ;;  %v16505_v61 = vpop.f32.mrf.mxu1 }
 0x43c   :  { %18660 = vst [vmem:[#allocation7_spill] sm:$0xff] %v16505_v61 }
 0x43e   :  { %11876 = vmatmul.mubr.msk.f32.gmra.mxu0 %vm94_vm0, %v6296_v1  ;;  %v6309_v1 = vld [vmem:[%s18338_s10 + $0x2f0] sm:$0xff] }
 0x43f   :  { %11878 = vmatprep.mubr.msk.f32.mxu0 %vm94_vm0, %v6297_v30  ;;  %v6310_v30 = vld [vmem:[%s18338_s10 + $0x2f8] sm:$0xff] }
 0x442   :  { %11879 = vmatmul.mubr.msk.f32.gmra.mxu0 %vm94_vm0, %v6298_v52  ;;  %v16515_v52 = vpop.f32.mrf.mxu1 }
 0x443   :  { %11881 = vmatprep.mubr.msk.f32.mxu0 %vm94_vm0, %v6299_v34  ;;  %18661 = vst [vmem:[#allocation5_spill] sm:$0xff] %v16515_v52  ;;  %v7311_v34 = vld [vmem:[%s18339_s11] sm:$0xff] }
 0x446   :  { %11882 = vmatmul.mubr.msk.f32.gmra.mxu0 %vm94_vm0, %v6300_v16 }
 0x447   :  { %11884 = vmatprep.mubr.msk.f32.mxu0 %vm94_vm0, %v6301_v44  ;;  %v7312_v44 = vld [vmem:[%s18339_s11 + $0x8] sm:$0xff] }
 0x44a   :  { %11885 = vmatmul.mubr.msk.f32.gmra.mxu0 %vm94_vm0, %v6302_v22  ;;  %v16527_v22 = vpop.f32.mrf.mxu1 }
 0x44b   :  { %11887 = vmatprep.mubr.msk.f32.mxu0 %vm94_vm0, %v6303_v47  ;;  %18662 = vst [vmem:[#allocation6_spill] sm:$0xff] %v16527_v22  ;;  %v7313_v47 = vld [vmem:[%s18339_s11 + $0x10] sm:$0xff] }
 0x44e   :  { %11888 = vmatmul.mubr.msk.f32.gmra.mxu0 %vm94_vm0, %v6304_v35 }
 0x44f   :  { %11890 = vmatprep.mubr.msk.f32.mxu0 %vm94_vm0, %v6305_v27 }
 0x452   :  { %11891 = vmatmul.mubr.msk.f32.gmra.mxu0 %vm94_vm0, %v6306_v33  ;;  %v7314_v33 = vld [vmem:[%s18339_s11 + $0x18] sm:$0xff] }
 0x453   :  { %11893 = vmatprep.mubr.msk.f32.mxu0 %vm94_vm0, %v6307_v40  ;;  %v16541_v40 = vpop.f32.mrf.mxu1 }
 0x454   :  { %18663 = vst [vmem:[#allocation4_spill] sm:$0xff] %v16541_v40 }
 0x456   :  { %11894 = vmatmul.mubr.msk.f32.gmra.mxu0 %vm94_vm0, %v6308_v60  ;;  %v7315_v60 = vld [vmem:[%s18339_s11 + $0x20] sm:$0xff] }
 0x457   :  { %11896 = vmatprep.mubr.msk.f32.mxu0 %vm94_vm0, %v6309_v1 }
 0x45a   :  { %11897 = vmatmul.mubr.msk.f32.gmra.mxu0 %vm94_vm0, %v6310_v30 }
 0x45b   :  { %11907 = vmatprep.mubr.msk.f32.mxu0 %vm94_vm0, %v7311_v34  ;;  %v7316_v34 = vld [vmem:[%s18339_s11 + $0x28] sm:$0xff] }
 0x45d   :  { %v16522_v16 = vpop.f32.mrf.mxu0 }
 0x45e   :  { %11908 = vmatmul.mubr.msk.f32.vlgmr.msra.gmra.mxu0 %vm94_vm0, %v7312_v44  ;;  %v16555_v44 = vpop.f32.mrf.mxu1 }
 0x45f   :  { %v16532_v35 = vpop.f32.mrf.mxu0  ;;  %11910 = vmatprep.mubr.msk.f32.mxu0 %vm94_vm0, %v7313_v47  ;;  %18664 = vst [vmem:[#allocation2_spill] sm:$0xff] %v16555_v44  ;;  %v7317_v47 = vld [vmem:[%s18339_s11 + $0x30] sm:$0xff]  ;;  %v7319_v44 = vld [vmem:[%s18339_s11 + $0x40] sm:$0xff] }
 0x460   :  { %v16569_v40 = vpop.f32.mrf.mxu1 }
 0x461   :  { %v16536_v27 = vpop.f32.mrf.mxu0  ;;  %18665 = vst [vmem:[#allocation44_spill] sm:$0xff] %v16569_v40  ;;  %v7321_v40 = vld [vmem:[%s18339_s11 + $0x50] sm:$0xff] }
 0x462   :  { %11911 = vmatmul.mubr.msk.f32.gmra.mxu0 %vm94_vm0, %v7314_v33  ;;  %v16583_v52 = vpop.f32.mrf.mxu1 }
 0x463   :  { %v16546_v1 = vpop.f32.mrf.mxu0  ;;  %11913 = vmatprep.mubr.msk.f32.mxu0 %vm94_vm0, %v7315_v60  ;;  %v7318_v60 = vld [vmem:[%s18339_s11 + $0x38] sm:$0xff]  ;;  %18666 = vst [vmem:[#allocation45_spill] sm:$0xff] %v16583_v52  ;;  %v7323_v52 = vld [vmem:[%s18339_s11 + $0x60] sm:$0xff] }
 0x464   :  { %v16597_v59 = vpop.f32.mrf.mxu1 }
 0x465   :  { %v16550_v30 = vpop.f32.mrf.mxu0  ;;  %18667 = vst [vmem:[#allocation46_spill] sm:$0xff] %v16597_v59  ;;  %v7325_v59 = vld [vmem:[%s18339_s11 + $0x70] sm:$0xff] }
 0x466   :  { %11914 = vmatmul.mubr.msk.f32.gmra.mxu0 %vm94_vm0, %v7316_v34  ;;  %v16611_v39 = vpop.f32.mrf.mxu1 }
 0x467   :  { %v16560_v37 = vpop.f32.mrf.mxu0  ;;  %11916 = vmatprep.mubr.msk.f32.mxu0 %vm94_vm0, %v7317_v47  ;;  %v7320_v47 = vld [vmem:[%s18339_s11 + $0x48] sm:$0xff]  ;;  %18669 = vst [vmem:[#allocation48_spill] sm:$0xff] %v16611_v39  ;;  %v7327_v39 = vld [vmem:[%s18339_s11 + $0x80] sm:$0xff] }
 0x468   :  { %v16625_v48 = vpop.f32.mrf.mxu1 }
 0x469   :  { %v16564_v33 = vpop.f32.mrf.mxu0  ;;  %18672 = vst [vmem:[#allocation51_spill] sm:$0xff] %v16625_v48  ;;  %v7329_v48 = vld [vmem:[%s18339_s11 + $0x90] sm:$0xff] }
 0x46a   :  { %11917 = vmatmul.mubr.msk.f32.gmra.mxu0 %vm94_vm0, %v7318_v60  ;;  %v16639_v25 = vpop.f32.mrf.mxu1 }
 0x46b   :  { %v16574_v22 = vpop.f32.mrf.mxu0  ;;  %11919 = vmatprep.mubr.msk.f32.mxu0 %vm94_vm0, %v7319_v44  ;;  %v7322_v44 = vld [vmem:[%s18339_s11 + $0x58] sm:$0xff]  ;;  %18675 = vst [vmem:[#allocation54_spill] sm:$0xff] %v16639_v25  ;;  %v7331_v25 = vld [vmem:[%s18339_s11 + $0xa0] sm:$0xff] }
 0x46c   :  { %v16653_v18 = vpop.f32.mrf.mxu1 }
 0x46d   :  { %v16578_v34 = vpop.f32.mrf.mxu0  ;;  %18678 = vst [vmem:[#allocation57_spill] sm:$0xff] %v16653_v18  ;;  %v7333_v18 = vld [vmem:[%s18339_s11 + $0xb0] sm:$0xff] }
 0x46e   :  { %11920 = vmatmul.mubr.msk.f32.gmra.mxu0 %vm94_vm0, %v7320_v47  ;;  %v16667_v20 = vpop.f32.mrf.mxu1 }
 0x46f   :  { %v16588_v61 = vpop.f32.mrf.mxu0  ;;  %11922 = vmatprep.mubr.msk.f32.mxu0 %vm94_vm0, %v7321_v40  ;;  %v7324_v40 = vld [vmem:[%s18339_s11 + $0x68] sm:$0xff]  ;;  %18681 = vst [vmem:[#allocation60_spill] sm:$0xff] %v16667_v20  ;;  %v7335_v20 = vld [vmem:[%s18339_s11 + $0xc0] sm:$0xff] }
 0x470   :  { %v16681_v53 = vpop.f32.mrf.mxu1 }
 0x471   :  { %v16592_v60 = vpop.f32.mrf.mxu0  ;;  %18684 = vst [vmem:[#allocation63_spill] sm:$0xff] %v16681_v53  ;;  %v7337_v53 = vld [vmem:[%s18339_s11 + $0xd0] sm:$0xff] }
 0x472   :  { %11923 = vmatmul.mubr.msk.f32.gmra.mxu0 %vm94_vm0, %v7322_v44  ;;  %v16695_v12 = vpop.f32.mrf.mxu1 }
 0x473   :  { %v16602_v21 = vpop.f32.mrf.mxu0  ;;  %11925 = vmatprep.mubr.msk.f32.mxu0 %vm94_vm0, %v7323_v52  ;;  %v7326_v52 = vld [vmem:[%s18339_s11 + $0x78] sm:$0xff]  ;;  %18687 = vst [vmem:[#allocation66_spill] sm:$0xff] %v16695_v12  ;;  %v7339_v12 = vld [vmem:[%s18339_s11 + $0xe0] sm:$0xff] }
 0x474   :  { %v16709_v26 = vpop.f32.mrf.mxu1 }
 0x475   :  { %v16606_v47 = vpop.f32.mrf.mxu0  ;;  %18690 = vst [vmem:[#allocation69_spill] sm:$0xff] %v16709_v26  ;;  %v7341_v26 = vld [vmem:[%s18339_s11 + $0xf0] sm:$0xff] }
 0x476   :  { %18668 = vst [vmem:[#allocation47_spill] sm:$0xff] %v16606_v47  ;;  %11926 = vmatmul.mubr.msk.f32.gmra.mxu0 %vm94_vm0, %v7324_v40 }
 0x477   :  { %v16616_v41 = vpop.f32.mrf.mxu0  ;;  %11928 = vmatprep.mubr.msk.f32.mxu0 %vm94_vm0, %v7325_v59  ;;  %v7328_v59 = vld [vmem:[%s18339_s11 + $0x88] sm:$0xff] }
 0x478   :  { %18670 = vst [vmem:[#allocation49_spill] sm:$0xff] %v16616_v41 }
 0x479   :  { %v16620_v44 = vpop.f32.mrf.mxu0 }
 0x47a   :  { %18671 = vst [vmem:[#allocation50_spill] sm:$0xff] %v16620_v44  ;;  %11929 = vmatmul.mubr.msk.f32.gmra.mxu0 %vm94_vm0, %v7326_v52 }
 0x47b   :  { %v16630_v58 = vpop.f32.mrf.mxu0  ;;  %11931 = vmatprep.mubr.msk.f32.mxu0 %vm94_vm0, %v7327_v39  ;;  %v7330_v39 = vld [vmem:[%s18339_s11 + $0x98] sm:$0xff] }
 0x47c   :  { %18673 = vst [vmem:[#allocation52_spill] sm:$0xff] %v16630_v58 }
 0x47d   :  { %v16634_v40 = vpop.f32.mrf.mxu0 }
 0x47e   :  { %18674 = vst [vmem:[#allocation53_spill] sm:$0xff] %v16634_v40  ;;  %11932 = vmatmul.mubr.msk.f32.gmra.mxu0 %vm94_vm0, %v7328_v59 }
 0x47f   :  { %v16644_v50 = vpop.f32.mrf.mxu0  ;;  %11934 = vmatprep.mubr.msk.f32.mxu0 %vm94_vm0, %v7329_v48  ;;  %v7332_v48 = vld [vmem:[%s18339_s11 + $0xa8] sm:$0xff] }
 0x480   :  { %18676 = vst [vmem:[#allocation55_spill] sm:$0xff] %v16644_v50  ;;  %v7405_v50 = vld [vmem:[%s18339_s11 + $0x2f0] sm:$0xff] }
 0x481   :  { %v16648_v52 = vpop.f32.mrf.mxu0 }
 0x482   :  { %18677 = vst [vmem:[#allocation56_spill] sm:$0xff] %v16648_v52  ;;  %11935 = vmatmul.mubr.msk.f32.gmra.mxu0 %vm94_vm0, %v7330_v39 }
 0x483   :  { %v16658_v49 = vpop.f32.mrf.mxu0  ;;  %11937 = vmatprep.mubr.msk.f32.mxu0 %vm94_vm0, %v7331_v25  ;;  %v7334_v25 = vld [vmem:[%s18339_s11 + $0xb8] sm:$0xff] }
 0x484   :  { %18679 = vst [vmem:[#allocation58_spill] sm:$0xff] %v16658_v49 }
 0x485   :  { %v16662_v59 = vpop.f32.mrf.mxu0 }
 0x486   :  { %18680 = vst [vmem:[#allocation59_spill] sm:$0xff] %v16662_v59  ;;  %11938 = vmatmul.mubr.msk.f32.gmra.mxu0 %vm94_vm0, %v7332_v48 }
 0x487   :  { %v16672_v11 = vpop.f32.mrf.mxu0  ;;  %11940 = vmatprep.mubr.msk.f32.mxu0 %vm94_vm0, %v7333_v18  ;;  %v7336_v18 = vld [vmem:[%s18339_s11 + $0xc8] sm:$0xff] }
 0x488   :  { %18682 = vst [vmem:[#allocation61_spill] sm:$0xff] %v16672_v11 }
 0x489   :  { %v16676_v39 = vpop.f32.mrf.mxu0 }
 0x48a   :  { %18683 = vst [vmem:[#allocation62_spill] sm:$0xff] %v16676_v39  ;;  %11941 = vmatmul.mubr.msk.f32.gmra.mxu0 %vm94_vm0, %v7334_v25 }
 0x48b   :  { %v16686_v10 = vpop.f32.mrf.mxu0  ;;  %11943 = vmatprep.mubr.msk.f32.mxu0 %vm94_vm0, %v7335_v20  ;;  %v7338_v20 = vld [vmem:[%s18339_s11 + $0xd8] sm:$0xff] }
 0x48c   :  { %18685 = vst [vmem:[#allocation64_spill] sm:$0xff] %v16686_v10 }
 0x48d   :  { %v16690_v48 = vpop.f32.mrf.mxu0 }
 0x48e   :  { %18686 = vst [vmem:[#allocation65_spill] sm:$0xff] %v16690_v48  ;;  %11944 = vmatmul.mubr.msk.f32.gmra.mxu0 %vm94_vm0, %v7336_v18  ;;  %v16721_v18 = vpop.f32.mrf.mxu1  ;;  %v7395_v48 = vld [vmem:[%s18339_s11 + $0x2a0] sm:$0xff] }
 0x48f   :  { %v16700_v14 = vpop.f32.mrf.mxu0  ;;  %11946 = vmatprep.mubr.msk.f32.mxu0 %vm94_vm0, %v7337_v53  ;;  %v7340_v53 = vld [vmem:[%s18339_s11 + $0xe8] sm:$0xff]  ;;  %18692 = vst [vmem:[#allocation71_spill] sm:$0xff] %v16721_v18  ;;  %v7343_v18 = vld [vmem:[%s18339_s11 + $0x100] sm:$0xff] }
 0x490   :  { %18688 = vst [vmem:[#allocation67_spill] sm:$0xff] %v16700_v14 }
 0x491   :  { %v16704_v25 = vpop.f32.mrf.mxu0 }
 0x492   :  { %18689 = vst [vmem:[#allocation68_spill] sm:$0xff] %v16704_v25  ;;  %11947 = vmatmul.mubr.msk.f32.gmra.mxu0 %vm94_vm0, %v7338_v20  ;;  %v16735_v20 = vpop.f32.mrf.mxu1 }
 0x493   :  { %v16714_v45 = vpop.f32.mrf.mxu0  ;;  %11949 = vmatprep.mubr.msk.f32.mxu0 %vm94_vm0, %v7339_v12  ;;  %v7342_v12 = vld [vmem:[%s18339_s11 + $0xf8] sm:$0xff]  ;;  %18695 = vst [vmem:[#allocation74_spill] sm:$0xff] %v16735_v20  ;;  %v7345_v20 = vld [vmem:[%s18339_s11 + $0x110] sm:$0xff] }
 0x494   :  { %18691 = vst [vmem:[#allocation70_spill] sm:$0xff] %v16714_v45 }
 0x495   :  { %v16723_v57 = vpop.f32.mrf.mxu0 }
 0x496   :  { %18693 = vst [vmem:[#allocation72_spill] sm:$0xff] %v16723_v57  ;;  %11950 = vmatmul.mubr.msk.f32.gmra.mxu0 %vm94_vm0, %v7340_v53  ;;  %v16749_v53 = vpop.f32.mrf.mxu1 }
 0x497   :  { %v16729_v36 = vpop.f32.mrf.mxu0  ;;  %11952 = vmatprep.mubr.msk.f32.mxu0 %vm94_vm0, %v7341_v26  ;;  %v7344_v26 = vld [vmem:[%s18339_s11 + $0x108] sm:$0xff]  ;;  %18698 = vst [vmem:[#allocation77_spill] sm:$0xff] %v16749_v53  ;;  %v7347_v53 = vld [vmem:[%s18339_s11 + $0x120] sm:$0xff] }
 0x498   :  { %18694 = vst [vmem:[#allocation73_spill] sm:$0xff] %v16729_v36 }
 0x499   :  { %v16737_v55 = vpop.f32.mrf.mxu0 }
 0x49a   :  { %18696 = vst [vmem:[#allocation75_spill] sm:$0xff] %v16737_v55  ;;  %11953 = vmatmul.mubr.msk.f32.gmra.mxu0 %vm94_vm0, %v7342_v12  ;;  %v16763_v12 = vpop.f32.mrf.mxu1 }
 0x49b   :  { %v16743_v57 = vpop.f32.mrf.mxu0  ;;  %11955 = vmatprep.mubr.msk.f32.mxu0 %vm94_vm0, %v7343_v18  ;;  %v7346_v18 = vld [vmem:[%s18339_s11 + $0x118] sm:$0xff]  ;;  %18701 = vst [vmem:[#allocation80_spill] sm:$0xff] %v16763_v12  ;;  %v7349_v12 = vld [vmem:[%s18339_s11 + $0x130] sm:$0xff] }
 0x49c   :  { %18697 = vst [vmem:[#allocation76_spill] sm:$0xff] %v16743_v57 }
 0x49d   :  { %v16751_v36 = vpop.f32.mrf.mxu0 }
 0x49e   :  { %18699 = vst [vmem:[#allocation78_spill] sm:$0xff] %v16751_v36  ;;  %11956 = vmatmul.mubr.msk.f32.gmra.mxu0 %vm94_vm0, %v7344_v26  ;;  %v16777_v26 = vpop.f32.mrf.mxu1 }
 0x49f   :  { %v16757_v55 = vpop.f32.mrf.mxu0  ;;  %11958 = vmatprep.mubr.msk.f32.mxu0 %vm94_vm0, %v7345_v20  ;;  %v7348_v20 = vld [vmem:[%s18339_s11 + $0x128] sm:$0xff]  ;;  %18704 = vst [vmem:[#allocation83_spill] sm:$0xff] %v16777_v26  ;;  %v7351_v26 = vld [vmem:[%s18339_s11 + $0x140] sm:$0xff] }
 0x4a0   :  { %18700 = vst [vmem:[#allocation79_spill] sm:$0xff] %v16757_v55 }
 0x4a1   :  { %v16765_v57 = vpop.f32.mrf.mxu0 }
 0x4a2   :  { %18702 = vst [vmem:[#allocation81_spill] sm:$0xff] %v16765_v57  ;;  %11959 = vmatmul.mubr.msk.f32.gmra.mxu0 %vm94_vm0, %v7346_v18  ;;  %v16791_v18 = vpop.f32.mrf.mxu1 }
 0x4a3   :  { %v16771_v36 = vpop.f32.mrf.mxu0  ;;  %11961 = vmatprep.mubr.msk.f32.mxu0 %vm94_vm0, %v7347_v53  ;;  %v7350_v53 = vld [vmem:[%s18339_s11 + $0x138] sm:$0xff]  ;;  %18707 = vst [vmem:[#allocation86_spill] sm:$0xff] %v16791_v18  ;;  %v7353_v18 = vld [vmem:[%s18339_s11 + $0x150] sm:$0xff] }
 0x4a4   :  { %18703 = vst [vmem:[#allocation82_spill] sm:$0xff] %v16771_v36 }
 0x4a5   :  { %v16779_v55 = vpop.f32.mrf.mxu0 }
 0x4a6   :  { %18705 = vst [vmem:[#allocation84_spill] sm:$0xff] %v16779_v55  ;;  %11962 = vmatmul.mubr.msk.f32.gmra.mxu0 %vm94_vm0, %v7348_v20  ;;  %v16805_v20 = vpop.f32.mrf.mxu1 }
 0x4a7   :  { %v16785_v57 = vpop.f32.mrf.mxu0  ;;  %11964 = vmatprep.mubr.msk.f32.mxu0 %vm94_vm0, %v7349_v12  ;;  %v7352_v12 = vld [vmem:[%s18339_s11 + $0x148] sm:$0xff]  ;;  %18710 = vst [vmem:[#allocation89_spill] sm:$0xff] %v16805_v20  ;;  %v7355_v20 = vld [vmem:[%s18339_s11 + $0x160] sm:$0xff] }
 0x4a8   :  { %18706 = vst [vmem:[#allocation85_spill] sm:$0xff] %v16785_v57 }
 0x4a9   :  { %v16793_v36 = vpop.f32.mrf.mxu0 }
 0x4aa   :  { %18708 = vst [vmem:[#allocation87_spill] sm:$0xff] %v16793_v36  ;;  %11965 = vmatmul.mubr.msk.f32.gmra.mxu0 %vm94_vm0, %v7350_v53  ;;  %v16819_v53 = vpop.f32.mrf.mxu1 }
 0x4ab   :  { %v16799_v55 = vpop.f32.mrf.mxu0  ;;  %11967 = vmatprep.mubr.msk.f32.mxu0 %vm94_vm0, %v7351_v26  ;;  %v7354_v26 = vld [vmem:[%s18339_s11 + $0x158] sm:$0xff]  ;;  %18713 = vst [vmem:[#allocation92_spill] sm:$0xff] %v16819_v53  ;;  %v7357_v53 = vld [vmem:[%s18339_s11 + $0x170] sm:$0xff] }
 0x4ac   :  { %18709 = vst [vmem:[#allocation88_spill] sm:$0xff] %v16799_v55 }
 0x4ae   :  { %v16810_v36 = vpop.f32.mrf.mxu0  ;;  %11968 = vmatmul.mubr.msk.f32.gmra.mxu0 %vm94_vm0, %v7352_v12  ;;  %v16833_v12 = vpop.f32.mrf.mxu1 }
 0x4af   :  { %18711 = vst [vmem:[#allocation90_spill] sm:$0xff] %v16810_v36  ;;  %11970 = vmatprep.mubr.msk.f32.mxu0 %vm94_vm0, %v7353_v18  ;;  %v7356_v18 = vld [vmem:[%s18339_s11 + $0x168] sm:$0xff]  ;;  %18716 = vst [vmem:[#allocation95_spill] sm:$0xff] %v16833_v12  ;;  %v7359_v12 = vld [vmem:[%s18339_s11 + $0x180] sm:$0xff] }
 0x4b0   :  { %v16813_v57 = vpop.f32.mrf.mxu0 }
 0x4b1   :  { %18712 = vst [vmem:[#allocation91_spill] sm:$0xff] %v16813_v57 }
 0x4b2   :  { %v16824_v55 = vpop.f32.mrf.mxu0  ;;  %11971 = vmatmul.mubr.msk.f32.gmra.mxu0 %vm94_vm0, %v7354_v26  ;;  %v16847_v26 = vpop.f32.mrf.mxu1 }
 0x4b3   :  { %18714 = vst [vmem:[#allocation93_spill] sm:$0xff] %v16824_v55  ;;  %11973 = vmatprep.mubr.msk.f32.mxu0 %vm94_vm0, %v7355_v20  ;;  %v7358_v20 = vld [vmem:[%s18339_s11 + $0x178] sm:$0xff]  ;;  %18719 = vst [vmem:[#allocation98_spill] sm:$0xff] %v16847_v26  ;;  %v7361_v26 = vld [vmem:[%s18339_s11 + $0x190] sm:$0xff] }
 0x4b4   :  { %v16827_v36 = vpop.f32.mrf.mxu0 }
 0x4b5   :  { %18715 = vst [vmem:[#allocation94_spill] sm:$0xff] %v16827_v36 }
 0x4b6   :  { %v16838_v57 = vpop.f32.mrf.mxu0  ;;  %11974 = vmatmul.mubr.msk.f32.gmra.mxu0 %vm94_vm0, %v7356_v18  ;;  %v16861_v18 = vpop.f32.mrf.mxu1 }
 0x4b7   :  { %18717 = vst [vmem:[#allocation96_spill] sm:$0xff] %v16838_v57  ;;  %11976 = vmatprep.mubr.msk.f32.mxu0 %vm94_vm0, %v7357_v53  ;;  %v7360_v53 = vld [vmem:[%s18339_s11 + $0x188] sm:$0xff]  ;;  %18722 = vst [vmem:[#allocation101_spill] sm:$0xff] %v16861_v18  ;;  %v7363_v18 = vld [vmem:[%s18339_s11 + $0x1a0] sm:$0xff] }
 0x4b8   :  { %v16841_v55 = vpop.f32.mrf.mxu0 }
 0x4b9   :  { %18718 = vst [vmem:[#allocation97_spill] sm:$0xff] %v16841_v55 }
 0x4ba   :  { %v16852_v36 = vpop.f32.mrf.mxu0  ;;  %11977 = vmatmul.mubr.msk.f32.gmra.mxu0 %vm94_vm0, %v7358_v20  ;;  %v16875_v20 = vpop.f32.mrf.mxu1 }
 0x4bb   :  { %18720 = vst [vmem:[#allocation99_spill] sm:$0xff] %v16852_v36  ;;  %11979 = vmatprep.mubr.msk.f32.mxu0 %vm94_vm0, %v7359_v12  ;;  %v7362_v12 = vld [vmem:[%s18339_s11 + $0x198] sm:$0xff]  ;;  %18725 = vst [vmem:[#allocation104_spill] sm:$0xff] %v16875_v20  ;;  %v7365_v20 = vld [vmem:[%s18339_s11 + $0x1b0] sm:$0xff] }
 0x4bc   :  { %v16855_v57 = vpop.f32.mrf.mxu0 }
 0x4bd   :  { %18721 = vst [vmem:[#allocation100_spill] sm:$0xff] %v16855_v57 }
 0x4be   :  { %v16866_v55 = vpop.f32.mrf.mxu0  ;;  %11980 = vmatmul.mubr.msk.f32.gmra.mxu0 %vm94_vm0, %v7360_v53  ;;  %v16889_v53 = vpop.f32.mrf.mxu1 }
 0x4bf   :  { %18723 = vst [vmem:[#allocation102_spill] sm:$0xff] %v16866_v55  ;;  %11982 = vmatprep.mubr.msk.f32.mxu0 %vm94_vm0, %v7361_v26  ;;  %v7364_v26 = vld [vmem:[%s18339_s11 + $0x1a8] sm:$0xff]  ;;  %18728 = vst [vmem:[#allocation107_spill] sm:$0xff] %v16889_v53  ;;  %v7367_v53 = vld [vmem:[%s18339_s11 + $0x1c0] sm:$0xff] }
 0x4c0   :  { %v16869_v36 = vpop.f32.mrf.mxu0 }
 0x4c1   :  { %18724 = vst [vmem:[#allocation103_spill] sm:$0xff] %v16869_v36 }
 0x4c2   :  { %v16880_v57 = vpop.f32.mrf.mxu0  ;;  %11983 = vmatmul.mubr.msk.f32.gmra.mxu0 %vm94_vm0, %v7362_v12  ;;  %v16903_v12 = vpop.f32.mrf.mxu1 }
 0x4c3   :  { %18726 = vst [vmem:[#allocation105_spill] sm:$0xff] %v16880_v57  ;;  %11985 = vmatprep.mubr.msk.f32.mxu0 %vm94_vm0, %v7363_v18  ;;  %v7366_v18 = vld [vmem:[%s18339_s11 + $0x1b8] sm:$0xff]  ;;  %18731 = vst [vmem:[#allocation110_spill] sm:$0xff] %v16903_v12  ;;  %v7369_v12 = vld [vmem:[%s18339_s11 + $0x1d0] sm:$0xff] }
 0x4c4   :  { %v16883_v55 = vpop.f32.mrf.mxu0 }
 0x4c5   :  { %18727 = vst [vmem:[#allocation106_spill] sm:$0xff] %v16883_v55 }
 0x4c6   :  { %v16894_v36 = vpop.f32.mrf.mxu0  ;;  %11986 = vmatmul.mubr.msk.f32.gmra.mxu0 %vm94_vm0, %v7364_v26  ;;  %v16917_v26 = vpop.f32.mrf.mxu1 }
 0x4c7   :  { %18729 = vst [vmem:[#allocation108_spill] sm:$0xff] %v16894_v36  ;;  %11988 = vmatprep.mubr.msk.f32.mxu0 %vm94_vm0, %v7365_v20  ;;  %v7368_v20 = vld [vmem:[%s18339_s11 + $0x1c8] sm:$0xff]  ;;  %18734 = vst [vmem:[#allocation113_spill] sm:$0xff] %v16917_v26  ;;  %v7371_v26 = vld [vmem:[%s18339_s11 + $0x1e0] sm:$0xff] }
 0x4c8   :  { %v16897_v57 = vpop.f32.mrf.mxu0 }
 0x4c9   :  { %18730 = vst [vmem:[#allocation109_spill] sm:$0xff] %v16897_v57 }
 0x4ca   :  { %v16908_v55 = vpop.f32.mrf.mxu0  ;;  %11989 = vmatmul.mubr.msk.f32.gmra.mxu0 %vm94_vm0, %v7366_v18  ;;  %v16931_v18 = vpop.f32.mrf.mxu1 }
 0x4cb   :  { %18732 = vst [vmem:[#allocation111_spill] sm:$0xff] %v16908_v55  ;;  %11991 = vmatprep.mubr.msk.f32.mxu0 %vm94_vm0, %v7367_v53  ;;  %v7370_v53 = vld [vmem:[%s18339_s11 + $0x1d8] sm:$0xff] }
 0x4cc   :  { %v16911_v36 = vpop.f32.mrf.mxu0 }
 0x4cd   :  { %18733 = vst [vmem:[#allocation112_spill] sm:$0xff] %v16911_v36 }
 0x4ce   :  { %v16922_v57 = vpop.f32.mrf.mxu0  ;;  %11992 = vmatmul.mubr.msk.f32.gmra.mxu0 %vm94_vm0, %v7368_v20  ;;  %v16945_v20 = vpop.f32.mrf.mxu1 }
 0x4cf   :  { %18735 = vst [vmem:[#allocation114_spill] sm:$0xff] %v16922_v57  ;;  %11994 = vmatprep.mubr.msk.f32.mxu0 %vm94_vm0, %v7369_v12  ;;  %v7372_v12 = vld [vmem:[%s18339_s11 + $0x1e8] sm:$0xff]  ;;  %18739 = vst [vmem:[#allocation118_spill] sm:$0xff] %v16945_v20  ;;  %v7375_v20 = vld [vmem:[%s18339_s11 + $0x200] sm:$0xff] }
 0x4d0   :  { %v16925_v55 = vpop.f32.mrf.mxu0 }
 0x4d1   :  { %18736 = vst [vmem:[#allocation115_spill] sm:$0xff] %v16925_v55  ;;  %v7373_v55 = vld [vmem:[%s18339_s11 + $0x1f0] sm:$0xff] }
 0x4d2   :  { %v16936_v36 = vpop.f32.mrf.mxu0  ;;  %11995 = vmatmul.mubr.msk.f32.gmra.mxu0 %vm94_vm0, %v7370_v53  ;;  %v16959_v53 = vpop.f32.mrf.mxu1 }
 0x4d3   :  { %18737 = vst [vmem:[#allocation116_spill] sm:$0xff] %v16936_v36  ;;  %11997 = vmatprep.mubr.msk.f32.mxu0 %vm94_vm0, %v7371_v26  ;;  %v7374_v26 = vld [vmem:[%s18339_s11 + $0x1f8] sm:$0xff] }
 0x4d4   :  { %v16939_v57 = vpop.f32.mrf.mxu0 }
 0x4d5   :  { %18738 = vst [vmem:[#allocation117_spill] sm:$0xff] %v16939_v57 }
 0x4d6   :  { %v16950_v45 = vpop.f32.mrf.mxu0  ;;  %11998 = vmatmul.mubr.msk.f32.gmra.mxu0 %vm94_vm0, %v7372_v12  ;;  %v16973_v12 = vpop.f32.mrf.mxu1 }
 0x4d7   :  { %18740 = vst [vmem:[#allocation119_spill] sm:$0xff] %v16950_v45  ;;  %12000 = vmatprep.mubr.msk.f32.mxu0 %vm94_vm0, %v7373_v55  ;;  %v7376_v55 = vld [vmem:[%s18339_s11 + $0x208] sm:$0xff]  ;;  %18744 = vst [vmem:[#allocation123_spill] sm:$0xff] %v16973_v12  ;;  %v7379_v12 = vld [vmem:[%s18339_s11 + $0x220] sm:$0xff] }
 0x4d8   :  { %v16953_v36 = vpop.f32.mrf.mxu0 }
 0x4d9   :  { %18741 = vst [vmem:[#allocation120_spill] sm:$0xff] %v16953_v36  ;;  %v7377_v36 = vld [vmem:[%s18339_s11 + $0x210] sm:$0xff] }
 0x4da   :  { %v16964_v57 = vpop.f32.mrf.mxu0  ;;  %12001 = vmatmul.mubr.msk.f32.gmra.mxu0 %vm94_vm0, %v7374_v26  ;;  %v16985_v26 = vpop.f32.mrf.mxu1 }
 0x4db   :  { %18742 = vst [vmem:[#allocation121_spill] sm:$0xff] %v16964_v57  ;;  %12003 = vmatprep.mubr.msk.f32.mxu0 %vm94_vm0, %v7375_v20  ;;  %v7378_v20 = vld [vmem:[%s18339_s11 + $0x218] sm:$0xff] }
 0x4dc   :  { %v16967_v45 = vpop.f32.mrf.mxu0 }
 0x4dd   :  { %18743 = vst [vmem:[#allocation122_spill] sm:$0xff] %v16967_v45 }
 0x4de   :  { %v16978_v3 = vpop.f32.mrf.mxu0  ;;  %12004 = vmatmul.mubr.msk.f32.gmra.mxu0 %vm94_vm0, %v7376_v55  ;;  %v16999_v55 = vpop.f32.mrf.mxu1 }
 0x4df   :  { %18745 = vst [vmem:[#allocation124_spill] sm:$0xff] %v16978_v3  ;;  %12006 = vmatprep.mubr.msk.f32.mxu0 %vm94_vm0, %v7377_v36  ;;  %v7380_v36 = vld [vmem:[%s18339_s11 + $0x228] sm:$0xff]  ;;  %18748 = vst [vmem:[#allocation127_spill] sm:$0xff] %v16999_v55  ;;  %v7383_v55 = vld [vmem:[%s18339_s11 + $0x240] sm:$0xff] }
 0x4e0   :  { %v16987_v45 = vpop.f32.mrf.mxu0 }
 0x4e1   :  { %18746 = vst [vmem:[#allocation125_spill] sm:$0xff] %v16987_v45  ;;  %v7381_v45 = vld [vmem:[%s18339_s11 + $0x230] sm:$0xff] }
 0x4e2   :  { %v16992_v57 = vpop.f32.mrf.mxu0  ;;  %12007 = vmatmul.mubr.msk.f32.gmra.mxu0 %vm94_vm0, %v7378_v20  ;;  %v17013_v20 = vpop.f32.mrf.mxu1 }
 0x4e3   :  { %18747 = vst [vmem:[#allocation126_spill] sm:$0xff] %v16992_v57  ;;  %12009 = vmatprep.mubr.msk.f32.mxu0 %vm94_vm0, %v7379_v12  ;;  %v7382_v12 = vld [vmem:[%s18339_s11 + $0x238] sm:$0xff] }
 0x4e4   :  { %v17001_v3 = vpop.f32.mrf.mxu0 }
 0x4e5   :  { %18749 = vst [vmem:[#allocation128_spill] sm:$0xff] %v17001_v3 }
 0x4e6   :  { %v17006_v25 = vpop.f32.mrf.mxu0  ;;  %12010 = vmatmul.mubr.msk.f32.gmra.mxu0 %vm94_vm0, %v7380_v36  ;;  %v17027_v36 = vpop.f32.mrf.mxu1 }
 0x4e7   :  { %18750 = vst [vmem:[#allocation129_spill] sm:$0xff] %v17006_v25  ;;  %12012 = vmatprep.mubr.msk.f32.mxu0 %vm94_vm0, %v7381_v45  ;;  %v7384_v45 = vld [vmem:[%s18339_s11 + $0x248] sm:$0xff]  ;;  %18753 = vst [vmem:[#allocation132_spill] sm:$0xff] %v17027_v36  ;;  %v7387_v36 = vld [vmem:[%s18339_s11 + $0x260] sm:$0xff] }
 0x4e8   :  { %v17015_v57 = vpop.f32.mrf.mxu0 }
 0x4e9   :  { %18751 = vst [vmem:[#allocation130_spill] sm:$0xff] %v17015_v57  ;;  %v7385_v57 = vld [vmem:[%s18339_s11 + $0x250] sm:$0xff] }
 0x4ea   :  { %v17020_v3 = vpop.f32.mrf.mxu0  ;;  %12013 = vmatmul.mubr.msk.f32.gmra.mxu0 %vm94_vm0, %v7382_v12  ;;  %v17041_v12 = vpop.f32.mrf.mxu1 }
 0x4eb   :  { %18752 = vst [vmem:[#allocation131_spill] sm:$0xff] %v17020_v3  ;;  %12015 = vmatprep.mubr.msk.f32.mxu0 %vm94_vm0, %v7383_v55  ;;  %v7386_v55 = vld [vmem:[%s18339_s11 + $0x258] sm:$0xff] }
 0x4ec   :  { %v17029_v25 = vpop.f32.mrf.mxu0 }
 0x4ed   :  { %18754 = vst [vmem:[#allocation133_spill] sm:$0xff] %v17029_v25 }
 0x4ee   :  { %v17034_v2 = vpop.f32.mrf.mxu0  ;;  %12016 = vmatmul.mubr.msk.f32.gmra.mxu0 %vm94_vm0, %v7384_v45  ;;  %v17055_v45 = vpop.f32.mrf.mxu1 }
 0x4ef   :  { %18755 = vst [vmem:[#allocation134_spill] sm:$0xff] %v17034_v2  ;;  %12018 = vmatprep.mubr.msk.f32.mxu0 %vm94_vm0, %v7385_v57  ;;  %v7388_v57 = vld [vmem:[%s18339_s11 + $0x268] sm:$0xff]  ;;  %18758 = vst [vmem:[#allocation137_spill] sm:$0xff] %v17055_v45  ;;  %v7391_v45 = vld [vmem:[%s18339_s11 + $0x280] sm:$0xff] }
 0x4f0   :  { %v17043_v3 = vpop.f32.mrf.mxu0 }
 0x4f1   :  { %18756 = vst [vmem:[#allocation135_spill] sm:$0xff] %v17043_v3  ;;  %v7389_v3 = vld [vmem:[%s18339_s11 + $0x270] sm:$0xff] }
 0x4f2   :  { %v17048_v25 = vpop.f32.mrf.mxu0  ;;  %12019 = vmatmul.mubr.msk.f32.gmra.mxu0 %vm94_vm0, %v7386_v55  ;;  %v17069_v55 = vpop.f32.mrf.mxu1 }
 0x4f3   :  { %18757 = vst [vmem:[#allocation136_spill] sm:$0xff] %v17048_v25  ;;  %12021 = vmatprep.mubr.msk.f32.mxu0 %vm94_vm0, %v7387_v36  ;;  %v7390_v36 = vld [vmem:[%s18339_s11 + $0x278] sm:$0xff]  ;;  %18761 = vst [vmem:[#allocation140_spill] sm:$0xff] %v17069_v55 }
 0x4f4   :  { %v17057_v2 = vpop.f32.mrf.mxu0 }
 0x4f5   :  { %18759 = vst [vmem:[#allocation138_spill] sm:$0xff] %v17057_v2 }
 0x4f6   :  { %v17062_v14 = vpop.f32.mrf.mxu0  ;;  %12022 = vmatmul.mubr.msk.f32.gmra.mxu0 %vm94_vm0, %v7388_v57  ;;  %v17083_v57 = vpop.f32.mrf.mxu1 }
 0x4f7   :  { %18760 = vst [vmem:[#allocation139_spill] sm:$0xff] %v17062_v14  ;;  %12024 = vmatprep.mubr.msk.f32.mxu0 %vm94_vm0, %v7389_v3  ;;  %v7392_v3 = vld [vmem:[%s18339_s11 + $0x288] sm:$0xff]  ;;  %18764 = vst [vmem:[#allocation143_spill] sm:$0xff] %v17083_v57 }
 0x4f8   :  { %v17071_v25 = vpop.f32.mrf.mxu0  ;;  %v17101_v57 = vpop.f32.mrf.mxu1 }
 0x4f9   :  { %18762 = vst [vmem:[#allocation141_spill] sm:$0xff] %v17071_v25  ;;  %v7393_v25 = vld [vmem:[%s18339_s11 + $0x290] sm:$0xff]  ;;  %18766 = vst [vmem:[#allocation145_spill] sm:$0xff] %v17101_v57 }
 0x4fa   :  { %v17076_v2 = vpop.f32.mrf.mxu0  ;;  %12025 = vmatmul.mubr.msk.f32.gmra.mxu0 %vm94_vm0, %v7390_v36  ;;  %v17095_v36 = vpop.permute.xlu1 %8561 }
 0x4fb   :  { %18763 = vst [vmem:[#allocation142_spill] sm:$0xff] %v17076_v2  ;;  %12027 = vmatprep.mubr.msk.f32.mxu0 %vm94_vm0, %v7391_v45  ;;  %v17093_v2 = vpop.permute.xlu0 %8381  ;;  %v7394_v45 = vld [vmem:[%s18339_s11 + $0x298] sm:$0xff] }
 0x4fc   :  { %v17085_v14 = vpop.f32.mrf.mxu0 }
 0x4fd   :  { %18765 = vst [vmem:[#allocation144_spill] sm:$0xff] %v17085_v14 }
 0x4fe   :  { %v17090_v4 = vpop.f32.mrf.mxu0  ;;  %12028 = vmatmul.mubr.msk.f32.gmra.mxu0 %vm94_vm0, %v7392_v3  ;;  %v17115_v3 = vpop.f32.mrf.mxu1 }
 0x4ff   :  { %12030 = vmatprep.mubr.msk.f32.mxu0 %vm94_vm0, %v7393_v25  ;;  %v7396_v25 = vld [vmem:[%s18339_s11 + $0x2a8] sm:$0xff]  ;;  %18768 = vst [vmem:[#allocation147_spill] sm:$0xff] %v17115_v3  ;;  %v17122_v24 = vpop.permute.xlu0 %8376  ;;  %v17124_v39 = vpop.permute.xlu1 %8556 }
 0x500   :  { %v17103_v14 = vpop.f32.mrf.mxu0 }
 0x501   :  { %18767 = vst [vmem:[#allocation146_spill] sm:$0xff] %v17103_v14  ;;  %v7397_v14 = vld [vmem:[%s18339_s11 + $0x2b0] sm:$0xff] }
 0x502   :  { %v17108_v8 = vpop.f32.mrf.mxu0  ;;  %12031 = vmatmul.mubr.msk.f32.gmra.mxu0 %vm94_vm0, %v7394_v45  ;;  %v17133_v45 = vpop.f32.mrf.mxu1 }
 0x503   :  { %12033 = vmatprep.mubr.msk.f32.mxu0 %vm94_vm0, %v7395_v48  ;;  %v7398_v48 = vld [vmem:[%s18339_s11 + $0x2b8] sm:$0xff]  ;;  %18770 = vst [vmem:[#allocation149_spill] sm:$0xff] %v17133_v45  ;;  %v17143_v23 = vpop.permute.xlu0 %8371  ;;  %v7218_v45 = vadd.f32 %v16536_v27, %v15741_v63 }
 0x504   :  { %v17117_v10 = vpop.f32.mrf.mxu0  ;;  %v17151_v59 = vpop.f32.mrf.mxu1 }
 0x505   :  { %18769 = vst [vmem:[#allocation148_spill] sm:$0xff] %v17117_v10  ;;  %v7399_v10 = vld [vmem:[%s18339_s11 + $0x2c0] sm:$0xff]  ;;  %18772 = vst [vmem:[#allocation151_spill] sm:$0xff] %v17151_v59 }
 0x506   :  { %v17126_v29 = vpop.f32.mrf.mxu0  ;;  %12034 = vmatmul.mubr.msk.f32.gmra.mxu0 %vm94_vm0, %v7396_v25  ;;  %v17145_v25 = vpop.permute.xlu1 %8551  ;;  %v7403_v59 = vld [vmem:[%s18339_s11 + $0x2e0] sm:$0xff] }
 0x507   :  { %12036 = vmatprep.mubr.msk.f32.mxu0 %vm94_vm0, %v7397_v14  ;;  %v7400_v14 = vld [vmem:[%s18339_s11 + $0x2c8] sm:$0xff] }
 0x508   :  { %v17135_v3 = vpop.f32.mrf.mxu0 }
 0x509   :  { %18771 = vst [vmem:[#allocation150_spill] sm:$0xff] %v17135_v3 }
 0x50a   :  { %v17140_v11 = vpop.f32.mrf.mxu0  ;;  %12037 = vmatmul.mubr.msk.f32.gmra.mxu0 %vm94_vm0, %v7398_v48  ;;  %v12055_v48 = vpop.f32.mrf.mxu1 }
 0x50b   :  { %12039 = vmatprep.mubr.msk.f32.mxu0 %vm94_vm0, %v7399_v10  ;;  %v7402_v10 = vld [vmem:[%s18339_s11 + $0x2d8] sm:$0xff]  ;;  %v17172_v52 = vpop.permute.xlu1 %8546 }
 0x50c   :  { %v17153_v3 = vpop.f32.mrf.mxu0  ;;  %18775 = vst [vmem:[#allocation154_spill] sm:$0xff] %v17172_v52 }
 0x50d   :  { %18773 = vst [vmem:[#allocation152_spill] sm:$0xff] %v17153_v3  ;;  %v17170_v3 = vpop.permute.xlu0 %8366 }
 0x50e   :  { %v17158_v49 = vpop.f32.mrf.mxu0  ;;  %12040 = vmatmul.mubr.msk.f32.gmra.mxu0 %vm94_vm0, %v7400_v14  ;;  %v8706_v14 = vpop.f32.mrf.mxu1 }
 0x50f   :  { %12042 = vmatprep.mubr.msk.f32.mxu0 %vm94_vm0, %v7401_v51  ;;  %v7404_v51 = vld [vmem:[%s18339_s11 + $0x2e8] sm:$0xff]  ;;  %v8707_v57 = vadd.f32 %v8706_v14, %v17172_v52  ;;  %v7220_v52 = vadd.f32 %v16550_v30, %v15796_v7 }
 0x510   :  { %v17165_v42 = vpop.f32.mrf.mxu0  ;;  %v12058_v28 = vpop.f32.mrf.mxu1 }
 0x511   :  { %18774 = vst [vmem:[#allocation153_spill] sm:$0xff] %v17165_v42  ;;  %v17189_v40 = vpop.permute.xlu0 %8401 }
 0x512   :  { %v17174_v5 = vpop.f32.mrf.mxu0  ;;  %12043 = vmatmul.mubr.msk.f32.gmra.mxu0 %vm94_vm0, %v7402_v10  ;;  %18779 = vst [vmem:[#allocation158_spill] sm:$0xff] %v17189_v40  ;;  %v17191_v10 = vpop.permute.xlu1 %8581 }
 0x513   :  { %18776 = vst [vmem:[#allocation155_spill] sm:$0xff] %v17174_v5  ;;  %12045 = vmatprep.mubr.msk.f32.mxu0 %vm94_vm0, %v7403_v59  ;;  %18780 = vst [vmem:[#allocation159_spill] sm:$0xff] %v17191_v10  ;;  %v7406_v59 = vld [vmem:[%s18339_s11 + $0x2f8] sm:$0xff] }
 0x514   :  { %v17181_v42 = vpop.f32.mrf.mxu0 }
 0x515   :  { %18777 = vst [vmem:[#allocation156_spill] sm:$0xff] %v17181_v42  ;;  %v17211_v44 = vpop.permute.xlu0 %8396 }
 0x516   :  { %v17186_v62 = vpop.f32.mrf.mxu0  ;;  %12046 = vmatmul.mubr.msk.f32.gmra.mxu0 %vm94_vm0, %v7404_v51  ;;  %v17205_v51 = vld [vmem:[%s18337_s12] sm:$0xff]  ;;  %18785 = vst [vmem:[#allocation164_spill] sm:$0xff] %v17211_v44  ;;  %v17213_v13 = vpop.permute.xlu1 %8576 }
 0x517   :  { %18778 = vst [vmem:[#allocation157_spill] sm:$0xff] %v17186_v62  ;;  %12048 = vmatprep.mubr.msk.f32.mxu0 %vm94_vm0, %v7405_v50  ;;  %18783 = vst [vmem:[#allocation162_spill] sm:$0xff] %v17205_v51  ;;  %v8716_v50 = vpop.f32.mrf.mxu1 }
 0x518   :  { %v17197_v42 = vpop.f32.mrf.mxu0  ;;  %18786 = vst [vmem:[#allocation165_spill] sm:$0xff] %v17213_v13 }
 0x519   :  { %18781 = vst [vmem:[#allocation160_spill] sm:$0xff] %v17197_v42  ;;  %v7216_v42 = vadd.f32 %v16522_v16, %v15714_v17  ;;  %v12061_v47 = vpop.f32.mrf.mxu1  ;;  %v17224_v55 = vpop.permute.xlu0 %8391 }
 0x51a   :  { %v17199_v58 = vpop.f32.mrf.mxu0  ;;  %12049 = vmatmul.mubr.msk.f32.gmra.mxu0 %vm94_vm0, %v7406_v59  ;;  %v7215_v59 = vadd.f32 %v16532_v35, %v15725_v0  ;;  %v17226_v17 = vpop.permute.xlu1 %8571  ;;  %v7217_v0 = vadd.f32 %v16546_v1, %v15767_v56  ;;  %v8722_v35 = vadd.f32 %v12058_v28, %v17095_v36  ;;  %v7219_v56 = vadd.f32 %v16560_v37, %v15819_v9 }
 0x51b   :  { %18782 = vst [vmem:[#allocation161_spill] sm:$0xff] %v17199_v58  ;;  %12209 = vmatprep.mubr.msk.f32.mxu0 %vm94_vm0, %v17205_v51  ;;  %v8712_v58 = vadd.f32 %v12055_v48, %v17145_v25  ;;  %v8726_v63 = vpop.f32.mrf.mxu1  ;;  %v7222_v1 = vadd.f32 %v16564_v33, %v15840_v31  ;;  %v8732_v37 = vadd.f32 %v12061_v47, %v17226_v17 }
 0x51c   :  { %v17209_v38 = vpop.f32.mrf.mxu0 }
 0x51d   :  { %18784 = vst [vmem:[#allocation163_spill] sm:$0xff] %v17209_v38 }
 0x51e   :  { %v11909_v41 = vpop.f32.mrf.mxu0 }
 0x51f   :  { %v8257_v19 = vadd.f32 %v11909_v41, %v7216_v42 }
 0x520   :  { %v7777_v15 = vpop.f32.mrf.mxu0 }
 0x521   :  { %v8425_v38 = vadd.f32 %v17143_v23, %v8257_v19  ;;  %v8256_v62 = vadd.f32 %v7777_v15, %v7215_v59  ;;  %v8717_v59 = vadd.f32 %v8716_v50, %v17124_v39 }
 0x522   :  { %v11912_v5 = vpop.f32.mrf.mxu0 }
 0x523   :  { %v8766_v42 = vadd.f32 %v8712_v58, %v8425_v38  ;;  %v8424_v41 = vadd.f32 %v17170_v3, %v8256_v62  ;;  %v8259_v16 = vadd.f32 %v11912_v5, %v7218_v45  ;;  %v12064_v58 = vpop.f32.mrf.mxu1 }
 0x524   :  { %v7787_v27 = vpop.f32.mrf.mxu0 }
 0x525   :  { %v10903_v19 = vmul.f32 -1.442695, %v8766_v42  ;;  %v8765_v15 = vadd.f32 %v8707_v57, %v8424_v41  ;;  %v8427_v48 = vadd.f32 %v17093_v2, %v8259_v16  ;;  %v8258_v14 = vadd.f32 %v7787_v27, %v7217_v0  ;;  %v17241_v0 = vpop.permute.xlu1 %8566  ;;  %v17243_v42 = vpop.permute.xlu0 %8386 }
 0x526   :  { %v11915_v38 = vpop.f32.mrf.mxu0  ;;  %v8727_v9 = vadd.f32 %v8726_v63, %v17241_v0  ;;  %v7221_v41 = vadd.f32 %v16574_v22, %v15861_v46  ;;  %v8742_v27 = vadd.f32 %v12064_v58, %v17191_v10 }
 0x527   :  { %12498 = vpow2.f32 %v10903_v19  ;;  %v10902_v62 = vmul.f32 -1.442695, %v8765_v15  ;;  %v8768_v5 = vadd.f32 %v8722_v35, %v8427_v48  ;;  %v8426_v28 = vadd.f32 %v17122_v24, %v8258_v14  ;;  %v8736_v19 = vpop.f32.mrf.mxu1 }
 0x528   :  { %v8261_v57 = vadd.f32 %v11915_v38, %v7220_v52  ;;  %v7797_v45 = vpop.f32.mrf.mxu0  ;;  %v8737_v22 = vadd.f32 %v8736_v19, %v17213_v13 }
 0x529   :  { %12500 = vpow2.f32 %v10902_v62  ;;  %v10905_v50 = vmul.f32 -1.442695, %v8768_v5  ;;  %v8767_v7 = vadd.f32 %v8717_v59, %v8426_v28  ;;  %v8260_v30 = vadd.f32 %v7797_v45, %v7219_v56  ;;  %v17255_v28 = vpop.permute.xlu0 %8601  ;;  %v17257_v45 = vpop.permute.xlu1 %8421 }
 0x52a   :  { %v8429_v16 = vadd.f32 %v17224_v55, %v8261_v57  ;;  %v11918_v31 = vpop.f32.mrf.mxu0 }
 0x52b   :  { %12502 = vpow2.f32 %v10905_v50  ;;  %v10904_v33 = vmul.f32 -1.442695, %v8767_v7  ;;  %v8428_v52 = vadd.f32 %v17243_v42, %v8260_v30  ;;  %v8263_v35 = vadd.f32 %v11918_v31, %v7222_v1 }
 0x52c   :  { %v8794_v15 = vadd.f32 %v8732_v37, %v8429_v16  ;;  %v7807_v48 = vpop.f32.mrf.mxu0 }
 0x52d   :  { %12504 = vpow2.f32 %v10904_v33  ;;  %v8793_v47 = vadd.f32 %v8727_v9, %v8428_v52  ;;  %v8431_v63 = vadd.f32 %v17189_v40, %v8263_v35  ;;  %v8262_v14 = vadd.f32 %v7807_v48, %v7221_v41  ;;  %v17261_v16 = vpop.permute.xlu0 %8596  ;;  %v17265_v35 = vpop.permute.xlu1 %8416 }
 0x52e   :  { %v10907_v59 = vmul.f32 -1.442695, %v8794_v15  ;;  %v11921_v46 = vpop.f32.mrf.mxu0 }
 0x52f   :  { %v10906_v56 = vmul.f32 -1.442695, %v8793_v47  ;;  %v8796_v38 = vadd.f32 %v8742_v27, %v8431_v63  ;;  %v8430_v62 = vadd.f32 %v17211_v44, %v8262_v14  ;;  %v12067_v27 = vpop.f32.mrf.mxu1 }
 0x530   :  { %v7817_v5 = vpop.f32.mrf.mxu0  ;;  %12506 = vpow2.f32 %v10907_v59 }
 0x531   :  { %v10909_v58 = vmul.f32 -1.442695, %v8796_v38  ;;  %v8795_v1 = vadd.f32 %v8737_v22, %v8430_v62  ;;  %12508 = vpow2.f32 %v10906_v56  ;;  %v17271_v14 = vpop.permute.xlu0 %8591  ;;  %v8746_v59 = vpop.f32.mrf.mxu1  ;;  %v7224_v62 = vadd.f32 %v16578_v34, %v15885_v32 }
 0x532   :  { %v11924_v57 = vpop.f32.mrf.mxu0  ;;  %18787 = vst [vmem:[#allocation166_spill] sm:$0xff] %v17271_v14  ;;  %v17275_v38 = vpop.permute.xlu1 %8411  ;;  %v8752_v13 = vadd.f32 %v12067_v27, %v17271_v14  ;;  %v7226_v32 = vadd.f32 %v16592_v60, %v15932_v43 }
 0x533   :  { %v10908_v50 = vmul.f32 -1.442695, %v8795_v1  ;;  %12510 = vpow2.f32 %v10909_v58  ;;  %v7223_v1 = vadd.f32 %v16588_v61, %v15905_v6  ;;  %v7225_v61 = vadd.f32 %v16602_v21, %v15957_v54 }
 0x534   :  { %v12499_v7 = vpop.eup %12498  ;;  %v7827_v30 = vpop.f32.mrf.mxu0  ;;  %v8267_v14 = vadd.f32 %v11924_v57, %v7226_v32 }
 0x535   :  { %v8782_v37 = vadd.f32 1.0, %v12499_v7  ;;  %12512 = vpow2.f32 %v10908_v50 }
 0x536   :  { %v12501_v9 = vpop.eup %12500  ;;  %v17259_v41 = vpop.f32.mrf.mxu0 }
 0x537   :  { %12514 = vrcp.f32 %v8782_v37  ;;  %v8781_v31 = vadd.f32 1.0, %v12501_v9  ;;  %v12070_v37 = vpop.f32.mrf.mxu1 }
 0x538   :  { %v12503_v33 = vpop.eup %12502  ;;  %v17263_v52 = vpop.f32.mrf.mxu0  ;;  %v8762_v43 = vadd.f32 %v12070_v37, %v17255_v28 }
 0x539   :  { %12516 = vrcp.f32 %v8781_v31  ;;  %v8784_v19 = vadd.f32 1.0, %v12503_v33  ;;  %v8265_v31 = vadd.f32 %v11921_v46, %v7224_v62  ;;  %v8264_v33 = vadd.f32 %v7817_v5, %v7223_v1  ;;  %v17295_v5 = vpop.permute.xlu1 %8406  ;;  %v8756_v62 = vpop.f32.mrf.mxu1 }
 0x53a   :  { %v12505_v15 = vpop.eup %12504  ;;  %v17267_v48 = vpop.f32.mrf.mxu0  ;;  %v8757_v40 = vadd.f32 %v8756_v62, %v17261_v16 }
 0x53b   :  { %12518 = vrcp.f32 %v8784_v19  ;;  %v8783_v47 = vadd.f32 1.0, %v12505_v15  ;;  %v8433_v1 = vadd.f32 %v17275_v38, %v8265_v31 }
 0x53c   :  { %v17269_v63 = vpop.f32.mrf.mxu0 }
 0x53d   :  { %12520 = vrcp.f32 %v8783_v47  ;;  %v12507_v22 = vpop.eup %12506  ;;  %v17285_v47 = vpop.permute.xlu0 %8586 }
 0x53e   :  { %v17273_v56 = vpop.f32.mrf.mxu0  ;;  %v12509_v58 = vpop.eup %12508  ;;  %v8810_v9 = vadd.f32 1.0, %v12507_v22  ;;  %18788 = vst [vmem:[#allocation167_spill] sm:$0xff] %v17285_v47  ;;  %v8747_v6 = vadd.f32 %v8746_v59, %v17285_v47  ;;  %v8432_v59 = vadd.f32 %v17295_v5, %v8264_v33 }
 0x53f   :  { %v8809_v34 = vadd.f32 1.0, %v12509_v58 }
 0x540   :  { %v17281_v50 = vpop.f32.mrf.mxu0  ;;  %v12511_v7 = vpop.eup %12510  ;;  %12522 = vrcp.f32 %v8810_v9 }
 0x541   :  { %v8812_v22 = vadd.f32 1.0, %v12511_v7  ;;  %12524 = vrcp.f32 %v8809_v34  ;;  %v8266_v7 = vadd.f32 %v7827_v30, %v7225_v61 }
 0x542   :  { %v17283_v19 = vpop.f32.mrf.mxu0  ;;  %v12513_v15 = vpop.eup %12512 }
 0x543   :  { %v8811_v60 = vadd.f32 1.0, %v12513_v15  ;;  %12526 = vrcp.f32 %v8812_v22 }
 0x544   :  { %v12515_v44 = vpop.eup %12514  ;;  %v17293_v46 = vpop.f32.mrf.mxu0 }
 0x545   :  { %v8822_v27 = vmul.f32 %v12515_v44, %v8752_v13  ;;  %v8435_v44 = vadd.f32 %v17257_v45, %v8267_v14 }
 0x546   :  { %v12517_v10 = vpop.eup %12516  ;;  %v17300_v58 = vpop.f32.mrf.mxu0 }
 0x547   :  { %v8826_v54 = vadd.f32 %v8822_v27, %v8433_v1  ;;  %v8821_v21 = vmul.f32 %v12517_v10, %v8747_v6  ;;  %v8434_v10 = vadd.f32 %v17265_v35, %v8266_v7 }
 0x548   :  { %v12519_v47 = vpop.eup %12518  ;;  %v17303_v9 = vpop.f32.mrf.mxu0 }
 0x549   :  { %12528 = vtanh.f32 %v8826_v54  ;;  %v8825_v13 = vadd.f32 %v8821_v21, %v8432_v59  ;;  %v8824_v57 = vmul.f32 %v12519_v47, %v8762_v43 }
 0x54a   :  { %v12521_v37 = vpop.eup %12520  ;;  %12530 = vrcp.f32 %v8811_v60  ;;  %v17306_v31 = vpop.f32.mrf.mxu0 }
 0x54b   :  { %12532 = vtanh.f32 %v8825_v13  ;;  %v8828_v33 = vadd.f32 %v8824_v57, %v8435_v44  ;;  %v8823_v30 = vmul.f32 %v12521_v37, %v8757_v40 }
 0x54c   :  { %v17309_v15 = vpop.f32.mrf.mxu0 }
 0x54d   :  { %12534 = vtanh.f32 %v8828_v33  ;;  %v8827_v32 = vadd.f32 %v8823_v30, %v8434_v10  ;;  %v12523_v14 = vpop.eup %12522 }
 0x54e   :  { %v17311_v34 = vpop.f32.mrf.mxu0  ;;  %v12525_v61 = vpop.eup %12524  ;;  %v8834_v1 = vsub.f32 1.0, %v12523_v14  ;;  %v8842_v59 = vmul.f32 0.0, %v12523_v14 }
 0x54f   :  { %18789 = vst [vmem:[#allocation168_spill] sm:$0xff] %v17311_v34  ;;  %12536 = vtanh.f32 %v8827_v32  ;;  %v8833_v54 = vsub.f32 1.0, %v12525_v61  ;;  %v8841_v37 = vmul.f32 0.0, %v12525_v61 }
 0x550   :  { %v17313_v6 = vpop.f32.mrf.mxu0  ;;  %v12527_v62 = vpop.eup %12526 }
 0x551   :  { %18790 = vst [vmem:[#allocation169_spill] sm:$0xff] %v17313_v6  ;;  %v8836_v13 = vsub.f32 1.0, %v12527_v62  ;;  %v8844_v32 = vmul.f32 0.0, %v12527_v62 }
 0x552   :  { %v17315_v47 = vpop.f32.mrf.mxu0 }
 0x553   :  { %18791 = vst [vmem:[#allocation170_spill] sm:$0xff] %v17315_v47 }
 0x554   :  { %v17317_v22 = vpop.f32.mrf.mxu0 }
 0x555   :  { %18792 = vst [vmem:[#allocation171_spill] sm:$0xff] %v17317_v22 }
 0x556   :  { %v12529_v27 = vpop.eup %12528  ;;  %v17319_v43 = vpop.f32.mrf.mxu0 }
 0x557   :  { %18793 = vst [vmem:[#allocation172_spill] sm:$0xff] %v17319_v43  ;;  %v12531_v40 = vpop.eup %12530  ;;  %v8838_v60 = vmul.f32 %v12529_v27, %v8834_v1 }
 0x558   :  { %v12533_v21 = vpop.eup %12532  ;;  %v17321_v7 = vpop.f32.mrf.mxu0  ;;  %v8835_v22 = vsub.f32 1.0, %v12531_v40 }
 0x559   :  { %18794 = vst [vmem:[#allocation173_spill] sm:$0xff] %v17321_v7  ;;  %v17323_v44 = vadd.f32 %v8842_v59, %v8838_v60  ;;  %v8837_v57 = vmul.f32 %v12533_v21, %v8833_v54  ;;  %v8843_v7 = vmul.f32 0.0, %v12531_v40  ;;  %v17356_v40 = vld [vmem:[%s18337_s12 + $0x8] sm:$0xff]  ;;  %v17365_v54 = vld [vmem:[%s18337_s12 + $0x10] sm:$0xff] }
 0x55a   :  { %v12535_v33 = vpop.eup %12534  ;;  %v17325_v10 = vpop.f32.mrf.mxu0 }
 0x55b   :  { %18795 = vst [vmem:[#allocation174_spill] sm:$0xff] %v17325_v10  ;;  %v8840_v30 = vmul.f32 %v12535_v33, %v8836_v13  ;;  %v17327_v47 = vadd.f32 %v8841_v37, %v8837_v57  ;;  %v17383_v57 = vld [vmem:[%s18337_s12 + $0x20] sm:$0xff]  ;;  %v17392_v33 = vld [vmem:[%s18337_s12 + $0x28] sm:$0xff] }
 0x55c   :  { %v12537_v43 = vpop.eup %12536  ;;  %v17329_v1 = vpop.f32.mrf.mxu0 }
 0x55d   :  { %18796 = vst [vmem:[#allocation175_spill] sm:$0xff] %v17329_v1  ;;  %v17331_v14 = vadd.f32 %v8844_v32, %v8840_v30  ;;  %v8839_v27 = vmul.f32 %v12537_v43, %v8835_v22  ;;  %v17401_v32 = vld [vmem:[%s18337_s12 + $0x30] sm:$0xff] }
 0x55e   :  { %v17333_v6 = vpop.f32.mrf.mxu0 }
 0x55f   :  { %18797 = vst [vmem:[#allocation176_spill] sm:$0xff] %v17333_v6  ;;  %12071 = vmatprep.subr.mxu1 %v17331_v14  ;;  %v17336_v61 = vadd.f32 %v8843_v7, %v8839_v27  ;;  %v17374_v7 = vld [vmem:[%s18337_s12 + $0x18] sm:$0xff] }
 0x560   :  { %v17338_v60 = vpop.f32.mrf.mxu0  ;;  %12072 = vmatpush3.msra.mxu1 %v17331_v14 }
 0x561   :  { %18798 = vst [vmem:[#allocation177_spill] sm:$0xff] %v17338_v60  ;;  %12073 = vmatprep.subr.mxu1 %v17336_v61 }
 0x562   :  { %v17342_v62 = vpop.f32.mrf.mxu0  ;;  %12074 = vmatpush3.msra.mxu1 %v17336_v61 }
 0x563   :  { %18799 = vst [vmem:[#allocation178_spill] sm:$0xff] %v17342_v62  ;;  %12075 = vmatprep.subr.mxu1 %v17323_v44 }
 0x564   :  { %v17346_v22 = vpop.f32.mrf.mxu0  ;;  %12076 = vmatpush3.msra.mxu1 %v17323_v44 }
 0x565   :  { %18800 = vst [vmem:[#allocation179_spill] sm:$0xff] %v17346_v22  ;;  %12077 = vmatprep.subr.mxu1 %v17327_v47 }
 0x566   :  { %v17350_v43 = vpop.f32.mrf.mxu0  ;;  %12078 = vmatpush3.msra.mxu1 %v17327_v47 }
 0x567   :  { %18801 = vst [vmem:[#allocation180_spill] sm:$0xff] %v17350_v43  ;;  %12080 = vmatmul.mubr.msk.f32.vlgmr.msra.gmra.mxu1 %vm94_vm0, %v17356_v40 }
 0x568   :  { %v17360_v59 = vpop.f32.mrf.mxu0  ;;  %12082 = vmatprep.mubr.msk.f32.mxu1 %vm94_vm0, %v17365_v54 }
 0x569   :  { %18802 = vst [vmem:[#allocation181_spill] sm:$0xff] %v17360_v59 }
 0x56a   :  { %v17369_v21 = vpop.f32.mrf.mxu0 }
 0x56b   :  { %18803 = vst [vmem:[#allocation182_spill] sm:$0xff] %v17369_v21  ;;  %12083 = vmatmul.mubr.msk.f32.gmra.mxu1 %vm94_vm0, %v17374_v7 }
 0x56c   :  { %v17378_v13 = vpop.f32.mrf.mxu0  ;;  %12085 = vmatprep.mubr.msk.f32.mxu1 %vm94_vm0, %v17383_v57 }
 0x56d   :  { %18804 = vst [vmem:[#allocation183_spill] sm:$0xff] %v17378_v13 }
 0x56e   :  { %v17387_v37 = vpop.f32.mrf.mxu0 }
 0x56f   :  { %18805 = vst [vmem:[#allocation184_spill] sm:$0xff] %v17387_v37  ;;  %12086 = vmatmul.mubr.msk.f32.gmra.mxu1 %vm94_vm0, %v17392_v33  ;;  %v17410_v37 = vld [vmem:[%s18337_s12 + $0x38] sm:$0xff] }
 0x570   :  { %v17396_v30 = vpop.f32.mrf.mxu0  ;;  %12088 = vmatprep.mubr.msk.f32.mxu1 %vm94_vm0, %v17401_v32 }
 0x571   :  { %18806 = vst [vmem:[#allocation185_spill] sm:$0xff] %v17396_v30  ;;  %v17419_v30 = vld [vmem:[%s18337_s12 + $0x40] sm:$0xff] }
 0x572   :  { %v17405_v27 = vpop.f32.mrf.mxu0 }
 0x573   :  { %18807 = vst [vmem:[#allocation186_spill] sm:$0xff] %v17405_v27  ;;  %12089 = vmatmul.mubr.msk.f32.gmra.mxu1 %vm94_vm0, %v17410_v37  ;;  %v17428_v27 = vld [vmem:[%s18337_s12 + $0x48] sm:$0xff] }
 0x574   :  { %v17414_v13 = vpop.f32.mrf.mxu0  ;;  %12091 = vmatprep.mubr.msk.f32.mxu1 %vm94_vm0, %v17419_v30 }
 0x575   :  { %18808 = vst [vmem:[#allocation187_spill] sm:$0xff] %v17414_v13  ;;  %v17437_v13 = vld [vmem:[%s18337_s12 + $0x50] sm:$0xff] }
 0x576   :  { %v17423_v21 = vpop.f32.mrf.mxu0 }
 0x577   :  { %18809 = vst [vmem:[#allocation188_spill] sm:$0xff] %v17423_v21  ;;  %12092 = vmatmul.mubr.msk.f32.gmra.mxu1 %vm94_vm0, %v17428_v27  ;;  %v17446_v21 = vld [vmem:[%s18337_s12 + $0x58] sm:$0xff] }
 0x578   :  { %v17432_v59 = vpop.f32.mrf.mxu0  ;;  %12094 = vmatprep.mubr.msk.f32.mxu1 %vm94_vm0, %v17437_v13  ;;  %18812 = vst [vmem:[#allocation191_spill] sm:$0xff] %v17446_v21 }
 0x579   :  { %18810 = vst [vmem:[#allocation189_spill] sm:$0xff] %v17432_v59 }
 0x57a   :  { %v17441_v43 = vpop.f32.mrf.mxu0 }
 0x57b   :  { %18811 = vst [vmem:[#allocation190_spill] sm:$0xff] %v17441_v43  ;;  %12095 = vmatmul.mubr.msk.f32.gmra.mxu1 %vm94_vm0, %v17446_v21 }
 0x57c   :  { %v17450_v22 = vpop.f32.mrf.mxu0  ;;  %12105 = vmatprep.mubr.msk.f32.mxu1 %vm94_vm0, %v17205_v51 }
 0x57d   :  { %18813 = vst [vmem:[#allocation192_spill] sm:$0xff] %v17450_v22 }
 0x57e   :  { %v17454_v59 = vpop.f32.mrf.mxu0 }
 0x57f   :  { %18814 = vst [vmem:[#allocation193_spill] sm:$0xff] %v17454_v59 }
 0x580   :  { %v17456_v62 = vpop.f32.mrf.mxu0 }
 0x581   :  { %18815 = vst [vmem:[#allocation194_spill] sm:$0xff] %v17456_v62 }
 0x582   :  { %v17458_v60 = vpop.f32.mrf.mxu0 }
 0x583   :  { %18816 = vst [vmem:[#allocation195_spill] sm:$0xff] %v17458_v60 }
 0x584   :  { %v17460_v43 = vpop.f32.mrf.mxu0 }
 0x585   :  { %18817 = vst [vmem:[#allocation196_spill] sm:$0xff] %v17460_v43 }
 0x586   :  { %v17462_v6 = vpop.f32.mrf.mxu0 }
 0x587   :  { %18818 = vst [vmem:[#allocation197_spill] sm:$0xff] %v17462_v6 }
 0x588   :  { %v17464_v1 = vpop.f32.mrf.mxu0 }
 0x589   :  { %18819 = vst [vmem:[#allocation198_spill] sm:$0xff] %v17464_v1 }
 0x58a   :  { %v17466_v10 = vpop.f32.mrf.mxu0 }
 0x58b   :  { %18820 = vst [vmem:[#allocation199_spill] sm:$0xff] %v17466_v10 }
 0x58c   :  { %v17468_v34 = vpop.f32.mrf.mxu0 }
 0x58d   :  { %18821 = vst [vmem:[#allocation200_spill] sm:$0xff] %v17468_v34 }
 0x58e   :  { %v17470_v22 = vpop.f32.mrf.mxu0 }
 0x58f   :  { %18822 = vst [vmem:[#allocation201_spill] sm:$0xff] %v17470_v22 }
 0x590   :  { %v17472_v21 = vpop.f32.mrf.mxu0 }
 0x591   :  { %18823 = vst [vmem:[#allocation202_spill] sm:$0xff] %v17472_v21 }
 0x592   :  { %v17474_v51 = vpop.f32.mrf.mxu0 }
 0x593   :  { %18824 = vst [vmem:[#allocation203_spill] sm:$0xff] %v17474_v51 }
 0x594   :  { %v17476_v59 = vpop.f32.mrf.mxu0 }
 0x595   :  { %18825 = vst [vmem:[#allocation204_spill] sm:$0xff] %v17476_v59 }
 0x596   :  { %v17478_v62 = vpop.f32.mrf.mxu0 }
 0x597   :  { %18826 = vst [vmem:[#allocation205_spill] sm:$0xff] %v17478_v62 }
 0x598   :  { %v17480_v60 = vpop.f32.mrf.mxu0 }
 0x599   :  { %18827 = vst [vmem:[#allocation206_spill] sm:$0xff] %v17480_v60 }
 0x59a   :  { %v17482_v43 = vpop.f32.mrf.mxu0 }
 0x59b   :  { %18828 = vst [vmem:[#allocation207_spill] sm:$0xff] %v17482_v43 }
 0x59c   :  { %v17484_v6 = vpop.f32.mrf.mxu0 }
 0x59d   :  { %18829 = vst [vmem:[#allocation208_spill] sm:$0xff] %v17484_v6 }
 0x59e   :  { %v17486_v1 = vpop.f32.mrf.mxu0 }
 0x59f   :  { %18830 = vst [vmem:[#allocation209_spill] sm:$0xff] %v17486_v1 }
 0x5a0   :  { %v17488_v10 = vpop.f32.mrf.mxu0 }
 0x5a1   :  { %18831 = vst [vmem:[#allocation210_spill] sm:$0xff] %v17488_v10 }
 0x5a2   :  { %v17490_v34 = vpop.f32.mrf.mxu0 }
 0x5a3   :  { %18832 = vst [vmem:[#allocation211_spill] sm:$0xff] %v17490_v34 }
 0x5a4   :  { %v17492_v22 = vpop.f32.mrf.mxu0 }
 0x5a5   :  { %18833 = vst [vmem:[#allocation212_spill] sm:$0xff] %v17492_v22 }
 0x5a6   :  { %v17494_v21 = vpop.f32.mrf.mxu0 }
 0x5a7   :  { %18834 = vst [vmem:[#allocation213_spill] sm:$0xff] %v17494_v21 }
 0x5a8   :  { %v17496_v51 = vpop.f32.mrf.mxu0 }
 0x5a9   :  { %18835 = vst [vmem:[#allocation214_spill] sm:$0xff] %v17496_v51 }
 0x5aa   :  { %v17498_v59 = vpop.f32.mrf.mxu0 }
 0x5ab   :  { %18836 = vst [vmem:[#allocation215_spill] sm:$0xff] %v17498_v59  ;;  %v7296_v59 = vadd.f32 %v17090_v4, %v16931_v18  ;;  %v7302_v18 = vadd.f32 %v17140_v11, %v17013_v20  ;;  %v18860_v20 = vld [vmem:[#allocation145_spill] sm:$0xff] }
 0x5ac   :  { %v17500_v62 = vpop.f32.mrf.mxu0 }
 0x5ad   :  { %18837 = vst [vmem:[#allocation216_spill] sm:$0xff] %v17500_v62 }
 0x5ae   :  { %v17502_v60 = vpop.f32.mrf.mxu0 }
 0x5af   :  { %18838 = vst [vmem:[#allocation217_spill] sm:$0xff] %v17502_v60 }
 0x5b0   :  { %v17504_v43 = vpop.f32.mrf.mxu0 }
 0x5b1   :  { %18839 = vst [vmem:[#allocation218_spill] sm:$0xff] %v17504_v43 }
 0x5b2   :  { %v17506_v6 = vpop.f32.mrf.mxu0 }
 0x5b3   :  { %18840 = vst [vmem:[#allocation219_spill] sm:$0xff] %v17506_v6  ;;  %v7298_v6 = vadd.f32 %v17108_v8, %v16959_v53  ;;  %v7304_v53 = vadd.f32 %v17158_v49, %v17041_v12  ;;  %v18864_v12 = vld [vmem:[#allocation149_spill] sm:$0xff] }
 0x5b4   :  { %v17508_v1 = vpop.f32.mrf.mxu0 }
 0x5b5   :  { %18841 = vst [vmem:[#allocation220_spill] sm:$0xff] %v17508_v1 }
 0x5b6   :  { %v17510_v10 = vpop.f32.mrf.mxu0 }
 0x5b7   :  { %18842 = vst [vmem:[#allocation221_spill] sm:$0xff] %v17510_v10 }
 0x5b8   :  { %v17512_v34 = vpop.f32.mrf.mxu0 }
 0x5b9   :  { %18843 = vst [vmem:[#allocation222_spill] sm:$0xff] %v17512_v34 }
 0x5ba   :  { %v17514_v22 = vpop.f32.mrf.mxu0 }
 0x5bb   :  { %18844 = vst [vmem:[#allocation223_spill] sm:$0xff] %v17514_v22  ;;  %v7300_v22 = vadd.f32 %v17126_v29, %v16985_v26  ;;  %v18856_v26 = vld [vmem:[#allocation140_spill] sm:$0xff] }
 0x5bc   :  { %v17516_v21 = vpop.f32.mrf.mxu0 }
 0x5bd   :  { %18845 = vst [vmem:[#allocation224_spill] sm:$0xff] %v17516_v21 }
 0x5be   :  { %v12029_v62 = vpop.f32.mrf.mxu0 }
 0x5bf   :  { %v17520_v51 = vadd.f32 %v12029_v62, %v7296_v59 }
 0x5c0   :  { %v17522_v60 = vpop.f32.mrf.mxu0 }
 0x5c1   :  { %18846 = vst [vmem:[#allocation225_spill] sm:$0xff] %v17520_v51  ;;  %18847 = vst [vmem:[#allocation226_spill] sm:$0xff] %v17522_v60 }
 0x5c2   :  { %v12032_v1 = vpop.f32.mrf.mxu0 }
 0x5c3   :  { %v17526_v43 = vadd.f32 %v12032_v1, %v7298_v6 }
 0x5c4   :  { %v17528_v10 = vpop.f32.mrf.mxu0 }
 0x5c5   :  { %18848 = vst [vmem:[#allocation227_spill] sm:$0xff] %v17526_v43  ;;  %18849 = vst [vmem:[#allocation228_spill] sm:$0xff] %v17528_v10 }
 0x5c6   :  { %v12035_v21 = vpop.f32.mrf.mxu0 }
 0x5c7   :  { %v17532_v34 = vadd.f32 %v12035_v21, %v7300_v22  ;;  %v18857_v22 = vld [vmem:[#allocation155_spill] sm:$0xff] }
 0x5c8   :  { %v17534_v4 = vpop.f32.mrf.mxu0  ;;  %v7306_v21 = vadd.f32 %v18857_v22, %v18856_v26  ;;  %v18867_v26 = vld [vmem:[#allocation10_spill] sm:$0xff]  ;;  %v18868_v22 = vld [vmem:[#allocation47_spill] sm:$0xff] }
 0x5c9   :  { %18850 = vst [vmem:[#allocation229_spill] sm:$0xff] %v17532_v34  ;;  %18851 = vst [vmem:[#allocation230_spill] sm:$0xff] %v17534_v4 }
 0x5ca   :  { %v12038_v62 = vpop.f32.mrf.mxu0 }
 0x5cb   :  { %v17538_v59 = vadd.f32 %v12038_v62, %v7302_v18  ;;  %v18861_v18 = vld [vmem:[#allocation157_spill] sm:$0xff] }
 0x5cc   :  { %v17540_v8 = vpop.f32.mrf.mxu0  ;;  %v7308_v62 = vadd.f32 %v18861_v18, %v18860_v20  ;;  %v18871_v20 = vld [vmem:[#allocation9_spill] sm:$0xff]  ;;  %v18872_v18 = vld [vmem:[#allocation50_spill] sm:$0xff] }
 0x5cd   :  { %18852 = vst [vmem:[#allocation231_spill] sm:$0xff] %v17538_v59  ;;  %18853 = vst [vmem:[#allocation232_spill] sm:$0xff] %v17540_v8 }
 0x5ce   :  { %v12041_v6 = vpop.f32.mrf.mxu0 }
 0x5cf   :  { %v17544_v1 = vadd.f32 %v12041_v6, %v7304_v53  ;;  %v18865_v53 = vld [vmem:[#allocation161_spill] sm:$0xff] }
 0x5d0   :  { %v17546_v29 = vpop.f32.mrf.mxu0  ;;  %v7310_v6 = vadd.f32 %v18865_v53, %v18864_v12 }
 0x5d1   :  { %18854 = vst [vmem:[#allocation233_spill] sm:$0xff] %v17544_v1  ;;  %18855 = vst [vmem:[#allocation234_spill] sm:$0xff] %v17546_v29 }
 0x5d2   :  { %v12044_v34 = vpop.f32.mrf.mxu0 }
 0x5d3   :  { %v17550_v4 = vadd.f32 %v12044_v34, %v7306_v21  ;;  %v7228_v34 = vadd.f32 %v18868_v22, %v18867_v26  ;;  %v18869_v21 = vld [vmem:[#allocation14_spill] sm:$0xff]  ;;  %v18875_v26 = vld [vmem:[#allocation15_spill] sm:$0xff]  ;;  %v18876_v22 = vld [vmem:[#allocation53_spill] sm:$0xff] }
 0x5d4   :  { %v17552_v11 = vpop.f32.mrf.mxu0 }
 0x5d5   :  { %18858 = vst [vmem:[#allocation140_spill] sm:$0xff] %v17550_v4  ;;  %18859 = vst [vmem:[#allocation155_spill] sm:$0xff] %v17552_v11  ;;  %v18870_v4 = vld [vmem:[#allocation49_spill] sm:$0xff]  ;;  %v8269_v43 = vadd.f32 %v17259_v41, %v7228_v34 }
 0x5d6   :  { %v12047_v59 = vpop.f32.mrf.mxu0  ;;  %v7227_v11 = vadd.f32 %v18870_v4, %v18869_v21  ;;  %v7232_v4 = vadd.f32 %v18876_v22, %v18875_v26  ;;  %v18880_v22 = vld [vmem:[#allocation11_spill] sm:$0xff] }
 0x5d7   :  { %v17556_v8 = vadd.f32 %v12047_v59, %v7308_v62  ;;  %v7230_v59 = vadd.f32 %v18872_v18, %v18871_v20  ;;  %v18878_v18 = vld [vmem:[#allocation13_spill] sm:$0xff] }
 0x5d8   :  { %v17558_v49 = vpop.f32.mrf.mxu0  ;;  %v8268_v62 = vadd.f32 %v17263_v52, %v7227_v11  ;;  %v18877_v52 = vld [vmem:[#allocation154_spill] sm:$0xff] }
 0x5d9   :  { %18862 = vst [vmem:[#allocation145_spill] sm:$0xff] %v17556_v8  ;;  %18863 = vst [vmem:[#allocation157_spill] sm:$0xff] %v17558_v49  ;;  %v18873_v8 = vld [vmem:[#allocation12_spill] sm:$0xff]  ;;  %v8271_v53 = vadd.f32 %v17267_v48, %v7230_v59 }
 0x5da   :  { %v12050_v1 = vpop.f32.mrf.mxu0  ;;  %v18874_v49 = vld [vmem:[#allocation52_spill] sm:$0xff]  ;;  %v8436_v21 = vadd.f32 %v17170_v3, %v8268_v62 }
 0x5db   :  { %v17562_v29 = vadd.f32 %v12050_v1, %v7310_v6  ;;  %v7229_v10 = vadd.f32 %v18874_v49, %v18873_v8  ;;  %v8437_v1 = vadd.f32 %v17143_v23, %v8269_v43  ;;  %v18879_v8 = vld [vmem:[#allocation55_spill] sm:$0xff]  ;;  %v8273_v43 = vadd.f32 %v17273_v56, %v7232_v4  ;;  %v18882_v4 = vld [vmem:[#allocation8_spill] sm:$0xff] }
 0x5dc   :  { %v7231_v49 = vadd.f32 %v18879_v8, %v18878_v18  ;;  %v8439_v48 = vadd.f32 %v17093_v2, %v8271_v53  ;;  %v18883_v8 = vld [vmem:[#allocation58_spill] sm:$0xff] }
 0x5dd   :  { %18866 = vst [vmem:[#allocation149_spill] sm:$0xff] %v17562_v29  ;;  %v8270_v41 = vadd.f32 %v17269_v63, %v7229_v10  ;;  %v18881_v63 = vld [vmem:[#allocation56_spill] sm:$0xff]  ;;  %v7233_v53 = vadd.f32 %v18883_v8, %v18882_v4 }
 0x5de   :  { %v7234_v10 = vadd.f32 %v18881_v63, %v18880_v22  ;;  %v18884_v63 = vld [vmem:[#allocation158_spill] sm:$0xff] }
 0x5df   :  { %v8438_v62 = vadd.f32 %v17122_v24, %v8270_v41 }
 0x627   :  { %v12081_v12 = vpop.f32.mrf.mxu1 }
 0x628   :  { %v8921_v6 = vadd.f32 %v12081_v12, %v17145_v25 }
 0x629   :  { %v8915_v34 = vpop.f32.mrf.mxu1 }
 0x62a   :  { %v8975_v20 = vadd.f32 %v8921_v6, %v8437_v1  ;;  %v8916_v11 = vadd.f32 %v8915_v34, %v18877_v52  ;;  %v8272_v1 = vadd.f32 %v17281_v50, %v7231_v49  ;;  %v8274_v49 = vadd.f32 %v17293_v46, %v7233_v53  ;;  %v18887_v46 = vld [vmem:[#allocation165_spill] sm:$0xff] }
 0x62b   :  { %v12084_v29 = vpop.f32.mrf.mxu1 }
 0x62c   :  { %v10923_v59 = vmul.f32 -1.442695, %v8975_v20  ;;  %v8974_v12 = vadd.f32 %v8916_v11, %v8436_v21  ;;  %v8931_v26 = vadd.f32 %v12084_v29, %v17095_v36  ;;  %v8441_v21 = vadd.f32 %v17224_v55, %v8273_v43 }
 0x62d   :  { %v8925_v6 = vpop.f32.mrf.mxu1  ;;  %v8275_v29 = vadd.f32 %v17283_v19, %v7234_v10  ;;  %v8440_v50 = vadd.f32 %v17243_v42, %v8272_v1 }
 0x62e   :  { %12538 = vpow2.f32 %v10923_v59  ;;  %v10922_v34 = vmul.f32 -1.442695, %v8974_v12  ;;  %v8977_v18 = vadd.f32 %v8931_v26, %v8439_v48  ;;  %v8926_v56 = vadd.f32 %v8925_v6, %v17124_v39 }
 0x62f   :  { %v12087_v20 = vpop.f32.mrf.mxu1  ;;  %v8443_v43 = vadd.f32 %v18884_v63, %v8275_v29 }
 0x630   :  { %12540 = vpow2.f32 %v10922_v34  ;;  %v10925_v11 = vmul.f32 -1.442695, %v8977_v18  ;;  %v8976_v22 = vadd.f32 %v8926_v56, %v8438_v62  ;;  %v8941_v41 = vadd.f32 %v12087_v20, %v17226_v17  ;;  %v18885_v34 = vld [vmem:[#allocation159_spill] sm:$0xff]  ;;  %v18886_v56 = vld [vmem:[#allocation164_spill] sm:$0xff] }
 0x631   :  { %v8935_v48 = vpop.f32.mrf.mxu1  ;;  %v8442_v4 = vadd.f32 %v18886_v56, %v8274_v49 }
 0x632   :  { %12542 = vpow2.f32 %v10925_v11  ;;  %v10924_v59 = vmul.f32 -1.442695, %v8976_v22  ;;  %v9003_v12 = vadd.f32 %v8941_v41, %v8441_v21  ;;  %v8936_v26 = vadd.f32 %v8935_v48, %v17241_v0 }
 0x633   :  { %v12090_v6 = vpop.f32.mrf.mxu1 }
 0x634   :  { %12544 = vpow2.f32 %v10924_v59  ;;  %v10927_v19 = vmul.f32 -1.442695, %v9003_v12  ;;  %v9002_v10 = vadd.f32 %v8936_v26, %v8440_v50  ;;  %v8951_v62 = vadd.f32 %v12090_v6, %v18885_v34 }
 0x635   :  { %v8945_v18 = vpop.f32.mrf.mxu1 }
 0x636   :  { %v10926_v1 = vmul.f32 -1.442695, %v9002_v10  ;;  %v9005_v8 = vadd.f32 %v8951_v62, %v8443_v43  ;;  %v8946_v53 = vadd.f32 %v8945_v18, %v18887_v46  ;;  %12546 = vpow2.f32 %v10927_v19  ;;  %v18888_v19 = vld [vmem:[#allocation16_spill] sm:$0xff]  ;;  %v18889_v10 = vld [vmem:[#allocation59_spill] sm:$0xff] }
 0x637   :  { %v12093_v12 = vpop.f32.mrf.mxu1  ;;  %v7236_v62 = vadd.f32 %v18889_v10, %v18888_v19  ;;  %v18895_v19 = vld [vmem:[#allocation25_spill] sm:$0xff]  ;;  %v18896_v10 = vld [vmem:[#allocation64_spill] sm:$0xff] }
 0x638   :  { %v10929_v20 = vmul.f32 -1.442695, %v9005_v8  ;;  %v9004_v21 = vadd.f32 %v8946_v53, %v8442_v4  ;;  %12548 = vpow2.f32 %v10926_v1  ;;  %v18890_v4 = vld [vmem:[#allocation21_spill] sm:$0xff]  ;;  %v7237_v60 = vadd.f32 %v18896_v10, %v18895_v19 }
 0x639   :  { %v8955_v6 = vpop.f32.mrf.mxu1  ;;  %v18891_v1 = vld [vmem:[#allocation61_spill] sm:$0xff] }
 0x63a   :  { %v10928_v11 = vmul.f32 -1.442695, %v9004_v21  ;;  %12550 = vpow2.f32 %v10929_v20  ;;  %v7235_v8 = vadd.f32 %v18891_v1, %v18890_v4  ;;  %v8277_v20 = vadd.f32 %v17300_v58, %v7236_v62  ;;  %v18897_v62 = vld [vmem:[#allocation167_spill] sm:$0xff] }
 0x63b   :  { %v12539_v22 = vpop.eup %12538 }
 0x63c   :  { %v8991_v29 = vadd.f32 1.0, %v12539_v22  ;;  %12552 = vpow2.f32 %v10928_v11  ;;  %v18892_v11 = vld [vmem:[#allocation19_spill] sm:$0xff]  ;;  %v18893_v22 = vld [vmem:[#allocation62_spill] sm:$0xff]  ;;  %v8445_v58 = vadd.f32 %v17275_v38, %v8277_v20 }
 0x63d   :  { %v12541_v41 = vpop.eup %12540 }
 0x63e   :  { %12554 = vrcp.f32 %v8991_v29  ;;  %v8990_v50 = vadd.f32 1.0, %v12541_v41  ;;  %v7238_v29 = vadd.f32 %v18893_v22, %v18892_v11  ;;  %v8276_v41 = vadd.f32 %v17303_v9, %v7235_v8 }
 0x63f   :  { %v12543_v48 = vpop.eup %12542  ;;  %v8956_v11 = vadd.f32 %v8955_v6, %v18897_v62 }
 0x640   :  { %12556 = vrcp.f32 %v8990_v50  ;;  %v8993_v59 = vadd.f32 1.0, %v12543_v48  ;;  %v12096_v50 = vpop.f32.mrf.mxu1  ;;  %v8279_v4 = vadd.f32 %v17306_v31, %v7238_v29  ;;  %v8444_v9 = vadd.f32 %v17295_v5, %v8276_v41 }
 0x641   :  { %v12545_v49 = vpop.eup %12544  ;;  %v8971_v19 = vadd.f32 %v12096_v50, %v17255_v28 }
 0x642   :  { %12558 = vrcp.f32 %v8993_v59  ;;  %v8992_v26 = vadd.f32 1.0, %v12545_v49  ;;  %v18894_v49 = vld [vmem:[#allocation166_spill] sm:$0xff] }
 0x643   :  { %v12547_v43 = vpop.eup %12546 }
 0x644   :  { %12560 = vrcp.f32 %v8992_v26  ;;  %v9019_v21 = vadd.f32 1.0, %v12547_v43  ;;  %v8961_v26 = vadd.f32 %v12093_v12, %v18894_v49  ;;  %v8965_v12 = vpop.f32.mrf.mxu1 }
 0x645   :  { %v12549_v18 = vpop.eup %12548  ;;  %v8966_v6 = vadd.f32 %v8965_v12, %v17261_v16 }
 0x646   :  { %v9018_v59 = vadd.f32 1.0, %v12549_v18  ;;  %12562 = vrcp.f32 %v9019_v21  ;;  %v8278_v18 = vadd.f32 %v17309_v15, %v7237_v60 }
 0x647   :  { %v12551_v53 = vpop.eup %12550 }
 0x648   :  { %v9021_v1 = vadd.f32 1.0, %v12551_v53  ;;  %12564 = vrcp.f32 %v9018_v59  ;;  %v8447_v53 = vadd.f32 %v17257_v45, %v8279_v4  ;;  %v8446_v15 = vadd.f32 %v17265_v35, %v8278_v18 }
 0x649   :  { %v12553_v48 = vpop.eup %12552 }
 0x64a   :  { %v9020_v8 = vadd.f32 1.0, %v12553_v48  ;;  %12566 = vrcp.f32 %v9021_v1 }
 0x64b   :  { %v12555_v51 = vpop.eup %12554 }
 0x64c   :  { %v9031_v43 = vmul.f32 %v12555_v51, %v8961_v26 }
 0x64d   :  { %v12557_v22 = vpop.eup %12556 }
 0x64e   :  { %v9035_v49 = vadd.f32 %v9031_v43, %v8445_v58  ;;  %v9030_v46 = vmul.f32 %v12557_v22, %v8956_v11 }
 0x64f   :  { %v12559_v31 = vpop.eup %12558 }
 0x650   :  { %12568 = vtanh.f32 %v9035_v49  ;;  %v9034_v51 = vadd.f32 %v9030_v46, %v8444_v9  ;;  %v9033_v20 = vmul.f32 %v12559_v31, %v8971_v19 }
 0x651   :  { %v12561_v21 = vpop.eup %12560  ;;  %12570 = vrcp.f32 %v9020_v8 }
 0x652   :  { %12572 = vtanh.f32 %v9034_v51  ;;  %v9037_v60 = vadd.f32 %v9033_v20, %v8447_v53  ;;  %v9032_v29 = vmul.f32 %v12561_v21, %v8966_v6  ;;  %v18901_v21 = vld [vmem:[#allocation65_spill] sm:$0xff] }
 0x653   :  { %v12563_v50 = vpop.eup %12562 }
 0x654   :  { %12574 = vtanh.f32 %v9037_v60  ;;  %v9036_v41 = vadd.f32 %v9032_v29, %v8446_v15  ;;  %v9043_v26 = vsub.f32 1.0, %v12563_v50  ;;  %v9051_v4 = vmul.f32 %v12563_v50, %v17323_v44  ;;  %v18902_v60 = vld [vmem:[#allocation17_spill] sm:$0xff]  ;;  %v18903_v29 = vld [vmem:[#allocation67_spill] sm:$0xff]  ;;  %v18904_v50 = vld [vmem:[#allocation168_spill] sm:$0xff] }
 0x655   :  { %v12565_v48 = vpop.eup %12564 }
 0x656   :  { %12576 = vtanh.f32 %v9036_v41  ;;  %v9042_v1 = vsub.f32 1.0, %v12565_v48  ;;  %v9050_v9 = vmul.f32 %v12565_v48, %v17327_v47  ;;  %v18898_v47 = vld [vmem:[#allocation191_spill] sm:$0xff]  ;;  %v7239_v41 = vadd.f32 %v18903_v29, %v18902_v60  ;;  %v18914_v60 = vld [vmem:[#allocation29_spill] sm:$0xff] }
 0x657   :  { %v12567_v59 = vpop.eup %12566  ;;  %v18915_v29 = vld [vmem:[#allocation73_spill] sm:$0xff] }
 0x658   :  { %v9045_v43 = vsub.f32 1.0, %v12567_v59  ;;  %v9053_v12 = vmul.f32 %v12567_v59, %v17331_v14  ;;  %v18899_v14 = vld [vmem:[#allocation162_spill] sm:$0xff] }
 0x659   :  { %v18905_v59 = vld [vmem:[#allocation26_spill] sm:$0xff] }
 0x65d   :  { %v12569_v10 = vpop.eup %12568 }
 0x65e   :  { %v12571_v49 = vpop.eup %12570  ;;  %v9047_v46 = vmul.f32 %v12569_v10, %v9043_v26  ;;  %v18906_v26 = vld [vmem:[#allocation68_spill] sm:$0xff] }
 0x65f   :  { %v12573_v58 = vpop.eup %12572  ;;  %v9044_v19 = vsub.f32 1.0, %v12571_v49  ;;  %v9052_v44 = vmul.f32 %v12571_v49, %v17336_v61  ;;  %v18900_v61 = vld [vmem:[#allocation22_spill] sm:$0xff]  ;;  %v7242_v10 = vadd.f32 %v18906_v26, %v18905_v59  ;;  %v18907_v49 = vld [vmem:[#allocation169_spill] sm:$0xff] }
 0x660   :  { %v17625_v11 = vadd.f32 %v9051_v4, %v9047_v46  ;;  %v9046_v22 = vmul.f32 %v12573_v58, %v9042_v1  ;;  %v7240_v15 = vadd.f32 %v18901_v21, %v18900_v61  ;;  %v8280_v46 = vadd.f32 %v18907_v49, %v7239_v41  ;;  %v18908_v4 = vld [vmem:[#allocation20_spill] sm:$0xff]  ;;  %v18909_v1 = vld [vmem:[#allocation70_spill] sm:$0xff] }
 0x661   :  { %v12575_v18 = vpop.eup %12574  ;;  %v7241_v58 = vadd.f32 %v18909_v1, %v18908_v4  ;;  %v7243_v41 = vadd.f32 %v18915_v29, %v18914_v60  ;;  %v18917_v1 = vld [vmem:[#allocation30_spill] sm:$0xff] }
 0x662   :  { %v9049_v8 = vmul.f32 %v12575_v18, %v9045_v43  ;;  %v17629_v31 = vadd.f32 %v9050_v9, %v9046_v22  ;;  %v8281_v48 = vadd.f32 %v18904_v50, %v7240_v15  ;;  %v18910_v9 = vld [vmem:[#allocation170_spill] sm:$0xff]  ;;  %v8448_v61 = vadd.f32 %v17170_v3, %v8280_v46  ;;  %v18916_v50 = vld [vmem:[#allocation172_spill] sm:$0xff] }
 0x663   :  { %v12577_v53 = vpop.eup %12576  ;;  %v8283_v18 = vadd.f32 %v18910_v9, %v7242_v10 }
 0x664   :  { %v17631_v51 = vadd.f32 %v9053_v12, %v9049_v8  ;;  %v9048_v20 = vmul.f32 %v12577_v53, %v9044_v19  ;;  %v8449_v22 = vadd.f32 %v17143_v23, %v8281_v48  ;;  %v18911_v12 = vld [vmem:[#allocation24_spill] sm:$0xff] }
 0x665   :  { %v18912_v19 = vld [vmem:[#allocation72_spill] sm:$0xff]  ;;  %v8451_v26 = vadd.f32 %v17093_v2, %v8283_v18 }
 0x666   :  { %12097 = vmatprep.subr.mxu1 %v17631_v51  ;;  %v17635_v6 = vadd.f32 %v9052_v44, %v9048_v20  ;;  %v7244_v53 = vadd.f32 %v18912_v19, %v18911_v12  ;;  %v18913_v20 = vld [vmem:[#allocation171_spill] sm:$0xff] }
 0x667   :  { %12098 = vmatpush3.msra.mxu1 %v17631_v51  ;;  %v8282_v44 = vadd.f32 %v18913_v20, %v7241_v58  ;;  %v18918_v58 = vld [vmem:[#allocation75_spill] sm:$0xff]  ;;  %v18920_v20 = vld [vmem:[#allocation33_spill] sm:$0xff] }
 0x668   :  { %12099 = vmatprep.subr.mxu1 %v17635_v6  ;;  %v8285_v48 = vadd.f32 %v18916_v50, %v7244_v53 }
 0x669   :  { %12100 = vmatpush3.msra.mxu1 %v17635_v6  ;;  %v8450_v46 = vadd.f32 %v17122_v24, %v8282_v44 }
 0x66a   :  { %12101 = vmatprep.subr.mxu1 %v17625_v11 }
 0x66b   :  { %12102 = vmatpush3.msra.mxu1 %v17625_v11 }
 0x66c   :  { %12103 = vmatprep.subr.mxu1 %v17629_v31 }
 0x66d   :  { %12104 = vmatpush3.msra.mxu1 %v17629_v31 }
 0x66e   :  { %12106 = vmatmul.mubr.msk.f32.vlgmr.msra.gmra.mxu1 %vm94_vm0, %v17356_v40 }
 0x66f   :  { %12108 = vmatprep.mubr.msk.f32.mxu1 %vm94_vm0, %v17365_v54 }
 0x672   :  { %12109 = vmatmul.mubr.msk.f32.gmra.mxu1 %vm94_vm0, %v17374_v7 }
 0x673   :  { %12111 = vmatprep.mubr.msk.f32.mxu1 %vm94_vm0, %v17383_v57 }
 0x676   :  { %12112 = vmatmul.mubr.msk.f32.gmra.mxu1 %vm94_vm0, %v17392_v33 }
 0x677   :  { %12114 = vmatprep.mubr.msk.f32.mxu1 %vm94_vm0, %v17401_v32 }
 0x67a   :  { %12115 = vmatmul.mubr.msk.f32.gmra.mxu1 %vm94_vm0, %v17410_v37 }
 0x67b   :  { %12117 = vmatprep.mubr.msk.f32.mxu1 %vm94_vm0, %v17419_v30 }
 0x67e   :  { %12118 = vmatmul.mubr.msk.f32.gmra.mxu1 %vm94_vm0, %v17428_v27 }
 0x67f   :  { %12120 = vmatprep.mubr.msk.f32.mxu1 %vm94_vm0, %v17437_v13 }
 0x682   :  { %12121 = vmatmul.mubr.msk.f32.gmra.mxu1 %vm94_vm0, %v18898_v47 }
 0x683   :  { %12131 = vmatprep.mubr.msk.f32.mxu1 %vm94_vm0, %v18899_v14 }
 0x72e   :  { %v12107_v43 = vpop.f32.mrf.mxu1 }
 0x72f   :  { %v9130_v8 = vadd.f32 %v12107_v43, %v17145_v25  ;;  %v7246_v43 = vadd.f32 %v18918_v58, %v18917_v1 }
 0x730   :  { %v9124_v14 = vpop.f32.mrf.mxu1 }
 0x731   :  { %v9184_v21 = vadd.f32 %v9130_v8, %v8449_v22  ;;  %v9125_v15 = vadd.f32 %v9124_v14, %v18877_v52  ;;  %v18919_v22 = vld [vmem:[#allocation173_spill] sm:$0xff]  ;;  %v18921_v14 = vld [vmem:[#allocation76_spill] sm:$0xff] }
 0x732   :  { %v12110_v59 = vpop.f32.mrf.mxu1  ;;  %v8284_v9 = vadd.f32 %v18919_v22, %v7243_v41  ;;  %v7245_v18 = vadd.f32 %v18921_v14, %v18920_v20 }
 0x733   :  { %v10943_v10 = vmul.f32 -1.442695, %v9184_v21  ;;  %v9183_v49 = vadd.f32 %v9125_v15, %v8448_v61  ;;  %v9140_v4 = vadd.f32 %v12110_v59, %v17095_v36  ;;  %v8453_v61 = vadd.f32 %v17224_v55, %v8285_v48  ;;  %v18922_v21 = vld [vmem:[#allocation174_spill] sm:$0xff]  ;;  %v18923_v59 = vld [vmem:[#allocation175_spill] sm:$0xff] }
 0x734   :  { %v9134_v8 = vpop.f32.mrf.mxu1  ;;  %v8287_v15 = vadd.f32 %v18922_v21, %v7246_v43  ;;  %v8452_v41 = vadd.f32 %v17243_v42, %v8284_v9 }
 0x735   :  { %12578 = vpow2.f32 %v10943_v10  ;;  %v10942_v12 = vmul.f32 -1.442695, %v9183_v49  ;;  %v9186_v19 = vadd.f32 %v9140_v4, %v8451_v26  ;;  %v9135_v53 = vadd.f32 %v9134_v8, %v17124_v39 }
 0x736   :  { %v12113_v60 = vpop.f32.mrf.mxu1  ;;  %v8286_v10 = vadd.f32 %v18923_v59, %v7245_v18  ;;  %v8455_v48 = vadd.f32 %v18884_v63, %v8287_v15 }
 0x737   :  { %12580 = vpow2.f32 %v10942_v12  ;;  %v10945_v29 = vmul.f32 -1.442695, %v9186_v19  ;;  %v9185_v50 = vadd.f32 %v9135_v53, %v8450_v46  ;;  %v9150_v44 = vadd.f32 %v12113_v60, %v17226_v17  ;;  %v18924_v53 = vld [vmem:[#allocation165_spill] sm:$0xff] }
 0x738   :  { %v9144_v26 = vpop.f32.mrf.mxu1  ;;  %v8454_v12 = vadd.f32 %v18886_v56, %v8286_v10 }
 0x739   :  { %12582 = vpow2.f32 %v10945_v29  ;;  %v10944_v49 = vmul.f32 -1.442695, %v9185_v50  ;;  %v9212_v4 = vadd.f32 %v9150_v44, %v8453_v61  ;;  %v9145_v1 = vadd.f32 %v9144_v26, %v17241_v0 }
 0x73a   :  { %v12116_v58 = vpop.f32.mrf.mxu1 }
 0x73b   :  { %12584 = vpow2.f32 %v10944_v49  ;;  %v10947_v43 = vmul.f32 -1.442695, %v9212_v4  ;;  %v9211_v22 = vadd.f32 %v9145_v1, %v8452_v41  ;;  %v9160_v46 = vadd.f32 %v12116_v58, %v18885_v34  ;;  %v18925_v4 = vld [vmem:[#allocation27_spill] sm:$0xff]  ;;  %v18926_v1 = vld [vmem:[#allocation78_spill] sm:$0xff] }
 0x73c   :  { %v9154_v8 = vpop.f32.mrf.mxu1 }
 0x73d   :  { %v10946_v9 = vmul.f32 -1.442695, %v9211_v22  ;;  %v9214_v19 = vadd.f32 %v9160_v46, %v8455_v48  ;;  %v9155_v20 = vadd.f32 %v9154_v8, %v18924_v53  ;;  %12586 = vpow2.f32 %v10947_v43  ;;  %v18927_v43 = vld [vmem:[#allocation18_spill] sm:$0xff]  ;;  %v18928_v22 = vld [vmem:[#allocation79_spill] sm:$0xff] }
 0x73e   :  { %v12119_v59 = vpop.f32.mrf.mxu1  ;;  %v7248_v48 = vadd.f32 %v18926_v1, %v18925_v4  ;;  %v7247_v46 = vadd.f32 %v18928_v22, %v18927_v43  ;;  %v18935_v4 = vld [vmem:[#allocation82_spill] sm:$0xff] }
 0x73f   :  { %v10949_v14 = vmul.f32 -1.442695, %v9214_v19  ;;  %v9213_v18 = vadd.f32 %v9155_v20, %v8454_v12  ;;  %12588 = vpow2.f32 %v10946_v9  ;;  %v18929_v12 = vld [vmem:[#allocation176_spill] sm:$0xff]  ;;  %v18936_v53 = vld [vmem:[#allocation178_spill] sm:$0xff] }
 0x740   :  { %v9164_v49 = vpop.f32.mrf.mxu1  ;;  %v8289_v9 = vadd.f32 %v18929_v12, %v7248_v48  ;;  %v18930_v20 = vld [vmem:[#allocation32_spill] sm:$0xff] }
 0x741   :  { %v10948_v61 = vmul.f32 -1.442695, %v9213_v18  ;;  %12590 = vpow2.f32 %v10949_v14  ;;  %v18931_v14 = vld [vmem:[#allocation81_spill] sm:$0xff]  ;;  %v9165_v12 = vadd.f32 %v9164_v49, %v18897_v62 }
 0x742   :  { %v12579_v21 = vpop.eup %12578  ;;  %v7250_v18 = vadd.f32 %v18931_v14, %v18930_v20  ;;  %v8457_v48 = vadd.f32 %v17275_v38, %v8289_v9  ;;  %v18937_v14 = vld [vmem:[#allocation179_spill] sm:$0xff] }
 0x743   :  { %v9200_v15 = vadd.f32 1.0, %v12579_v21  ;;  %12592 = vpow2.f32 %v10948_v61  ;;  %v18932_v61 = vld [vmem:[#allocation177_spill] sm:$0xff] }
 0x744   :  { %v12581_v60 = vpop.eup %12580  ;;  %v8288_v21 = vadd.f32 %v18932_v61, %v7247_v46  ;;  %v8291_v43 = vadd.f32 %v18936_v53, %v7250_v18 }
 0x745   :  { %12594 = vrcp.f32 %v9200_v15  ;;  %v9199_v29 = vadd.f32 1.0, %v12581_v60  ;;  %v12122_v15 = vpop.f32.mrf.mxu1 }
 0x746   :  { %v12583_v50 = vpop.eup %12582  ;;  %v8456_v46 = vadd.f32 %v17295_v5, %v8288_v21 }
 0x747   :  { %12596 = vrcp.f32 %v9199_v29  ;;  %v9202_v44 = vadd.f32 1.0, %v12583_v50  ;;  %v18933_v50 = vld [vmem:[#allocation166_spill] sm:$0xff] }
 0x748   :  { %v12585_v41 = vpop.eup %12584 }
 0x749   :  { %12598 = vrcp.f32 %v9202_v44  ;;  %v9201_v10 = vadd.f32 1.0, %v12585_v41  ;;  %v9170_v44 = vadd.f32 %v12119_v59, %v18933_v50  ;;  %v9174_v59 = vpop.f32.mrf.mxu1 }
 0x74a   :  { %v12587_v26 = vpop.eup %12586  ;;  %v9175_v49 = vadd.f32 %v9174_v59, %v17261_v16 }
 0x74b   :  { %12600 = vrcp.f32 %v9201_v10  ;;  %v9228_v19 = vadd.f32 1.0, %v12587_v26  ;;  %v18934_v10 = vld [vmem:[#allocation34_spill] sm:$0xff] }
 0x74c   :  { %v12589_v58 = vpop.eup %12588  ;;  %v7249_v1 = vadd.f32 %v18935_v4, %v18934_v10  ;;  %v9180_v10 = vadd.f32 %v12122_v15, %v17255_v28 }
 0x74d   :  { %v9227_v29 = vadd.f32 1.0, %v12589_v58  ;;  %12602 = vrcp.f32 %v9228_v19 }
 0x74e   :  { %v12591_v8 = vpop.eup %12590  ;;  %v8290_v58 = vadd.f32 %v18937_v14, %v7249_v1 }
 0x74f   :  { %v9230_v22 = vadd.f32 1.0, %v12591_v8  ;;  %12604 = vrcp.f32 %v9227_v29  ;;  %v8459_v8 = vadd.f32 %v17257_v45, %v8291_v43 }
 0x750   :  { %v12593_v60 = vpop.eup %12592  ;;  %v8458_v21 = vadd.f32 %v17265_v35, %v8290_v58 }
 0x751   :  { %v9229_v61 = vadd.f32 1.0, %v12593_v60  ;;  %12606 = vrcp.f32 %v9230_v22 }
 0x752   :  { %v12595_v41 = vpop.eup %12594 }
 0x753   :  { %v9240_v26 = vmul.f32 %v12595_v41, %v9170_v44 }
 0x754   :  { %v12597_v20 = vpop.eup %12596 }
 0x755   :  { %v9244_v50 = vadd.f32 %v9240_v26, %v8457_v48  ;;  %v9239_v56 = vmul.f32 %v12597_v20, %v9165_v12 }
 0x756   :  { %v12599_v53 = vpop.eup %12598 }
 0x757   :  { %12608 = vtanh.f32 %v9244_v50  ;;  %v9243_v9 = vadd.f32 %v9239_v56, %v8456_v46  ;;  %v9242_v19 = vmul.f32 %v12599_v53, %v9180_v10 }
 0x758   :  { %v12601_v18 = vpop.eup %12600  ;;  %12610 = vrcp.f32 %v9229_v61 }
 0x759   :  { %12612 = vtanh.f32 %v9243_v9  ;;  %v9246_v60 = vadd.f32 %v9242_v19, %v8459_v8  ;;  %v9241_v29 = vmul.f32 %v12601_v18, %v9175_v49  ;;  %v18946_v18 = vld [vmem:[#allocation37_spill] sm:$0xff] }
 0x75a   :  { %v12603_v15 = vpop.eup %12602 }
 0x75b   :  { %12614 = vtanh.f32 %v9246_v60  ;;  %v9245_v44 = vadd.f32 %v9241_v29, %v8458_v21  ;;  %v9252_v1 = vsub.f32 1.0, %v12603_v15  ;;  %v9260_v22 = vmul.f32 %v12603_v15, %v17625_v11  ;;  %v18947_v21 = vld [vmem:[#allocation88_spill] sm:$0xff]  ;;  %v18948_v15 = vld [vmem:[#allocation182_spill] sm:$0xff] }
 0x75c   :  { %v12605_v41 = vpop.eup %12604  ;;  %v7253_v60 = vadd.f32 %v18947_v21, %v18946_v18  ;;  %v18959_v18 = vld [vmem:[#allocation94_spill] sm:$0xff] }
 0x75d   :  { %12616 = vtanh.f32 %v9245_v44  ;;  %v9251_v48 = vsub.f32 1.0, %v12605_v41  ;;  %v9259_v14 = vmul.f32 %v12605_v41, %v17629_v31  ;;  %v18944_v31 = vld [vmem:[#allocation87_spill] sm:$0xff] }
 0x75e   :  { %v12607_v4 = vpop.eup %12606 }
 0x75f   :  { %v9254_v12 = vsub.f32 1.0, %v12607_v4  ;;  %v9262_v59 = vmul.f32 %v12607_v4, %v17631_v51 }
 0x764   :  { %v12609_v43 = vpop.eup %12608 }
 0x765   :  { %v12611_v50 = vpop.eup %12610  ;;  %v9256_v56 = vmul.f32 %v12609_v43, %v9252_v1  ;;  %v18949_v1 = vld [vmem:[#allocation28_spill] sm:$0xff]  ;;  %v18950_v43 = vld [vmem:[#allocation90_spill] sm:$0xff] }
 0x766   :  { %v12613_v26 = vpop.eup %12612  ;;  %v9253_v10 = vsub.f32 1.0, %v12611_v50  ;;  %v9261_v11 = vmul.f32 %v12611_v50, %v17635_v6  ;;  %v18945_v6 = vld [vmem:[#allocation181_spill] sm:$0xff]  ;;  %v7256_v50 = vadd.f32 %v18950_v43, %v18949_v1 }
 0x767   :  { %v17729_v20 = vadd.f32 %v9260_v22, %v9256_v56  ;;  %v9255_v46 = vmul.f32 %v12613_v26, %v9251_v48  ;;  %v18951_v56 = vld [vmem:[#allocation183_spill] sm:$0xff] }
 0x768   :  { %v12615_v58 = vpop.eup %12614  ;;  %v8294_v22 = vadd.f32 %v18951_v56, %v7253_v60 }
 0x769   :  { %v9258_v61 = vmul.f32 %v12615_v58, %v9254_v12  ;;  %v17733_v53 = vadd.f32 %v9259_v14, %v9255_v46  ;;  %v18952_v14 = vld [vmem:[#allocation35_spill] sm:$0xff] }
 0x76a   :  { %v12617_v8 = vpop.eup %12616  ;;  %v18953_v58 = vld [vmem:[#allocation91_spill] sm:$0xff] }
 0x76b   :  { %v17735_v9 = vadd.f32 %v9262_v59, %v9258_v61  ;;  %v9257_v19 = vmul.f32 %v12617_v8, %v9253_v10  ;;  %v7255_v61 = vadd.f32 %v18953_v58, %v18952_v14  ;;  %v18954_v59 = vld [vmem:[#allocation184_spill] sm:$0xff] }
 0x76c   :  { %v8297_v10 = vadd.f32 %v18954_v59, %v7256_v50  ;;  %v18961_v50 = vld [vmem:[#allocation187_spill] sm:$0xff] }
 0x76d   :  { %12123 = vmatprep.subr.mxu1 %v17735_v9  ;;  %v17739_v49 = vadd.f32 %v9261_v11, %v9257_v19 }
 0x76e   :  { %12124 = vmatpush3.msra.mxu1 %v17735_v9  ;;  %v8465_v60 = vadd.f32 %v17224_v55, %v8297_v10 }
 0x76f   :  { %12125 = vmatprep.subr.mxu1 %v17739_v49 }
 0x770   :  { %12126 = vmatpush3.msra.mxu1 %v17739_v49 }
 0x771   :  { %12127 = vmatprep.subr.mxu1 %v17729_v20 }
 0x772   :  { %12128 = vmatpush3.msra.mxu1 %v17729_v20 }
 0x773   :  { %12129 = vmatprep.subr.mxu1 %v17733_v53 }
 0x774   :  { %12130 = vmatpush3.msra.mxu1 %v17733_v53 }
 0x775   :  { %12132 = vmatmul.mubr.msk.f32.vlgmr.msra.gmra.mxu1 %vm94_vm0, %v17356_v40  ;;  %v17773_v40 = vld [vmem:[%s18337_s12] sm:$0xff] }
 0x776   :  { %12134 = vmatprep.mubr.msk.f32.mxu1 %vm94_vm0, %v17365_v54  ;;  %v18938_v54 = vld [vmem:[#allocation23_spill] sm:$0xff] }
 0x779   :  { %12135 = vmatmul.mubr.msk.f32.gmra.mxu1 %vm94_vm0, %v17374_v7  ;;  %v18939_v7 = vld [vmem:[#allocation84_spill] sm:$0xff] }
 0x77a   :  { %12137 = vmatprep.mubr.msk.f32.mxu1 %vm94_vm0, %v17383_v57  ;;  %v7252_v57 = vadd.f32 %v18939_v7, %v18938_v54 }
 0x77d   :  { %12138 = vmatmul.mubr.msk.f32.gmra.mxu1 %vm94_vm0, %v17392_v33  ;;  %v18941_v33 = vld [vmem:[#allocation85_spill] sm:$0xff] }
 0x77e   :  { %12140 = vmatprep.mubr.msk.f32.mxu1 %vm94_vm0, %v17401_v32  ;;  %v18942_v32 = vld [vmem:[#allocation180_spill] sm:$0xff] }
 0x781   :  { %12141 = vmatmul.mubr.msk.f32.gmra.mxu1 %vm94_vm0, %v17410_v37  ;;  %v18940_v37 = vld [vmem:[#allocation31_spill] sm:$0xff] }
 0x782   :  { %12143 = vmatprep.mubr.msk.f32.mxu1 %vm94_vm0, %v17419_v30  ;;  %v7251_v30 = vadd.f32 %v18941_v33, %v18940_v37  ;;  %v18956_v37 = vld [vmem:[#allocation93_spill] sm:$0xff] }
 0x785   :  { %12144 = vmatmul.mubr.msk.f32.gmra.mxu1 %vm94_vm0, %v17428_v27  ;;  %v8293_v27 = vadd.f32 %v18942_v32, %v7252_v57  ;;  %v18955_v57 = vld [vmem:[#allocation38_spill] sm:$0xff]  ;;  %v18957_v32 = vld [vmem:[#allocation185_spill] sm:$0xff] }
 0x786   :  { %12146 = vmatprep.mubr.msk.f32.mxu1 %vm94_vm0, %v17437_v13  ;;  %v18943_v13 = vld [vmem:[#allocation36_spill] sm:$0xff]  ;;  %v7258_v33 = vadd.f32 %v18956_v37, %v18955_v57 }
 0x787   :  { %v7254_v51 = vadd.f32 %v18944_v31, %v18943_v13  ;;  %v8461_v44 = vadd.f32 %v17143_v23, %v8293_v27  ;;  %v8296_v27 = vadd.f32 %v18957_v32, %v7255_v61 }
 0x789   :  { %12147 = vmatmul.mubr.msk.f32.gmra.mxu1 %vm94_vm0, %v18898_v47  ;;  %v8292_v47 = vadd.f32 %v18945_v6, %v7251_v30  ;;  %v8295_v41 = vadd.f32 %v18948_v15, %v7254_v51  ;;  %v8462_v30 = vadd.f32 %v17122_v24, %v8294_v22  ;;  %v8464_v43 = vadd.f32 %v17243_v42, %v8296_v27 }
 0x78a   :  { %12157 = vmatprep.mubr.msk.f32.mxu1 %vm94_vm0, %v17773_v40 }
 0x78b   :  { %v8460_v26 = vadd.f32 %v17170_v3, %v8292_v47  ;;  %v8463_v19 = vadd.f32 %v17093_v2, %v8295_v41  ;;  %v18958_v47 = vld [vmem:[#allocation40_spill] sm:$0xff] }
 0x78c   :  { %v7257_v21 = vadd.f32 %v18959_v18, %v18958_v47 }
 0x78e   :  { %v8298_v56 = vadd.f32 %v18961_v50, %v7257_v21 }
 0x835   :  { %v12133_v29 = vpop.f32.mrf.mxu1 }
 0x836   :  { %v9339_v4 = vadd.f32 %v12133_v29, %v17145_v25  ;;  %v18960_v29 = vld [vmem:[#allocation186_spill] sm:$0xff] }
 0x837   :  { %v9333_v48 = vpop.f32.mrf.mxu1 }
 0x838   :  { %v9393_v12 = vadd.f32 %v9339_v4, %v8461_v44  ;;  %v9334_v46 = vadd.f32 %v9333_v48, %v18877_v52  ;;  %v8299_v44 = vadd.f32 %v18960_v29, %v7258_v33 }
 0x839   :  { %v12136_v8 = vpop.f32.mrf.mxu1 }
 0x83a   :  { %v10963_v11 = vmul.f32 -1.442695, %v9393_v12  ;;  %v9392_v54 = vadd.f32 %v9334_v46, %v8460_v26  ;;  %v9349_v7 = vadd.f32 %v12136_v8, %v17095_v36  ;;  %v8467_v46 = vadd.f32 %v18884_v63, %v8299_v44  ;;  %v18962_v8 = vld [vmem:[#allocation164_spill] sm:$0xff]  ;;  %v18964_v44 = vld [vmem:[#allocation3_spill] sm:$0xff] }
 0x83b   :  { %v9343_v13 = vpop.f32.mrf.mxu1 }
 0x83c   :  { %12618 = vpow2.f32 %v10963_v11  ;;  %v10962_v31 = vmul.f32 -1.442695, %v9392_v54  ;;  %v9395_v51 = vadd.f32 %v9349_v7, %v8463_v19  ;;  %v9344_v6 = vadd.f32 %v9343_v13, %v17124_v39  ;;  %v18963_v7 = vld [vmem:[#allocation165_spill] sm:$0xff] }
 0x83d   :  { %v12139_v15 = vpop.f32.mrf.mxu1  ;;  %v8466_v19 = vadd.f32 %v18962_v8, %v8298_v56 }
 0x83e   :  { %12620 = vpow2.f32 %v10962_v31  ;;  %v10965_v41 = vmul.f32 -1.442695, %v9395_v51  ;;  %v9394_v4 = vadd.f32 %v9344_v6, %v8462_v30  ;;  %v9359_v1 = vadd.f32 %v12139_v15, %v17226_v17  ;;  %v18965_v15 = vld [vmem:[#allocation96_spill] sm:$0xff] }
 0x83f   :  { %v9353_v22 = vpop.f32.mrf.mxu1 }
 0x840   :  { %12622 = vpow2.f32 %v10965_v41  ;;  %v10964_v48 = vmul.f32 -1.442695, %v9394_v4  ;;  %v9421_v26 = vadd.f32 %v9359_v1, %v8465_v60  ;;  %v9354_v12 = vadd.f32 %v9353_v22, %v17241_v0  ;;  %v18966_v1 = vld [vmem:[#allocation39_spill] sm:$0xff]  ;;  %v18968_v22 = vld [vmem:[#allocation188_spill] sm:$0xff] }
 0x841   :  { %v12142_v14 = vpop.f32.mrf.mxu1  ;;  %v7260_v41 = vadd.f32 %v18965_v15, %v18964_v44 }
 0x842   :  { %12624 = vpow2.f32 %v10964_v48  ;;  %v10967_v58 = vmul.f32 -1.442695, %v9421_v26  ;;  %v9420_v61 = vadd.f32 %v9354_v12, %v8464_v43  ;;  %v9369_v59 = vadd.f32 %v12142_v14, %v18885_v34  ;;  %v18967_v43 = vld [vmem:[#allocation97_spill] sm:$0xff] }
 0x843   :  { %v9363_v10 = vpop.f32.mrf.mxu1  ;;  %v7259_v50 = vadd.f32 %v18967_v43, %v18966_v1  ;;  %v8301_v48 = vadd.f32 %v18968_v22, %v7260_v41  ;;  %v18969_v12 = vld [vmem:[#allocation41_spill] sm:$0xff] }
 0x844   :  { %v10966_v11 = vmul.f32 -1.442695, %v9420_v61  ;;  %v9423_v54 = vadd.f32 %v9369_v59, %v8467_v46  ;;  %v9364_v57 = vadd.f32 %v9363_v10, %v18963_v7  ;;  %12626 = vpow2.f32 %v10967_v58  ;;  %v18970_v46 = vld [vmem:[#allocation99_spill] sm:$0xff]  ;;  %v18971_v58 = vld [vmem:[#allocation189_spill] sm:$0xff] }
 0x845   :  { %v12145_v18 = vpop.f32.mrf.mxu1  ;;  %v7262_v14 = vadd.f32 %v18970_v46, %v18969_v12  ;;  %v8300_v61 = vadd.f32 %v18971_v58, %v7259_v50 }
 0x846   :  { %v10969_v37 = vmul.f32 -1.442695, %v9423_v54  ;;  %v9422_v33 = vadd.f32 %v9364_v57, %v8466_v19  ;;  %12628 = vpow2.f32 %v10966_v11  ;;  %v18972_v11 = vld [vmem:[#allocation166_spill] sm:$0xff] }
 0x847   :  { %v9373_v29 = vpop.f32.mrf.mxu1  ;;  %v9379_v54 = vadd.f32 %v12145_v18, %v18972_v11 }
 0x848   :  { %v10968_v30 = vmul.f32 -1.442695, %v9422_v33  ;;  %12630 = vpow2.f32 %v10969_v37  ;;  %v18973_v37 = vld [vmem:[#allocation42_spill] sm:$0xff]  ;;  %v18974_v33 = vld [vmem:[#allocation100_spill] sm:$0xff] }
 0x849   :  { %v12619_v32 = vpop.eup %12618  ;;  %v12148_v59 = vpop.f32.mrf.mxu1 }
 0x84a   :  { %v9409_v27 = vadd.f32 1.0, %v12619_v32  ;;  %12632 = vpow2.f32 %v10968_v30  ;;  %v7261_v30 = vadd.f32 %v18974_v33, %v18973_v37  ;;  %v18975_v32 = vld [vmem:[#allocation190_spill] sm:$0xff]  ;;  %v9389_v1 = vadd.f32 %v12148_v59, %v17255_v28 }
 0x84b   :  { %v12621_v13 = vpop.eup %12620  ;;  %v9383_v18 = vpop.f32.mrf.mxu1 }
 0x84c   :  { %12634 = vrcp.f32 %v9409_v27  ;;  %v9408_v31 = vadd.f32 1.0, %v12621_v13  ;;  %v8303_v27 = vadd.f32 %v18975_v32, %v7262_v14 }
 0x84d   :  { %v12623_v51 = vpop.eup %12622 }
 0x84e   :  { %12636 = vrcp.f32 %v9408_v31  ;;  %v9411_v6 = vadd.f32 1.0, %v12623_v51  ;;  %v8469_v31 = vadd.f32 %v17275_v38, %v8301_v48  ;;  %v8471_v50 = vadd.f32 %v17257_v45, %v8303_v27 }
 0x84f   :  { %v12625_v47 = vpop.eup %12624 }
 0x850   :  { %12638 = vrcp.f32 %v9411_v6  ;;  %v9410_v21 = vadd.f32 1.0, %v12625_v47  ;;  %v9374_v6 = vadd.f32 %v9373_v29, %v18897_v62  ;;  %v9384_v29 = vadd.f32 %v9383_v18, %v17261_v16 }
 0x851   :  { %v12627_v60 = vpop.eup %12626 }
 0x852   :  { %12640 = vrcp.f32 %v9410_v21  ;;  %v9437_v26 = vadd.f32 1.0, %v12627_v60  ;;  %v8468_v21 = vadd.f32 %v17295_v5, %v8300_v61  ;;  %v18976_v60 = vld [vmem:[#allocation192_spill] sm:$0xff] }
 0x853   :  { %v12629_v4 = vpop.eup %12628  ;;  %v8302_v44 = vadd.f32 %v18976_v60, %v7261_v30 }
 0x854   :  { %v9436_v19 = vadd.f32 1.0, %v12629_v4  ;;  %12642 = vrcp.f32 %v9437_v26 }
 0x855   :  { %v12631_v56 = vpop.eup %12630  ;;  %v8470_v26 = vadd.f32 %v17265_v35, %v8302_v44 }
 0x856   :  { %v9439_v13 = vadd.f32 1.0, %v12631_v56  ;;  %12644 = vrcp.f32 %v9436_v19 }
 0x857   :  { %v12633_v10 = vpop.eup %12632 }
 0x858   :  { %v9438_v15 = vadd.f32 1.0, %v12633_v10  ;;  %12646 = vrcp.f32 %v9439_v13 }
 0x859   :  { %v12635_v57 = vpop.eup %12634 }
 0x85a   :  { %v9449_v51 = vmul.f32 %v12635_v57, %v9379_v54 }
 0x85b   :  { %v12637_v47 = vpop.eup %12636 }
 0x85c   :  { %v9453_v41 = vadd.f32 %v9449_v51, %v8469_v31  ;;  %v9448_v4 = vmul.f32 %v12637_v47, %v9374_v6 }
 0x85d   :  { %v12639_v43 = vpop.eup %12638 }
 0x85e   :  { %12648 = vtanh.f32 %v9453_v41  ;;  %v9452_v56 = vadd.f32 %v9448_v4, %v8468_v21  ;;  %v9451_v22 = vmul.f32 %v12639_v43, %v9389_v1  ;;  %v17881_v4 = vld [vmem:[%s18337_s12 + $0x20] sm:$0xff]  ;;  %v17888_v1 = vld [vmem:[%s18337_s12 + $0x28] sm:$0xff]  ;;  %v17895_v43 = vld [vmem:[%s18337_s12 + $0x30] sm:$0xff] }
 0x85f   :  { %v12641_v48 = vpop.eup %12640  ;;  %12650 = vrcp.f32 %v9438_v15 }
 0x860   :  { %12652 = vtanh.f32 %v9452_v56  ;;  %v9455_v12 = vadd.f32 %v9451_v22, %v8471_v50  ;;  %v9450_v46 = vmul.f32 %v12641_v48, %v9384_v29  ;;  %v17902_v50 = vld [vmem:[%s18337_s12 + $0x38] sm:$0xff]  ;;  %v17909_v56 = vld [vmem:[%s18337_s12 + $0x40] sm:$0xff]  ;;  %v17916_v22 = vld [vmem:[%s18337_s12 + $0x48] sm:$0xff] }
 0x861   :  { %v12643_v58 = vpop.eup %12642  ;;  %v17923_v29 = vld [vmem:[%s18337_s12 + $0x50] sm:$0xff]  ;;  %v17930_v48 = vld [vmem:[%s18337_s12 + $0x58] sm:$0xff] }
 0x862   :  { %12654 = vtanh.f32 %v9455_v12  ;;  %v9454_v14 = vadd.f32 %v9450_v46, %v8470_v26  ;;  %v9461_v10 = vsub.f32 1.0, %v12643_v58  ;;  %v9469_v37 = vmul.f32 %v12643_v58, %v17729_v20  ;;  %v18977_v26 = vld [vmem:[#allocation43_spill] sm:$0xff]  ;;  %v18978_v12 = vld [vmem:[#allocation102_spill] sm:$0xff] }
 0x863   :  { %v12645_v61 = vpop.eup %12644  ;;  %v7264_v46 = vadd.f32 %v18978_v12, %v18977_v26  ;;  %v18980_v58 = vld [vmem:[#allocation103_spill] sm:$0xff]  ;;  %v18990_v26 = vld [vmem:[#allocation196_spill] sm:$0xff] }
 0x864   :  { %12656 = vtanh.f32 %v9454_v14  ;;  %v9460_v33 = vsub.f32 1.0, %v12645_v61  ;;  %v9468_v31 = vmul.f32 %v12645_v61, %v17733_v53  ;;  %v17860_v53 = vld [vmem:[%s18337_s12 + $0x8] sm:$0xff] }
 0x865   :  { %v12647_v59 = vpop.eup %12646  ;;  %v18979_v14 = vld [vmem:[#allocation7_spill] sm:$0xff] }
 0x866   :  { %v9463_v32 = vsub.f32 1.0, %v12647_v59  ;;  %v9471_v47 = vmul.f32 %v12647_v59, %v17735_v9  ;;  %v17867_v9 = vld [vmem:[%s18337_s12 + $0x10] sm:$0xff]  ;;  %v7263_v61 = vadd.f32 %v18980_v58, %v18979_v14  ;;  %v18981_v59 = vld [vmem:[#allocation193_spill] sm:$0xff] }
 0x86b   :  { %v12649_v19 = vpop.eup %12648 }
 0x86c   :  { %v12651_v54 = vpop.eup %12650  ;;  %v9465_v57 = vmul.f32 %v12649_v19, %v9461_v10  ;;  %v8305_v10 = vadd.f32 %v18981_v59, %v7264_v46  ;;  %v18982_v19 = vld [vmem:[#allocation5_spill] sm:$0xff]  ;;  %v18991_v59 = vld [vmem:[#allocation2_spill] sm:$0xff] }
 0x86d   :  { %v12653_v30 = vpop.eup %12652  ;;  %v9462_v21 = vsub.f32 1.0, %v12651_v54  ;;  %v9470_v20 = vmul.f32 %v12651_v54, %v17739_v49  ;;  %v17874_v49 = vld [vmem:[%s18337_s12 + $0x18] sm:$0xff] }
 0x86e   :  { %v17838_v27 = vadd.f32 %v9469_v37, %v9465_v57  ;;  %v9464_v13 = vmul.f32 %v12653_v30, %v9460_v33  ;;  %v18983_v54 = vld [vmem:[#allocation105_spill] sm:$0xff]  ;;  %v18984_v37 = vld [vmem:[#allocation194_spill] sm:$0xff] }
 0x86f   :  { %v12655_v51 = vpop.eup %12654  ;;  %v7266_v57 = vadd.f32 %v18983_v54, %v18982_v19  ;;  %v8304_v33 = vadd.f32 %v18984_v37, %v7263_v61  ;;  %v18985_v30 = vld [vmem:[#allocation6_spill] sm:$0xff]  ;;  %v18992_v19 = vld [vmem:[#allocation109_spill] sm:$0xff] }
 0x870   :  { %v9467_v6 = vmul.f32 %v12655_v51, %v9463_v32  ;;  %v17842_v60 = vadd.f32 %v9468_v31, %v9464_v13  ;;  %v18986_v32 = vld [vmem:[#allocation106_spill] sm:$0xff]  ;;  %v8473_v51 = vadd.f32 %v17143_v23, %v8305_v10  ;;  %v7267_v54 = vadd.f32 %v18992_v19, %v18991_v59  ;;  %v18993_v37 = vld [vmem:[#allocation197_spill] sm:$0xff] }
 0x871   :  { %v12657_v44 = vpop.eup %12656  ;;  %v7265_v13 = vadd.f32 %v18986_v32, %v18985_v30  ;;  %v8472_v14 = vadd.f32 %v17170_v3, %v8304_v33  ;;  %v18997_v19 = vld [vmem:[#allocation45_spill] sm:$0xff] }
 0x872   :  { %v17844_v15 = vadd.f32 %v9471_v47, %v9467_v6  ;;  %v9466_v18 = vmul.f32 %v12657_v44, %v9462_v21  ;;  %v18987_v6 = vld [vmem:[#allocation195_spill] sm:$0xff]  ;;  %v18988_v44 = vld [vmem:[#allocation4_spill] sm:$0xff] }
 0x873   :  { %v8307_v47 = vadd.f32 %v18987_v6, %v7266_v57  ;;  %v8306_v12 = vadd.f32 %v18990_v26, %v7265_v13  ;;  %v18995_v13 = vld [vmem:[#allocation111_spill] sm:$0xff] }
 0x874   :  { %12149 = vmatprep.subr.mxu1 %v17844_v15  ;;  %v17848_v41 = vadd.f32 %v9470_v20, %v9466_v18  ;;  %v18989_v18 = vld [vmem:[#allocation108_spill] sm:$0xff] }
 0x875   :  { %12150 = vmatpush3.msra.mxu1 %v17844_v15  ;;  %v7268_v20 = vadd.f32 %v18989_v18, %v18988_v44  ;;  %v8475_v57 = vadd.f32 %v17093_v2, %v8307_v47  ;;  %v18994_v44 = vld [vmem:[#allocation44_spill] sm:$0xff]  ;;  %v8474_v33 = vadd.f32 %v17122_v24, %v8306_v12 }
 0x876   :  { %12151 = vmatprep.subr.mxu1 %v17848_v41  ;;  %v7270_v18 = vadd.f32 %v18995_v13, %v18994_v44 }
 0x877   :  { %12152 = vmatpush3.msra.mxu1 %v17848_v41  ;;  %v8309_v10 = vadd.f32 %v18993_v37, %v7268_v20  ;;  %v18998_v37 = vld [vmem:[#allocation112_spill] sm:$0xff] }
 0x878   :  { %12153 = vmatprep.subr.mxu1 %v17838_v27  ;;  %v7269_v47 = vadd.f32 %v18998_v37, %v18997_v19 }
 0x879   :  { %12154 = vmatpush3.msra.mxu1 %v17838_v27 }
 0x87a   :  { %12155 = vmatprep.subr.mxu1 %v17842_v60 }
 0x87b   :  { %12156 = vmatpush3.msra.mxu1 %v17842_v60 }
 0x87c   :  { %12158 = vmatmul.mubr.msk.f32.vlgmr.msra.gmra.mxu1 %vm94_vm0, %v17860_v53 }
 0x87d   :  { %12160 = vmatprep.mubr.msk.f32.mxu1 %vm94_vm0, %v17867_v9 }
 0x880   :  { %12161 = vmatmul.mubr.msk.f32.gmra.mxu1 %vm94_vm0, %v17874_v49 }
 0x881   :  { %12163 = vmatprep.mubr.msk.f32.mxu1 %vm94_vm0, %v17881_v4 }
 0x884   :  { %12164 = vmatmul.mubr.msk.f32.gmra.mxu1 %vm94_vm0, %v17888_v1 }
 0x885   :  { %12166 = vmatprep.mubr.msk.f32.mxu1 %vm94_vm0, %v17895_v43 }
 0x888   :  { %12167 = vmatmul.mubr.msk.f32.gmra.mxu1 %vm94_vm0, %v17902_v50 }
 0x889   :  { %12169 = vmatprep.mubr.msk.f32.mxu1 %vm94_vm0, %v17909_v56 }
 0x88c   :  { %12170 = vmatmul.mubr.msk.f32.gmra.mxu1 %vm94_vm0, %v17916_v22 }
 0x88d   :  { %12172 = vmatprep.mubr.msk.f32.mxu1 %vm94_vm0, %v17923_v29 }
 0x890   :  { %12173 = vmatmul.mubr.msk.f32.gmra.mxu1 %vm94_vm0, %v17930_v48 }
 0x891   :  { %12183 = vmatprep.mubr.msk.f32.mxu1 %vm94_vm0, %v17773_v40 }
 0x93c   :  { %v12159_v31 = vpop.f32.mrf.mxu1 }
 0x93d   :  { %v9548_v21 = vadd.f32 %v12159_v31, %v17145_v25 }
 0x93e   :  { %v9542_v46 = vpop.f32.mrf.mxu1 }
 0x93f   :  { %v9602_v58 = vadd.f32 %v9548_v21, %v8473_v51  ;;  %v9543_v61 = vadd.f32 %v9542_v46, %v18877_v52  ;;  %v18996_v51 = vld [vmem:[#allocation198_spill] sm:$0xff] }
 0x940   :  { %v12162_v30 = vpop.f32.mrf.mxu1  ;;  %v8308_v21 = vadd.f32 %v18996_v51, %v7267_v54 }
 0x941   :  { %v10983_v32 = vmul.f32 -1.442695, %v9602_v58  ;;  %v9601_v31 = vadd.f32 %v9543_v61, %v8472_v14  ;;  %v9558_v6 = vadd.f32 %v12162_v30, %v17095_v36  ;;  %v8477_v14 = vadd.f32 %v17224_v55, %v8309_v10  ;;  %v18999_v58 = vld [vmem:[#allocation199_spill] sm:$0xff] }
 0x942   :  { %v9552_v26 = vpop.f32.mrf.mxu1  ;;  %v8311_v61 = vadd.f32 %v18999_v58, %v7270_v18  ;;  %v8476_v54 = vadd.f32 %v17243_v42, %v8308_v21 }
 0x943   :  { %12658 = vpow2.f32 %v10983_v32  ;;  %v10982_v46 = vmul.f32 -1.442695, %v9601_v31  ;;  %v9604_v59 = vadd.f32 %v9558_v6, %v8475_v57  ;;  %v9553_v20 = vadd.f32 %v9552_v26, %v17124_v39  ;;  %v19000_v32 = vld [vmem:[#allocation200_spill] sm:$0xff] }
 0x944   :  { %v12165_v30 = vpop.f32.mrf.mxu1  ;;  %v8310_v31 = vadd.f32 %v19000_v32, %v7269_v47  ;;  %v8479_v10 = vadd.f32 %v18884_v63, %v8311_v61 }
 0x945   :  { %12660 = vpow2.f32 %v10982_v46  ;;  %v10985_v44 = vmul.f32 -1.442695, %v9604_v59  ;;  %v9603_v13 = vadd.f32 %v9553_v20, %v8474_v33  ;;  %v9568_v12 = vadd.f32 %v12165_v30, %v17226_v17 }
 0x946   :  { %v9562_v57 = vpop.f32.mrf.mxu1  ;;  %v8478_v20 = vadd.f32 %v18962_v8, %v8310_v31  ;;  %v19011_v8 = vld [vmem:[#allocation203_spill] sm:$0xff] }
 0x947   :  { %12662 = vpow2.f32 %v10985_v44  ;;  %v10984_v6 = vmul.f32 -1.442695, %v9603_v13  ;;  %v9630_v51 = vadd.f32 %v9568_v12, %v8477_v14  ;;  %v9563_v26 = vadd.f32 %v9562_v57, %v17241_v0 }
 0x948   :  { %v12168_v19 = vpop.f32.mrf.mxu1 }
 0x949   :  { %12664 = vpow2.f32 %v10984_v6  ;;  %v10987_v18 = vmul.f32 -1.442695, %v9630_v51  ;;  %v9629_v46 = vadd.f32 %v9563_v26, %v8476_v54  ;;  %v9578_v33 = vadd.f32 %v12168_v19, %v18885_v34  ;;  %v19002_v19 = vld [vmem:[#allocation114_spill] sm:$0xff] }
 0x94a   :  { %v9572_v59 = vpop.f32.mrf.mxu1 }
 0x94b   :  { %v10986_v21 = vmul.f32 -1.442695, %v9629_v46  ;;  %v9632_v37 = vadd.f32 %v9578_v33, %v8479_v10  ;;  %v9573_v47 = vadd.f32 %v9572_v59, %v18963_v7  ;;  %12666 = vpow2.f32 %v10987_v18  ;;  %v19001_v10 = vld [vmem:[#allocation46_spill] sm:$0xff]  ;;  %v19003_v33 = vld [vmem:[#allocation48_spill] sm:$0xff]  ;;  %v19004_v59 = vld [vmem:[#allocation115_spill] sm:$0xff] }
 0x94c   :  { %v12171_v57 = vpop.f32.mrf.mxu1  ;;  %v7272_v18 = vadd.f32 %v19002_v19, %v19001_v10  ;;  %v19009_v10 = vld [vmem:[#allocation54_spill] sm:$0xff]  ;;  %v19010_v19 = vld [vmem:[#allocation117_spill] sm:$0xff] }
 0x94d   :  { %v10989_v58 = vmul.f32 -1.442695, %v9632_v37  ;;  %v9631_v14 = vadd.f32 %v9573_v47, %v8478_v20  ;;  %12668 = vpow2.f32 %v10986_v21  ;;  %v7271_v20 = vadd.f32 %v19004_v59, %v19003_v33  ;;  %v19005_v37 = vld [vmem:[#allocation201_spill] sm:$0xff] }
 0x94e   :  { %v9582_v26 = vpop.f32.mrf.mxu1  ;;  %v8313_v47 = vadd.f32 %v19005_v37, %v7272_v18  ;;  %v7273_v7 = vadd.f32 %v19010_v19, %v19009_v10 }
 0x94f   :  { %v10988_v30 = vmul.f32 -1.442695, %v9631_v14  ;;  %12670 = vpow2.f32 %v10989_v58  ;;  %v19006_v14 = vld [vmem:[#allocation51_spill] sm:$0xff]  ;;  %v9583_v37 = vadd.f32 %v9582_v26, %v18897_v62 }
 0x950   :  { %v12659_v44 = vpop.eup %12658  ;;  %v8481_v18 = vadd.f32 %v17275_v38, %v8313_v47 }
 0x951   :  { %v9618_v61 = vadd.f32 1.0, %v12659_v44  ;;  %12672 = vpow2.f32 %v10988_v30  ;;  %v19007_v30 = vld [vmem:[#allocation116_spill] sm:$0xff] }
 0x952   :  { %v12661_v13 = vpop.eup %12660  ;;  %v7274_v44 = vadd.f32 %v19007_v30, %v19006_v14  ;;  %v19012_v30 = vld [vmem:[#allocation204_spill] sm:$0xff] }
 0x953   :  { %12674 = vrcp.f32 %v9618_v61  ;;  %v9617_v12 = vadd.f32 1.0, %v12661_v13  ;;  %v19008_v61 = vld [vmem:[#allocation202_spill] sm:$0xff] }
 0x954   :  { %v12663_v54 = vpop.eup %12662  ;;  %v8312_v13 = vadd.f32 %v19008_v61, %v7271_v20  ;;  %v8315_v33 = vadd.f32 %v19011_v8, %v7274_v44 }
 0x955   :  { %12676 = vrcp.f32 %v9617_v12  ;;  %v9620_v32 = vadd.f32 1.0, %v12663_v54  ;;  %v12174_v12 = vpop.f32.mrf.mxu1 }
 0x956   :  { %v12665_v31 = vpop.eup %12664  ;;  %v8480_v20 = vadd.f32 %v17295_v5, %v8312_v13  ;;  %v9598_v10 = vadd.f32 %v12174_v12, %v17255_v28 }
 0x957   :  { %12678 = vrcp.f32 %v9620_v32  ;;  %v9619_v6 = vadd.f32 1.0, %v12665_v31  ;;  %v9588_v31 = vadd.f32 %v12171_v57, %v18972_v11  ;;  %v9592_v57 = vpop.f32.mrf.mxu1 }
 0x958   :  { %v12667_v51 = vpop.eup %12666  ;;  %v9593_v26 = vadd.f32 %v9592_v57, %v17261_v16 }
 0x959   :  { %12680 = vrcp.f32 %v9619_v6  ;;  %v9646_v58 = vadd.f32 1.0, %v12667_v51 }
 0x95a   :  { %v12669_v46 = vpop.eup %12668 }
 0x95b   :  { %v9645_v32 = vadd.f32 1.0, %v12669_v46  ;;  %12682 = vrcp.f32 %v9646_v58  ;;  %v8314_v46 = vadd.f32 %v19012_v30, %v7273_v7 }
 0x95c   :  { %v12671_v21 = vpop.eup %12670 }
 0x95d   :  { %v9648_v59 = vadd.f32 1.0, %v12671_v21  ;;  %12684 = vrcp.f32 %v9645_v32  ;;  %v8483_v21 = vadd.f32 %v17257_v45, %v8315_v33  ;;  %v8482_v7 = vadd.f32 %v17265_v35, %v8314_v46 }
 0x95e   :  { %v12673_v54 = vpop.eup %12672 }
 0x95f   :  { %v9647_v61 = vadd.f32 1.0, %v12673_v54  ;;  %12686 = vrcp.f32 %v9648_v59 }
 0x960   :  { %v12675_v6 = vpop.eup %12674 }
 0x961   :  { %v9658_v51 = vmul.f32 %v12675_v6, %v9588_v31 }
 0x962   :  { %v12677_v14 = vpop.eup %12676 }
 0x963   :  { %v9662_v11 = vadd.f32 %v9658_v51, %v8481_v18  ;;  %v9657_v34 = vmul.f32 %v12677_v14, %v9583_v37 }
 0x964   :  { %v12679_v8 = vpop.eup %12678 }
 0x965   :  { %12688 = vtanh.f32 %v9662_v11  ;;  %v9661_v47 = vadd.f32 %v9657_v34, %v8480_v20  ;;  %v9660_v58 = vmul.f32 %v12679_v8, %v9598_v10 }
 0x966   :  { %v12681_v44 = vpop.eup %12680  ;;  %12690 = vrcp.f32 %v9647_v61 }
 0x967   :  { %12692 = vtanh.f32 %v9661_v47  ;;  %v9664_v13 = vadd.f32 %v9660_v58, %v8483_v21  ;;  %v9659_v54 = vmul.f32 %v12681_v44, %v9593_v26  ;;  %v19015_v44 = vld [vmem:[#allocation60_spill] sm:$0xff] }
 0x968   :  { %v12683_v12 = vpop.eup %12682 }
 0x969   :  { %12694 = vtanh.f32 %v9664_v13  ;;  %v9663_v32 = vadd.f32 %v9659_v54, %v8482_v7  ;;  %v9670_v19 = vsub.f32 1.0, %v12683_v12  ;;  %v9678_v59 = vmul.f32 %v12683_v12, %v17838_v27  ;;  %v19016_v7 = vld [vmem:[#allocation120_spill] sm:$0xff]  ;;  %v19017_v54 = vld [vmem:[#allocation205_spill] sm:$0xff]  ;;  %v19018_v12 = vld [vmem:[#allocation63_spill] sm:$0xff] }
 0x96a   :  { %v12685_v31 = vpop.eup %12684  ;;  %v7275_v13 = vadd.f32 %v19016_v7, %v19015_v44  ;;  %v19029_v7 = vld [vmem:[#allocation209_spill] sm:$0xff] }
 0x96b   :  { %12696 = vtanh.f32 %v9663_v32  ;;  %v9669_v18 = vsub.f32 1.0, %v12685_v31  ;;  %v9677_v30 = vmul.f32 %v12685_v31, %v17842_v60  ;;  %v19013_v60 = vld [vmem:[#allocation57_spill] sm:$0xff] }
 0x96c   :  { %v12687_v6 = vpop.eup %12686  ;;  %v19019_v31 = vld [vmem:[#allocation121_spill] sm:$0xff] }
 0x96d   :  { %v9672_v37 = vsub.f32 1.0, %v12687_v6  ;;  %v9680_v57 = vmul.f32 %v12687_v6, %v17844_v15  ;;  %v19014_v15 = vld [vmem:[#allocation119_spill] sm:$0xff]  ;;  %v7278_v6 = vadd.f32 %v19019_v31, %v19018_v12 }
 0x972   :  { %v12689_v33 = vpop.eup %12688 }
 0x973   :  { %v12691_v11 = vpop.eup %12690  ;;  %v9674_v34 = vmul.f32 %v12689_v33, %v9670_v19  ;;  %v19020_v19 = vld [vmem:[#allocation206_spill] sm:$0xff] }
 0x974   :  { %v12693_v51 = vpop.eup %12692  ;;  %v9671_v10 = vsub.f32 1.0, %v12691_v11  ;;  %v9679_v27 = vmul.f32 %v12691_v11, %v17848_v41  ;;  %v7276_v41 = vadd.f32 %v19014_v15, %v19013_v60  ;;  %v8316_v33 = vadd.f32 %v19020_v19, %v7275_v13  ;;  %v19021_v11 = vld [vmem:[#allocation66_spill] sm:$0xff]  ;;  %v19027_v15 = vld [vmem:[#allocation71_spill] sm:$0xff] }
 0x975   :  { %v17997_v14 = vadd.f32 %v9678_v59, %v9674_v34  ;;  %v9673_v20 = vmul.f32 %v12693_v51, %v9669_v18  ;;  %v19022_v34 = vld [vmem:[#allocation122_spill] sm:$0xff] }
 0x976   :  { %v12695_v46 = vpop.eup %12694  ;;  %v8317_v32 = vadd.f32 %v19017_v54, %v7276_v41  ;;  %v7277_v59 = vadd.f32 %v19022_v34, %v19021_v11  ;;  %v19028_v41 = vld [vmem:[#allocation125_spill] sm:$0xff]  ;;  %v19030_v19 = vld [vmem:[#allocation74_spill] sm:$0xff] }
 0x977   :  { %v9676_v61 = vmul.f32 %v12695_v46, %v9672_v37  ;;  %v18001_v8 = vadd.f32 %v9677_v30, %v9673_v20  ;;  %v19024_v30 = vld [vmem:[#allocation69_spill] sm:$0xff]  ;;  %v19025_v46 = vld [vmem:[#allocation124_spill] sm:$0xff]  ;;  %v7279_v44 = vadd.f32 %v19028_v41, %v19027_v15  ;;  %v19031_v11 = vld [vmem:[#allocation126_spill] sm:$0xff] }
 0x978   :  { %v12697_v21 = vpop.eup %12696  ;;  %v8485_v51 = vadd.f32 %v17143_v23, %v8317_v32  ;;  %v7282_v34 = vadd.f32 %v19031_v11, %v19030_v19 }
 0x979   :  { %v18003_v47 = vadd.f32 %v9680_v57, %v9676_v61  ;;  %v9675_v58 = vmul.f32 %v12697_v21, %v9671_v10  ;;  %v7280_v61 = vadd.f32 %v19025_v46, %v19024_v30  ;;  %v19026_v57 = vld [vmem:[#allocation208_spill] sm:$0xff]  ;;  %v19033_v46 = vld [vmem:[#allocation77_spill] sm:$0xff] }
 0x97a   :  { %v8318_v10 = vadd.f32 %v19026_v57, %v7277_v59  ;;  %v19032_v59 = vld [vmem:[#allocation210_spill] sm:$0xff] }
 0x97b   :  { %12175 = vmatprep.subr.mxu1 %v18003_v47  ;;  %v18007_v26 = vadd.f32 %v9679_v27, %v9675_v58  ;;  %v8484_v58 = vadd.f32 %v17170_v3, %v8316_v33  ;;  %v8321_v13 = vadd.f32 %v19029_v7, %v7280_v61  ;;  %v19034_v61 = vld [vmem:[#allocation128_spill] sm:$0xff] }
 0x97c   :  { %12176 = vmatpush3.msra.mxu1 %v18003_v47  ;;  %v8486_v33 = vadd.f32 %v17122_v24, %v8318_v10 }
 0x97d   :  { %12177 = vmatprep.subr.mxu1 %v18007_v26  ;;  %v8489_v57 = vadd.f32 %v17224_v55, %v8321_v13 }
 0x97e   :  { %12178 = vmatpush3.msra.mxu1 %v18007_v26 }
 0x97f   :  { %12179 = vmatprep.subr.mxu1 %v17997_v14 }
 0x980   :  { %12180 = vmatpush3.msra.mxu1 %v17997_v14 }
 0x981   :  { %12181 = vmatprep.subr.mxu1 %v18001_v8 }
 0x982   :  { %12182 = vmatpush3.msra.mxu1 %v18001_v8 }
 0x983   :  { %12184 = vmatmul.mubr.msk.f32.vlgmr.msra.gmra.mxu1 %vm94_vm0, %v17860_v53 }
 0x984   :  { %12186 = vmatprep.mubr.msk.f32.mxu1 %vm94_vm0, %v17867_v9 }
 0x987   :  { %12187 = vmatmul.mubr.msk.f32.gmra.mxu1 %vm94_vm0, %v17874_v49 }
 0x988   :  { %12189 = vmatprep.mubr.msk.f32.mxu1 %vm94_vm0, %v17881_v4 }
 0x98b   :  { %12190 = vmatmul.mubr.msk.f32.gmra.mxu1 %vm94_vm0, %v17888_v1 }
 0x98c   :  { %12192 = vmatprep.mubr.msk.f32.mxu1 %vm94_vm0, %v17895_v43 }
 0x98f   :  { %12193 = vmatmul.mubr.msk.f32.gmra.mxu1 %vm94_vm0, %v17902_v50 }
 0x990   :  { %12195 = vmatprep.mubr.msk.f32.mxu1 %vm94_vm0, %v17909_v56 }
 0x993   :  { %12196 = vmatmul.mubr.msk.f32.gmra.mxu1 %vm94_vm0, %v17916_v22 }
 0x994   :  { %12198 = vmatprep.mubr.msk.f32.mxu1 %vm94_vm0, %v17923_v29 }
 0x997   :  { %12199 = vmatmul.mubr.msk.f32.gmra.mxu1 %vm94_vm0, %v17930_v48 }
 0x998   :  { %12235 = vmatprep.mubr.msk.f32.mxu1 %vm94_vm0, %v17773_v40  ;;  %v19023_v40 = vld [vmem:[#allocation207_spill] sm:$0xff] }
 0x999   :  { %v8319_v37 = vadd.f32 %v19023_v40, %v7278_v6 }
 0x99b   :  { %v8487_v32 = vadd.f32 %v17093_v2, %v8319_v37  ;;  %v7281_v37 = vadd.f32 %v19034_v61, %v19033_v46 }
 0xa43   :  { %v12185_v18 = vpop.f32.mrf.mxu1 }
 0xa44   :  { %v9757_v20 = vadd.f32 %v12185_v18, %v17145_v25  ;;  %v8320_v18 = vadd.f32 %v19032_v59, %v7279_v44  ;;  %v19036_v44 = vld [vmem:[#allocation212_spill] sm:$0xff] }
 0xa45   :  { %v9751_v21 = vpop.f32.mrf.mxu1  ;;  %v8322_v7 = vadd.f32 %v19036_v44, %v7281_v37 }
 0xa46   :  { %v9811_v27 = vadd.f32 %v9757_v20, %v8485_v51  ;;  %v9752_v60 = vadd.f32 %v9751_v21, %v18877_v52  ;;  %v19035_v21 = vld [vmem:[#allocation211_spill] sm:$0xff]  ;;  %v8488_v41 = vadd.f32 %v17243_v42, %v8320_v18 }
 0xa47   :  { %v12188_v54 = vpop.f32.mrf.mxu1 }
 0xa48   :  { %v11003_v12 = vmul.f32 -1.442695, %v9811_v27  ;;  %v9810_v31 = vadd.f32 %v9752_v60, %v8484_v58  ;;  %v9767_v6 = vadd.f32 %v12188_v54, %v17095_v36  ;;  %v8323_v58 = vadd.f32 %v19035_v21, %v7282_v34  ;;  %v19037_v34 = vld [vmem:[#allocation159_spill] sm:$0xff] }
 0xa49   :  { %v9761_v51 = vpop.f32.mrf.mxu1 }
 0xa4a   :  { %12698 = vpow2.f32 %v11003_v12  ;;  %v11002_v40 = vmul.f32 -1.442695, %v9810_v31  ;;  %v9813_v20 = vadd.f32 %v9767_v6, %v8487_v32  ;;  %v9762_v30 = vadd.f32 %v9761_v51, %v17124_v39  ;;  %v19038_v51 = vld [vmem:[#allocation164_spill] sm:$0xff] }
 0xa4b   :  { %v12191_v27 = vpop.f32.mrf.mxu1  ;;  %v8491_v13 = vadd.f32 %v18884_v63, %v8323_v58 }
 0xa4c   :  { %12700 = vpow2.f32 %v11002_v40  ;;  %v11005_v60 = vmul.f32 -1.442695, %v9813_v20  ;;  %v9812_v15 = vadd.f32 %v9762_v30, %v8486_v33  ;;  %v9777_v10 = vadd.f32 %v12191_v27, %v17226_v17  ;;  %v19039_v30 = vld [vmem:[#allocation165_spill] sm:$0xff] }
 0xa4d   :  { %v9771_v54 = vpop.f32.mrf.mxu1  ;;  %v8490_v40 = vadd.f32 %v19038_v51, %v8322_v7 }
 0xa4e   :  { %12702 = vpow2.f32 %v11005_v60  ;;  %v11004_v32 = vmul.f32 -1.442695, %v9812_v15  ;;  %v9839_v12 = vadd.f32 %v9777_v10, %v8489_v57  ;;  %v9772_v31 = vadd.f32 %v9771_v54, %v17241_v0 }
 0xa4f   :  { %v12194_v6 = vpop.f32.mrf.mxu1 }
 0xa50   :  { %12704 = vpow2.f32 %v11004_v32  ;;  %v11007_v19 = vmul.f32 -1.442695, %v9839_v12  ;;  %v9838_v11 = vadd.f32 %v9772_v31, %v8488_v41  ;;  %v9787_v33 = vadd.f32 %v12194_v6, %v19037_v34  ;;  %v19040_v12 = vld [vmem:[#allocation80_spill] sm:$0xff]  ;;  %v19041_v31 = vld [vmem:[#allocation129_spill] sm:$0xff] }
 0xa51   :  { %v9781_v59 = vpop.f32.mrf.mxu1 }
 0xa52   :  { %v11006_v18 = vmul.f32 -1.442695, %v9838_v11  ;;  %v9841_v20 = vadd.f32 %v9787_v33, %v8491_v13  ;;  %v9782_v46 = vadd.f32 %v9781_v59, %v19039_v30  ;;  %12706 = vpow2.f32 %v11007_v19  ;;  %v19042_v19 = vld [vmem:[#allocation83_spill] sm:$0xff]  ;;  %v19043_v11 = vld [vmem:[#allocation130_spill] sm:$0xff] }
 0xa53   :  { %v12197_v44 = vpop.f32.mrf.mxu1  ;;  %v7284_v13 = vadd.f32 %v19041_v31, %v19040_v12  ;;  %v7283_v33 = vadd.f32 %v19043_v11, %v19042_v19  ;;  %v19050_v12 = vld [vmem:[#allocation133_spill] sm:$0xff]  ;;  %v19051_v30 = vld [vmem:[#allocation215_spill] sm:$0xff] }
 0xa54   :  { %v11009_v61 = vmul.f32 -1.442695, %v9841_v20  ;;  %v9840_v37 = vadd.f32 %v9782_v46, %v8490_v40  ;;  %12708 = vpow2.f32 %v11006_v18  ;;  %v19044_v40 = vld [vmem:[#allocation213_spill] sm:$0xff]  ;;  %v19045_v46 = vld [vmem:[#allocation86_spill] sm:$0xff] }
 0xa55   :  { %v9791_v32 = vpop.f32.mrf.mxu1  ;;  %v8325_v18 = vadd.f32 %v19044_v40, %v7284_v13 }
 0xa56   :  { %v11008_v57 = vmul.f32 -1.442695, %v9840_v37  ;;  %12710 = vpow2.f32 %v11009_v61  ;;  %v19046_v61 = vld [vmem:[#allocation131_spill] sm:$0xff]  ;;  %v9792_v40 = vadd.f32 %v9791_v32, %v18897_v62 }
 0xa57   :  { %v12699_v21 = vpop.eup %12698  ;;  %v7286_v37 = vadd.f32 %v19046_v61, %v19045_v46  ;;  %v8493_v13 = vadd.f32 %v17275_v38, %v8325_v18  ;;  %v19052_v61 = vld [vmem:[#allocation216_spill] sm:$0xff] }
 0xa58   :  { %v9827_v58 = vadd.f32 1.0, %v12699_v21  ;;  %12712 = vpow2.f32 %v11008_v57  ;;  %v19047_v57 = vld [vmem:[#allocation214_spill] sm:$0xff] }
 0xa59   :  { %v12701_v27 = vpop.eup %12700  ;;  %v8324_v21 = vadd.f32 %v19047_v57, %v7283_v33  ;;  %v8327_v19 = vadd.f32 %v19051_v30, %v7286_v37 }
 0xa5a   :  { %12714 = vrcp.f32 %v9827_v58  ;;  %v9826_v60 = vadd.f32 1.0, %v12701_v27  ;;  %v12200_v58 = vpop.f32.mrf.mxu1 }
 0xa5b   :  { %v12703_v15 = vpop.eup %12702  ;;  %v8492_v33 = vadd.f32 %v17295_v5, %v8324_v21 }
 0xa5c   :  { %12716 = vrcp.f32 %v9826_v60  ;;  %v9829_v10 = vadd.f32 1.0, %v12703_v15  ;;  %v19048_v15 = vld [vmem:[#allocation166_spill] sm:$0xff] }
 0xa5d   :  { %v12705_v41 = vpop.eup %12704 }
 0xa5e   :  { %12718 = vrcp.f32 %v9829_v10  ;;  %v9828_v7 = vadd.f32 1.0, %v12705_v41  ;;  %v9797_v10 = vadd.f32 %v12197_v44, %v19048_v15  ;;  %v9801_v44 = vpop.f32.mrf.mxu1 }
 0xa5f   :  { %v12707_v54 = vpop.eup %12706  ;;  %v9802_v32 = vadd.f32 %v9801_v44, %v17261_v16 }
 0xa60   :  { %12720 = vrcp.f32 %v9828_v7  ;;  %v9855_v20 = vadd.f32 1.0, %v12707_v54  ;;  %v19049_v7 = vld [vmem:[#allocation89_spill] sm:$0xff] }
 0xa61   :  { %v12709_v6 = vpop.eup %12708  ;;  %v7285_v31 = vadd.f32 %v19050_v12, %v19049_v7  ;;  %v9807_v7 = vadd.f32 %v12200_v58, %v17255_v28 }
 0xa62   :  { %v9854_v60 = vadd.f32 1.0, %v12709_v6  ;;  %12722 = vrcp.f32 %v9855_v20 }
 0xa63   :  { %v12711_v59 = vpop.eup %12710  ;;  %v8326_v6 = vadd.f32 %v19052_v61, %v7285_v31 }
 0xa64   :  { %v9857_v11 = vadd.f32 1.0, %v12711_v59  ;;  %12724 = vrcp.f32 %v9854_v60  ;;  %v8495_v59 = vadd.f32 %v17257_v45, %v8327_v19 }
 0xa65   :  { %v12713_v27 = vpop.eup %12712  ;;  %v8494_v21 = vadd.f32 %v17265_v35, %v8326_v6 }
 0xa66   :  { %v9856_v57 = vadd.f32 1.0, %v12713_v27  ;;  %12726 = vrcp.f32 %v9857_v11 }
 0xa67   :  { %v12715_v41 = vpop.eup %12714 }
 0xa68   :  { %v9867_v54 = vmul.f32 %v12715_v41, %v9797_v10 }
 0xa69   :  { %v12717_v46 = vpop.eup %12716 }
 0xa6a   :  { %v9871_v15 = vadd.f32 %v9867_v54, %v8493_v13  ;;  %v9866_v51 = vmul.f32 %v12717_v46, %v9792_v40 }
 0xa6b   :  { %v12719_v30 = vpop.eup %12718 }
 0xa6c   :  { %12728 = vtanh.f32 %v9871_v15  ;;  %v9870_v18 = vadd.f32 %v9866_v51, %v8492_v33  ;;  %v9869_v20 = vmul.f32 %v12719_v30, %v9807_v7 }
 0xa6d   :  { %v12721_v37 = vpop.eup %12720  ;;  %12730 = vrcp.f32 %v9856_v57 }
 0xa6e   :  { %12732 = vtanh.f32 %v9870_v18  ;;  %v9873_v27 = vadd.f32 %v9869_v20, %v8495_v59  ;;  %v9868_v60 = vmul.f32 %v12721_v37, %v9802_v32  ;;  %v19055_v37 = vld [vmem:[#allocation95_spill] sm:$0xff] }
 0xa6f   :  { %v12723_v58 = vpop.eup %12722 }
 0xa70   :  { %12734 = vtanh.f32 %v9873_v27  ;;  %v9872_v10 = vadd.f32 %v9868_v60, %v8494_v21  ;;  %v9879_v31 = vsub.f32 1.0, %v12723_v58  ;;  %v9887_v11 = vmul.f32 %v12723_v58, %v17997_v14  ;;  %v19056_v21 = vld [vmem:[#allocation135_spill] sm:$0xff]  ;;  %v19057_v60 = vld [vmem:[#allocation217_spill] sm:$0xff]  ;;  %v18147_v58 = vpop.f32.mrf.mxu0 }
 0xa71   :  { %v12725_v41 = vpop.eup %12724  ;;  %v7287_v27 = vadd.f32 %v19056_v21, %v19055_v37  ;;  %19058 = vst [vmem:[#allocation161_spill] sm:$0xff] %v18147_v58  ;;  %v19068_v37 = vld [vmem:[#allocation107_spill] sm:$0xff]  ;;  %v19069_v21 = vld [vmem:[#allocation141_spill] sm:$0xff] }
 0xa72   :  { %12736 = vtanh.f32 %v9872_v10  ;;  %v9878_v13 = vsub.f32 1.0, %v12725_v41  ;;  %v9886_v61 = vmul.f32 %v12725_v41, %v18001_v8  ;;  %v19053_v8 = vld [vmem:[#allocation92_spill] sm:$0xff]  ;;  %v19059_v41 = vld [vmem:[#allocation98_spill] sm:$0xff] }
 0xa73   :  { %v12727_v12 = vpop.eup %12726 }
 0xa74   :  { %v9881_v40 = vsub.f32 1.0, %v12727_v12  ;;  %v9889_v44 = vmul.f32 %v12727_v12, %v18003_v47  ;;  %v19054_v47 = vld [vmem:[#allocation134_spill] sm:$0xff]  ;;  %v19060_v12 = vld [vmem:[#allocation136_spill] sm:$0xff] }
 0xa79   :  { %v12729_v19 = vpop.eup %12728 }
 0xa7a   :  { %v12731_v15 = vpop.eup %12730  ;;  %v9883_v51 = vmul.f32 %v12729_v19, %v9879_v31  ;;  %v7290_v31 = vadd.f32 %v19060_v12, %v19059_v41  ;;  %v19061_v19 = vld [vmem:[#allocation218_spill] sm:$0xff] }
 0xa7b   :  { %v12733_v54 = vpop.eup %12732  ;;  %v9880_v7 = vsub.f32 1.0, %v12731_v15  ;;  %v9888_v14 = vmul.f32 %v12731_v15, %v18007_v26  ;;  %v7288_v26 = vadd.f32 %v19054_v47, %v19053_v8  ;;  %v8328_v15 = vadd.f32 %v19061_v19, %v7287_v27 }
 0xa7c   :  { %v18101_v46 = vadd.f32 %v9887_v11, %v9883_v51  ;;  %v9882_v33 = vmul.f32 %v12733_v54, %v9878_v13  ;;  %v19062_v51 = vld [vmem:[#allocation101_spill] sm:$0xff]  ;;  %v19063_v11 = vld [vmem:[#allocation138_spill] sm:$0xff]  ;;  %v7291_v27 = vadd.f32 %v19069_v21, %v19068_v37 }
 0xa7d   :  { %v12735_v6 = vpop.eup %12734  ;;  %v8329_v10 = vadd.f32 %v19057_v60, %v7288_v26  ;;  %v7289_v13 = vadd.f32 %v19063_v11, %v19062_v51  ;;  %v8496_v8 = vadd.f32 %v17170_v3, %v8328_v15  ;;  %v19070_v60 = vld [vmem:[#allocation221_spill] sm:$0xff]  ;;  %v19071_v11 = vld [vmem:[#allocation110_spill] sm:$0xff] }
 0xa7e   :  { %v9885_v57 = vmul.f32 %v12735_v6, %v9881_v40  ;;  %v18105_v30 = vadd.f32 %v9886_v61, %v9882_v33  ;;  %v19064_v33 = vld [vmem:[#allocation219_spill] sm:$0xff] }
 0xa7f   :  { %v12737_v59 = vpop.eup %12736  ;;  %v8497_v40 = vadd.f32 %v17143_v23, %v8329_v10  ;;  %v8331_v61 = vadd.f32 %v19064_v33, %v7290_v31 }
 0xa80   :  { %v18107_v18 = vadd.f32 %v9889_v44, %v9885_v57  ;;  %v9884_v20 = vmul.f32 %v12737_v59, %v9880_v7  ;;  %v19065_v57 = vld [vmem:[#allocation104_spill] sm:$0xff]  ;;  %v19066_v44 = vld [vmem:[#allocation139_spill] sm:$0xff] }
 0xa81   :  { %v7292_v7 = vadd.f32 %v19066_v44, %v19065_v57  ;;  %v19067_v59 = vld [vmem:[#allocation220_spill] sm:$0xff]  ;;  %v8499_v12 = vadd.f32 %v17093_v2, %v8331_v61 }
 0xa82   :  { %12201 = vmatprep.subr.mxu0 %v18107_v18  ;;  %v18111_v32 = vadd.f32 %v9888_v14, %v9884_v20  ;;  %v8330_v20 = vadd.f32 %v19067_v59, %v7289_v13  ;;  %v19072_v13 = vld [vmem:[#allocation142_spill] sm:$0xff]  ;;  %v19074_v59 = vld [vmem:[#allocation113_spill] sm:$0xff] }
 0xa83   :  { %12202 = vmatpush3.msra.mxu0 %v18107_v18  ;;  %v8333_v10 = vadd.f32 %v19070_v60, %v7292_v7 }
 0xa84   :  { %12203 = vmatprep.subr.mxu0 %v18111_v32  ;;  %v8498_v15 = vadd.f32 %v17122_v24, %v8330_v20 }
 0xa85   :  { %12204 = vmatpush3.msra.mxu0 %v18111_v32 }
 0xa86   :  { %12205 = vmatprep.subr.mxu0 %v18101_v46 }
 0xa87   :  { %12206 = vmatpush3.msra.mxu0 %v18101_v46 }
 0xa88   :  { %12207 = vmatprep.subr.mxu0 %v18105_v30 }
 0xa89   :  { %12208 = vmatpush3.msra.mxu0 %v18105_v30 }
 0xa8a   :  { %12210 = vmatmul.mubr.msk.f32.vlgmr.msra.gmra.mxu0 %vm94_vm0, %v17860_v53 }
 0xa8b   :  { %12212 = vmatprep.mubr.msk.f32.mxu0 %vm94_vm0, %v17867_v9 }
 0xa8e   :  { %12213 = vmatmul.mubr.msk.f32.gmra.mxu0 %vm94_vm0, %v17874_v49 }
 0xa8f   :  { %12215 = vmatprep.mubr.msk.f32.mxu0 %vm94_vm0, %v17881_v4 }
 0xa92   :  { %12216 = vmatmul.mubr.msk.f32.gmra.mxu0 %vm94_vm0, %v17888_v1 }
 0xa93   :  { %12218 = vmatprep.mubr.msk.f32.mxu0 %vm94_vm0, %v17895_v43 }
 0xa96   :  { %12219 = vmatmul.mubr.msk.f32.gmra.mxu0 %vm94_vm0, %v17902_v50 }
 0xa97   :  { %12221 = vmatprep.mubr.msk.f32.mxu0 %vm94_vm0, %v17909_v56 }
 0xa9a   :  { %12222 = vmatmul.mubr.msk.f32.gmra.mxu0 %vm94_vm0, %v17916_v22 }
 0xa9b   :  { %12224 = vmatprep.mubr.msk.f32.mxu0 %vm94_vm0, %v17923_v29 }
 0xa9e   :  { %12225 = vmatmul.mubr.msk.f32.gmra.mxu0 %vm94_vm0, %v17930_v48 }
 0xb4a   :  { %v12211_v54 = vpop.f32.mrf.mxu0 }
 0xb4b   :  { %v9966_v6 = vadd.f32 %v12211_v54, %v17145_v25  ;;  %v7294_v54 = vadd.f32 %v19072_v13, %v19071_v11 }
 0xb4c   :  { %v9960_v14 = vpop.f32.mrf.mxu0 }
 0xb4d   :  { %v10020_v47 = vadd.f32 %v9966_v6, %v8497_v40  ;;  %v9961_v26 = vadd.f32 %v9960_v14, %v18877_v52  ;;  %v19073_v40 = vld [vmem:[#allocation222_spill] sm:$0xff]  ;;  %v19075_v14 = vld [vmem:[#allocation144_spill] sm:$0xff] }
 0xb4e   :  { %v12214_v41 = vpop.f32.mrf.mxu0  ;;  %v8332_v33 = vadd.f32 %v19073_v40, %v7291_v27  ;;  %v7293_v61 = vadd.f32 %v19075_v14, %v19074_v59  ;;  %v19079_v59 = vld [vmem:[#allocation165_spill] sm:$0xff] }
 0xb4f   :  { %v11023_v31 = vmul.f32 -1.442695, %v10020_v47  ;;  %v10019_v19 = vadd.f32 %v9961_v26, %v8496_v8  ;;  %v9976_v51 = vadd.f32 %v12214_v41, %v17095_v36  ;;  %v8501_v8 = vadd.f32 %v17224_v55, %v8333_v10  ;;  %v19076_v47 = vld [vmem:[#allocation223_spill] sm:$0xff]  ;;  %v19077_v41 = vld [vmem:[#allocation224_spill] sm:$0xff] }
 0xb50   :  { %v9970_v6 = vpop.f32.mrf.mxu0  ;;  %v8335_v26 = vadd.f32 %v19076_v47, %v7294_v54  ;;  %v8500_v27 = vadd.f32 %v17243_v42, %v8332_v33 }
 0xb51   :  { %12738 = vpow2.f32 %v11023_v31  ;;  %v11022_v57 = vmul.f32 -1.442695, %v10019_v19  ;;  %v10022_v44 = vadd.f32 %v9976_v51, %v8499_v12  ;;  %v9971_v7 = vadd.f32 %v9970_v6, %v17124_v39 }
 0xb52   :  { %v12217_v37 = vpop.f32.mrf.mxu0  ;;  %v8334_v31 = vadd.f32 %v19077_v41, %v7293_v61  ;;  %v8503_v10 = vadd.f32 %v18884_v63, %v8335_v26 }
 0xb53   :  { %12740 = vpow2.f32 %v11022_v57  ;;  %v11025_v21 = vmul.f32 -1.442695, %v10022_v44  ;;  %v10021_v60 = vadd.f32 %v9971_v7, %v8498_v15  ;;  %v9986_v20 = vadd.f32 %v12217_v37, %v17226_v17  ;;  %v19078_v57 = vld [vmem:[#allocation164_spill] sm:$0xff] }
 0xb54   :  { %v9980_v12 = vpop.f32.mrf.mxu0  ;;  %v8502_v44 = vadd.f32 %v19078_v57, %v8334_v31 }
 0xb55   :  { %12742 = vpow2.f32 %v11025_v21  ;;  %v11024_v19 = vmul.f32 -1.442695, %v10021_v60  ;;  %v10048_v51 = vadd.f32 %v9986_v20, %v8501_v8  ;;  %v9981_v11 = vadd.f32 %v9980_v12, %v17241_v0 }
 0xb56   :  { %v12220_v13 = vpop.f32.mrf.mxu0 }
 0xb57   :  { %12744 = vpow2.f32 %v11024_v19  ;;  %v11027_v54 = vmul.f32 -1.442695, %v10048_v51  ;;  %v10047_v40 = vadd.f32 %v9981_v11, %v8500_v27  ;;  %v9996_v15 = vadd.f32 %v12220_v13, %v19037_v34  ;;  %v19081_v13 = vld [vmem:[#allocation146_spill] sm:$0xff] }
 0xb58   :  { %v9990_v6 = vpop.f32.mrf.mxu0 }
 0xb59   :  { %v11026_v33 = vmul.f32 -1.442695, %v10047_v40  ;;  %v10050_v7 = vadd.f32 %v9996_v15, %v8503_v10  ;;  %v9991_v14 = vadd.f32 %v9990_v6, %v19079_v59  ;;  %12746 = vpow2.f32 %v11027_v54  ;;  %v19080_v10 = vld [vmem:[#allocation118_spill] sm:$0xff] }
 0xb5a   :  { %v12223_v31 = vpop.f32.mrf.mxu0  ;;  %v7295_v54 = vadd.f32 %v19081_v13, %v19080_v10  ;;  %v19082_v6 = vld [vmem:[#allocation226_spill] sm:$0xff]  ;;  %v19087_v13 = vld [vmem:[#allocation228_spill] sm:$0xff] }
 0xb5b   :  { %v11029_v61 = vmul.f32 -1.442695, %v10050_v7  ;;  %v10049_v8 = vadd.f32 %v9991_v14, %v8502_v44  ;;  %12748 = vpow2.f32 %v11026_v33 }
 0xb5c   :  { %v10000_v51 = vpop.f32.mrf.mxu0  ;;  %v8336_v44 = vadd.f32 %v19082_v6, %v7295_v54 }
 0xb5d   :  { %v11028_v47 = vmul.f32 -1.442695, %v10049_v8  ;;  %12750 = vpow2.f32 %v11029_v61  ;;  %v19083_v61 = vld [vmem:[#allocation166_spill] sm:$0xff] }
 0xb5e   :  { %v12739_v37 = vpop.eup %12738  ;;  %v12226_v33 = vpop.f32.mrf.mxu0  ;;  %v10006_v8 = vadd.f32 %v12223_v31, %v19083_v61  ;;  %v8504_v10 = vadd.f32 %v17295_v5, %v8336_v44 }
 0xb5f   :  { %v10036_v26 = vadd.f32 1.0, %v12739_v37  ;;  %12752 = vpow2.f32 %v11028_v47  ;;  %v19084_v37 = vld [vmem:[#allocation123_spill] sm:$0xff] }
 0xb60   :  { %v12741_v21 = vpop.eup %12740  ;;  %v10010_v6 = vpop.f32.mrf.mxu0 }
 0xb61   :  { %12754 = vrcp.f32 %v10036_v26  ;;  %v10035_v60 = vadd.f32 1.0, %v12741_v21  ;;  %v19085_v26 = vld [vmem:[#allocation148_spill] sm:$0xff] }
 0xb62   :  { %v12743_v20 = vpop.eup %12742  ;;  %v7297_v21 = vadd.f32 %v19085_v26, %v19084_v37  ;;  %v10016_v37 = vadd.f32 %v12226_v33, %v17255_v28  ;;  %v19088_v26 = vld [vmem:[#allocation227_spill] sm:$0xff] }
 0xb63   :  { %12756 = vrcp.f32 %v10035_v60  ;;  %v10038_v27 = vadd.f32 1.0, %v12743_v20  ;;  %v19086_v20 = vld [vmem:[#allocation225_spill] sm:$0xff] }
 0xb64   :  { %v12745_v41 = vpop.eup %12744  ;;  %v8338_v54 = vadd.f32 %v19087_v13, %v7297_v21 }
 0xb65   :  { %12758 = vrcp.f32 %v10038_v27  ;;  %v10037_v12 = vadd.f32 1.0, %v12745_v41  ;;  %v8505_v27 = vadd.f32 %v17275_v38, %v19086_v20  ;;  %v8507_v20 = vadd.f32 %v17257_v45, %v19088_v26 }
 0xb66   :  { %v12747_v19 = vpop.eup %12746 }
 0xb67   :  { %12760 = vrcp.f32 %v10037_v12  ;;  %v10064_v15 = vadd.f32 1.0, %v12747_v19  ;;  %v10001_v12 = vadd.f32 %v10000_v51, %v18897_v62 }
 0xb68   :  { %v12749_v11 = vpop.eup %12748 }
 0xb69   :  { %v10063_v14 = vadd.f32 1.0, %v12749_v11  ;;  %12762 = vrcp.f32 %v10064_v15 }
 0xb6a   :  { %v12751_v40 = vpop.eup %12750 }
 0xb6b   :  { %v10066_v60 = vadd.f32 1.0, %v12751_v40  ;;  %12764 = vrcp.f32 %v10063_v14 }
 0xb6c   :  { %v12753_v7 = vpop.eup %12752 }
 0xb6d   :  { %v10065_v11 = vadd.f32 1.0, %v12753_v7  ;;  %12766 = vrcp.f32 %v10066_v60  ;;  %v8506_v7 = vadd.f32 %v17265_v35, %v8338_v54 }
 0xb6e   :  { %v12755_v47 = vpop.eup %12754 }
 0xb6f   :  { %v10076_v41 = vmul.f32 %v12755_v47, %v10006_v8  ;;  %v10011_v8 = vadd.f32 %v10010_v6, %v17261_v16 }
 0xb70   :  { %v12757_v19 = vpop.eup %12756 }
 0xb71   :  { %v10080_v31 = vadd.f32 %v10076_v41, %v8505_v27  ;;  %v10075_v58 = vmul.f32 %v12757_v19, %v10001_v12 }
 0xb72   :  { %v12759_v40 = vpop.eup %12758 }
 0xb73   :  { %12768 = vtanh.f32 %v10080_v31  ;;  %v10079_v15 = vadd.f32 %v10075_v58, %v8504_v10  ;;  %v10078_v51 = vmul.f32 %v12759_v40, %v10016_v37 }
 0xb74   :  { %v12761_v44 = vpop.eup %12760  ;;  %12770 = vrcp.f32 %v10065_v11 }
 0xb75   :  { %12772 = vtanh.f32 %v10079_v15  ;;  %v10082_v14 = vadd.f32 %v10078_v51, %v8507_v20  ;;  %v10077_v47 = vmul.f32 %v12761_v44, %v10011_v8 }
 0xb76   :  { %v12763_v33 = vpop.eup %12762 }
 0xb77   :  { %12774 = vtanh.f32 %v10082_v14  ;;  %v10081_v21 = vadd.f32 %v10077_v47, %v8506_v7  ;;  %v10088_v12 = vsub.f32 1.0, %v12763_v33  ;;  %v10096_v10 = vmul.f32 %v12763_v33, %v18101_v46 }
 0xb78   :  { %v12765_v27 = vpop.eup %12764 }
 0xb79   :  { %12776 = vtanh.f32 %v10081_v21  ;;  %v10087_v13 = vsub.f32 1.0, %v12765_v27  ;;  %v10095_v37 = vmul.f32 %v12765_v27, %v18105_v30 }
 0xb7a   :  { %v12767_v41 = vpop.eup %12766 }
 0xb7b   :  { %v10090_v11 = vsub.f32 1.0, %v12767_v41  ;;  %v10098_v20 = vmul.f32 %v12767_v41, %v18107_v18  ;;  %v19094_v18 = vld [vmem:[#allocation229_spill] sm:$0xff] }
 0xb80   :  { %v12769_v60 = vpop.eup %12768 }
 0xb81   :  { %v12771_v19 = vpop.eup %12770  ;;  %v10092_v58 = vmul.f32 %v12769_v60, %v10088_v12  ;;  %v19096_v12 = vld [vmem:[#allocation137_spill] sm:$0xff] }
 0xb82   :  { %v12773_v6 = vpop.eup %12772  ;;  %v10089_v15 = vsub.f32 1.0, %v12771_v19  ;;  %v10097_v46 = vmul.f32 %v12771_v19, %v18111_v32  ;;  %v19095_v32 = vld [vmem:[#allocation232_spill] sm:$0xff]  ;;  %v19097_v60 = vld [vmem:[#allocation153_spill] sm:$0xff] }
 0xb83   :  { %v18201_v31 = vadd.f32 %v10096_v10, %v10092_v58  ;;  %v10091_v54 = vmul.f32 %v12773_v6, %v10087_v13  ;;  %v7303_v19 = vadd.f32 %v19097_v60, %v19096_v12  ;;  %v19098_v10 = vld [vmem:[#allocation231_spill] sm:$0xff] }
 0xb84   :  { %v12775_v40 = vpop.eup %12774  ;;  %v8511_v13 = vadd.f32 %v17093_v2, %v19098_v10 }
 0xb85   :  { %v10094_v26 = vmul.f32 %v12775_v40, %v10090_v11  ;;  %v18205_v51 = vadd.f32 %v10095_v37, %v10091_v54  ;;  %v19099_v54 = vld [vmem:[#allocation234_spill] sm:$0xff] }
 0xb86   :  { %v12777_v8 = vpop.eup %12776  ;;  %v8344_v37 = vadd.f32 %v19099_v54, %v7303_v19 }
 0xb87   :  { %v18207_v44 = vadd.f32 %v10098_v20, %v10094_v26  ;;  %v10093_v7 = vmul.f32 %v12777_v8, %v10089_v15  ;;  %v19100_v20 = vld [vmem:[#allocation143_spill] sm:$0xff]  ;;  %v19101_v15 = vld [vmem:[#allocation156_spill] sm:$0xff] }
 0xb88   :  { %v7305_v8 = vadd.f32 %v19101_v15, %v19100_v20 }
 0xb89   :  { %12227 = vmatprep.subr.mxu1 %v18207_v44  ;;  %v18211_v14 = vadd.f32 %v10097_v46, %v10093_v7  ;;  %v19102_v7 = vld [vmem:[#allocation233_spill] sm:$0xff] }
 0xb8a   :  { %12228 = vmatpush3.msra.mxu1 %v18207_v44  ;;  %v8513_v2 = vadd.f32 %v17224_v55, %v19102_v7  ;;  %v19109_v7 = vld [vmem:[#allocation163_spill] sm:$0xff] }
 0xb8b   :  { %12229 = vmatprep.subr.mxu1 %v18211_v14 }
 0xb8c   :  { %12230 = vmatpush3.msra.mxu1 %v18211_v14 }
 0xb8d   :  { %12231 = vmatprep.subr.mxu1 %v18201_v31 }
 0xb8e   :  { %12232 = vmatpush3.msra.mxu1 %v18201_v31 }
 0xb8f   :  { %12233 = vmatprep.subr.mxu1 %v18205_v51 }
 0xb90   :  { %12234 = vmatpush3.msra.mxu1 %v18205_v51 }
 0xb91   :  { %12236 = vmatmul.mubr.msk.f32.vlgmr.msra.gmra.mxu1 %vm94_vm0, %v17860_v53  ;;  %v10312_v53 = vld [vmem:[%s18340_s15] sm:$0xff] }
 0xb92   :  { %12238 = vmatprep.mubr.msk.f32.mxu1 %vm94_vm0, %v17867_v9  ;;  %12261 = vmatprep.mubr.msk.f32.mxu0 %vm94_vm0, %v10312_v53  ;;  %v19089_v9 = vld [vmem:[#allocation127_spill] sm:$0xff] }
 0xb95   :  { %12239 = vmatmul.mubr.msk.f32.gmra.mxu1 %vm94_vm0, %v17874_v49  ;;  %v19090_v49 = vld [vmem:[#allocation150_spill] sm:$0xff] }
 0xb96   :  { %12241 = vmatprep.mubr.msk.f32.mxu1 %vm94_vm0, %v17881_v4  ;;  %v7299_v4 = vadd.f32 %v19090_v49, %v19089_v9  ;;  %v8512_v9 = vadd.f32 %v17243_v42, %v8344_v37  ;;  %v19103_v49 = vld [vmem:[#allocation155_spill] sm:$0xff]  ;;  %v19107_v37 = vld [vmem:[#allocation157_spill] sm:$0xff] }
 0xb99   :  { %12242 = vmatmul.mubr.msk.f32.gmra.mxu1 %vm94_vm0, %v17888_v1  ;;  %v19091_v1 = vld [vmem:[#allocation230_spill] sm:$0xff] }
 0xb9a   :  { %12244 = vmatprep.mubr.msk.f32.mxu1 %vm94_vm0, %v17895_v43  ;;  %v8340_v43 = vadd.f32 %v19091_v1, %v7299_v4  ;;  %v8346_v4 = vadd.f32 %v19103_v49, %v7305_v8  ;;  %v19108_v8 = vld [vmem:[#allocation151_spill] sm:$0xff] }
 0xb9c   :  { %v8508_v33 = vadd.f32 %v17170_v3, %v8340_v43  ;;  %v8514_v42 = vadd.f32 %v19078_v57, %v8346_v4 }
 0xb9d   :  { %12245 = vmatmul.mubr.msk.f32.gmra.mxu1 %vm94_vm0, %v17902_v50  ;;  %v19092_v50 = vld [vmem:[#allocation132_spill] sm:$0xff] }
 0xb9e   :  { %12247 = vmatprep.mubr.msk.f32.mxu1 %vm94_vm0, %v17909_v56  ;;  %v19093_v56 = vld [vmem:[#allocation152_spill] sm:$0xff] }
 0xba1   :  { %12248 = vmatmul.mubr.msk.f32.gmra.mxu1 %vm94_vm0, %v17916_v22  ;;  %v7301_v22 = vadd.f32 %v19093_v56, %v19092_v50  ;;  %v19104_v56 = vld [vmem:[#allocation140_spill] sm:$0xff] }
 0xba2   :  { %12250 = vmatprep.mubr.msk.f32.mxu1 %vm94_vm0, %v17923_v29  ;;  %v8509_v29 = vadd.f32 %v17143_v23, %v19094_v18 }
 0xba3   :  { %v8342_v47 = vadd.f32 %v19095_v32, %v7301_v22  ;;  %v8515_v22 = vadd.f32 %v18884_v63, %v19104_v56 }
 0xba5   :  { %12251 = vmatmul.mubr.msk.f32.gmra.mxu1 %vm94_vm0, %v17930_v48 }
 0xc51   :  { %v12237_v30 = vpop.f32.mrf.mxu1 }
 0xc52   :  { %v10175_v48 = vadd.f32 %v12237_v30, %v17145_v25  ;;  %v8510_v25 = vadd.f32 %v17122_v24, %v8342_v47 }
 0xc53   :  { %v10169_v21 = vpop.f32.mrf.mxu1 }
 0xc54   :  { %v10229_v27 = vadd.f32 %v10175_v48, %v8509_v29  ;;  %v10170_v41 = vadd.f32 %v10169_v21, %v18877_v52 }
 0xc55   :  { %v12240_v58 = vpop.f32.mrf.mxu1 }
 0xc56   :  { %v11043_v6 = vmul.f32 -1.442695, %v10229_v27  ;;  %v10228_v11 = vadd.f32 %v10170_v41, %v8508_v33  ;;  %v10185_v23 = vadd.f32 %v12240_v58, %v17095_v36 }
 0xc57   :  { %v10179_v40 = vpop.f32.mrf.mxu1 }
 0xc58   :  { %12778 = vpow2.f32 %v11043_v6  ;;  %v11042_v3 = vmul.f32 -1.442695, %v10228_v11  ;;  %v10231_v26 = vadd.f32 %v10185_v23, %v8511_v13  ;;  %v10180_v52 = vadd.f32 %v10179_v40, %v17124_v39  ;;  %v19105_v6 = vld [vmem:[#allocation147_spill] sm:$0xff]  ;;  %v19106_v11 = vld [vmem:[#allocation160_spill] sm:$0xff] }
 0xc59   :  { %v12243_v46 = vpop.f32.mrf.mxu1  ;;  %v7307_v23 = vadd.f32 %v19106_v11, %v19105_v6 }
 0xc5a   :  { %12780 = vpow2.f32 %v11042_v3  ;;  %v11045_v53 = vmul.f32 -1.442695, %v10231_v26  ;;  %v10230_v36 = vadd.f32 %v10180_v52, %v8510_v25  ;;  %v10195_v24 = vadd.f32 %v12243_v46, %v17226_v17 }
 0xc5b   :  { %v10189_v1 = vpop.f32.mrf.mxu1  ;;  %v8348_v40 = vadd.f32 %v19107_v37, %v7307_v23 }
 0xc5c   :  { %12782 = vpow2.f32 %v11045_v53  ;;  %v11044_v43 = vmul.f32 -1.442695, %v10230_v36  ;;  %v10257_v39 = vadd.f32 %v10195_v24, %v8513_v2  ;;  %v10190_v50 = vadd.f32 %v10189_v1, %v17241_v0  ;;  %v19110_v53 = vld [vmem:[#allocation145_spill] sm:$0xff] }
 0xc5d   :  { %v12246_v55 = vpop.f32.mrf.mxu1  ;;  %v7309_v2 = vadd.f32 %v19109_v7, %v19108_v8  ;;  %v8517_v36 = vadd.f32 %v17275_v38, %v19110_v53  ;;  %v8516_v4 = vadd.f32 %v17295_v5, %v8348_v40  ;;  %v19111_v1 = vld [vmem:[#allocation161_spill] sm:$0xff]  ;;  %v10333_v40 = vpop.permute.xlu1 %10332 }
 0xc5e   :  { %12784 = vpow2.f32 %v11044_v43  ;;  %v11047_v30 = vmul.f32 -1.442695, %v10257_v39  ;;  %v10256_v18 = vadd.f32 %v10190_v50, %v8512_v9  ;;  %v10205_v29 = vadd.f32 %v12246_v55, %v19037_v34 }
 0xc5f   :  { %v10199_v17 = vpop.f32.mrf.mxu1  ;;  %v8350_v43 = vadd.f32 %v19111_v1, %v7309_v2 }
 0xc60   :  { %v11046_v48 = vmul.f32 -1.442695, %v10256_v18  ;;  %v10259_v32 = vadd.f32 %v10205_v29, %v8515_v22  ;;  %v10200_v47 = vadd.f32 %v10199_v17, %v19079_v59  ;;  %12786 = vpow2.f32 %v11047_v30  ;;  %v19112_v30 = vld [vmem:[#allocation149_spill] sm:$0xff] }
 0xc61   :  { %v12249_v19 = vpop.f32.mrf.mxu1  ;;  %v8519_v38 = vadd.f32 %v17257_v45, %v19112_v30  ;;  %v8518_v17 = vadd.f32 %v17265_v35, %v8350_v43 }
 0xc62   :  { %v11049_v21 = vmul.f32 -1.442695, %v10259_v32  ;;  %v10258_v33 = vadd.f32 %v10200_v47, %v8514_v42  ;;  %12788 = vpow2.f32 %v11046_v48  ;;  %v10215_v20 = vadd.f32 %v12249_v19, %v19083_v61 }
 0xc63   :  { %v10209_v10 = vpop.f32.mrf.mxu1 }
 0xc64   :  { %v11048_v0 = vmul.f32 -1.442695, %v10258_v33  ;;  %12790 = vpow2.f32 %v11049_v21  ;;  %v10210_v9 = vadd.f32 %v10209_v10, %v18897_v62 }
 0xc65   :  { %v12779_v27 = vpop.eup %12778  ;;  %v12252_v3 = vpop.f32.mrf.mxu1 }
 0xc66   :  { %v10245_v63 = vadd.f32 1.0, %v12779_v27  ;;  %12792 = vpow2.f32 %v11048_v0  ;;  %v10225_v22 = vadd.f32 %v12252_v3, %v17255_v28 }
 0xc67   :  { %v12781_v41 = vpop.eup %12780  ;;  %v10219_v50 = vpop.f32.mrf.mxu1 }
 0xc68   :  { %12794 = vrcp.f32 %v10245_v63  ;;  %v10244_v12 = vadd.f32 1.0, %v12781_v41  ;;  %v10220_v29 = vadd.f32 %v10219_v50, %v17261_v16 }
 0xc69   :  { %v12783_v34 = vpop.eup %12782 }
 0xc6a   :  { %12796 = vrcp.f32 %v10244_v12  ;;  %v10247_v60 = vadd.f32 1.0, %v12783_v34 }
 0xc6b   :  { %v12785_v57 = vpop.eup %12784 }
 0xc6c   :  { %12798 = vrcp.f32 %v10247_v60  ;;  %v10246_v58 = vadd.f32 1.0, %v12785_v57 }
 0xc6d   :  { %v12787_v59 = vpop.eup %12786 }
 0xc6e   :  { %12800 = vrcp.f32 %v10246_v58  ;;  %v10273_v54 = vadd.f32 1.0, %v12787_v59 }
 0xc6f   :  { %v12789_v13 = vpop.eup %12788 }
 0xc70   :  { %v10272_v52 = vadd.f32 1.0, %v12789_v13  ;;  %12802 = vrcp.f32 %v10273_v54  ;;  %v10338_v54 = vpop.permute.xlu0 %10337 }
 0xc71   :  { %v12791_v25 = vpop.eup %12790 }
 0xc72   :  { %v10275_v46 = vadd.f32 1.0, %v12791_v25  ;;  %12804 = vrcp.f32 %v10272_v52  ;;  %v10315_v25 = vld [vmem:[%s18340_s15 + $0x18] sm:$0xff] }
 0xc73   :  { %v12793_v26 = vpop.eup %12792 }
 0xc74   :  { %v10274_v39 = vadd.f32 1.0, %v12793_v26  ;;  %12806 = vrcp.f32 %v10275_v46  ;;  %v10323_v46 = vpop.permute.xlu1 %10322 }
 0xc75   :  { %v12795_v15 = vpop.eup %12794 }
 0xc76   :  { %v10285_v24 = vmul.f32 %v12795_v15, %v10215_v20  ;;  %v10328_v20 = vpop.permute.xlu0 %10327 }
 0xc77   :  { %v12797_v49 = vpop.eup %12796 }
 0xc78   :  { %v10289_v61 = vadd.f32 %v10285_v24, %v8517_v36  ;;  %v10284_v56 = vmul.f32 %v12797_v49, %v10210_v9  ;;  %v10441_v49 = vld [vmem:[%s18341_s17] sm:$0xf] }
 0xc79   :  { %v12799_v55 = vpop.eup %12798 }
 0xc7a   :  { %12808 = vtanh.f32 %v10289_v61  ;;  %v10288_v18 = vadd.f32 %v10284_v56, %v8516_v4  ;;  %v10287_v62 = vmul.f32 %v12799_v55, %v10225_v22  ;;  %v10446_v4 = vpop.permute.xlu0 %10445 }
 0xc7b   :  { %v12801_v5 = vpop.eup %12800  ;;  %12810 = vrcp.f32 %v10274_v39 }
 0xc7c   :  { %12812 = vtanh.f32 %v10288_v18  ;;  %v10291_v42 = vadd.f32 %v10287_v62, %v8519_v38  ;;  %v10286_v48 = vmul.f32 %v12801_v5, %v10220_v29 }
 0xc7d   :  { %v12803_v28 = vpop.eup %12802 }
 0xc7e   :  { %12814 = vtanh.f32 %v10291_v42  ;;  %v10290_v32 = vadd.f32 %v10286_v48, %v8518_v17  ;;  %v10297_v45 = vsub.f32 1.0, %v12803_v28  ;;  %v10305_v63 = vmul.f32 %v12803_v28, %v18201_v31 }
 0xc7f   :  { %v12805_v47 = vpop.eup %12804 }
 0xc80   :  { %12816 = vtanh.f32 %v10290_v32  ;;  %v10296_v16 = vsub.f32 1.0, %v12805_v47  ;;  %v10304_v60 = vmul.f32 %v12805_v47, %v18205_v51  ;;  %v10313_v51 = vld [vmem:[%s18340_s15 + $0x8] sm:$0xff] }
 0xc81   :  { %v12807_v21 = vpop.eup %12806 }
 0xc82   :  { %v10299_v12 = vsub.f32 1.0, %v12807_v21  ;;  %v10307_v58 = vmul.f32 %v12807_v21, %v18207_v44  ;;  %v10314_v44 = vld [vmem:[%s18340_s15 + $0x10] sm:$0xff] }
 0xc87   :  { %v12809_v33 = vpop.eup %12808 }
 0xc88   :  { %v12811_v0 = vpop.eup %12810  ;;  %v10301_v27 = vmul.f32 %v12809_v33, %v10297_v45 }
 0xc89   :  { %v12813_v41 = vpop.eup %12812  ;;  %v10298_v59 = vsub.f32 1.0, %v12811_v0  ;;  %v10306_v23 = vmul.f32 %v12811_v0, %v18211_v14  ;;  %v19113_v14 = vmov 0.0  }
 0xc8a   :  { %v10309_v34 = vadd.f32 %v10305_v63, %v10301_v27  ;;  %v10300_v35 = vmul.f32 %v12813_v41, %v10296_v16 }
 0xc8b   :  { %v12815_v57 = vpop.eup %12814 }
 0xc8c   :  { %v10303_v19 = vmul.f32 %v12815_v57, %v10299_v12  ;;  %v10308_v10 = vadd.f32 %v10304_v60, %v10300_v35 }
 0xc8d   :  { %v12817_v13 = vpop.eup %12816 }
 0xc8e   :  { %v10311_v6 = vadd.f32 %v10307_v58, %v10303_v19  ;;  %v10302_v11 = vmul.f32 %v12817_v13, %v10298_v59 }
 0xc90   :  { %12253 = vmatprep.subr.mxu0 %v10311_v6  ;;  %v10310_v31 = vadd.f32 %v10306_v23, %v10302_v11 }
 0xc91   :  { %12254 = vmatpush3.msra.mxu0 %v10311_v6 }
 0xc92   :  { %12255 = vmatprep.subr.mxu0 %v10310_v31 }
 0xc93   :  { %12256 = vmatpush3.msra.mxu0 %v10310_v31 }
 0xc94   :  { %12257 = vmatprep.subr.mxu0 %v10309_v34 }
 0xc95   :  { %12258 = vmatpush3.msra.mxu0 %v10309_v34 }
 0xc96   :  { %12259 = vmatprep.subr.mxu0 %v10308_v10 }
 0xc97   :  { %12260 = vmatpush3.msra.mxu0 %v10308_v10 }
 0xc98   :  { %12262 = vmatmul.mubr.msk.f32.vlgmr.msra.gmra.mxu0 %vm94_vm0, %v10313_v51  ;;  %12267 = vmatprep.subr.mxu0 %v19113_v14 }
 0xc99   :  { %12264 = vmatprep.mubr.msk.f32.mxu0 %vm94_vm0, %v10314_v44 }
 0xc9c   :  { %12265 = vmatmul.mubr.msk.f32.gmra.mxu0 %vm94_vm0, %v10315_v25 }
 0xc9d   :  { %12275 = vmatprep.mubr.msk.f32.mxu0 %vm12846_vm10, %v19113_v14 }
 0xd58   :  { %v12263_v37 = vpop.f32.mrf.mxu0 }
 0xd59   :  { %v10424_v8 = vadd.f32 %v12263_v37, %v10328_v20 }
 0xd5a   :  { %v10418_v3 = vpop.f32.mrf.mxu0 }
 0xd5b   :  { %v10419_v53 = vadd.f32 %v10418_v3, %v10323_v46  ;;  %v10438_v24 = vmax.f32 %v10424_v8, 0.0 }
 0xd5c   :  { %v12266_v26 = vpop.f32.mrf.mxu0 }
 0xd5d   :  { %v10434_v52 = vadd.f32 %v12266_v26, %v10338_v54  ;;  %v10437_v9 = vmax.f32 %v10419_v53, 0.0 }
 0xd5e   :  { %v10428_v15 = vpop.f32.mrf.mxu0 }
 0xd5f   :  { %v10440_v7 = vmax.f32 %v10434_v52, 0.0  ;;  %v10429_v2 = vadd.f32 %v10428_v15, %v10333_v40 }
 0xd61   :  { %v10439_v36 = vmax.f32 %v10429_v2, 0.0  ;;  %12268 = vmatpush3.msra.mxu0 %v10440_v7 }
 0xd62   :  { %12269 = vmatprep.subr.mxu0 %v19113_v14 }
 0xd63   :  { %12270 = vmatpush3.msra.mxu0 %v10439_v36 }
 0xd64   :  { %12271 = vmatprep.subr.mxu0 %v19113_v14 }
 0xd65   :  { %12272 = vmatpush3.msra.mxu0 %v10438_v24 }
 0xd66   :  { %12273 = vmatprep.subr.mxu0 %v19113_v14 }
 0xd67   :  { %12274 = vmatpush3.msra.mxu0 %v10437_v9 }
 0xd68   :  { %12276 = vmatmul.mubr.msk.f32.vlgmr.msra.gmra.mxu0 %vm94_vm0, %v10441_v49 }
 0xe28   :  { %v10517_v1 = vpop.f32.mrf.mxu0 }
 0xe29   :  { %v10518_v43 = vadd.f32 %v10517_v1, %v10446_v4 }
 0xe2a   :  { %v12277_v39 = vpop.f32.mrf.mxu0 }
 0xe2b   :  { %10521 = vst.msk [vmem:[%s18342_s19] sm:$0xf] %vm2953_vm1, %v10518_v43 }

</bundles_post_ra>
